<compile_context>
chip_gen: v7x
topology: tpu7x:2x2x1
jax: 0.10.0
libtpu: 0.0.40
codegen_flags: <defaults>
</compile_context>

<pallas_src>
import functools

import jax
import jax.numpy as jnp
from jax.experimental import pallas as pl
from jax.experimental.pallas import tpu as pltpu


BN_EPS = 1e-5
VGG_CHANNELS = ((3, 64), (64, 64), (64, 128), (128, 128),
                (128, 256), (256, 256), (256, 512))

_F = 8                      # zero slack rows at the front/back of every flat image
_ACC_BYTES = 128 * 1024     # keep the per-chunk f32 accumulator ~<= 32 vregs


def _round_up(x, m):
    return -(-x // m) * m


def _geom(h, w):
    """Padded flat geometry of an (h, w) image: (wide row stride, flat length)."""
    wp = _round_up(w + 2, 8)            # row stride multiple of 8 -> aligned taps
    return wp, (h + 2) * wp + 2 * _F


def _pick_conv_rows(h, wp, tn, pool):
    """Conv rows per in-kernel chunk: divides h, even when pooling, small acc."""
    cap = max(2 * wp, _ACC_BYTES // (4 * tn))
    step = 2 if pool else 1
    best = min(step, h)
    for d in range(step, h + 1, step):
        if h % d == 0 and d * wp <= cap:
            best = d
    return best


# ------------------------------ Pallas kernel -------------------------------

def _conv_bn_relu_kernel(x_ref, w_ref, s_ref, b_ref, o_ref, *,
                         h, width, wp, wpo, pool, crc, taps):
    """Fused 3x3 conv (s1, p1) + folded-BN scale/bias + ReLU [+ 2x2/s2 maxpool].

    x_ref : (Lin_tot, K) bf16   zero-padded flat image: wide rows of stride wp,
            image content at padded (row 1+i, col 1+j), `_F` zero slack rows
            front and back.
    w_ref : (T, K, tn) bf16     one (K, tn) slab per tap (T=9, or T=1 for the
            pre-gathered K=9*cin first layer).
    s_ref, b_ref : (1, tn) f32  folded BatchNorm scale / bias.
    o_ref : (Lout_tot, tn) bf16 the NEXT layer's zero-padded flat layout,
            written completely (computed interior + exact-zero borders/slack).
    """
    tn = o_ref.shape[-1]
    ho = h // 2 if pool else h
    wo = width // 2 if pool else width
    scale = s_ref[...]
    bias = b_ref[...]

    # exact-zero borders of the next layer's padded layout
    o_ref[pl.ds(0, _F + wpo), :] = jnp.zeros((_F + wpo, tn), o_ref.dtype)
    o_ref[pl.ds(_F + (ho + 1) * wpo, wpo + _F), :] = (
        jnp.zeros((wpo + _F, tn), o_ref.dtype))

    m = crc * wp
    for ci in range(h // crc):
        i0 = ci * crc
        # 3x3 conv as shifted-row MXU matmuls, f32 accumulation
        acc = jnp.zeros((m, tn), jnp.float32)
        for t, off in enumerate(taps):
            acc = acc + jnp.dot(x_ref[pl.ds(_F + i0 * wp + off, m), :], w_ref[t],
                                preferred_element_type=jnp.float32)
        y = jnp.maximum(acc * scale + bias, 0.0)            # fused BN + ReLU
        yr = y.reshape(crc, wp, tn)
        if pool:                                            # fused 2x2/s2 maxpool
            rows = crc // 2
            y2 = yr.reshape(rows, 2, wp, tn)
            rmax = jnp.maximum(y2[:, 0], y2[:, 1])          # (rows, wp, tn)
            body = jnp.stack(
                [jnp.maximum(rmax[:, 2 * c, :], rmax[:, 2 * c + 1, :])
                 for c in range(wo)], axis=1)               # (rows, wo, tn)
            row0 = i0 // 2
        else:
            rows = crc
            body = yr[:, :wo, :]
            row0 = i0
        padded = jnp.concatenate(
            [jnp.zeros((rows, 1, tn), jnp.float32), body,
             jnp.zeros((rows, wpo - 1 - wo, tn), jnp.float32)], axis=1)
        o_ref[pl.ds(_F + (1 + row0) * wpo, rows * wpo), :] = (
            padded.reshape(rows * wpo, tn).astype(o_ref.dtype))


# -------------------------------- wrapper ------------------------------------

def conv_bn_relu_pool(x_flat, w_taps, scale, bias, *, h, width, pool):
    """One VGG layer. x_flat: (N, Lin_tot, K) bf16 padded-flat input; returns
    (N, Lout_tot, Cout) bf16 padded-flat output = the next layer's input."""
    n, lin_tot, k = x_flat.shape
    t, kk, cout = w_taps.shape
    assert kk == k and t in (1, 9)
    wp, lin_expect = _geom(h, width)
    assert lin_tot == lin_expect
    if pool:
        assert h % 2 == 0 and width % 2 == 0
    ho, wo = (h // 2, width // 2) if pool else (h, width)
    wpo, lout_tot = _geom(ho, wo)

    tn = min(cout, 128)                 # Cout tile keeps the f32 acc vreg-resident
    assert cout % tn == 0
    nj = cout // tn
    crc = _pick_conv_rows(h, wp, tn, pool)
    taps = (0,) if t == 1 else tuple(di * wp + dj
                                     for di in range(3) for dj in range(3))

    kernel = functools.partial(_conv_bn_relu_kernel, h=h, width=width, wp=wp,
                               wpo=wpo, pool=pool, crc=crc, taps=taps)
    return pl.pallas_call(
        kernel,
        out_shape=jax.ShapeDtypeStruct((n, lout_tot, cout), jnp.bfloat16),
        grid=(nj, n),
        in_specs=[
            pl.BlockSpec((None, lin_tot, k), lambda j, b: (b, 0, 0)),
            pl.BlockSpec((t, k, tn), lambda j, b: (0, 0, j)),
            pl.BlockSpec((1, tn), lambda j, b: (0, j)),
            pl.BlockSpec((1, tn), lambda j, b: (0, j)),
        ],
        out_specs=pl.BlockSpec((None, lout_tot, tn), lambda j, b: (b, 0, j)),
        compiler_params=pltpu.CompilerParams(
            dimension_semantics=("parallel", "parallel"),
            vmem_limit_bytes=48 * 1024 * 1024),
    )(x_flat, w_taps, scale, bias)


# ----------------------- input packing (first layer only) --------------------

def _to_padded_flat(x_nhwc, h, w):
    """NHWC -> zero-padded flat layout (N, (h+2)*wp + 2*_F, C)."""
    n, _, _, c = x_nhwc.shape
    wp, _ = _geom(h, w)
    xp = jnp.pad(x_nhwc, ((0, 0), (1, 1), (1, wp - w - 1), (0, 0)))
    xf = xp.reshape(n, (h + 2) * wp, c)
    return jnp.pad(xf, ((0, 0), (_F, _F), (0, 0)))


def _gather_taps(x_flat, h, wp):
    """Layer-1 (tiny Cin) tap gather so the kernel runs one K=9*Cin matmul."""
    n, lin_tot, _ = x_flat.shape
    lw = h * wp
    cols = [x_flat[:, _F + di * wp + dj:_F + di * wp + dj + lw, :]
            for di in range(3) for dj in range(3)]
    g = jnp.concatenate(cols, axis=-1)
    return jnp.pad(g, ((0, 0), (_F, lin_tot - _F - lw), (0, 0)))


# --------------------------- parameter construction --------------------------

def init_vgg_params(key, channels=VGG_CHANNELS, dtype=jnp.float32):
    params = []
    for (cin, cout) in channels:
        key, kw_, kb_, kg_, kbe_, km_, kv_ = jax.random.split(key, 7)
        w = jax.random.normal(kw_, (3, 3, cin, cout), dtype) * 0.05
        conv_b = jax.random.normal(kb_, (cout,), dtype) * 0.05
        gamma = jax.random.uniform(kg_, (cout,), dtype, 0.5, 1.5)
        beta = jax.random.normal(kbe_, (cout,), dtype) * 0.1
        r_mean = jax.random.normal(km_, (cout,), dtype) * 0.1
        r_var = jax.random.uniform(kv_, (cout,), dtype, 0.5, 1.5)
        # fold inference-mode BN (and the conv bias) into per-channel scale/bias
        s = gamma / jnp.sqrt(r_var + BN_EPS)
        params.append({"w": w, "scale": s, "bias": (conv_b - r_mean) * s + beta})
    pool_flags = tuple(cin != cout for (cin, cout) in channels)   # static!
    return params, pool_flags


# ------------------------------ full forward ---------------------------------

def make_vgg_forward(pool_flags):
    # pool_flags are static Python structure (not traced).
    @jax.jit
    def fwd(x_nchw, params):
        x = jnp.transpose(x_nchw, (0, 2, 3, 1)).astype(jnp.bfloat16)
        n, h, width, _ = x.shape
        xf = _to_padded_flat(x, h, width)
        for layer, pool in zip(params, pool_flags):
            wgt = layer["w"]
            cin, cout = wgt.shape[2], wgt.shape[3]
            wp, _ = _geom(h, width)
            if 9 * cin <= 128:          # first layer: single K = 9*Cin contraction
                xf = _gather_taps(xf, h, wp)
                wk = wgt.reshape(1, 9 * cin, cout).astype(jnp.bfloat16)
            else:
                wk = wgt.reshape(9, cin, cout).astype(jnp.bfloat16)
            xf = conv_bn_relu_pool(
                xf, wk,
                layer["scale"].reshape(1, cout).astype(jnp.float32),
                layer["bias"].reshape(1, cout).astype(jnp.float32),
                h=h, width=width, pool=pool)
            if pool:
                h, width = h // 2, width // 2
        # unpack the padded flat layout of the last layer
        wp, _ = _geom(h, width)
        c = xf.shape[-1]
        y = xf[:, _F:_F + (h + 2) * wp, :].reshape(n, h + 2, wp, c)
        y = y[:, 1:1 + h, 1:1 + width, :]
        return jnp.transpose(y.astype(jnp.float32), (0, 3, 1, 2))   # NHWC -> NCHW
    return fwd


# pure-JAX reference (same bf16 activations / MXU operands) for a sanity check
def vgg_ref(x_nchw, params, pool_flags):
    x = jnp.transpose(x_nchw, (0, 2, 3, 1)).astype(jnp.bfloat16)
    for layer, pool in zip(params, pool_flags):
        y = jax.lax.conv_general_dilated(
            x, layer["w"].astype(jnp.bfloat16),
            window_strides=(1, 1), padding=((1, 1), (1, 1)),
            dimension_numbers=("NHWC", "HWIO", "NHWC"),
            preferred_element_type=jnp.float32)
        y = jnp.maximum(y * layer["scale"] + layer["bias"], 0.0)
        if pool:
            y = jax.lax.reduce_window(y, -jnp.inf, jax.lax.max,
                                      (1, 2, 2, 1), (1, 2, 2, 1), "VALID")
        x = y.astype(jnp.bfloat16)
    return jnp.transpose(x.astype(jnp.float32), (0, 3, 1, 2))


if __name__ == "__main__":
    key = jax.random.PRNGKey(0)
    kx, kp = jax.random.split(key)

    # small NCHW input consistent with the module (in_channels = 3)
    x = jax.random.normal(kx, (2, 3, 16, 16), jnp.float32)
    params, pool_flags = init_vgg_params(kp)

    vgg_forward = make_vgg_forward(pool_flags)
    out = jax.block_until_ready(vgg_forward(x, params))
    assert out.shape == (2, 512, 1, 1), out.shape

    ref = vgg_ref(x, params, pool_flags)
    err = float(jnp.max(jnp.abs(out - ref)))
    assert jnp.allclose(out, ref, atol=2e-2, rtol=2e-2), err

    print("KERNEL_OK")
</pallas_src>

<mosaic_0001>
module attributes {stable_mosaic.version = 11 : i64} {
  func.func @_conv_bn_relu_kernel(%arg0: i32, %arg1: i32, %arg2: memref<1x448x27xbf16, #tpu.memory_space<vmem>>, %arg3: memref<1x27x64xbf16, #tpu.memory_space<vmem>>, %arg4: memref<1x64xf32, #tpu.memory_space<vmem>>, %arg5: memref<1x64xf32, #tpu.memory_space<vmem>>, %arg6: memref<1x176x64xbf16, #tpu.memory_space<vmem>>) attributes {dimension_semantics = [#tpu.dimension_semantics<parallel>, #tpu.dimension_semantics<parallel>], iteration_bounds = array<i64: 1, 2>, scalar_prefetch = 0 : i64, scratch_operands = 0 : i64, tpu.core_type = #tpu.core_type<tc>, window_params = [{transform_indices = @transform_0, window_bounds = array<i64: 1, 448, 27>}, {transform_indices = @transform_1, window_bounds = array<i64: 1, 27, 64>}, {transform_indices = @transform_2, window_bounds = array<i64: 1, 64>}, {transform_indices = @transform_3, window_bounds = array<i64: 1, 64>}, {transform_indices = @transform_4, window_bounds = array<i64: 1, 176, 64>}]} {
    %c0 = arith.constant 0 : index
    %c0_0 = arith.constant 0 : index
    %0 = vector.load %arg4[%c0, %c0_0] : memref<1x64xf32, #tpu.memory_space<vmem>>, vector<1x64xf32>
    %c0_1 = arith.constant 0 : index
    %c0_2 = arith.constant 0 : index
    %1 = vector.load %arg5[%c0_1, %c0_2] : memref<1x64xf32, #tpu.memory_space<vmem>>, vector<1x64xf32>
    %cst = arith.constant 0.000000e+00 : bf16
    %2 = vector.broadcast %cst : bf16 to vector<24x64xbf16>
    %c0_3 = arith.constant 0 : index
    %c0_4 = arith.constant 0 : index
    %c0_5 = arith.constant 0 : index
    %3 = vector.load %arg6[%c0_3, %c0_4, %c0_5] : memref<1x176x64xbf16, #tpu.memory_space<vmem>>, vector<1x24x64xbf16>
    %4 = vector.shape_cast %3 : vector<1x24x64xbf16> to vector<24x64xbf16>
    %5 = vector.shape_cast %2 : vector<24x64xbf16> to vector<1x24x64xbf16>
    tpu.vector_store %arg6[%c0_3, %c0_4, %c0_5], %5 {strides = array<i32>} : memref<1x176x64xbf16, #tpu.memory_space<vmem>>, vector<1x24x64xbf16>,
    %cst_6 = arith.constant 0.000000e+00 : bf16
    %6 = vector.broadcast %cst_6 : bf16 to vector<24x64xbf16>
    %c0_7 = arith.constant 0 : index
    %c152 = arith.constant 152 : index
    %c0_8 = arith.constant 0 : index
    %7 = vector.load %arg6[%c0_7, %c152, %c0_8] : memref<1x176x64xbf16, #tpu.memory_space<vmem>>, vector<1x24x64xbf16>
    %8 = vector.shape_cast %7 : vector<1x24x64xbf16> to vector<24x64xbf16>
    %9 = vector.shape_cast %6 : vector<24x64xbf16> to vector<1x24x64xbf16>
    tpu.vector_store %arg6[%c0_7, %c152, %c0_8], %9 {strides = array<i32>} : memref<1x176x64xbf16, #tpu.memory_space<vmem>>, vector<1x24x64xbf16>,
    %cst_9 = arith.constant 0.000000e+00 : f32
    %10 = vector.broadcast %cst_9 : f32 to vector<384x64xf32>
    %c0_10 = arith.constant 0 : index
    %c8 = arith.constant 8 : index
    %c0_11 = arith.constant 0 : index
    %11 = vector.load %arg2[%c0_10, %c8, %c0_11] : memref<1x448x27xbf16, #tpu.memory_space<vmem>>, vector<1x384x27xbf16>
    %12 = vector.shape_cast %11 : vector<1x384x27xbf16> to vector<384x27xbf16>
    %c0_12 = arith.constant 0 : index
    %c0_13 = arith.constant 0 : index
    %c0_14 = arith.constant 0 : index
    %13 = vector.load %arg3[%c0_12, %c0_13, %c0_14] : memref<1x27x64xbf16, #tpu.memory_space<vmem>>, vector<1x27x64xbf16>
    %14 = vector.shape_cast %13 : vector<1x27x64xbf16> to vector<27x64xbf16>
    %cst_15 = arith.constant dense<0.000000e+00> : vector<384x64xf32>
    %15 = tpu.matmul %12, %14, %cst_15 {dimension_numbers = #tpu.dot_dimension_numbers<[1], [0], [0], [1], [0, 0, 1, 1], [], []>} : vector<384x27xbf16>, vector<27x64xbf16>, vector<384x64xf32> -> vector<384x64xf32>
    %16 = arith.addf %10, %15 : vector<384x64xf32>
    %17 = vector.broadcast %0 : vector<1x64xf32> to vector<384x64xf32>
    %18 = arith.mulf %16, %17 : vector<384x64xf32>
    %19 = vector.broadcast %1 : vector<1x64xf32> to vector<384x64xf32>
    %20 = arith.addf %18, %19 : vector<384x64xf32>
    %cst_16 = arith.constant 0.000000e+00 : f32
    %21 = vector.broadcast %cst_16 : f32 to vector<384x64xf32>
    %22 = arith.maximumf %20, %21 : vector<384x64xf32>
    %23 = vector.shape_cast %22 : vector<384x64xf32> to vector<16x24x64xf32>
    %24 = vector.shape_cast %23 : vector<16x24x64xf32> to vector<8x2x24x64xf32>
    %25 = vector.extract_strided_slice %24 {offsets = [0, 0, 0, 0], sizes = [8, 1, 24, 64], strides = [1, 1, 1, 1]} : vector<8x2x24x64xf32> to vector<8x1x24x64xf32>
    %26 = vector.shape_cast %25 : vector<8x1x24x64xf32> to vector<8x24x64xf32>
    %27 = vector.extract_strided_slice %24 {offsets = [0, 1, 0, 0], sizes = [8, 1, 24, 64], strides = [1, 1, 1, 1]} : vector<8x2x24x64xf32> to vector<8x1x24x64xf32>
    %28 = vector.shape_cast %27 : vector<8x1x24x64xf32> to vector<8x24x64xf32>
    %29 = arith.maximumf %26, %28 : vector<8x24x64xf32>
    %30 = vector.extract_strided_slice %29 {offsets = [0, 0, 0], sizes = [8, 1, 64], strides = [1, 1, 1]} : vector<8x24x64xf32> to vector<8x1x64xf32>
    %31 = vector.shape_cast %30 : vector<8x1x64xf32> to vector<8x64xf32>
    %32 = vector.extract_strided_slice %29 {offsets = [0, 1, 0], sizes = [8, 1, 64], strides = [1, 1, 1]} : vector<8x24x64xf32> to vector<8x1x64xf32>
    %33 = vector.shape_cast %32 : vector<8x1x64xf32> to vector<8x64xf32>
    %34 = arith.maximumf %31, %33 : vector<8x64xf32>
    %35 = vector.extract_strided_slice %29 {offsets = [0, 2, 0], sizes = [8, 1, 64], strides = [1, 1, 1]} : vector<8x24x64xf32> to vector<8x1x64xf32>
    %36 = vector.shape_cast %35 : vector<8x1x64xf32> to vector<8x64xf32>
    %37 = vector.extract_strided_slice %29 {offsets = [0, 3, 0], sizes = [8, 1, 64], strides = [1, 1, 1]} : vector<8x24x64xf32> to vector<8x1x64xf32>
    %38 = vector.shape_cast %37 : vector<8x1x64xf32> to vector<8x64xf32>
    %39 = arith.maximumf %36, %38 : vector<8x64xf32>
    %40 = vector.extract_strided_slice %29 {offsets = [0, 4, 0], sizes = [8, 1, 64], strides = [1, 1, 1]} : vector<8x24x64xf32> to vector<8x1x64xf32>
    %41 = vector.shape_cast %40 : vector<8x1x64xf32> to vector<8x64xf32>
    %42 = vector.extract_strided_slice %29 {offsets = [0, 5, 0], sizes = [8, 1, 64], strides = [1, 1, 1]} : vector<8x24x64xf32> to vector<8x1x64xf32>
    %43 = vector.shape_cast %42 : vector<8x1x64xf32> to vector<8x64xf32>
    %44 = arith.maximumf %41, %43 : vector<8x64xf32>
    %45 = vector.extract_strided_slice %29 {offsets = [0, 6, 0], sizes = [8, 1, 64], strides = [1, 1, 1]} : vector<8x24x64xf32> to vector<8x1x64xf32>
    %46 = vector.shape_cast %45 : vector<8x1x64xf32> to vector<8x64xf32>
    %47 = vector.extract_strided_slice %29 {offsets = [0, 7, 0], sizes = [8, 1, 64], strides = [1, 1, 1]} : vector<8x24x64xf32> to vector<8x1x64xf32>
    %48 = vector.shape_cast %47 : vector<8x1x64xf32> to vector<8x64xf32>
    %49 = arith.maximumf %46, %48 : vector<8x64xf32>
    %50 = vector.extract_strided_slice %29 {offsets = [0, 8, 0], sizes = [8, 1, 64], strides = [1, 1, 1]} : vector<8x24x64xf32> to vector<8x1x64xf32>
    %51 = vector.shape_cast %50 : vector<8x1x64xf32> to vector<8x64xf32>
    %52 = vector.extract_strided_slice %29 {offsets = [0, 9, 0], sizes = [8, 1, 64], strides = [1, 1, 1]} : vector<8x24x64xf32> to vector<8x1x64xf32>
    %53 = vector.shape_cast %52 : vector<8x1x64xf32> to vector<8x64xf32>
    %54 = arith.maximumf %51, %53 : vector<8x64xf32>
    %55 = vector.extract_strided_slice %29 {offsets = [0, 10, 0], sizes = [8, 1, 64], strides = [1, 1, 1]} : vector<8x24x64xf32> to vector<8x1x64xf32>
    %56 = vector.shape_cast %55 : vector<8x1x64xf32> to vector<8x64xf32>
    %57 = vector.extract_strided_slice %29 {offsets = [0, 11, 0], sizes = [8, 1, 64], strides = [1, 1, 1]} : vector<8x24x64xf32> to vector<8x1x64xf32>
    %58 = vector.shape_cast %57 : vector<8x1x64xf32> to vector<8x64xf32>
    %59 = arith.maximumf %56, %58 : vector<8x64xf32>
    %60 = vector.extract_strided_slice %29 {offsets = [0, 12, 0], sizes = [8, 1, 64], strides = [1, 1, 1]} : vector<8x24x64xf32> to vector<8x1x64xf32>
    %61 = vector.shape_cast %60 : vector<8x1x64xf32> to vector<8x64xf32>
    %62 = vector.extract_strided_slice %29 {offsets = [0, 13, 0], sizes = [8, 1, 64], strides = [1, 1, 1]} : vector<8x24x64xf32> to vector<8x1x64xf32>
    %63 = vector.shape_cast %62 : vector<8x1x64xf32> to vector<8x64xf32>
    %64 = arith.maximumf %61, %63 : vector<8x64xf32>
    %65 = vector.extract_strided_slice %29 {offsets = [0, 14, 0], sizes = [8, 1, 64], strides = [1, 1, 1]} : vector<8x24x64xf32> to vector<8x1x64xf32>
    %66 = vector.shape_cast %65 : vector<8x1x64xf32> to vector<8x64xf32>
    %67 = vector.extract_strided_slice %29 {offsets = [0, 15, 0], sizes = [8, 1, 64], strides = [1, 1, 1]} : vector<8x24x64xf32> to vector<8x1x64xf32>
    %68 = vector.shape_cast %67 : vector<8x1x64xf32> to vector<8x64xf32>
    %69 = arith.maximumf %66, %68 : vector<8x64xf32>
    %70 = vector.shape_cast %34 : vector<8x64xf32> to vector<8x1x64xf32>
    %71 = vector.shape_cast %39 : vector<8x64xf32> to vector<8x1x64xf32>
    %72 = vector.shape_cast %44 : vector<8x64xf32> to vector<8x1x64xf32>
    %73 = vector.shape_cast %49 : vector<8x64xf32> to vector<8x1x64xf32>
    %74 = vector.shape_cast %54 : vector<8x64xf32> to vector<8x1x64xf32>
    %75 = vector.shape_cast %59 : vector<8x64xf32> to vector<8x1x64xf32>
    %76 = vector.shape_cast %64 : vector<8x64xf32> to vector<8x1x64xf32>
    %77 = vector.shape_cast %69 : vector<8x64xf32> to vector<8x1x64xf32>
    %78 = tpu.concatenate %70, %71, %72, %73, %74, %75, %76, %77 in 1 : vector<8x1x64xf32>, vector<8x1x64xf32>, vector<8x1x64xf32>, vector<8x1x64xf32>, vector<8x1x64xf32>, vector<8x1x64xf32>, vector<8x1x64xf32>, vector<8x1x64xf32> -> vector<8x8x64xf32>
    %cst_17 = arith.constant 0.000000e+00 : f32
    %79 = vector.broadcast %cst_17 : f32 to vector<8x1x64xf32>
    %cst_18 = arith.constant 0.000000e+00 : f32
    %80 = vector.broadcast %cst_18 : f32 to vector<8x7x64xf32>
    %81 = tpu.concatenate %79, %78, %80 in 1 : vector<8x1x64xf32>, vector<8x8x64xf32>, vector<8x7x64xf32> -> vector<8x16x64xf32>
    %82 = vector.shape_cast %81 : vector<8x16x64xf32> to vector<128x64xf32>
    %83 = arith.truncf %82 : vector<128x64xf32> to vector<128x64xbf16>
    %c0_19 = arith.constant 0 : index
    %c24 = arith.constant 24 : index
    %c0_20 = arith.constant 0 : index
    %84 = vector.load %arg6[%c0_19, %c24, %c0_20] : memref<1x176x64xbf16, #tpu.memory_space<vmem>>, vector<1x128x64xbf16>
    %85 = vector.shape_cast %84 : vector<1x128x64xbf16> to vector<128x64xbf16>
    %86 = vector.shape_cast %83 : vector<128x64xbf16> to vector<1x128x64xbf16>
    tpu.vector_store %arg6[%c0_19, %c24, %c0_20], %86 {strides = array<i32>} : memref<1x176x64xbf16, #tpu.memory_space<vmem>>, vector<1x128x64xbf16>,
    return
  }
  func.func @transform_0(%arg0: i32, %arg1: i32) -> (i32, i32, i32) {
    %c0_i32 = arith.constant 0 : i32
    %c0_i32_0 = arith.constant 0 : i32
    %c0_i32_1 = arith.constant 0 : i32
    return %arg1, %c0_i32, %c0_i32_0 : i32, i32, i32
  }
  func.func @transform_1(%arg0: i32, %arg1: i32) -> (i32, i32, i32) {
    %c0_i32 = arith.constant 0 : i32
    %c0_i32_0 = arith.constant 0 : i32
    %c0_i32_1 = arith.constant 0 : i32
    return %c0_i32, %c0_i32_0, %arg0 : i32, i32, i32
  }
  func.func @transform_2(%arg0: i32, %arg1: i32) -> (i32, i32) {
    %c0_i32 = arith.constant 0 : i32
    %c0_i32_0 = arith.constant 0 : i32
    return %c0_i32, %arg0 : i32, i32
  }
  func.func @transform_3(%arg0: i32, %arg1: i32) -> (i32, i32) {
    %c0_i32 = arith.constant 0 : i32
    %c0_i32_0 = arith.constant 0 : i32
    return %c0_i32, %arg0 : i32, i32
  }
  func.func @transform_4(%arg0: i32, %arg1: i32) -> (i32, i32, i32) {
    %c0_i32 = arith.constant 0 : i32
    %c0_i32_0 = arith.constant 0 : i32
    return %arg1, %c0_i32, %arg0 : i32, i32, i32
  }
}

module attributes {stable_mosaic.version = 11 : i64} {
  func.func @_conv_bn_relu_kernel(%arg0: i32, %arg1: i32, %arg2: memref<1x176x64xbf16, #tpu.memory_space<vmem>>, %arg3: memref<9x64x64xbf16, #tpu.memory_space<vmem>>, %arg4: memref<1x64xf32, #tpu.memory_space<vmem>>, %arg5: memref<1x64xf32, #tpu.memory_space<vmem>>, %arg6: memref<1x176x64xbf16, #tpu.memory_space<vmem>>) attributes {dimension_semantics = [#tpu.dimension_semantics<parallel>, #tpu.dimension_semantics<parallel>], iteration_bounds = array<i64: 1, 2>, scalar_prefetch = 0 : i64, scratch_operands = 0 : i64, tpu.core_type = #tpu.core_type<tc>, window_params = [{transform_indices = @transform_0, window_bounds = array<i64: 1, 176, 64>}, {transform_indices = @transform_1, window_bounds = array<i64: 9, 64, 64>}, {transform_indices = @transform_2, window_bounds = array<i64: 1, 64>}, {transform_indices = @transform_3, window_bounds = array<i64: 1, 64>}, {transform_indices = @transform_4, window_bounds = array<i64: 1, 176, 64>}]} {
    %c0 = arith.constant 0 : index
    %c0_0 = arith.constant 0 : index
    %0 = vector.load %arg4[%c0, %c0_0] : memref<1x64xf32, #tpu.memory_space<vmem>>, vector<1x64xf32>
    %c0_1 = arith.constant 0 : index
    %c0_2 = arith.constant 0 : index
    %1 = vector.load %arg5[%c0_1, %c0_2] : memref<1x64xf32, #tpu.memory_space<vmem>>, vector<1x64xf32>
    %cst = arith.constant 0.000000e+00 : bf16
    %2 = vector.broadcast %cst : bf16 to vector<24x64xbf16>
    %c0_3 = arith.constant 0 : index
    %c0_4 = arith.constant 0 : index
    %c0_5 = arith.constant 0 : index
    %3 = vector.load %arg6[%c0_3, %c0_4, %c0_5] : memref<1x176x64xbf16, #tpu.memory_space<vmem>>, vector<1x24x64xbf16>
    %4 = vector.shape_cast %3 : vector<1x24x64xbf16> to vector<24x64xbf16>
    %5 = vector.shape_cast %2 : vector<24x64xbf16> to vector<1x24x64xbf16>
    tpu.vector_store %arg6[%c0_3, %c0_4, %c0_5], %5 {strides = array<i32>} : memref<1x176x64xbf16, #tpu.memory_space<vmem>>, vector<1x24x64xbf16>,
    %cst_6 = arith.constant 0.000000e+00 : bf16
    %6 = vector.broadcast %cst_6 : bf16 to vector<24x64xbf16>
    %c0_7 = arith.constant 0 : index
    %c152 = arith.constant 152 : index
    %c0_8 = arith.constant 0 : index
    %7 = vector.load %arg6[%c0_7, %c152, %c0_8] : memref<1x176x64xbf16, #tpu.memory_space<vmem>>, vector<1x24x64xbf16>
    %8 = vector.shape_cast %7 : vector<1x24x64xbf16> to vector<24x64xbf16>
    %9 = vector.shape_cast %6 : vector<24x64xbf16> to vector<1x24x64xbf16>
    tpu.vector_store %arg6[%c0_7, %c152, %c0_8], %9 {strides = array<i32>} : memref<1x176x64xbf16, #tpu.memory_space<vmem>>, vector<1x24x64xbf16>,
    %cst_9 = arith.constant 0.000000e+00 : f32
    %10 = vector.broadcast %cst_9 : f32 to vector<128x64xf32>
    %c0_10 = arith.constant 0 : index
    %c8 = arith.constant 8 : index
    %c0_11 = arith.constant 0 : index
    %11 = vector.load %arg2[%c0_10, %c8, %c0_11] : memref<1x176x64xbf16, #tpu.memory_space<vmem>>, vector<1x128x64xbf16>
    %12 = vector.shape_cast %11 : vector<1x128x64xbf16> to vector<128x64xbf16>
    %c0_12 = arith.constant 0 : index
    %c0_13 = arith.constant 0 : index
    %c0_14 = arith.constant 0 : index
    %13 = vector.load %arg3[%c0_12, %c0_13, %c0_14] : memref<9x64x64xbf16, #tpu.memory_space<vmem>>, vector<1x64x64xbf16>
    %14 = vector.shape_cast %13 : vector<1x64x64xbf16> to vector<64x64xbf16>
    %cst_15 = arith.constant dense<0.000000e+00> : vector<128x64xf32>
    %15 = tpu.matmul %12, %14, %cst_15 {dimension_numbers = #tpu.dot_dimension_numbers<[1], [0], [0], [1], [0, 0, 1, 1], [], []>} : vector<128x64xbf16>, vector<64x64xbf16>, vector<128x64xf32> -> vector<128x64xf32>
    %16 = arith.addf %10, %15 : vector<128x64xf32>
    %c0_16 = arith.constant 0 : index
    %c9 = arith.constant 9 : index
    %c0_17 = arith.constant 0 : index
    %17 = vector.load %arg2[%c0_16, %c9, %c0_17] : memref<1x176x64xbf16, #tpu.memory_space<vmem>>, vector<1x128x64xbf16>
    %18 = vector.shape_cast %17 : vector<1x128x64xbf16> to vector<128x64xbf16>
    %c1 = arith.constant 1 : index
    %c0_18 = arith.constant 0 : index
    %c0_19 = arith.constant 0 : index
    %19 = vector.load %arg3[%c1, %c0_18, %c0_19] : memref<9x64x64xbf16, #tpu.memory_space<vmem>>, vector<1x64x64xbf16>
    %20 = vector.shape_cast %19 : vector<1x64x64xbf16> to vector<64x64xbf16>
    %cst_20 = arith.constant dense<0.000000e+00> : vector<128x64xf32>
    %21 = tpu.matmul %18, %20, %cst_20 {dimension_numbers = #tpu.dot_dimension_numbers<[1], [0], [0], [1], [0, 0, 1, 1], [], []>} : vector<128x64xbf16>, vector<64x64xbf16>, vector<128x64xf32> -> vector<128x64xf32>
    %22 = arith.addf %16, %21 : vector<128x64xf32>
    %c0_21 = arith.constant 0 : index
    %c10 = arith.constant 10 : index
    %c0_22 = arith.constant 0 : index
    %23 = vector.load %arg2[%c0_21, %c10, %c0_22] : memref<1x176x64xbf16, #tpu.memory_space<vmem>>, vector<1x128x64xbf16>
    %24 = vector.shape_cast %23 : vector<1x128x64xbf16> to vector<128x64xbf16>
    %c2 = arith.constant 2 : index
    %c0_23 = arith.constant 0 : index
    %c0_24 = arith.constant 0 : index
    %25 = vector.load %arg3[%c2, %c0_23, %c0_24] : memref<9x64x64xbf16, #tpu.memory_space<vmem>>, vector<1x64x64xbf16>
    %26 = vector.shape_cast %25 : vector<1x64x64xbf16> to vector<64x64xbf16>
    %cst_25 = arith.constant dense<0.000000e+00> : vector<128x64xf32>
    %27 = tpu.matmul %24, %26, %cst_25 {dimension_numbers = #tpu.dot_dimension_numbers<[1], [0], [0], [1], [0, 0, 1, 1], [], []>} : vector<128x64xbf16>, vector<64x64xbf16>, vector<128x64xf32> -> vector<128x64xf32>
    %28 = arith.addf %22, %27 : vector<128x64xf32>
    %c0_26 = arith.constant 0 : index
    %c24 = arith.constant 24 : index
    %c0_27 = arith.constant 0 : index
    %29 = vector.load %arg2[%c0_26, %c24, %c0_27] : memref<1x176x64xbf16, #tpu.memory_space<vmem>>, vector<1x128x64xbf16>
    %30 = vector.shape_cast %29 : vector<1x128x64xbf16> to vector<128x64xbf16>
    %c3 = arith.constant 3 : index
    %c0_28 = arith.constant 0 : index
    %c0_29 = arith.constant 0 : index
    %31 = vector.load %arg3[%c3, %c0_28, %c0_29] : memref<9x64x64xbf16, #tpu.memory_space<vmem>>, vector<1x64x64xbf16>
    %32 = vector.shape_cast %31 : vector<1x64x64xbf16> to vector<64x64xbf16>
    %cst_30 = arith.constant dense<0.000000e+00> : vector<128x64xf32>
    %33 = tpu.matmul %30, %32, %cst_30 {dimension_numbers = #tpu.dot_dimension_numbers<[1], [0], [0], [1], [0, 0, 1, 1], [], []>} : vector<128x64xbf16>, vector<64x64xbf16>, vector<128x64xf32> -> vector<128x64xf32>
    %34 = arith.addf %28, %33 : vector<128x64xf32>
    %c0_31 = arith.constant 0 : index
    %c25 = arith.constant 25 : index
    %c0_32 = arith.constant 0 : index
    %35 = vector.load %arg2[%c0_31, %c25, %c0_32] : memref<1x176x64xbf16, #tpu.memory_space<vmem>>, vector<1x128x64xbf16>
    %36 = vector.shape_cast %35 : vector<1x128x64xbf16> to vector<128x64xbf16>
    %c4 = arith.constant 4 : index
    %c0_33 = arith.constant 0 : index
    %c0_34 = arith.constant 0 : index
    %37 = vector.load %arg3[%c4, %c0_33, %c0_34] : memref<9x64x64xbf16, #tpu.memory_space<vmem>>, vector<1x64x64xbf16>
    %38 = vector.shape_cast %37 : vector<1x64x64xbf16> to vector<64x64xbf16>
    %cst_35 = arith.constant dense<0.000000e+00> : vector<128x64xf32>
    %39 = tpu.matmul %36, %38, %cst_35 {dimension_numbers = #tpu.dot_dimension_numbers<[1], [0], [0], [1], [0, 0, 1, 1], [], []>} : vector<128x64xbf16>, vector<64x64xbf16>, vector<128x64xf32> -> vector<128x64xf32>
    %40 = arith.addf %34, %39 : vector<128x64xf32>
    %c0_36 = arith.constant 0 : index
    %c26 = arith.constant 26 : index
    %c0_37 = arith.constant 0 : index
    %41 = vector.load %arg2[%c0_36, %c26, %c0_37] : memref<1x176x64xbf16, #tpu.memory_space<vmem>>, vector<1x128x64xbf16>
    %42 = vector.shape_cast %41 : vector<1x128x64xbf16> to vector<128x64xbf16>
    %c5 = arith.constant 5 : index
    %c0_38 = arith.constant 0 : index
    %c0_39 = arith.constant 0 : index
    %43 = vector.load %arg3[%c5, %c0_38, %c0_39] : memref<9x64x64xbf16, #tpu.memory_space<vmem>>, vector<1x64x64xbf16>
    %44 = vector.shape_cast %43 : vector<1x64x64xbf16> to vector<64x64xbf16>
    %cst_40 = arith.constant dense<0.000000e+00> : vector<128x64xf32>
    %45 = tpu.matmul %42, %44, %cst_40 {dimension_numbers = #tpu.dot_dimension_numbers<[1], [0], [0], [1], [0, 0, 1, 1], [], []>} : vector<128x64xbf16>, vector<64x64xbf16>, vector<128x64xf32> -> vector<128x64xf32>
    %46 = arith.addf %40, %45 : vector<128x64xf32>
    %c0_41 = arith.constant 0 : index
    %c40 = arith.constant 40 : index
    %c0_42 = arith.constant 0 : index
    %47 = vector.load %arg2[%c0_41, %c40, %c0_42] : memref<1x176x64xbf16, #tpu.memory_space<vmem>>, vector<1x128x64xbf16>
    %48 = vector.shape_cast %47 : vector<1x128x64xbf16> to vector<128x64xbf16>
    %c6 = arith.constant 6 : index
    %c0_43 = arith.constant 0 : index
    %c0_44 = arith.constant 0 : index
    %49 = vector.load %arg3[%c6, %c0_43, %c0_44] : memref<9x64x64xbf16, #tpu.memory_space<vmem>>, vector<1x64x64xbf16>
    %50 = vector.shape_cast %49 : vector<1x64x64xbf16> to vector<64x64xbf16>
    %cst_45 = arith.constant dense<0.000000e+00> : vector<128x64xf32>
    %51 = tpu.matmul %48, %50, %cst_45 {dimension_numbers = #tpu.dot_dimension_numbers<[1], [0], [0], [1], [0, 0, 1, 1], [], []>} : vector<128x64xbf16>, vector<64x64xbf16>, vector<128x64xf32> -> vector<128x64xf32>
    %52 = arith.addf %46, %51 : vector<128x64xf32>
    %c0_46 = arith.constant 0 : index
    %c41 = arith.constant 41 : index
    %c0_47 = arith.constant 0 : index
    %53 = vector.load %arg2[%c0_46, %c41, %c0_47] : memref<1x176x64xbf16, #tpu.memory_space<vmem>>, vector<1x128x64xbf16>
    %54 = vector.shape_cast %53 : vector<1x128x64xbf16> to vector<128x64xbf16>
    %c7 = arith.constant 7 : index
    %c0_48 = arith.constant 0 : index
    %c0_49 = arith.constant 0 : index
    %55 = vector.load %arg3[%c7, %c0_48, %c0_49] : memref<9x64x64xbf16, #tpu.memory_space<vmem>>, vector<1x64x64xbf16>
    %56 = vector.shape_cast %55 : vector<1x64x64xbf16> to vector<64x64xbf16>
    %cst_50 = arith.constant dense<0.000000e+00> : vector<128x64xf32>
    %57 = tpu.matmul %54, %56, %cst_50 {dimension_numbers = #tpu.dot_dimension_numbers<[1], [0], [0], [1], [0, 0, 1, 1], [], []>} : vector<128x64xbf16>, vector<64x64xbf16>, vector<128x64xf32> -> vector<128x64xf32>
    %58 = arith.addf %52, %57 : vector<128x64xf32>
    %c0_51 = arith.constant 0 : index
    %c42 = arith.constant 42 : index
    %c0_52 = arith.constant 0 : index
    %59 = vector.load %arg2[%c0_51, %c42, %c0_52] : memref<1x176x64xbf16, #tpu.memory_space<vmem>>, vector<1x128x64xbf16>
    %60 = vector.shape_cast %59 : vector<1x128x64xbf16> to vector<128x64xbf16>
    %c8_53 = arith.constant 8 : index
    %c0_54 = arith.constant 0 : index
    %c0_55 = arith.constant 0 : index
    %61 = vector.load %arg3[%c8_53, %c0_54, %c0_55] : memref<9x64x64xbf16, #tpu.memory_space<vmem>>, vector<1x64x64xbf16>
    %62 = vector.shape_cast %61 : vector<1x64x64xbf16> to vector<64x64xbf16>
    %cst_56 = arith.constant dense<0.000000e+00> : vector<128x64xf32>
    %63 = tpu.matmul %60, %62, %cst_56 {dimension_numbers = #tpu.dot_dimension_numbers<[1], [0], [0], [1], [0, 0, 1, 1], [], []>} : vector<128x64xbf16>, vector<64x64xbf16>, vector<128x64xf32> -> vector<128x64xf32>
    %64 = arith.addf %58, %63 : vector<128x64xf32>
    %65 = vector.broadcast %0 : vector<1x64xf32> to vector<128x64xf32>
    %66 = arith.mulf %64, %65 : vector<128x64xf32>
    %67 = vector.broadcast %1 : vector<1x64xf32> to vector<128x64xf32>
    %68 = arith.addf %66, %67 : vector<128x64xf32>
    %cst_57 = arith.constant 0.000000e+00 : f32
    %69 = vector.broadcast %cst_57 : f32 to vector<128x64xf32>
    %70 = arith.maximumf %68, %69 : vector<128x64xf32>
    %71 = vector.shape_cast %70 : vector<128x64xf32> to vector<8x16x64xf32>
    %72 = vector.extract_strided_slice %71 {offsets = [0, 0, 0], sizes = [8, 8, 64], strides = [1, 1, 1]} : vector<8x16x64xf32> to vector<8x8x64xf32>
    %cst_58 = arith.constant 0.000000e+00 : f32
    %73 = vector.broadcast %cst_58 : f32 to vector<8x1x64xf32>
    %cst_59 = arith.constant 0.000000e+00 : f32
    %74 = vector.broadcast %cst_59 : f32 to vector<8x7x64xf32>
    %75 = tpu.concatenate %73, %72, %74 in 1 : vector<8x1x64xf32>, vector<8x8x64xf32>, vector<8x7x64xf32> -> vector<8x16x64xf32>
    %76 = vector.shape_cast %75 : vector<8x16x64xf32> to vector<128x64xf32>
    %77 = arith.truncf %76 : vector<128x64xf32> to vector<128x64xbf16>
    %c0_60 = arith.constant 0 : index
    %c24_61 = arith.constant 24 : index
    %c0_62 = arith.constant 0 : index
    %78 = vector.load %arg6[%c0_60, %c24_61, %c0_62] : memref<1x176x64xbf16, #tpu.memory_space<vmem>>, vector<1x128x64xbf16>
    %79 = vector.shape_cast %78 : vector<1x128x64xbf16> to vector<128x64xbf16>
    %80 = vector.shape_cast %77 : vector<128x64xbf16> to vector<1x128x64xbf16>
    tpu.vector_store %arg6[%c0_60, %c24_61, %c0_62], %80 {strides = array<i32>} : memref<1x176x64xbf16, #tpu.memory_space<vmem>>, vector<1x128x64xbf16>,
    return
  }
  func.func @transform_0(%arg0: i32, %arg1: i32) -> (i32, i32, i32) {
    %c0_i32 = arith.constant 0 : i32
    %c0_i32_0 = arith.constant 0 : i32
    %c0_i32_1 = arith.constant 0 : i32
    return %arg1, %c0_i32, %c0_i32_0 : i32, i32, i32
  }
  func.func @transform_1(%arg0: i32, %arg1: i32) -> (i32, i32, i32) {
    %c0_i32 = arith.constant 0 : i32
    %c0_i32_0 = arith.constant 0 : i32
    %c0_i32_1 = arith.constant 0 : i32
    return %c0_i32, %c0_i32_0, %arg0 : i32, i32, i32
  }
  func.func @transform_2(%arg0: i32, %arg1: i32) -> (i32, i32) {
    %c0_i32 = arith.constant 0 : i32
    %c0_i32_0 = arith.constant 0 : i32
    return %c0_i32, %arg0 : i32, i32
  }
  func.func @transform_3(%arg0: i32, %arg1: i32) -> (i32, i32) {
    %c0_i32 = arith.constant 0 : i32
    %c0_i32_0 = arith.constant 0 : i32
    return %c0_i32, %arg0 : i32, i32
  }
  func.func @transform_4(%arg0: i32, %arg1: i32) -> (i32, i32, i32) {
    %c0_i32 = arith.constant 0 : i32
    %c0_i32_0 = arith.constant 0 : i32
    return %arg1, %c0_i32, %arg0 : i32, i32, i32
  }
}

module attributes {stable_mosaic.version = 11 : i64} {
  func.func @_conv_bn_relu_kernel(%arg0: i32, %arg1: i32, %arg2: memref<1x176x64xbf16, #tpu.memory_space<vmem>>, %arg3: memref<9x64x128xbf16, #tpu.memory_space<vmem>>, %arg4: memref<1x128xf32, #tpu.memory_space<vmem>>, %arg5: memref<1x128xf32, #tpu.memory_space<vmem>>, %arg6: memref<1x64x128xbf16, #tpu.memory_space<vmem>>) attributes {dimension_semantics = [#tpu.dimension_semantics<parallel>, #tpu.dimension_semantics<parallel>], iteration_bounds = array<i64: 1, 2>, scalar_prefetch = 0 : i64, scratch_operands = 0 : i64, tpu.core_type = #tpu.core_type<tc>, window_params = [{transform_indices = @transform_0, window_bounds = array<i64: 1, 176, 64>}, {transform_indices = @transform_1, window_bounds = array<i64: 9, 64, 128>}, {transform_indices = @transform_2, window_bounds = array<i64: 1, 128>}, {transform_indices = @transform_3, window_bounds = array<i64: 1, 128>}, {transform_indices = @transform_4, window_bounds = array<i64: 1, 64, 128>}]} {
    %c0 = arith.constant 0 : index
    %c0_0 = arith.constant 0 : index
    %0 = vector.load %arg4[%c0, %c0_0] : memref<1x128xf32, #tpu.memory_space<vmem>>, vector<1x128xf32>
    %c0_1 = arith.constant 0 : index
    %c0_2 = arith.constant 0 : index
    %1 = vector.load %arg5[%c0_1, %c0_2] : memref<1x128xf32, #tpu.memory_space<vmem>>, vector<1x128xf32>
    %cst = arith.constant 0.000000e+00 : bf16
    %2 = vector.broadcast %cst : bf16 to vector<16x128xbf16>
    %c0_3 = arith.constant 0 : index
    %c0_4 = arith.constant 0 : index
    %c0_5 = arith.constant 0 : index
    %3 = vector.load %arg6[%c0_3, %c0_4, %c0_5] : memref<1x64x128xbf16, #tpu.memory_space<vmem>>, vector<1x16x128xbf16>
    %4 = vector.shape_cast %3 : vector<1x16x128xbf16> to vector<16x128xbf16>
    %5 = vector.shape_cast %2 : vector<16x128xbf16> to vector<1x16x128xbf16>
    tpu.vector_store %arg6[%c0_3, %c0_4, %c0_5], %5 {strides = array<i32>} : memref<1x64x128xbf16, #tpu.memory_space<vmem>>, vector<1x16x128xbf16>,
    %cst_6 = arith.constant 0.000000e+00 : bf16
    %6 = vector.broadcast %cst_6 : bf16 to vector<16x128xbf16>
    %c0_7 = arith.constant 0 : index
    %c48 = arith.constant 48 : index
    %c0_8 = arith.constant 0 : index
    %7 = vector.load %arg6[%c0_7, %c48, %c0_8] : memref<1x64x128xbf16, #tpu.memory_space<vmem>>, vector<1x16x128xbf16>
    %8 = vector.shape_cast %7 : vector<1x16x128xbf16> to vector<16x128xbf16>
    %9 = vector.shape_cast %6 : vector<16x128xbf16> to vector<1x16x128xbf16>
    tpu.vector_store %arg6[%c0_7, %c48, %c0_8], %9 {strides = array<i32>} : memref<1x64x128xbf16, #tpu.memory_space<vmem>>, vector<1x16x128xbf16>,
    %cst_9 = arith.constant 0.000000e+00 : f32
    %10 = vector.broadcast %cst_9 : f32 to vector<128x128xf32>
    %c0_10 = arith.constant 0 : index
    %c8 = arith.constant 8 : index
    %c0_11 = arith.constant 0 : index
    %11 = vector.load %arg2[%c0_10, %c8, %c0_11] : memref<1x176x64xbf16, #tpu.memory_space<vmem>>, vector<1x128x64xbf16>
    %12 = vector.shape_cast %11 : vector<1x128x64xbf16> to vector<128x64xbf16>
    %c0_12 = arith.constant 0 : index
    %c0_13 = arith.constant 0 : index
    %c0_14 = arith.constant 0 : index
    %13 = vector.load %arg3[%c0_12, %c0_13, %c0_14] : memref<9x64x128xbf16, #tpu.memory_space<vmem>>, vector<1x64x128xbf16>
    %14 = vector.shape_cast %13 : vector<1x64x128xbf16> to vector<64x128xbf16>
    %cst_15 = arith.constant dense<0.000000e+00> : vector<128x128xf32>
    %15 = tpu.matmul %12, %14, %cst_15 {dimension_numbers = #tpu.dot_dimension_numbers<[1], [0], [0], [1], [0, 0, 1, 1], [], []>} : vector<128x64xbf16>, vector<64x128xbf16>, vector<128x128xf32> -> vector<128x128xf32>
    %16 = arith.addf %10, %15 : vector<128x128xf32>
    %c0_16 = arith.constant 0 : index
    %c9 = arith.constant 9 : index
    %c0_17 = arith.constant 0 : index
    %17 = vector.load %arg2[%c0_16, %c9, %c0_17] : memref<1x176x64xbf16, #tpu.memory_space<vmem>>, vector<1x128x64xbf16>
    %18 = vector.shape_cast %17 : vector<1x128x64xbf16> to vector<128x64xbf16>
    %c1 = arith.constant 1 : index
    %c0_18 = arith.constant 0 : index
    %c0_19 = arith.constant 0 : index
    %19 = vector.load %arg3[%c1, %c0_18, %c0_19] : memref<9x64x128xbf16, #tpu.memory_space<vmem>>, vector<1x64x128xbf16>
    %20 = vector.shape_cast %19 : vector<1x64x128xbf16> to vector<64x128xbf16>
    %cst_20 = arith.constant dense<0.000000e+00> : vector<128x128xf32>
    %21 = tpu.matmul %18, %20, %cst_20 {dimension_numbers = #tpu.dot_dimension_numbers<[1], [0], [0], [1], [0, 0, 1, 1], [], []>} : vector<128x64xbf16>, vector<64x128xbf16>, vector<128x128xf32> -> vector<128x128xf32>
    %22 = arith.addf %16, %21 : vector<128x128xf32>
    %c0_21 = arith.constant 0 : index
    %c10 = arith.constant 10 : index
    %c0_22 = arith.constant 0 : index
    %23 = vector.load %arg2[%c0_21, %c10, %c0_22] : memref<1x176x64xbf16, #tpu.memory_space<vmem>>, vector<1x128x64xbf16>
    %24 = vector.shape_cast %23 : vector<1x128x64xbf16> to vector<128x64xbf16>
    %c2 = arith.constant 2 : index
    %c0_23 = arith.constant 0 : index
    %c0_24 = arith.constant 0 : index
    %25 = vector.load %arg3[%c2, %c0_23, %c0_24] : memref<9x64x128xbf16, #tpu.memory_space<vmem>>, vector<1x64x128xbf16>
    %26 = vector.shape_cast %25 : vector<1x64x128xbf16> to vector<64x128xbf16>
    %cst_25 = arith.constant dense<0.000000e+00> : vector<128x128xf32>
    %27 = tpu.matmul %24, %26, %cst_25 {dimension_numbers = #tpu.dot_dimension_numbers<[1], [0], [0], [1], [0, 0, 1, 1], [], []>} : vector<128x64xbf16>, vector<64x128xbf16>, vector<128x128xf32> -> vector<128x128xf32>
    %28 = arith.addf %22, %27 : vector<128x128xf32>
    %c0_26 = arith.constant 0 : index
    %c24 = arith.constant 24 : index
    %c0_27 = arith.constant 0 : index
    %29 = vector.load %arg2[%c0_26, %c24, %c0_27] : memref<1x176x64xbf16, #tpu.memory_space<vmem>>, vector<1x128x64xbf16>
    %30 = vector.shape_cast %29 : vector<1x128x64xbf16> to vector<128x64xbf16>
    %c3 = arith.constant 3 : index
    %c0_28 = arith.constant 0 : index
    %c0_29 = arith.constant 0 : index
    %31 = vector.load %arg3[%c3, %c0_28, %c0_29] : memref<9x64x128xbf16, #tpu.memory_space<vmem>>, vector<1x64x128xbf16>
    %32 = vector.shape_cast %31 : vector<1x64x128xbf16> to vector<64x128xbf16>
    %cst_30 = arith.constant dense<0.000000e+00> : vector<128x128xf32>
    %33 = tpu.matmul %30, %32, %cst_30 {dimension_numbers = #tpu.dot_dimension_numbers<[1], [0], [0], [1], [0, 0, 1, 1], [], []>} : vector<128x64xbf16>, vector<64x128xbf16>, vector<128x128xf32> -> vector<128x128xf32>
    %34 = arith.addf %28, %33 : vector<128x128xf32>
    %c0_31 = arith.constant 0 : index
    %c25 = arith.constant 25 : index
    %c0_32 = arith.constant 0 : index
    %35 = vector.load %arg2[%c0_31, %c25, %c0_32] : memref<1x176x64xbf16, #tpu.memory_space<vmem>>, vector<1x128x64xbf16>
    %36 = vector.shape_cast %35 : vector<1x128x64xbf16> to vector<128x64xbf16>
    %c4 = arith.constant 4 : index
    %c0_33 = arith.constant 0 : index
    %c0_34 = arith.constant 0 : index
    %37 = vector.load %arg3[%c4, %c0_33, %c0_34] : memref<9x64x128xbf16, #tpu.memory_space<vmem>>, vector<1x64x128xbf16>
    %38 = vector.shape_cast %37 : vector<1x64x128xbf16> to vector<64x128xbf16>
    %cst_35 = arith.constant dense<0.000000e+00> : vector<128x128xf32>
    %39 = tpu.matmul %36, %38, %cst_35 {dimension_numbers = #tpu.dot_dimension_numbers<[1], [0], [0], [1], [0, 0, 1, 1], [], []>} : vector<128x64xbf16>, vector<64x128xbf16>, vector<128x128xf32> -> vector<128x128xf32>
    %40 = arith.addf %34, %39 : vector<128x128xf32>
    %c0_36 = arith.constant 0 : index
    %c26 = arith.constant 26 : index
    %c0_37 = arith.constant 0 : index
    %41 = vector.load %arg2[%c0_36, %c26, %c0_37] : memref<1x176x64xbf16, #tpu.memory_space<vmem>>, vector<1x128x64xbf16>
    %42 = vector.shape_cast %41 : vector<1x128x64xbf16> to vector<128x64xbf16>
    %c5 = arith.constant 5 : index
    %c0_38 = arith.constant 0 : index
    %c0_39 = arith.constant 0 : index
    %43 = vector.load %arg3[%c5, %c0_38, %c0_39] : memref<9x64x128xbf16, #tpu.memory_space<vmem>>, vector<1x64x128xbf16>
    %44 = vector.shape_cast %43 : vector<1x64x128xbf16> to vector<64x128xbf16>
    %cst_40 = arith.constant dense<0.000000e+00> : vector<128x128xf32>
    %45 = tpu.matmul %42, %44, %cst_40 {dimension_numbers = #tpu.dot_dimension_numbers<[1], [0], [0], [1], [0, 0, 1, 1], [], []>} : vector<128x64xbf16>, vector<64x128xbf16>, vector<128x128xf32> -> vector<128x128xf32>
    %46 = arith.addf %40, %45 : vector<128x128xf32>
    %c0_41 = arith.constant 0 : index
    %c40 = arith.constant 40 : index
    %c0_42 = arith.constant 0 : index
    %47 = vector.load %arg2[%c0_41, %c40, %c0_42] : memref<1x176x64xbf16, #tpu.memory_space<vmem>>, vector<1x128x64xbf16>
    %48 = vector.shape_cast %47 : vector<1x128x64xbf16> to vector<128x64xbf16>
    %c6 = arith.constant 6 : index
    %c0_43 = arith.constant 0 : index
    %c0_44 = arith.constant 0 : index
    %49 = vector.load %arg3[%c6, %c0_43, %c0_44] : memref<9x64x128xbf16, #tpu.memory_space<vmem>>, vector<1x64x128xbf16>
    %50 = vector.shape_cast %49 : vector<1x64x128xbf16> to vector<64x128xbf16>
    %cst_45 = arith.constant dense<0.000000e+00> : vector<128x128xf32>
    %51 = tpu.matmul %48, %50, %cst_45 {dimension_numbers = #tpu.dot_dimension_numbers<[1], [0], [0], [1], [0, 0, 1, 1], [], []>} : vector<128x64xbf16>, vector<64x128xbf16>, vector<128x128xf32> -> vector<128x128xf32>
    %52 = arith.addf %46, %51 : vector<128x128xf32>
    %c0_46 = arith.constant 0 : index
    %c41 = arith.constant 41 : index
    %c0_47 = arith.constant 0 : index
    %53 = vector.load %arg2[%c0_46, %c41, %c0_47] : memref<1x176x64xbf16, #tpu.memory_space<vmem>>, vector<1x128x64xbf16>
    %54 = vector.shape_cast %53 : vector<1x128x64xbf16> to vector<128x64xbf16>
    %c7 = arith.constant 7 : index
    %c0_48 = arith.constant 0 : index
    %c0_49 = arith.constant 0 : index
    %55 = vector.load %arg3[%c7, %c0_48, %c0_49] : memref<9x64x128xbf16, #tpu.memory_space<vmem>>, vector<1x64x128xbf16>
    %56 = vector.shape_cast %55 : vector<1x64x128xbf16> to vector<64x128xbf16>
    %cst_50 = arith.constant dense<0.000000e+00> : vector<128x128xf32>
    %57 = tpu.matmul %54, %56, %cst_50 {dimension_numbers = #tpu.dot_dimension_numbers<[1], [0], [0], [1], [0, 0, 1, 1], [], []>} : vector<128x64xbf16>, vector<64x128xbf16>, vector<128x128xf32> -> vector<128x128xf32>
    %58 = arith.addf %52, %57 : vector<128x128xf32>
    %c0_51 = arith.constant 0 : index
    %c42 = arith.constant 42 : index
    %c0_52 = arith.constant 0 : index
    %59 = vector.load %arg2[%c0_51, %c42, %c0_52] : memref<1x176x64xbf16, #tpu.memory_space<vmem>>, vector<1x128x64xbf16>
    %60 = vector.shape_cast %59 : vector<1x128x64xbf16> to vector<128x64xbf16>
    %c8_53 = arith.constant 8 : index
    %c0_54 = arith.constant 0 : index
    %c0_55 = arith.constant 0 : index
    %61 = vector.load %arg3[%c8_53, %c0_54, %c0_55] : memref<9x64x128xbf16, #tpu.memory_space<vmem>>, vector<1x64x128xbf16>
    %62 = vector.shape_cast %61 : vector<1x64x128xbf16> to vector<64x128xbf16>
    %cst_56 = arith.constant dense<0.000000e+00> : vector<128x128xf32>
    %63 = tpu.matmul %60, %62, %cst_56 {dimension_numbers = #tpu.dot_dimension_numbers<[1], [0], [0], [1], [0, 0, 1, 1], [], []>} : vector<128x64xbf16>, vector<64x128xbf16>, vector<128x128xf32> -> vector<128x128xf32>
    %64 = arith.addf %58, %63 : vector<128x128xf32>
    %65 = vector.broadcast %0 : vector<1x128xf32> to vector<128x128xf32>
    %66 = arith.mulf %64, %65 : vector<128x128xf32>
    %67 = vector.broadcast %1 : vector<1x128xf32> to vector<128x128xf32>
    %68 = arith.addf %66, %67 : vector<128x128xf32>
    %cst_57 = arith.constant 0.000000e+00 : f32
    %69 = vector.broadcast %cst_57 : f32 to vector<128x128xf32>
    %70 = arith.maximumf %68, %69 : vector<128x128xf32>
    %71 = vector.shape_cast %70 : vector<128x128xf32> to vector<8x16x128xf32>
    %72 = vector.shape_cast %71 : vector<8x16x128xf32> to vector<4x2x16x128xf32>
    %73 = vector.extract_strided_slice %72 {offsets = [0, 0, 0, 0], sizes = [4, 1, 16, 128], strides = [1, 1, 1, 1]} : vector<4x2x16x128xf32> to vector<4x1x16x128xf32>
    %74 = vector.shape_cast %73 : vector<4x1x16x128xf32> to vector<4x16x128xf32>
    %75 = vector.extract_strided_slice %72 {offsets = [0, 1, 0, 0], sizes = [4, 1, 16, 128], strides = [1, 1, 1, 1]} : vector<4x2x16x128xf32> to vector<4x1x16x128xf32>
    %76 = vector.shape_cast %75 : vector<4x1x16x128xf32> to vector<4x16x128xf32>
    %77 = arith.maximumf %74, %76 : vector<4x16x128xf32>
    %78 = vector.extract_strided_slice %77 {offsets = [0, 0, 0], sizes = [4, 1, 128], strides = [1, 1, 1]} : vector<4x16x128xf32> to vector<4x1x128xf32>
    %79 = vector.shape_cast %78 : vector<4x1x128xf32> to vector<4x128xf32>
    %80 = vector.extract_strided_slice %77 {offsets = [0, 1, 0], sizes = [4, 1, 128], strides = [1, 1, 1]} : vector<4x16x128xf32> to vector<4x1x128xf32>
    %81 = vector.shape_cast %80 : vector<4x1x128xf32> to vector<4x128xf32>
    %82 = arith.maximumf %79, %81 : vector<4x128xf32>
    %83 = vector.extract_strided_slice %77 {offsets = [0, 2, 0], sizes = [4, 1, 128], strides = [1, 1, 1]} : vector<4x16x128xf32> to vector<4x1x128xf32>
    %84 = vector.shape_cast %83 : vector<4x1x128xf32> to vector<4x128xf32>
    %85 = vector.extract_strided_slice %77 {offsets = [0, 3, 0], sizes = [4, 1, 128], strides = [1, 1, 1]} : vector<4x16x128xf32> to vector<4x1x128xf32>
    %86 = vector.shape_cast %85 : vector<4x1x128xf32> to vector<4x128xf32>
    %87 = arith.maximumf %84, %86 : vector<4x128xf32>
    %88 = vector.extract_strided_slice %77 {offsets = [0, 4, 0], sizes = [4, 1, 128], strides = [1, 1, 1]} : vector<4x16x128xf32> to vector<4x1x128xf32>
    %89 = vector.shape_cast %88 : vector<4x1x128xf32> to vector<4x128xf32>
    %90 = vector.extract_strided_slice %77 {offsets = [0, 5, 0], sizes = [4, 1, 128], strides = [1, 1, 1]} : vector<4x16x128xf32> to vector<4x1x128xf32>
    %91 = vector.shape_cast %90 : vector<4x1x128xf32> to vector<4x128xf32>
    %92 = arith.maximumf %89, %91 : vector<4x128xf32>
    %93 = vector.extract_strided_slice %77 {offsets = [0, 6, 0], sizes = [4, 1, 128], strides = [1, 1, 1]} : vector<4x16x128xf32> to vector<4x1x128xf32>
    %94 = vector.shape_cast %93 : vector<4x1x128xf32> to vector<4x128xf32>
    %95 = vector.extract_strided_slice %77 {offsets = [0, 7, 0], sizes = [4, 1, 128], strides = [1, 1, 1]} : vector<4x16x128xf32> to vector<4x1x128xf32>
    %96 = vector.shape_cast %95 : vector<4x1x128xf32> to vector<4x128xf32>
    %97 = arith.maximumf %94, %96 : vector<4x128xf32>
    %98 = vector.shape_cast %82 : vector<4x128xf32> to vector<4x1x128xf32>
    %99 = vector.shape_cast %87 : vector<4x128xf32> to vector<4x1x128xf32>
    %100 = vector.shape_cast %92 : vector<4x128xf32> to vector<4x1x128xf32>
    %101 = vector.shape_cast %97 : vector<4x128xf32> to vector<4x1x128xf32>
    %102 = tpu.concatenate %98, %99, %100, %101 in 1 : vector<4x1x128xf32>, vector<4x1x128xf32>, vector<4x1x128xf32>, vector<4x1x128xf32> -> vector<4x4x128xf32>
    %cst_58 = arith.constant 0.000000e+00 : f32
    %103 = vector.broadcast %cst_58 : f32 to vector<4x1x128xf32>
    %cst_59 = arith.constant 0.000000e+00 : f32
    %104 = vector.broadcast %cst_59 : f32 to vector<4x3x128xf32>
    %105 = tpu.concatenate %103, %102, %104 in 1 : vector<4x1x128xf32>, vector<4x4x128xf32>, vector<4x3x128xf32> -> vector<4x8x128xf32>
    %106 = vector.shape_cast %105 : vector<4x8x128xf32> to vector<32x128xf32>
    %107 = arith.truncf %106 : vector<32x128xf32> to vector<32x128xbf16>
    %c0_60 = arith.constant 0 : index
    %c16 = arith.constant 16 : index
    %c0_61 = arith.constant 0 : index
    %108 = vector.load %arg6[%c0_60, %c16, %c0_61] : memref<1x64x128xbf16, #tpu.memory_space<vmem>>, vector<1x32x128xbf16>
    %109 = vector.shape_cast %108 : vector<1x32x128xbf16> to vector<32x128xbf16>
    %110 = vector.shape_cast %107 : vector<32x128xbf16> to vector<1x32x128xbf16>
    tpu.vector_store %arg6[%c0_60, %c16, %c0_61], %110 {strides = array<i32>} : memref<1x64x128xbf16, #tpu.memory_space<vmem>>, vector<1x32x128xbf16>,
    return
  }
  func.func @transform_0(%arg0: i32, %arg1: i32) -> (i32, i32, i32) {
    %c0_i32 = arith.constant 0 : i32
    %c0_i32_0 = arith.constant 0 : i32
    %c0_i32_1 = arith.constant 0 : i32
    return %arg1, %c0_i32, %c0_i32_0 : i32, i32, i32
  }
  func.func @transform_1(%arg0: i32, %arg1: i32) -> (i32, i32, i32) {
    %c0_i32 = arith.constant 0 : i32
    %c0_i32_0 = arith.constant 0 : i32
    %c0_i32_1 = arith.constant 0 : i32
    return %c0_i32, %c0_i32_0, %arg0 : i32, i32, i32
  }
  func.func @transform_2(%arg0: i32, %arg1: i32) -> (i32, i32) {
    %c0_i32 = arith.constant 0 : i32
    %c0_i32_0 = arith.constant 0 : i32
    return %c0_i32, %arg0 : i32, i32
  }
  func.func @transform_3(%arg0: i32, %arg1: i32) -> (i32, i32) {
    %c0_i32 = arith.constant 0 : i32
    %c0_i32_0 = arith.constant 0 : i32
    return %c0_i32, %arg0 : i32, i32
  }
  func.func @transform_4(%arg0: i32, %arg1: i32) -> (i32, i32, i32) {
    %c0_i32 = arith.constant 0 : i32
    %c0_i32_0 = arith.constant 0 : i32
    return %arg1, %c0_i32, %arg0 : i32, i32, i32
  }
}

module attributes {stable_mosaic.version = 11 : i64} {
  func.func @_conv_bn_relu_kernel(%arg0: i32, %arg1: i32, %arg2: memref<1x64x128xbf16, #tpu.memory_space<vmem>>, %arg3: memref<9x128x128xbf16, #tpu.memory_space<vmem>>, %arg4: memref<1x128xf32, #tpu.memory_space<vmem>>, %arg5: memref<1x128xf32, #tpu.memory_space<vmem>>, %arg6: memref<1x64x128xbf16, #tpu.memory_space<vmem>>) attributes {dimension_semantics = [#tpu.dimension_semantics<parallel>, #tpu.dimension_semantics<parallel>], iteration_bounds = array<i64: 1, 2>, scalar_prefetch = 0 : i64, scratch_operands = 0 : i64, tpu.core_type = #tpu.core_type<tc>, window_params = [{transform_indices = @transform_0, window_bounds = array<i64: 1, 64, 128>}, {transform_indices = @transform_1, window_bounds = array<i64: 9, 128, 128>}, {transform_indices = @transform_2, window_bounds = array<i64: 1, 128>}, {transform_indices = @transform_3, window_bounds = array<i64: 1, 128>}, {transform_indices = @transform_4, window_bounds = array<i64: 1, 64, 128>}]} {
    %c0 = arith.constant 0 : index
    %c0_0 = arith.constant 0 : index
    %0 = vector.load %arg4[%c0, %c0_0] : memref<1x128xf32, #tpu.memory_space<vmem>>, vector<1x128xf32>
    %c0_1 = arith.constant 0 : index
    %c0_2 = arith.constant 0 : index
    %1 = vector.load %arg5[%c0_1, %c0_2] : memref<1x128xf32, #tpu.memory_space<vmem>>, vector<1x128xf32>
    %cst = arith.constant 0.000000e+00 : bf16
    %2 = vector.broadcast %cst : bf16 to vector<16x128xbf16>
    %c0_3 = arith.constant 0 : index
    %c0_4 = arith.constant 0 : index
    %c0_5 = arith.constant 0 : index
    %3 = vector.load %arg6[%c0_3, %c0_4, %c0_5] : memref<1x64x128xbf16, #tpu.memory_space<vmem>>, vector<1x16x128xbf16>
    %4 = vector.shape_cast %3 : vector<1x16x128xbf16> to vector<16x128xbf16>
    %5 = vector.shape_cast %2 : vector<16x128xbf16> to vector<1x16x128xbf16>
    tpu.vector_store %arg6[%c0_3, %c0_4, %c0_5], %5 {strides = array<i32>} : memref<1x64x128xbf16, #tpu.memory_space<vmem>>, vector<1x16x128xbf16>,
    %cst_6 = arith.constant 0.000000e+00 : bf16
    %6 = vector.broadcast %cst_6 : bf16 to vector<16x128xbf16>
    %c0_7 = arith.constant 0 : index
    %c48 = arith.constant 48 : index
    %c0_8 = arith.constant 0 : index
    %7 = vector.load %arg6[%c0_7, %c48, %c0_8] : memref<1x64x128xbf16, #tpu.memory_space<vmem>>, vector<1x16x128xbf16>
    %8 = vector.shape_cast %7 : vector<1x16x128xbf16> to vector<16x128xbf16>
    %9 = vector.shape_cast %6 : vector<16x128xbf16> to vector<1x16x128xbf16>
    tpu.vector_store %arg6[%c0_7, %c48, %c0_8], %9 {strides = array<i32>} : memref<1x64x128xbf16, #tpu.memory_space<vmem>>, vector<1x16x128xbf16>,
    %cst_9 = arith.constant 0.000000e+00 : f32
    %10 = vector.broadcast %cst_9 : f32 to vector<32x128xf32>
    %c0_10 = arith.constant 0 : index
    %c8 = arith.constant 8 : index
    %c0_11 = arith.constant 0 : index
    %11 = vector.load %arg2[%c0_10, %c8, %c0_11] : memref<1x64x128xbf16, #tpu.memory_space<vmem>>, vector<1x32x128xbf16>
    %12 = vector.shape_cast %11 : vector<1x32x128xbf16> to vector<32x128xbf16>
    %c0_12 = arith.constant 0 : index
    %c0_13 = arith.constant 0 : index
    %c0_14 = arith.constant 0 : index
    %13 = vector.load %arg3[%c0_12, %c0_13, %c0_14] : memref<9x128x128xbf16, #tpu.memory_space<vmem>>, vector<1x128x128xbf16>
    %14 = vector.shape_cast %13 : vector<1x128x128xbf16> to vector<128x128xbf16>
    %cst_15 = arith.constant dense<0.000000e+00> : vector<32x128xf32>
    %15 = tpu.matmul %12, %14, %cst_15 {dimension_numbers = #tpu.dot_dimension_numbers<[1], [0], [0], [1], [0, 0, 1, 1], [], []>} : vector<32x128xbf16>, vector<128x128xbf16>, vector<32x128xf32> -> vector<32x128xf32>
    %16 = arith.addf %10, %15 : vector<32x128xf32>
    %c0_16 = arith.constant 0 : index
    %c9 = arith.constant 9 : index
    %c0_17 = arith.constant 0 : index
    %17 = vector.load %arg2[%c0_16, %c9, %c0_17] : memref<1x64x128xbf16, #tpu.memory_space<vmem>>, vector<1x32x128xbf16>
    %18 = vector.shape_cast %17 : vector<1x32x128xbf16> to vector<32x128xbf16>
    %c1 = arith.constant 1 : index
    %c0_18 = arith.constant 0 : index
    %c0_19 = arith.constant 0 : index
    %19 = vector.load %arg3[%c1, %c0_18, %c0_19] : memref<9x128x128xbf16, #tpu.memory_space<vmem>>, vector<1x128x128xbf16>
    %20 = vector.shape_cast %19 : vector<1x128x128xbf16> to vector<128x128xbf16>
    %cst_20 = arith.constant dense<0.000000e+00> : vector<32x128xf32>
    %21 = tpu.matmul %18, %20, %cst_20 {dimension_numbers = #tpu.dot_dimension_numbers<[1], [0], [0], [1], [0, 0, 1, 1], [], []>} : vector<32x128xbf16>, vector<128x128xbf16>, vector<32x128xf32> -> vector<32x128xf32>
    %22 = arith.addf %16, %21 : vector<32x128xf32>
    %c0_21 = arith.constant 0 : index
    %c10 = arith.constant 10 : index
    %c0_22 = arith.constant 0 : index
    %23 = vector.load %arg2[%c0_21, %c10, %c0_22] : memref<1x64x128xbf16, #tpu.memory_space<vmem>>, vector<1x32x128xbf16>
    %24 = vector.shape_cast %23 : vector<1x32x128xbf16> to vector<32x128xbf16>
    %c2 = arith.constant 2 : index
    %c0_23 = arith.constant 0 : index
    %c0_24 = arith.constant 0 : index
    %25 = vector.load %arg3[%c2, %c0_23, %c0_24] : memref<9x128x128xbf16, #tpu.memory_space<vmem>>, vector<1x128x128xbf16>
    %26 = vector.shape_cast %25 : vector<1x128x128xbf16> to vector<128x128xbf16>
    %cst_25 = arith.constant dense<0.000000e+00> : vector<32x128xf32>
    %27 = tpu.matmul %24, %26, %cst_25 {dimension_numbers = #tpu.dot_dimension_numbers<[1], [0], [0], [1], [0, 0, 1, 1], [], []>} : vector<32x128xbf16>, vector<128x128xbf16>, vector<32x128xf32> -> vector<32x128xf32>
    %28 = arith.addf %22, %27 : vector<32x128xf32>
    %c0_26 = arith.constant 0 : index
    %c16 = arith.constant 16 : index
    %c0_27 = arith.constant 0 : index
    %29 = vector.load %arg2[%c0_26, %c16, %c0_27] : memref<1x64x128xbf16, #tpu.memory_space<vmem>>, vector<1x32x128xbf16>
    %30 = vector.shape_cast %29 : vector<1x32x128xbf16> to vector<32x128xbf16>
    %c3 = arith.constant 3 : index
    %c0_28 = arith.constant 0 : index
    %c0_29 = arith.constant 0 : index
    %31 = vector.load %arg3[%c3, %c0_28, %c0_29] : memref<9x128x128xbf16, #tpu.memory_space<vmem>>, vector<1x128x128xbf16>
    %32 = vector.shape_cast %31 : vector<1x128x128xbf16> to vector<128x128xbf16>
    %cst_30 = arith.constant dense<0.000000e+00> : vector<32x128xf32>
    %33 = tpu.matmul %30, %32, %cst_30 {dimension_numbers = #tpu.dot_dimension_numbers<[1], [0], [0], [1], [0, 0, 1, 1], [], []>} : vector<32x128xbf16>, vector<128x128xbf16>, vector<32x128xf32> -> vector<32x128xf32>
    %34 = arith.addf %28, %33 : vector<32x128xf32>
    %c0_31 = arith.constant 0 : index
    %c17 = arith.constant 17 : index
    %c0_32 = arith.constant 0 : index
    %35 = vector.load %arg2[%c0_31, %c17, %c0_32] : memref<1x64x128xbf16, #tpu.memory_space<vmem>>, vector<1x32x128xbf16>
    %36 = vector.shape_cast %35 : vector<1x32x128xbf16> to vector<32x128xbf16>
    %c4 = arith.constant 4 : index
    %c0_33 = arith.constant 0 : index
    %c0_34 = arith.constant 0 : index
    %37 = vector.load %arg3[%c4, %c0_33, %c0_34] : memref<9x128x128xbf16, #tpu.memory_space<vmem>>, vector<1x128x128xbf16>
    %38 = vector.shape_cast %37 : vector<1x128x128xbf16> to vector<128x128xbf16>
    %cst_35 = arith.constant dense<0.000000e+00> : vector<32x128xf32>
    %39 = tpu.matmul %36, %38, %cst_35 {dimension_numbers = #tpu.dot_dimension_numbers<[1], [0], [0], [1], [0, 0, 1, 1], [], []>} : vector<32x128xbf16>, vector<128x128xbf16>, vector<32x128xf32> -> vector<32x128xf32>
    %40 = arith.addf %34, %39 : vector<32x128xf32>
    %c0_36 = arith.constant 0 : index
    %c18 = arith.constant 18 : index
    %c0_37 = arith.constant 0 : index
    %41 = vector.load %arg2[%c0_36, %c18, %c0_37] : memref<1x64x128xbf16, #tpu.memory_space<vmem>>, vector<1x32x128xbf16>
    %42 = vector.shape_cast %41 : vector<1x32x128xbf16> to vector<32x128xbf16>
    %c5 = arith.constant 5 : index
    %c0_38 = arith.constant 0 : index
    %c0_39 = arith.constant 0 : index
    %43 = vector.load %arg3[%c5, %c0_38, %c0_39] : memref<9x128x128xbf16, #tpu.memory_space<vmem>>, vector<1x128x128xbf16>
    %44 = vector.shape_cast %43 : vector<1x128x128xbf16> to vector<128x128xbf16>
    %cst_40 = arith.constant dense<0.000000e+00> : vector<32x128xf32>
    %45 = tpu.matmul %42, %44, %cst_40 {dimension_numbers = #tpu.dot_dimension_numbers<[1], [0], [0], [1], [0, 0, 1, 1], [], []>} : vector<32x128xbf16>, vector<128x128xbf16>, vector<32x128xf32> -> vector<32x128xf32>
    %46 = arith.addf %40, %45 : vector<32x128xf32>
    %c0_41 = arith.constant 0 : index
    %c24 = arith.constant 24 : index
    %c0_42 = arith.constant 0 : index
    %47 = vector.load %arg2[%c0_41, %c24, %c0_42] : memref<1x64x128xbf16, #tpu.memory_space<vmem>>, vector<1x32x128xbf16>
    %48 = vector.shape_cast %47 : vector<1x32x128xbf16> to vector<32x128xbf16>
    %c6 = arith.constant 6 : index
    %c0_43 = arith.constant 0 : index
    %c0_44 = arith.constant 0 : index
    %49 = vector.load %arg3[%c6, %c0_43, %c0_44] : memref<9x128x128xbf16, #tpu.memory_space<vmem>>, vector<1x128x128xbf16>
    %50 = vector.shape_cast %49 : vector<1x128x128xbf16> to vector<128x128xbf16>
    %cst_45 = arith.constant dense<0.000000e+00> : vector<32x128xf32>
    %51 = tpu.matmul %48, %50, %cst_45 {dimension_numbers = #tpu.dot_dimension_numbers<[1], [0], [0], [1], [0, 0, 1, 1], [], []>} : vector<32x128xbf16>, vector<128x128xbf16>, vector<32x128xf32> -> vector<32x128xf32>
    %52 = arith.addf %46, %51 : vector<32x128xf32>
    %c0_46 = arith.constant 0 : index
    %c25 = arith.constant 25 : index
    %c0_47 = arith.constant 0 : index
    %53 = vector.load %arg2[%c0_46, %c25, %c0_47] : memref<1x64x128xbf16, #tpu.memory_space<vmem>>, vector<1x32x128xbf16>
    %54 = vector.shape_cast %53 : vector<1x32x128xbf16> to vector<32x128xbf16>
    %c7 = arith.constant 7 : index
    %c0_48 = arith.constant 0 : index
    %c0_49 = arith.constant 0 : index
    %55 = vector.load %arg3[%c7, %c0_48, %c0_49] : memref<9x128x128xbf16, #tpu.memory_space<vmem>>, vector<1x128x128xbf16>
    %56 = vector.shape_cast %55 : vector<1x128x128xbf16> to vector<128x128xbf16>
    %cst_50 = arith.constant dense<0.000000e+00> : vector<32x128xf32>
    %57 = tpu.matmul %54, %56, %cst_50 {dimension_numbers = #tpu.dot_dimension_numbers<[1], [0], [0], [1], [0, 0, 1, 1], [], []>} : vector<32x128xbf16>, vector<128x128xbf16>, vector<32x128xf32> -> vector<32x128xf32>
    %58 = arith.addf %52, %57 : vector<32x128xf32>
    %c0_51 = arith.constant 0 : index
    %c26 = arith.constant 26 : index
    %c0_52 = arith.constant 0 : index
    %59 = vector.load %arg2[%c0_51, %c26, %c0_52] : memref<1x64x128xbf16, #tpu.memory_space<vmem>>, vector<1x32x128xbf16>
    %60 = vector.shape_cast %59 : vector<1x32x128xbf16> to vector<32x128xbf16>
    %c8_53 = arith.constant 8 : index
    %c0_54 = arith.constant 0 : index
    %c0_55 = arith.constant 0 : index
    %61 = vector.load %arg3[%c8_53, %c0_54, %c0_55] : memref<9x128x128xbf16, #tpu.memory_space<vmem>>, vector<1x128x128xbf16>
    %62 = vector.shape_cast %61 : vector<1x128x128xbf16> to vector<128x128xbf16>
    %cst_56 = arith.constant dense<0.000000e+00> : vector<32x128xf32>
    %63 = tpu.matmul %60, %62, %cst_56 {dimension_numbers = #tpu.dot_dimension_numbers<[1], [0], [0], [1], [0, 0, 1, 1], [], []>} : vector<32x128xbf16>, vector<128x128xbf16>, vector<32x128xf32> -> vector<32x128xf32>
    %64 = arith.addf %58, %63 : vector<32x128xf32>
    %65 = vector.broadcast %0 : vector<1x128xf32> to vector<32x128xf32>
    %66 = arith.mulf %64, %65 : vector<32x128xf32>
    %67 = vector.broadcast %1 : vector<1x128xf32> to vector<32x128xf32>
    %68 = arith.addf %66, %67 : vector<32x128xf32>
    %cst_57 = arith.constant 0.000000e+00 : f32
    %69 = vector.broadcast %cst_57 : f32 to vector<32x128xf32>
    %70 = arith.maximumf %68, %69 : vector<32x128xf32>
    %71 = vector.shape_cast %70 : vector<32x128xf32> to vector<4x8x128xf32>
    %72 = vector.extract_strided_slice %71 {offsets = [0, 0, 0], sizes = [4, 4, 128], strides = [1, 1, 1]} : vector<4x8x128xf32> to vector<4x4x128xf32>
    %cst_58 = arith.constant 0.000000e+00 : f32
    %73 = vector.broadcast %cst_58 : f32 to vector<4x1x128xf32>
    %cst_59 = arith.constant 0.000000e+00 : f32
    %74 = vector.broadcast %cst_59 : f32 to vector<4x3x128xf32>
    %75 = tpu.concatenate %73, %72, %74 in 1 : vector<4x1x128xf32>, vector<4x4x128xf32>, vector<4x3x128xf32> -> vector<4x8x128xf32>
    %76 = vector.shape_cast %75 : vector<4x8x128xf32> to vector<32x128xf32>
    %77 = arith.truncf %76 : vector<32x128xf32> to vector<32x128xbf16>
    %c0_60 = arith.constant 0 : index
    %c16_61 = arith.constant 16 : index
    %c0_62 = arith.constant 0 : index
    %78 = vector.load %arg6[%c0_60, %c16_61, %c0_62] : memref<1x64x128xbf16, #tpu.memory_space<vmem>>, vector<1x32x128xbf16>
    %79 = vector.shape_cast %78 : vector<1x32x128xbf16> to vector<32x128xbf16>
    %80 = vector.shape_cast %77 : vector<32x128xbf16> to vector<1x32x128xbf16>
    tpu.vector_store %arg6[%c0_60, %c16_61, %c0_62], %80 {strides = array<i32>} : memref<1x64x128xbf16, #tpu.memory_space<vmem>>, vector<1x32x128xbf16>,
    return
  }
  func.func @transform_0(%arg0: i32, %arg1: i32) -> (i32, i32, i32) {
    %c0_i32 = arith.constant 0 : i32
    %c0_i32_0 = arith.constant 0 : i32
    %c0_i32_1 = arith.constant 0 : i32
    return %arg1, %c0_i32, %c0_i32_0 : i32, i32, i32
  }
  func.func @transform_1(%arg0: i32, %arg1: i32) -> (i32, i32, i32) {
    %c0_i32 = arith.constant 0 : i32
    %c0_i32_0 = arith.constant 0 : i32
    %c0_i32_1 = arith.constant 0 : i32
    return %c0_i32, %c0_i32_0, %arg0 : i32, i32, i32
  }
  func.func @transform_2(%arg0: i32, %arg1: i32) -> (i32, i32) {
    %c0_i32 = arith.constant 0 : i32
    %c0_i32_0 = arith.constant 0 : i32
    return %c0_i32, %arg0 : i32, i32
  }
  func.func @transform_3(%arg0: i32, %arg1: i32) -> (i32, i32) {
    %c0_i32 = arith.constant 0 : i32
    %c0_i32_0 = arith.constant 0 : i32
    return %c0_i32, %arg0 : i32, i32
  }
  func.func @transform_4(%arg0: i32, %arg1: i32) -> (i32, i32, i32) {
    %c0_i32 = arith.constant 0 : i32
    %c0_i32_0 = arith.constant 0 : i32
    return %arg1, %c0_i32, %arg0 : i32, i32, i32
  }
}

module attributes {stable_mosaic.version = 11 : i64} {
  func.func @_conv_bn_relu_kernel(%arg0: i32, %arg1: i32, %arg2: memref<1x64x128xbf16, #tpu.memory_space<vmem>>, %arg3: memref<9x128x128xbf16, #tpu.memory_space<vmem>>, %arg4: memref<1x128xf32, #tpu.memory_space<vmem>>, %arg5: memref<1x128xf32, #tpu.memory_space<vmem>>, %arg6: memref<1x48x128xbf16, #tpu.memory_space<vmem>>) attributes {dimension_semantics = [#tpu.dimension_semantics<parallel>, #tpu.dimension_semantics<parallel>], iteration_bounds = array<i64: 2, 2>, scalar_prefetch = 0 : i64, scratch_operands = 0 : i64, tpu.core_type = #tpu.core_type<tc>, window_params = [{transform_indices = @transform_0, window_bounds = array<i64: 1, 64, 128>}, {transform_indices = @transform_1, window_bounds = array<i64: 9, 128, 128>}, {transform_indices = @transform_2, window_bounds = array<i64: 1, 128>}, {transform_indices = @transform_3, window_bounds = array<i64: 1, 128>}, {transform_indices = @transform_4, window_bounds = array<i64: 1, 48, 128>}]} {
    %c0 = arith.constant 0 : index
    %c0_0 = arith.constant 0 : index
    %0 = vector.load %arg4[%c0, %c0_0] : memref<1x128xf32, #tpu.memory_space<vmem>>, vector<1x128xf32>
    %c0_1 = arith.constant 0 : index
    %c0_2 = arith.constant 0 : index
    %1 = vector.load %arg5[%c0_1, %c0_2] : memref<1x128xf32, #tpu.memory_space<vmem>>, vector<1x128xf32>
    %cst = arith.constant 0.000000e+00 : bf16
    %2 = vector.broadcast %cst : bf16 to vector<16x128xbf16>
    %c0_3 = arith.constant 0 : index
    %c0_4 = arith.constant 0 : index
    %c0_5 = arith.constant 0 : index
    %3 = vector.load %arg6[%c0_3, %c0_4, %c0_5] : memref<1x48x128xbf16, #tpu.memory_space<vmem>>, vector<1x16x128xbf16>
    %4 = vector.shape_cast %3 : vector<1x16x128xbf16> to vector<16x128xbf16>
    %5 = vector.shape_cast %2 : vector<16x128xbf16> to vector<1x16x128xbf16>
    tpu.vector_store %arg6[%c0_3, %c0_4, %c0_5], %5 {strides = array<i32>} : memref<1x48x128xbf16, #tpu.memory_space<vmem>>, vector<1x16x128xbf16>,
    %cst_6 = arith.constant 0.000000e+00 : bf16
    %6 = vector.broadcast %cst_6 : bf16 to vector<16x128xbf16>
    %c0_7 = arith.constant 0 : index
    %c32 = arith.constant 32 : index
    %c0_8 = arith.constant 0 : index
    %7 = vector.load %arg6[%c0_7, %c32, %c0_8] : memref<1x48x128xbf16, #tpu.memory_space<vmem>>, vector<1x16x128xbf16>
    %8 = vector.shape_cast %7 : vector<1x16x128xbf16> to vector<16x128xbf16>
    %9 = vector.shape_cast %6 : vector<16x128xbf16> to vector<1x16x128xbf16>
    tpu.vector_store %arg6[%c0_7, %c32, %c0_8], %9 {strides = array<i32>} : memref<1x48x128xbf16, #tpu.memory_space<vmem>>, vector<1x16x128xbf16>,
    %cst_9 = arith.constant 0.000000e+00 : f32
    %10 = vector.broadcast %cst_9 : f32 to vector<32x128xf32>
    %c0_10 = arith.constant 0 : index
    %c8 = arith.constant 8 : index
    %c0_11 = arith.constant 0 : index
    %11 = vector.load %arg2[%c0_10, %c8, %c0_11] : memref<1x64x128xbf16, #tpu.memory_space<vmem>>, vector<1x32x128xbf16>
    %12 = vector.shape_cast %11 : vector<1x32x128xbf16> to vector<32x128xbf16>
    %c0_12 = arith.constant 0 : index
    %c0_13 = arith.constant 0 : index
    %c0_14 = arith.constant 0 : index
    %13 = vector.load %arg3[%c0_12, %c0_13, %c0_14] : memref<9x128x128xbf16, #tpu.memory_space<vmem>>, vector<1x128x128xbf16>
    %14 = vector.shape_cast %13 : vector<1x128x128xbf16> to vector<128x128xbf16>
    %cst_15 = arith.constant dense<0.000000e+00> : vector<32x128xf32>
    %15 = tpu.matmul %12, %14, %cst_15 {dimension_numbers = #tpu.dot_dimension_numbers<[1], [0], [0], [1], [0, 0, 1, 1], [], []>} : vector<32x128xbf16>, vector<128x128xbf16>, vector<32x128xf32> -> vector<32x128xf32>
    %16 = arith.addf %10, %15 : vector<32x128xf32>
    %c0_16 = arith.constant 0 : index
    %c9 = arith.constant 9 : index
    %c0_17 = arith.constant 0 : index
    %17 = vector.load %arg2[%c0_16, %c9, %c0_17] : memref<1x64x128xbf16, #tpu.memory_space<vmem>>, vector<1x32x128xbf16>
    %18 = vector.shape_cast %17 : vector<1x32x128xbf16> to vector<32x128xbf16>
    %c1 = arith.constant 1 : index
    %c0_18 = arith.constant 0 : index
    %c0_19 = arith.constant 0 : index
    %19 = vector.load %arg3[%c1, %c0_18, %c0_19] : memref<9x128x128xbf16, #tpu.memory_space<vmem>>, vector<1x128x128xbf16>
    %20 = vector.shape_cast %19 : vector<1x128x128xbf16> to vector<128x128xbf16>
    %cst_20 = arith.constant dense<0.000000e+00> : vector<32x128xf32>
    %21 = tpu.matmul %18, %20, %cst_20 {dimension_numbers = #tpu.dot_dimension_numbers<[1], [0], [0], [1], [0, 0, 1, 1], [], []>} : vector<32x128xbf16>, vector<128x128xbf16>, vector<32x128xf32> -> vector<32x128xf32>
    %22 = arith.addf %16, %21 : vector<32x128xf32>
    %c0_21 = arith.constant 0 : index
    %c10 = arith.constant 10 : index
    %c0_22 = arith.constant 0 : index
    %23 = vector.load %arg2[%c0_21, %c10, %c0_22] : memref<1x64x128xbf16, #tpu.memory_space<vmem>>, vector<1x32x128xbf16>
    %24 = vector.shape_cast %23 : vector<1x32x128xbf16> to vector<32x128xbf16>
    %c2 = arith.constant 2 : index
    %c0_23 = arith.constant 0 : index
    %c0_24 = arith.constant 0 : index
    %25 = vector.load %arg3[%c2, %c0_23, %c0_24] : memref<9x128x128xbf16, #tpu.memory_space<vmem>>, vector<1x128x128xbf16>
    %26 = vector.shape_cast %25 : vector<1x128x128xbf16> to vector<128x128xbf16>
    %cst_25 = arith.constant dense<0.000000e+00> : vector<32x128xf32>
    %27 = tpu.matmul %24, %26, %cst_25 {dimension_numbers = #tpu.dot_dimension_numbers<[1], [0], [0], [1], [0, 0, 1, 1], [], []>} : vector<32x128xbf16>, vector<128x128xbf16>, vector<32x128xf32> -> vector<32x128xf32>
    %28 = arith.addf %22, %27 : vector<32x128xf32>
    %c0_26 = arith.constant 0 : index
    %c16 = arith.constant 16 : index
    %c0_27 = arith.constant 0 : index
    %29 = vector.load %arg2[%c0_26, %c16, %c0_27] : memref<1x64x128xbf16, #tpu.memory_space<vmem>>, vector<1x32x128xbf16>
    %30 = vector.shape_cast %29 : vector<1x32x128xbf16> to vector<32x128xbf16>
    %c3 = arith.constant 3 : index
    %c0_28 = arith.constant 0 : index
    %c0_29 = arith.constant 0 : index
    %31 = vector.load %arg3[%c3, %c0_28, %c0_29] : memref<9x128x128xbf16, #tpu.memory_space<vmem>>, vector<1x128x128xbf16>
    %32 = vector.shape_cast %31 : vector<1x128x128xbf16> to vector<128x128xbf16>
    %cst_30 = arith.constant dense<0.000000e+00> : vector<32x128xf32>
    %33 = tpu.matmul %30, %32, %cst_30 {dimension_numbers = #tpu.dot_dimension_numbers<[1], [0], [0], [1], [0, 0, 1, 1], [], []>} : vector<32x128xbf16>, vector<128x128xbf16>, vector<32x128xf32> -> vector<32x128xf32>
    %34 = arith.addf %28, %33 : vector<32x128xf32>
    %c0_31 = arith.constant 0 : index
    %c17 = arith.constant 17 : index
    %c0_32 = arith.constant 0 : index
    %35 = vector.load %arg2[%c0_31, %c17, %c0_32] : memref<1x64x128xbf16, #tpu.memory_space<vmem>>, vector<1x32x128xbf16>
    %36 = vector.shape_cast %35 : vector<1x32x128xbf16> to vector<32x128xbf16>
    %c4 = arith.constant 4 : index
    %c0_33 = arith.constant 0 : index
    %c0_34 = arith.constant 0 : index
    %37 = vector.load %arg3[%c4, %c0_33, %c0_34] : memref<9x128x128xbf16, #tpu.memory_space<vmem>>, vector<1x128x128xbf16>
    %38 = vector.shape_cast %37 : vector<1x128x128xbf16> to vector<128x128xbf16>
    %cst_35 = arith.constant dense<0.000000e+00> : vector<32x128xf32>
    %39 = tpu.matmul %36, %38, %cst_35 {dimension_numbers = #tpu.dot_dimension_numbers<[1], [0], [0], [1], [0, 0, 1, 1], [], []>} : vector<32x128xbf16>, vector<128x128xbf16>, vector<32x128xf32> -> vector<32x128xf32>
    %40 = arith.addf %34, %39 : vector<32x128xf32>
    %c0_36 = arith.constant 0 : index
    %c18 = arith.constant 18 : index
    %c0_37 = arith.constant 0 : index
    %41 = vector.load %arg2[%c0_36, %c18, %c0_37] : memref<1x64x128xbf16, #tpu.memory_space<vmem>>, vector<1x32x128xbf16>
    %42 = vector.shape_cast %41 : vector<1x32x128xbf16> to vector<32x128xbf16>
    %c5 = arith.constant 5 : index
    %c0_38 = arith.constant 0 : index
    %c0_39 = arith.constant 0 : index
    %43 = vector.load %arg3[%c5, %c0_38, %c0_39] : memref<9x128x128xbf16, #tpu.memory_space<vmem>>, vector<1x128x128xbf16>
    %44 = vector.shape_cast %43 : vector<1x128x128xbf16> to vector<128x128xbf16>
    %cst_40 = arith.constant dense<0.000000e+00> : vector<32x128xf32>
    %45 = tpu.matmul %42, %44, %cst_40 {dimension_numbers = #tpu.dot_dimension_numbers<[1], [0], [0], [1], [0, 0, 1, 1], [], []>} : vector<32x128xbf16>, vector<128x128xbf16>, vector<32x128xf32> -> vector<32x128xf32>
    %46 = arith.addf %40, %45 : vector<32x128xf32>
    %c0_41 = arith.constant 0 : index
    %c24 = arith.constant 24 : index
    %c0_42 = arith.constant 0 : index
    %47 = vector.load %arg2[%c0_41, %c24, %c0_42] : memref<1x64x128xbf16, #tpu.memory_space<vmem>>, vector<1x32x128xbf16>
    %48 = vector.shape_cast %47 : vector<1x32x128xbf16> to vector<32x128xbf16>
    %c6 = arith.constant 6 : index
    %c0_43 = arith.constant 0 : index
    %c0_44 = arith.constant 0 : index
    %49 = vector.load %arg3[%c6, %c0_43, %c0_44] : memref<9x128x128xbf16, #tpu.memory_space<vmem>>, vector<1x128x128xbf16>
    %50 = vector.shape_cast %49 : vector<1x128x128xbf16> to vector<128x128xbf16>
    %cst_45 = arith.constant dense<0.000000e+00> : vector<32x128xf32>
    %51 = tpu.matmul %48, %50, %cst_45 {dimension_numbers = #tpu.dot_dimension_numbers<[1], [0], [0], [1], [0, 0, 1, 1], [], []>} : vector<32x128xbf16>, vector<128x128xbf16>, vector<32x128xf32> -> vector<32x128xf32>
    %52 = arith.addf %46, %51 : vector<32x128xf32>
    %c0_46 = arith.constant 0 : index
    %c25 = arith.constant 25 : index
    %c0_47 = arith.constant 0 : index
    %53 = vector.load %arg2[%c0_46, %c25, %c0_47] : memref<1x64x128xbf16, #tpu.memory_space<vmem>>, vector<1x32x128xbf16>
    %54 = vector.shape_cast %53 : vector<1x32x128xbf16> to vector<32x128xbf16>
    %c7 = arith.constant 7 : index
    %c0_48 = arith.constant 0 : index
    %c0_49 = arith.constant 0 : index
    %55 = vector.load %arg3[%c7, %c0_48, %c0_49] : memref<9x128x128xbf16, #tpu.memory_space<vmem>>, vector<1x128x128xbf16>
    %56 = vector.shape_cast %55 : vector<1x128x128xbf16> to vector<128x128xbf16>
    %cst_50 = arith.constant dense<0.000000e+00> : vector<32x128xf32>
    %57 = tpu.matmul %54, %56, %cst_50 {dimension_numbers = #tpu.dot_dimension_numbers<[1], [0], [0], [1], [0, 0, 1, 1], [], []>} : vector<32x128xbf16>, vector<128x128xbf16>, vector<32x128xf32> -> vector<32x128xf32>
    %58 = arith.addf %52, %57 : vector<32x128xf32>
    %c0_51 = arith.constant 0 : index
    %c26 = arith.constant 26 : index
    %c0_52 = arith.constant 0 : index
    %59 = vector.load %arg2[%c0_51, %c26, %c0_52] : memref<1x64x128xbf16, #tpu.memory_space<vmem>>, vector<1x32x128xbf16>
    %60 = vector.shape_cast %59 : vector<1x32x128xbf16> to vector<32x128xbf16>
    %c8_53 = arith.constant 8 : index
    %c0_54 = arith.constant 0 : index
    %c0_55 = arith.constant 0 : index
    %61 = vector.load %arg3[%c8_53, %c0_54, %c0_55] : memref<9x128x128xbf16, #tpu.memory_space<vmem>>, vector<1x128x128xbf16>
    %62 = vector.shape_cast %61 : vector<1x128x128xbf16> to vector<128x128xbf16>
    %cst_56 = arith.constant dense<0.000000e+00> : vector<32x128xf32>
    %63 = tpu.matmul %60, %62, %cst_56 {dimension_numbers = #tpu.dot_dimension_numbers<[1], [0], [0], [1], [0, 0, 1, 1], [], []>} : vector<32x128xbf16>, vector<128x128xbf16>, vector<32x128xf32> -> vector<32x128xf32>
    %64 = arith.addf %58, %63 : vector<32x128xf32>
    %65 = vector.broadcast %0 : vector<1x128xf32> to vector<32x128xf32>
    %66 = arith.mulf %64, %65 : vector<32x128xf32>
    %67 = vector.broadcast %1 : vector<1x128xf32> to vector<32x128xf32>
    %68 = arith.addf %66, %67 : vector<32x128xf32>
    %cst_57 = arith.constant 0.000000e+00 : f32
    %69 = vector.broadcast %cst_57 : f32 to vector<32x128xf32>
    %70 = arith.maximumf %68, %69 : vector<32x128xf32>
    %71 = vector.shape_cast %70 : vector<32x128xf32> to vector<4x8x128xf32>
    %72 = vector.shape_cast %71 : vector<4x8x128xf32> to vector<2x2x8x128xf32>
    %73 = vector.extract_strided_slice %72 {offsets = [0, 0, 0, 0], sizes = [2, 1, 8, 128], strides = [1, 1, 1, 1]} : vector<2x2x8x128xf32> to vector<2x1x8x128xf32>
    %74 = vector.shape_cast %73 : vector<2x1x8x128xf32> to vector<2x8x128xf32>
    %75 = vector.extract_strided_slice %72 {offsets = [0, 1, 0, 0], sizes = [2, 1, 8, 128], strides = [1, 1, 1, 1]} : vector<2x2x8x128xf32> to vector<2x1x8x128xf32>
    %76 = vector.shape_cast %75 : vector<2x1x8x128xf32> to vector<2x8x128xf32>
    %77 = arith.maximumf %74, %76 : vector<2x8x128xf32>
    %78 = vector.extract_strided_slice %77 {offsets = [0, 0, 0], sizes = [2, 1, 128], strides = [1, 1, 1]} : vector<2x8x128xf32> to vector<2x1x128xf32>
    %79 = vector.shape_cast %78 : vector<2x1x128xf32> to vector<2x128xf32>
    %80 = vector.extract_strided_slice %77 {offsets = [0, 1, 0], sizes = [2, 1, 128], strides = [1, 1, 1]} : vector<2x8x128xf32> to vector<2x1x128xf32>
    %81 = vector.shape_cast %80 : vector<2x1x128xf32> to vector<2x128xf32>
    %82 = arith.maximumf %79, %81 : vector<2x128xf32>
    %83 = vector.extract_strided_slice %77 {offsets = [0, 2, 0], sizes = [2, 1, 128], strides = [1, 1, 1]} : vector<2x8x128xf32> to vector<2x1x128xf32>
    %84 = vector.shape_cast %83 : vector<2x1x128xf32> to vector<2x128xf32>
    %85 = vector.extract_strided_slice %77 {offsets = [0, 3, 0], sizes = [2, 1, 128], strides = [1, 1, 1]} : vector<2x8x128xf32> to vector<2x1x128xf32>
    %86 = vector.shape_cast %85 : vector<2x1x128xf32> to vector<2x128xf32>
    %87 = arith.maximumf %84, %86 : vector<2x128xf32>
    %88 = vector.shape_cast %82 : vector<2x128xf32> to vector<2x1x128xf32>
    %89 = vector.shape_cast %87 : vector<2x128xf32> to vector<2x1x128xf32>
    %90 = tpu.concatenate %88, %89 in 1 : vector<2x1x128xf32>, vector<2x1x128xf32> -> vector<2x2x128xf32>
    %cst_58 = arith.constant 0.000000e+00 : f32
    %91 = vector.broadcast %cst_58 : f32 to vector<2x1x128xf32>
    %cst_59 = arith.constant 0.000000e+00 : f32
    %92 = vector.broadcast %cst_59 : f32 to vector<2x5x128xf32>
    %93 = tpu.concatenate %91, %90, %92 in 1 : vector<2x1x128xf32>, vector<2x2x128xf32>, vector<2x5x128xf32> -> vector<2x8x128xf32>
    %94 = vector.shape_cast %93 : vector<2x8x128xf32> to vector<16x128xf32>
    %95 = arith.truncf %94 : vector<16x128xf32> to vector<16x128xbf16>
    %c0_60 = arith.constant 0 : index
    %c16_61 = arith.constant 16 : index
    %c0_62 = arith.constant 0 : index
    %96 = vector.load %arg6[%c0_60, %c16_61, %c0_62] : memref<1x48x128xbf16, #tpu.memory_space<vmem>>, vector<1x16x128xbf16>
    %97 = vector.shape_cast %96 : vector<1x16x128xbf16> to vector<16x128xbf16>
    %98 = vector.shape_cast %95 : vector<16x128xbf16> to vector<1x16x128xbf16>
    tpu.vector_store %arg6[%c0_60, %c16_61, %c0_62], %98 {strides = array<i32>} : memref<1x48x128xbf16, #tpu.memory_space<vmem>>, vector<1x16x128xbf16>,
    return
  }
  func.func @transform_0(%arg0: i32, %arg1: i32) -> (i32, i32, i32) {
    %c0_i32 = arith.constant 0 : i32
    %c0_i32_0 = arith.constant 0 : i32
    %c0_i32_1 = arith.constant 0 : i32
    return %arg1, %c0_i32, %c0_i32_0 : i32, i32, i32
  }
  func.func @transform_1(%arg0: i32, %arg1: i32) -> (i32, i32, i32) {
    %c0_i32 = arith.constant 0 : i32
    %c0_i32_0 = arith.constant 0 : i32
    %c0_i32_1 = arith.constant 0 : i32
    return %c0_i32, %c0_i32_0, %arg0 : i32, i32, i32
  }
  func.func @transform_2(%arg0: i32, %arg1: i32) -> (i32, i32) {
    %c0_i32 = arith.constant 0 : i32
    %c0_i32_0 = arith.constant 0 : i32
    return %c0_i32, %arg0 : i32, i32
  }
  func.func @transform_3(%arg0: i32, %arg1: i32) -> (i32, i32) {
    %c0_i32 = arith.constant 0 : i32
    %c0_i32_0 = arith.constant 0 : i32
    return %c0_i32, %arg0 : i32, i32
  }
  func.func @transform_4(%arg0: i32, %arg1: i32) -> (i32, i32, i32) {
    %c0_i32 = arith.constant 0 : i32
    %c0_i32_0 = arith.constant 0 : i32
    return %arg1, %c0_i32, %arg0 : i32, i32, i32
  }
}

module attributes {stable_mosaic.version = 11 : i64} {
  func.func @_conv_bn_relu_kernel(%arg0: i32, %arg1: i32, %arg2: memref<1x48x256xbf16, #tpu.memory_space<vmem>>, %arg3: memref<9x256x128xbf16, #tpu.memory_space<vmem>>, %arg4: memref<1x128xf32, #tpu.memory_space<vmem>>, %arg5: memref<1x128xf32, #tpu.memory_space<vmem>>, %arg6: memref<1x48x128xbf16, #tpu.memory_space<vmem>>) attributes {dimension_semantics = [#tpu.dimension_semantics<parallel>, #tpu.dimension_semantics<parallel>], iteration_bounds = array<i64: 2, 2>, scalar_prefetch = 0 : i64, scratch_operands = 0 : i64, tpu.core_type = #tpu.core_type<tc>, window_params = [{transform_indices = @transform_0, window_bounds = array<i64: 1, 48, 256>}, {transform_indices = @transform_1, window_bounds = array<i64: 9, 256, 128>}, {transform_indices = @transform_2, window_bounds = array<i64: 1, 128>}, {transform_indices = @transform_3, window_bounds = array<i64: 1, 128>}, {transform_indices = @transform_4, window_bounds = array<i64: 1, 48, 128>}]} {
    %c0 = arith.constant 0 : index
    %c0_0 = arith.constant 0 : index
    %0 = vector.load %arg4[%c0, %c0_0] : memref<1x128xf32, #tpu.memory_space<vmem>>, vector<1x128xf32>
    %c0_1 = arith.constant 0 : index
    %c0_2 = arith.constant 0 : index
    %1 = vector.load %arg5[%c0_1, %c0_2] : memref<1x128xf32, #tpu.memory_space<vmem>>, vector<1x128xf32>
    %cst = arith.constant 0.000000e+00 : bf16
    %2 = vector.broadcast %cst : bf16 to vector<16x128xbf16>
    %c0_3 = arith.constant 0 : index
    %c0_4 = arith.constant 0 : index
    %c0_5 = arith.constant 0 : index
    %3 = vector.load %arg6[%c0_3, %c0_4, %c0_5] : memref<1x48x128xbf16, #tpu.memory_space<vmem>>, vector<1x16x128xbf16>
    %4 = vector.shape_cast %3 : vector<1x16x128xbf16> to vector<16x128xbf16>
    %5 = vector.shape_cast %2 : vector<16x128xbf16> to vector<1x16x128xbf16>
    tpu.vector_store %arg6[%c0_3, %c0_4, %c0_5], %5 {strides = array<i32>} : memref<1x48x128xbf16, #tpu.memory_space<vmem>>, vector<1x16x128xbf16>,
    %cst_6 = arith.constant 0.000000e+00 : bf16
    %6 = vector.broadcast %cst_6 : bf16 to vector<16x128xbf16>
    %c0_7 = arith.constant 0 : index
    %c32 = arith.constant 32 : index
    %c0_8 = arith.constant 0 : index
    %7 = vector.load %arg6[%c0_7, %c32, %c0_8] : memref<1x48x128xbf16, #tpu.memory_space<vmem>>, vector<1x16x128xbf16>
    %8 = vector.shape_cast %7 : vector<1x16x128xbf16> to vector<16x128xbf16>
    %9 = vector.shape_cast %6 : vector<16x128xbf16> to vector<1x16x128xbf16>
    tpu.vector_store %arg6[%c0_7, %c32, %c0_8], %9 {strides = array<i32>} : memref<1x48x128xbf16, #tpu.memory_space<vmem>>, vector<1x16x128xbf16>,
    %cst_9 = arith.constant 0.000000e+00 : f32
    %10 = vector.broadcast %cst_9 : f32 to vector<16x128xf32>
    %c0_10 = arith.constant 0 : index
    %c8 = arith.constant 8 : index
    %c0_11 = arith.constant 0 : index
    %11 = vector.load %arg2[%c0_10, %c8, %c0_11] : memref<1x48x256xbf16, #tpu.memory_space<vmem>>, vector<1x16x256xbf16>
    %12 = vector.shape_cast %11 : vector<1x16x256xbf16> to vector<16x256xbf16>
    %c0_12 = arith.constant 0 : index
    %c0_13 = arith.constant 0 : index
    %c0_14 = arith.constant 0 : index
    %13 = vector.load %arg3[%c0_12, %c0_13, %c0_14] : memref<9x256x128xbf16, #tpu.memory_space<vmem>>, vector<1x256x128xbf16>
    %14 = vector.shape_cast %13 : vector<1x256x128xbf16> to vector<256x128xbf16>
    %cst_15 = arith.constant dense<0.000000e+00> : vector<16x128xf32>
    %15 = tpu.matmul %12, %14, %cst_15 {dimension_numbers = #tpu.dot_dimension_numbers<[1], [0], [0], [1], [0, 0, 1, 1], [], []>} : vector<16x256xbf16>, vector<256x128xbf16>, vector<16x128xf32> -> vector<16x128xf32>
    %16 = arith.addf %10, %15 : vector<16x128xf32>
    %c0_16 = arith.constant 0 : index
    %c9 = arith.constant 9 : index
    %c0_17 = arith.constant 0 : index
    %17 = vector.load %arg2[%c0_16, %c9, %c0_17] : memref<1x48x256xbf16, #tpu.memory_space<vmem>>, vector<1x16x256xbf16>
    %18 = vector.shape_cast %17 : vector<1x16x256xbf16> to vector<16x256xbf16>
    %c1 = arith.constant 1 : index
    %c0_18 = arith.constant 0 : index
    %c0_19 = arith.constant 0 : index
    %19 = vector.load %arg3[%c1, %c0_18, %c0_19] : memref<9x256x128xbf16, #tpu.memory_space<vmem>>, vector<1x256x128xbf16>
    %20 = vector.shape_cast %19 : vector<1x256x128xbf16> to vector<256x128xbf16>
    %cst_20 = arith.constant dense<0.000000e+00> : vector<16x128xf32>
    %21 = tpu.matmul %18, %20, %cst_20 {dimension_numbers = #tpu.dot_dimension_numbers<[1], [0], [0], [1], [0, 0, 1, 1], [], []>} : vector<16x256xbf16>, vector<256x128xbf16>, vector<16x128xf32> -> vector<16x128xf32>
    %22 = arith.addf %16, %21 : vector<16x128xf32>
    %c0_21 = arith.constant 0 : index
    %c10 = arith.constant 10 : index
    %c0_22 = arith.constant 0 : index
    %23 = vector.load %arg2[%c0_21, %c10, %c0_22] : memref<1x48x256xbf16, #tpu.memory_space<vmem>>, vector<1x16x256xbf16>
    %24 = vector.shape_cast %23 : vector<1x16x256xbf16> to vector<16x256xbf16>
    %c2 = arith.constant 2 : index
    %c0_23 = arith.constant 0 : index
    %c0_24 = arith.constant 0 : index
    %25 = vector.load %arg3[%c2, %c0_23, %c0_24] : memref<9x256x128xbf16, #tpu.memory_space<vmem>>, vector<1x256x128xbf16>
    %26 = vector.shape_cast %25 : vector<1x256x128xbf16> to vector<256x128xbf16>
    %cst_25 = arith.constant dense<0.000000e+00> : vector<16x128xf32>
    %27 = tpu.matmul %24, %26, %cst_25 {dimension_numbers = #tpu.dot_dimension_numbers<[1], [0], [0], [1], [0, 0, 1, 1], [], []>} : vector<16x256xbf16>, vector<256x128xbf16>, vector<16x128xf32> -> vector<16x128xf32>
    %28 = arith.addf %22, %27 : vector<16x128xf32>
    %c0_26 = arith.constant 0 : index
    %c16 = arith.constant 16 : index
    %c0_27 = arith.constant 0 : index
    %29 = vector.load %arg2[%c0_26, %c16, %c0_27] : memref<1x48x256xbf16, #tpu.memory_space<vmem>>, vector<1x16x256xbf16>
    %30 = vector.shape_cast %29 : vector<1x16x256xbf16> to vector<16x256xbf16>
    %c3 = arith.constant 3 : index
    %c0_28 = arith.constant 0 : index
    %c0_29 = arith.constant 0 : index
    %31 = vector.load %arg3[%c3, %c0_28, %c0_29] : memref<9x256x128xbf16, #tpu.memory_space<vmem>>, vector<1x256x128xbf16>
    %32 = vector.shape_cast %31 : vector<1x256x128xbf16> to vector<256x128xbf16>
    %cst_30 = arith.constant dense<0.000000e+00> : vector<16x128xf32>
    %33 = tpu.matmul %30, %32, %cst_30 {dimension_numbers = #tpu.dot_dimension_numbers<[1], [0], [0], [1], [0, 0, 1, 1], [], []>} : vector<16x256xbf16>, vector<256x128xbf16>, vector<16x128xf32> -> vector<16x128xf32>
    %34 = arith.addf %28, %33 : vector<16x128xf32>
    %c0_31 = arith.constant 0 : index
    %c17 = arith.constant 17 : index
    %c0_32 = arith.constant 0 : index
    %35 = vector.load %arg2[%c0_31, %c17, %c0_32] : memref<1x48x256xbf16, #tpu.memory_space<vmem>>, vector<1x16x256xbf16>
    %36 = vector.shape_cast %35 : vector<1x16x256xbf16> to vector<16x256xbf16>
    %c4 = arith.constant 4 : index
    %c0_33 = arith.constant 0 : index
    %c0_34 = arith.constant 0 : index
    %37 = vector.load %arg3[%c4, %c0_33, %c0_34] : memref<9x256x128xbf16, #tpu.memory_space<vmem>>, vector<1x256x128xbf16>
    %38 = vector.shape_cast %37 : vector<1x256x128xbf16> to vector<256x128xbf16>
    %cst_35 = arith.constant dense<0.000000e+00> : vector<16x128xf32>
    %39 = tpu.matmul %36, %38, %cst_35 {dimension_numbers = #tpu.dot_dimension_numbers<[1], [0], [0], [1], [0, 0, 1, 1], [], []>} : vector<16x256xbf16>, vector<256x128xbf16>, vector<16x128xf32> -> vector<16x128xf32>
    %40 = arith.addf %34, %39 : vector<16x128xf32>
    %c0_36 = arith.constant 0 : index
    %c18 = arith.constant 18 : index
    %c0_37 = arith.constant 0 : index
    %41 = vector.load %arg2[%c0_36, %c18, %c0_37] : memref<1x48x256xbf16, #tpu.memory_space<vmem>>, vector<1x16x256xbf16>
    %42 = vector.shape_cast %41 : vector<1x16x256xbf16> to vector<16x256xbf16>
    %c5 = arith.constant 5 : index
    %c0_38 = arith.constant 0 : index
    %c0_39 = arith.constant 0 : index
    %43 = vector.load %arg3[%c5, %c0_38, %c0_39] : memref<9x256x128xbf16, #tpu.memory_space<vmem>>, vector<1x256x128xbf16>
    %44 = vector.shape_cast %43 : vector<1x256x128xbf16> to vector<256x128xbf16>
    %cst_40 = arith.constant dense<0.000000e+00> : vector<16x128xf32>
    %45 = tpu.matmul %42, %44, %cst_40 {dimension_numbers = #tpu.dot_dimension_numbers<[1], [0], [0], [1], [0, 0, 1, 1], [], []>} : vector<16x256xbf16>, vector<256x128xbf16>, vector<16x128xf32> -> vector<16x128xf32>
    %46 = arith.addf %40, %45 : vector<16x128xf32>
    %c0_41 = arith.constant 0 : index
    %c24 = arith.constant 24 : index
    %c0_42 = arith.constant 0 : index
    %47 = vector.load %arg2[%c0_41, %c24, %c0_42] : memref<1x48x256xbf16, #tpu.memory_space<vmem>>, vector<1x16x256xbf16>
    %48 = vector.shape_cast %47 : vector<1x16x256xbf16> to vector<16x256xbf16>
    %c6 = arith.constant 6 : index
    %c0_43 = arith.constant 0 : index
    %c0_44 = arith.constant 0 : index
    %49 = vector.load %arg3[%c6, %c0_43, %c0_44] : memref<9x256x128xbf16, #tpu.memory_space<vmem>>, vector<1x256x128xbf16>
    %50 = vector.shape_cast %49 : vector<1x256x128xbf16> to vector<256x128xbf16>
    %cst_45 = arith.constant dense<0.000000e+00> : vector<16x128xf32>
    %51 = tpu.matmul %48, %50, %cst_45 {dimension_numbers = #tpu.dot_dimension_numbers<[1], [0], [0], [1], [0, 0, 1, 1], [], []>} : vector<16x256xbf16>, vector<256x128xbf16>, vector<16x128xf32> -> vector<16x128xf32>
    %52 = arith.addf %46, %51 : vector<16x128xf32>
    %c0_46 = arith.constant 0 : index
    %c25 = arith.constant 25 : index
    %c0_47 = arith.constant 0 : index
    %53 = vector.load %arg2[%c0_46, %c25, %c0_47] : memref<1x48x256xbf16, #tpu.memory_space<vmem>>, vector<1x16x256xbf16>
    %54 = vector.shape_cast %53 : vector<1x16x256xbf16> to vector<16x256xbf16>
    %c7 = arith.constant 7 : index
    %c0_48 = arith.constant 0 : index
    %c0_49 = arith.constant 0 : index
    %55 = vector.load %arg3[%c7, %c0_48, %c0_49] : memref<9x256x128xbf16, #tpu.memory_space<vmem>>, vector<1x256x128xbf16>
    %56 = vector.shape_cast %55 : vector<1x256x128xbf16> to vector<256x128xbf16>
    %cst_50 = arith.constant dense<0.000000e+00> : vector<16x128xf32>
    %57 = tpu.matmul %54, %56, %cst_50 {dimension_numbers = #tpu.dot_dimension_numbers<[1], [0], [0], [1], [0, 0, 1, 1], [], []>} : vector<16x256xbf16>, vector<256x128xbf16>, vector<16x128xf32> -> vector<16x128xf32>
    %58 = arith.addf %52, %57 : vector<16x128xf32>
    %c0_51 = arith.constant 0 : index
    %c26 = arith.constant 26 : index
    %c0_52 = arith.constant 0 : index
    %59 = vector.load %arg2[%c0_51, %c26, %c0_52] : memref<1x48x256xbf16, #tpu.memory_space<vmem>>, vector<1x16x256xbf16>
    %60 = vector.shape_cast %59 : vector<1x16x256xbf16> to vector<16x256xbf16>
    %c8_53 = arith.constant 8 : index
    %c0_54 = arith.constant 0 : index
    %c0_55 = arith.constant 0 : index
    %61 = vector.load %arg3[%c8_53, %c0_54, %c0_55] : memref<9x256x128xbf16, #tpu.memory_space<vmem>>, vector<1x256x128xbf16>
    %62 = vector.shape_cast %61 : vector<1x256x128xbf16> to vector<256x128xbf16>
    %cst_56 = arith.constant dense<0.000000e+00> : vector<16x128xf32>
    %63 = tpu.matmul %60, %62, %cst_56 {dimension_numbers = #tpu.dot_dimension_numbers<[1], [0], [0], [1], [0, 0, 1, 1], [], []>} : vector<16x256xbf16>, vector<256x128xbf16>, vector<16x128xf32> -> vector<16x128xf32>
    %64 = arith.addf %58, %63 : vector<16x128xf32>
    %65 = vector.broadcast %0 : vector<1x128xf32> to vector<16x128xf32>
    %66 = arith.mulf %64, %65 : vector<16x128xf32>
    %67 = vector.broadcast %1 : vector<1x128xf32> to vector<16x128xf32>
    %68 = arith.addf %66, %67 : vector<16x128xf32>
    %cst_57 = arith.constant 0.000000e+00 : f32
    %69 = vector.broadcast %cst_57 : f32 to vector<16x128xf32>
    %70 = arith.maximumf %68, %69 : vector<16x128xf32>
    %71 = vector.shape_cast %70 : vector<16x128xf32> to vector<2x8x128xf32>
    %72 = vector.extract_strided_slice %71 {offsets = [0, 0, 0], sizes = [2, 2, 128], strides = [1, 1, 1]} : vector<2x8x128xf32> to vector<2x2x128xf32>
    %cst_58 = arith.constant 0.000000e+00 : f32
    %73 = vector.broadcast %cst_58 : f32 to vector<2x1x128xf32>
    %cst_59 = arith.constant 0.000000e+00 : f32
    %74 = vector.broadcast %cst_59 : f32 to vector<2x5x128xf32>
    %75 = tpu.concatenate %73, %72, %74 in 1 : vector<2x1x128xf32>, vector<2x2x128xf32>, vector<2x5x128xf32> -> vector<2x8x128xf32>
    %76 = vector.shape_cast %75 : vector<2x8x128xf32> to vector<16x128xf32>
    %77 = arith.truncf %76 : vector<16x128xf32> to vector<16x128xbf16>
    %c0_60 = arith.constant 0 : index
    %c16_61 = arith.constant 16 : index
    %c0_62 = arith.constant 0 : index
    %78 = vector.load %arg6[%c0_60, %c16_61, %c0_62] : memref<1x48x128xbf16, #tpu.memory_space<vmem>>, vector<1x16x128xbf16>
    %79 = vector.shape_cast %78 : vector<1x16x128xbf16> to vector<16x128xbf16>
    %80 = vector.shape_cast %77 : vector<16x128xbf16> to vector<1x16x128xbf16>
    tpu.vector_store %arg6[%c0_60, %c16_61, %c0_62], %80 {strides = array<i32>} : memref<1x48x128xbf16, #tpu.memory_space<vmem>>, vector<1x16x128xbf16>,
    return
  }
  func.func @transform_0(%arg0: i32, %arg1: i32) -> (i32, i32, i32) {
    %c0_i32 = arith.constant 0 : i32
    %c0_i32_0 = arith.constant 0 : i32
    %c0_i32_1 = arith.constant 0 : i32
    return %arg1, %c0_i32, %c0_i32_0 : i32, i32, i32
  }
  func.func @transform_1(%arg0: i32, %arg1: i32) -> (i32, i32, i32) {
    %c0_i32 = arith.constant 0 : i32
    %c0_i32_0 = arith.constant 0 : i32
    %c0_i32_1 = arith.constant 0 : i32
    return %c0_i32, %c0_i32_0, %arg0 : i32, i32, i32
  }
  func.func @transform_2(%arg0: i32, %arg1: i32) -> (i32, i32) {
    %c0_i32 = arith.constant 0 : i32
    %c0_i32_0 = arith.constant 0 : i32
    return %c0_i32, %arg0 : i32, i32
  }
  func.func @transform_3(%arg0: i32, %arg1: i32) -> (i32, i32) {
    %c0_i32 = arith.constant 0 : i32
    %c0_i32_0 = arith.constant 0 : i32
    return %c0_i32, %arg0 : i32, i32
  }
  func.func @transform_4(%arg0: i32, %arg1: i32) -> (i32, i32, i32) {
    %c0_i32 = arith.constant 0 : i32
    %c0_i32_0 = arith.constant 0 : i32
    return %arg1, %c0_i32, %arg0 : i32, i32, i32
  }
}

module attributes {stable_mosaic.version = 11 : i64} {
  func.func @_conv_bn_relu_kernel(%arg0: i32, %arg1: i32, %arg2: memref<1x48x256xbf16, #tpu.memory_space<vmem>>, %arg3: memref<9x256x128xbf16, #tpu.memory_space<vmem>>, %arg4: memref<1x128xf32, #tpu.memory_space<vmem>>, %arg5: memref<1x128xf32, #tpu.memory_space<vmem>>, %arg6: memref<1x40x128xbf16, #tpu.memory_space<vmem>>) attributes {dimension_semantics = [#tpu.dimension_semantics<parallel>, #tpu.dimension_semantics<parallel>], iteration_bounds = array<i64: 4, 2>, scalar_prefetch = 0 : i64, scratch_operands = 0 : i64, tpu.core_type = #tpu.core_type<tc>, window_params = [{transform_indices = @transform_0, window_bounds = array<i64: 1, 48, 256>}, {transform_indices = @transform_1, window_bounds = array<i64: 9, 256, 128>}, {transform_indices = @transform_2, window_bounds = array<i64: 1, 128>}, {transform_indices = @transform_3, window_bounds = array<i64: 1, 128>}, {transform_indices = @transform_4, window_bounds = array<i64: 1, 40, 128>}]} {
    %c0 = arith.constant 0 : index
    %c0_0 = arith.constant 0 : index
    %0 = vector.load %arg4[%c0, %c0_0] : memref<1x128xf32, #tpu.memory_space<vmem>>, vector<1x128xf32>
    %c0_1 = arith.constant 0 : index
    %c0_2 = arith.constant 0 : index
    %1 = vector.load %arg5[%c0_1, %c0_2] : memref<1x128xf32, #tpu.memory_space<vmem>>, vector<1x128xf32>
    %cst = arith.constant 0.000000e+00 : bf16
    %2 = vector.broadcast %cst : bf16 to vector<16x128xbf16>
    %c0_3 = arith.constant 0 : index
    %c0_4 = arith.constant 0 : index
    %c0_5 = arith.constant 0 : index
    %3 = vector.load %arg6[%c0_3, %c0_4, %c0_5] : memref<1x40x128xbf16, #tpu.memory_space<vmem>>, vector<1x16x128xbf16>
    %4 = vector.shape_cast %3 : vector<1x16x128xbf16> to vector<16x128xbf16>
    %5 = vector.shape_cast %2 : vector<16x128xbf16> to vector<1x16x128xbf16>
    tpu.vector_store %arg6[%c0_3, %c0_4, %c0_5], %5 {strides = array<i32>} : memref<1x40x128xbf16, #tpu.memory_space<vmem>>, vector<1x16x128xbf16>,
    %cst_6 = arith.constant 0.000000e+00 : bf16
    %6 = vector.broadcast %cst_6 : bf16 to vector<16x128xbf16>
    %c0_7 = arith.constant 0 : index
    %c24 = arith.constant 24 : index
    %c0_8 = arith.constant 0 : index
    %7 = vector.load %arg6[%c0_7, %c24, %c0_8] : memref<1x40x128xbf16, #tpu.memory_space<vmem>>, vector<1x16x128xbf16>
    %8 = vector.shape_cast %7 : vector<1x16x128xbf16> to vector<16x128xbf16>
    %9 = vector.shape_cast %6 : vector<16x128xbf16> to vector<1x16x128xbf16>
    tpu.vector_store %arg6[%c0_7, %c24, %c0_8], %9 {strides = array<i32>} : memref<1x40x128xbf16, #tpu.memory_space<vmem>>, vector<1x16x128xbf16>,
    %cst_9 = arith.constant 0.000000e+00 : f32
    %10 = vector.broadcast %cst_9 : f32 to vector<16x128xf32>
    %c0_10 = arith.constant 0 : index
    %c8 = arith.constant 8 : index
    %c0_11 = arith.constant 0 : index
    %11 = vector.load %arg2[%c0_10, %c8, %c0_11] : memref<1x48x256xbf16, #tpu.memory_space<vmem>>, vector<1x16x256xbf16>
    %12 = vector.shape_cast %11 : vector<1x16x256xbf16> to vector<16x256xbf16>
    %c0_12 = arith.constant 0 : index
    %c0_13 = arith.constant 0 : index
    %c0_14 = arith.constant 0 : index
    %13 = vector.load %arg3[%c0_12, %c0_13, %c0_14] : memref<9x256x128xbf16, #tpu.memory_space<vmem>>, vector<1x256x128xbf16>
    %14 = vector.shape_cast %13 : vector<1x256x128xbf16> to vector<256x128xbf16>
    %cst_15 = arith.constant dense<0.000000e+00> : vector<16x128xf32>
    %15 = tpu.matmul %12, %14, %cst_15 {dimension_numbers = #tpu.dot_dimension_numbers<[1], [0], [0], [1], [0, 0, 1, 1], [], []>} : vector<16x256xbf16>, vector<256x128xbf16>, vector<16x128xf32> -> vector<16x128xf32>
    %16 = arith.addf %10, %15 : vector<16x128xf32>
    %c0_16 = arith.constant 0 : index
    %c9 = arith.constant 9 : index
    %c0_17 = arith.constant 0 : index
    %17 = vector.load %arg2[%c0_16, %c9, %c0_17] : memref<1x48x256xbf16, #tpu.memory_space<vmem>>, vector<1x16x256xbf16>
    %18 = vector.shape_cast %17 : vector<1x16x256xbf16> to vector<16x256xbf16>
    %c1 = arith.constant 1 : index
    %c0_18 = arith.constant 0 : index
    %c0_19 = arith.constant 0 : index
    %19 = vector.load %arg3[%c1, %c0_18, %c0_19] : memref<9x256x128xbf16, #tpu.memory_space<vmem>>, vector<1x256x128xbf16>
    %20 = vector.shape_cast %19 : vector<1x256x128xbf16> to vector<256x128xbf16>
    %cst_20 = arith.constant dense<0.000000e+00> : vector<16x128xf32>
    %21 = tpu.matmul %18, %20, %cst_20 {dimension_numbers = #tpu.dot_dimension_numbers<[1], [0], [0], [1], [0, 0, 1, 1], [], []>} : vector<16x256xbf16>, vector<256x128xbf16>, vector<16x128xf32> -> vector<16x128xf32>
    %22 = arith.addf %16, %21 : vector<16x128xf32>
    %c0_21 = arith.constant 0 : index
    %c10 = arith.constant 10 : index
    %c0_22 = arith.constant 0 : index
    %23 = vector.load %arg2[%c0_21, %c10, %c0_22] : memref<1x48x256xbf16, #tpu.memory_space<vmem>>, vector<1x16x256xbf16>
    %24 = vector.shape_cast %23 : vector<1x16x256xbf16> to vector<16x256xbf16>
    %c2 = arith.constant 2 : index
    %c0_23 = arith.constant 0 : index
    %c0_24 = arith.constant 0 : index
    %25 = vector.load %arg3[%c2, %c0_23, %c0_24] : memref<9x256x128xbf16, #tpu.memory_space<vmem>>, vector<1x256x128xbf16>
    %26 = vector.shape_cast %25 : vector<1x256x128xbf16> to vector<256x128xbf16>
    %cst_25 = arith.constant dense<0.000000e+00> : vector<16x128xf32>
    %27 = tpu.matmul %24, %26, %cst_25 {dimension_numbers = #tpu.dot_dimension_numbers<[1], [0], [0], [1], [0, 0, 1, 1], [], []>} : vector<16x256xbf16>, vector<256x128xbf16>, vector<16x128xf32> -> vector<16x128xf32>
    %28 = arith.addf %22, %27 : vector<16x128xf32>
    %c0_26 = arith.constant 0 : index
    %c16 = arith.constant 16 : index
    %c0_27 = arith.constant 0 : index
    %29 = vector.load %arg2[%c0_26, %c16, %c0_27] : memref<1x48x256xbf16, #tpu.memory_space<vmem>>, vector<1x16x256xbf16>
    %30 = vector.shape_cast %29 : vector<1x16x256xbf16> to vector<16x256xbf16>
    %c3 = arith.constant 3 : index
    %c0_28 = arith.constant 0 : index
    %c0_29 = arith.constant 0 : index
    %31 = vector.load %arg3[%c3, %c0_28, %c0_29] : memref<9x256x128xbf16, #tpu.memory_space<vmem>>, vector<1x256x128xbf16>
    %32 = vector.shape_cast %31 : vector<1x256x128xbf16> to vector<256x128xbf16>
    %cst_30 = arith.constant dense<0.000000e+00> : vector<16x128xf32>
    %33 = tpu.matmul %30, %32, %cst_30 {dimension_numbers = #tpu.dot_dimension_numbers<[1], [0], [0], [1], [0, 0, 1, 1], [], []>} : vector<16x256xbf16>, vector<256x128xbf16>, vector<16x128xf32> -> vector<16x128xf32>
    %34 = arith.addf %28, %33 : vector<16x128xf32>
    %c0_31 = arith.constant 0 : index
    %c17 = arith.constant 17 : index
    %c0_32 = arith.constant 0 : index
    %35 = vector.load %arg2[%c0_31, %c17, %c0_32] : memref<1x48x256xbf16, #tpu.memory_space<vmem>>, vector<1x16x256xbf16>
    %36 = vector.shape_cast %35 : vector<1x16x256xbf16> to vector<16x256xbf16>
    %c4 = arith.constant 4 : index
    %c0_33 = arith.constant 0 : index
    %c0_34 = arith.constant 0 : index
    %37 = vector.load %arg3[%c4, %c0_33, %c0_34] : memref<9x256x128xbf16, #tpu.memory_space<vmem>>, vector<1x256x128xbf16>
    %38 = vector.shape_cast %37 : vector<1x256x128xbf16> to vector<256x128xbf16>
    %cst_35 = arith.constant dense<0.000000e+00> : vector<16x128xf32>
    %39 = tpu.matmul %36, %38, %cst_35 {dimension_numbers = #tpu.dot_dimension_numbers<[1], [0], [0], [1], [0, 0, 1, 1], [], []>} : vector<16x256xbf16>, vector<256x128xbf16>, vector<16x128xf32> -> vector<16x128xf32>
    %40 = arith.addf %34, %39 : vector<16x128xf32>
    %c0_36 = arith.constant 0 : index
    %c18 = arith.constant 18 : index
    %c0_37 = arith.constant 0 : index
    %41 = vector.load %arg2[%c0_36, %c18, %c0_37] : memref<1x48x256xbf16, #tpu.memory_space<vmem>>, vector<1x16x256xbf16>
    %42 = vector.shape_cast %41 : vector<1x16x256xbf16> to vector<16x256xbf16>
    %c5 = arith.constant 5 : index
    %c0_38 = arith.constant 0 : index
    %c0_39 = arith.constant 0 : index
    %43 = vector.load %arg3[%c5, %c0_38, %c0_39] : memref<9x256x128xbf16, #tpu.memory_space<vmem>>, vector<1x256x128xbf16>
    %44 = vector.shape_cast %43 : vector<1x256x128xbf16> to vector<256x128xbf16>
    %cst_40 = arith.constant dense<0.000000e+00> : vector<16x128xf32>
    %45 = tpu.matmul %42, %44, %cst_40 {dimension_numbers = #tpu.dot_dimension_numbers<[1], [0], [0], [1], [0, 0, 1, 1], [], []>} : vector<16x256xbf16>, vector<256x128xbf16>, vector<16x128xf32> -> vector<16x128xf32>
    %46 = arith.addf %40, %45 : vector<16x128xf32>
    %c0_41 = arith.constant 0 : index
    %c24_42 = arith.constant 24 : index
    %c0_43 = arith.constant 0 : index
    %47 = vector.load %arg2[%c0_41, %c24_42, %c0_43] : memref<1x48x256xbf16, #tpu.memory_space<vmem>>, vector<1x16x256xbf16>
    %48 = vector.shape_cast %47 : vector<1x16x256xbf16> to vector<16x256xbf16>
    %c6 = arith.constant 6 : index
    %c0_44 = arith.constant 0 : index
    %c0_45 = arith.constant 0 : index
    %49 = vector.load %arg3[%c6, %c0_44, %c0_45] : memref<9x256x128xbf16, #tpu.memory_space<vmem>>, vector<1x256x128xbf16>
    %50 = vector.shape_cast %49 : vector<1x256x128xbf16> to vector<256x128xbf16>
    %cst_46 = arith.constant dense<0.000000e+00> : vector<16x128xf32>
    %51 = tpu.matmul %48, %50, %cst_46 {dimension_numbers = #tpu.dot_dimension_numbers<[1], [0], [0], [1], [0, 0, 1, 1], [], []>} : vector<16x256xbf16>, vector<256x128xbf16>, vector<16x128xf32> -> vector<16x128xf32>
    %52 = arith.addf %46, %51 : vector<16x128xf32>
    %c0_47 = arith.constant 0 : index
    %c25 = arith.constant 25 : index
    %c0_48 = arith.constant 0 : index
    %53 = vector.load %arg2[%c0_47, %c25, %c0_48] : memref<1x48x256xbf16, #tpu.memory_space<vmem>>, vector<1x16x256xbf16>
    %54 = vector.shape_cast %53 : vector<1x16x256xbf16> to vector<16x256xbf16>
    %c7 = arith.constant 7 : index
    %c0_49 = arith.constant 0 : index
    %c0_50 = arith.constant 0 : index
    %55 = vector.load %arg3[%c7, %c0_49, %c0_50] : memref<9x256x128xbf16, #tpu.memory_space<vmem>>, vector<1x256x128xbf16>
    %56 = vector.shape_cast %55 : vector<1x256x128xbf16> to vector<256x128xbf16>
    %cst_51 = arith.constant dense<0.000000e+00> : vector<16x128xf32>
    %57 = tpu.matmul %54, %56, %cst_51 {dimension_numbers = #tpu.dot_dimension_numbers<[1], [0], [0], [1], [0, 0, 1, 1], [], []>} : vector<16x256xbf16>, vector<256x128xbf16>, vector<16x128xf32> -> vector<16x128xf32>
    %58 = arith.addf %52, %57 : vector<16x128xf32>
    %c0_52 = arith.constant 0 : index
    %c26 = arith.constant 26 : index
    %c0_53 = arith.constant 0 : index
    %59 = vector.load %arg2[%c0_52, %c26, %c0_53] : memref<1x48x256xbf16, #tpu.memory_space<vmem>>, vector<1x16x256xbf16>
    %60 = vector.shape_cast %59 : vector<1x16x256xbf16> to vector<16x256xbf16>
    %c8_54 = arith.constant 8 : index
    %c0_55 = arith.constant 0 : index
    %c0_56 = arith.constant 0 : index
    %61 = vector.load %arg3[%c8_54, %c0_55, %c0_56] : memref<9x256x128xbf16, #tpu.memory_space<vmem>>, vector<1x256x128xbf16>
    %62 = vector.shape_cast %61 : vector<1x256x128xbf16> to vector<256x128xbf16>
    %cst_57 = arith.constant dense<0.000000e+00> : vector<16x128xf32>
    %63 = tpu.matmul %60, %62, %cst_57 {dimension_numbers = #tpu.dot_dimension_numbers<[1], [0], [0], [1], [0, 0, 1, 1], [], []>} : vector<16x256xbf16>, vector<256x128xbf16>, vector<16x128xf32> -> vector<16x128xf32>
    %64 = arith.addf %58, %63 : vector<16x128xf32>
    %65 = vector.broadcast %0 : vector<1x128xf32> to vector<16x128xf32>
    %66 = arith.mulf %64, %65 : vector<16x128xf32>
    %67 = vector.broadcast %1 : vector<1x128xf32> to vector<16x128xf32>
    %68 = arith.addf %66, %67 : vector<16x128xf32>
    %cst_58 = arith.constant 0.000000e+00 : f32
    %69 = vector.broadcast %cst_58 : f32 to vector<16x128xf32>
    %70 = arith.maximumf %68, %69 : vector<16x128xf32>
    %71 = vector.shape_cast %70 : vector<16x128xf32> to vector<2x8x128xf32>
    %72 = vector.shape_cast %71 : vector<2x8x128xf32> to vector<1x2x8x128xf32>
    %73 = vector.extract_strided_slice %72 {offsets = [0, 0, 0, 0], sizes = [1, 1, 8, 128], strides = [1, 1, 1, 1]} : vector<1x2x8x128xf32> to vector<1x1x8x128xf32>
    %74 = vector.shape_cast %73 : vector<1x1x8x128xf32> to vector<1x8x128xf32>
    %75 = vector.extract_strided_slice %72 {offsets = [0, 1, 0, 0], sizes = [1, 1, 8, 128], strides = [1, 1, 1, 1]} : vector<1x2x8x128xf32> to vector<1x1x8x128xf32>
    %76 = vector.shape_cast %75 : vector<1x1x8x128xf32> to vector<1x8x128xf32>
    %77 = arith.maximumf %74, %76 : vector<1x8x128xf32>
    %78 = vector.extract_strided_slice %77 {offsets = [0, 0, 0], sizes = [1, 1, 128], strides = [1, 1, 1]} : vector<1x8x128xf32> to vector<1x1x128xf32>
    %79 = vector.shape_cast %78 : vector<1x1x128xf32> to vector<1x128xf32>
    %80 = vector.extract_strided_slice %77 {offsets = [0, 1, 0], sizes = [1, 1, 128], strides = [1, 1, 1]} : vector<1x8x128xf32> to vector<1x1x128xf32>
    %81 = vector.shape_cast %80 : vector<1x1x128xf32> to vector<1x128xf32>
    %82 = arith.maximumf %79, %81 : vector<1x128xf32>
    %83 = vector.shape_cast %82 : vector<1x128xf32> to vector<1x1x128xf32>
    %cst_59 = arith.constant 0.000000e+00 : f32
    %84 = vector.broadcast %cst_59 : f32 to vector<1x1x128xf32>
    %cst_60 = arith.constant 0.000000e+00 : f32
    %85 = vector.broadcast %cst_60 : f32 to vector<1x6x128xf32>
    %86 = tpu.concatenate %84, %83, %85 in 1 : vector<1x1x128xf32>, vector<1x1x128xf32>, vector<1x6x128xf32> -> vector<1x8x128xf32>
    %87 = vector.shape_cast %86 : vector<1x8x128xf32> to vector<8x128xf32>
    %88 = arith.truncf %87 : vector<8x128xf32> to vector<8x128xbf16>
    %c0_61 = arith.constant 0 : index
    %c16_62 = arith.constant 16 : index
    %c0_63 = arith.constant 0 : index
    %89 = vector.load %arg6[%c0_61, %c16_62, %c0_63] : memref<1x40x128xbf16, #tpu.memory_space<vmem>>, vector<1x8x128xbf16>
    %90 = vector.shape_cast %89 : vector<1x8x128xbf16> to vector<8x128xbf16>
    %91 = vector.shape_cast %88 : vector<8x128xbf16> to vector<1x8x128xbf16>
    tpu.vector_store %arg6[%c0_61, %c16_62, %c0_63], %91 {strides = array<i32>} : memref<1x40x128xbf16, #tpu.memory_space<vmem>>, vector<1x8x128xbf16>,
    return
  }
  func.func @transform_0(%arg0: i32, %arg1: i32) -> (i32, i32, i32) {
    %c0_i32 = arith.constant 0 : i32
    %c0_i32_0 = arith.constant 0 : i32
    %c0_i32_1 = arith.constant 0 : i32
    return %arg1, %c0_i32, %c0_i32_0 : i32, i32, i32
  }
  func.func @transform_1(%arg0: i32, %arg1: i32) -> (i32, i32, i32) {
    %c0_i32 = arith.constant 0 : i32
    %c0_i32_0 = arith.constant 0 : i32
    %c0_i32_1 = arith.constant 0 : i32
    return %c0_i32, %c0_i32_0, %arg0 : i32, i32, i32
  }
  func.func @transform_2(%arg0: i32, %arg1: i32) -> (i32, i32) {
    %c0_i32 = arith.constant 0 : i32
    %c0_i32_0 = arith.constant 0 : i32
    return %c0_i32, %arg0 : i32, i32
  }
  func.func @transform_3(%arg0: i32, %arg1: i32) -> (i32, i32) {
    %c0_i32 = arith.constant 0 : i32
    %c0_i32_0 = arith.constant 0 : i32
    return %c0_i32, %arg0 : i32, i32
  }
  func.func @transform_4(%arg0: i32, %arg1: i32) -> (i32, i32, i32) {
    %c0_i32 = arith.constant 0 : i32
    %c0_i32_0 = arith.constant 0 : i32
    return %arg1, %c0_i32, %arg0 : i32, i32, i32
  }
}

</mosaic_0001>

<bundles_post_ra>
// kernel: fwd.7
= control target key start
LH: loop header
LB: loop body
LE: loop exit
PB: predicated region body
PF: predicated region fallthrough
CT: control target
= control target key end

     0   :  { %9 = vsyncpa [#allocation3], 0  ;;  %s2169_s0 = inlined_call_operand.vmem [shape: bf16[2,448,27], index: 0, kind: input, shape index: {}]   ;;  %s2170_s1 = inlined_call_operand.vmem [shape: bf16[1,27,64], index: 1, kind: input, shape index: {}]   ;;  %s2171_s2 = inlined_call_operand.hbm [shape: f32[1,64], index: 2, kind: input, shape index: {}]   ;;  %s2172_s3 = inlined_call_operand.hbm [shape: f32[1,64], index: 3, kind: input, shape index: {}]   ;;  %s2173_s4 = inlined_call_operand.vmem [shape: bf16[2,176,64], index: 4, kind: output, shape index: {}]  }
   0x1   :  { %10 = vsyncpa [#allocation5], 0  ;;  %s1745_s15 = smov 0   ;;  %s1747_s16 = smov 0  }
   0x2   :  { %s1749_s17 = smov 0  }
   0x3 LB: > { %s1373_s18 = sadd.s32 4294967295, %s1714_s17   ;;  %s25_s19 = sadd.s32 1, %s1710_s16  ;;  %s1714_s17 = sphi %s1749_s17, %s16_s17   ;;  %s1710_s16 = sphi %s1747_s16, %s2183_s16   ;;  %s1706_s15 = sphi %s1745_s15, %s2182_s15  }
   0x4   : > { %p26_p0 = scmp.ge.s32.totalorder %s25_s19, 2  ;;  %p1375_p1 = scmp.ge.s32.totalorder %s1714_s17, 1 }
   0x5   : > { %p165_p2 = scmp.lt.s32.totalorder %s1714_s17, 3  ;;  %p1770_p4 = scmp.eq.s32.totalorder %s1373_s18, 0 }
   0x6   : > { %s2185_s19 = smov (%p26_p0, %s25_s19), 0  ;;  %s1716_s22 = smov [#allocation2]  }
   0x7   : > { %p1766_p3 = pnand %p1375_p1, %p165_p2  ;;  %s187_s23 = sshll.u32 %s1716_s22, 4  ;;  %s188_s23 = int_to_ptr.vmem [resolvable:$true] %s187_s23 }
   0x8   : > { %s2178_s21 = scalar_select %p1770_p4, 1, 0 }
   0x9   : > { %s2177_s20 = scalar_select %p1766_p3, 1, 0 }
   0xa   : > { %p1563_p5 = pneg %p1766_p3  ;;  %s1717_s24 = smov [#allocation4]  }
   0xb   : > { %s200_s25 = sshll.u32 %s1717_s24, 4  ;;  %s1628_s29 = scalar_lea.hbm %s2171_s2, 16  ;;  %s1782_s25 = int_to_ptr.vmem [resolvable:$true] %s200_s25 }
   0xc   : > { %p1778_p6 = pnand %p1770_p4, %p1563_p5  ;;  %p1629_p7 = scmp.ne.s32.totalorder %s2171_s2, %s1628_s29 }
   0xd   : > { %p1635_p11 = scmp.lt.u32.totalorder %s1628_s29, %s2171_s2 }
   0xe   : > { %p1630_p8 = pneg %p1778_p6 }
  0x10   : > { %p1631_p9 = pnand %p1630_p8, %p1629_p7 }
  0x12   : > { %p1632_p10 = pneg %p1631_p9 }
  0x14   : > { %p1637_p12 = pnand %p1635_p11, %p1632_p10 }
  0x16   : > { %1640 = shalt.err (!%p1637_p12)
}
  0x17   : > { %s1641_s8 = scalar_lea.vmem %s188_s23, 16  ;;  %s1648_s9 = scalar_lea.vmem %s188_s23, 32 }
  0x18   : > { %p1642_p13 = scmp.ne.s32.totalorder %s188_s23, %s1641_s8  ;;  %p1649_p2 = scmp.lt.s32.totalorder %s188_s23, %s188_s23 }
  0x19   : > { %p1650_p5 = scmp.lt.s32.totalorder %s1648_s9, %s1641_s8 }
  0x1a   : > { %p1644_p0 = pnand %p1642_p13, %p1630_p8 }
  0x1b   : > { %p1651_p4 = por %p1650_p5, %p1649_p2 }
  0x1c   : > { %p1645_p1 = pneg %p1644_p0 }
  0x1e   : > { %p1652_p3 = pnand %p1651_p4, %p1645_p1 }
  0x20   : > { %1655 = shalt.err (!%p1652_p3)
}
  0x21   : > { %1566 = dma.hbm_to_vmem [thread:$0]  (!%p1778_p6), %s2171_s2, 16, %s188_s23, [#allocation3]  }
  0x22   : > { %s1656_s14 = scalar_lea.hbm %s2172_s3, 16 }
  0x23   : > { %p1657_p7 = scmp.ne.s32.totalorder %s2172_s3, %s1656_s14  ;;  %p1663_p3 = scmp.lt.u32.totalorder %s1656_s14, %s2172_s3 }
  0x25   : > { %p1659_p9 = pnand %p1657_p7, %p1630_p8 }
  0x27   : > { %p1660_p4 = pneg %p1659_p9 }
  0x29   : > { %p1665_p10 = pnand %p1663_p3, %p1660_p4 }
  0x2b   : > { %1668 = shalt.err (!%p1665_p10)
}
  0x2c   : > { %s1669_s23 = scalar_lea.vmem %s1782_s25, 16  ;;  %s1676_s28 = scalar_lea.vmem %s1782_s25, 32 }
  0x2d   : > { %p1670_p11 = scmp.ne.s32.totalorder %s1782_s25, %s1669_s23  ;;  %p1677_p0 = scmp.lt.s32.totalorder %s1782_s25, %s1782_s25 }
  0x2e   : > { %p1678_p1 = scmp.lt.s32.totalorder %s1676_s28, %s1669_s23 }
  0x2f   : > { %p1672_p12 = pnand %p1670_p11, %p1630_p8 }
  0x30   : > { %p1679_p2 = por %p1678_p1, %p1677_p0 }
  0x31   : > { %p1673_p13 = pneg %p1672_p12 }
  0x33   : > { %p1680_p5 = pnand %p1679_p2, %p1673_p13 }
  0x35   : > { %1683 = shalt.err (!%p1680_p5)
}
  0x36   : > { %1569 = dma.hbm_to_vmem [thread:$0]  (!%p1778_p6), %s2172_s3, 16, %s1782_s25, [#allocation5]  }
  0x37   : > { %p2180_p7 = scmp.ne.s32.totalorder %s2177_s20, 0 }
  0x38   : > { %p2181_p8 = scmp.ne.s32.totalorder (!%p2180_p7), %s2178_s21, 0 }
  0x39   : > { %221 = sbr.rel (%p2180_p7) target bundleno = 374 (0x176), region = 36 }
  0x40   : > { %1697 = dma.done.wait (%p2181_p8), [#allocation3], 16  }
  0x41   : > { %1699 = vsyncadd (%p2181_p8), [#allocation3], 4294967280 }
  0x42   : > { %1701 = dma.done.wait (%p2181_p8), [#allocation5], 16  }
  0x43   : > { %1703 = vsyncadd (%p2181_p8), [#allocation5], 4294967280  ;;  %p258_p9 = scmp.lt.s32.totalorder %s1706_s15, 1  ;;  %vm541_vm0 = vcmask 1044480   ;;  %vm542_vm1 = vcmask 1045504   ;;  %v1718_v0 = vmov 65535  }
  0x44   : > { %v543_v1 = vsel %vm541_vm0, 4294967295, %v1718_v0  ;;  %vm468_vm2 = vcmask 220160   ;;  %v1602_v2 = vld [vmem:[%s2170_s1] sm:$0xff]   ;;  %v1603_v4 = vld [vmem:[%s2170_s1 + $0x8] sm:$0x3f]   ;;  %vm278_vm3 = vcmask 519168  }
  0x45   : > { %s2187_s15 = smov (!%p258_p9, %s1706_s15), 1  ;;  %v544_v3 = vsel %vm542_vm1, %v543_v1, 0  ;;  %1497 = vmatprep.subr.bf16.mxu0 %v1602_v2  ;;  %1549 = vmatprep.subr.bf16.mxu1 %v1602_v2  ;;  %v1719_v30 = vmov 0   ;;  %v1926_v31 = vld [vmem:[#allocation2] ss:$0 sm:$0xff]  ;;  %vm1073_vm4 = vcmask 1040384  }
  0x46   : > { %s1553_s20 = smul.u32 224, %s2187_s15  ;;  %1498 = vmatpush3.bf16.msra.mxu0 %v1602_v2  ;;  %1551 = vmatpush3.bf16.msra.mxu1 %v1602_v2  ;;  %v546_v6 = vand.u32 %v1603_v4, %v544_v3  ;;  %v1928_v34 = vld [vmem:[#allocation4] ss:$0 sm:$0xff]  ;;  %vm1082_vm5 = vcmask 1041408   ;;  %vm1091_vm6 = vcmask 1042432   ;;  %vm1100_vm7 = vcmask 1043456  }
  0x47   : > { %s1554_s9 = smul.u32 88, %s2187_s15  ;;  %vm1125_vm8 = vcmask 1046528  }
  0x48   : > { %s1851_s5 = scalar_lea.vmem %s2169_s0, %s1553_s20  ;;  %1499 = vmatprep.subr.bf16.mxu0 %v546_v6  ;;  %1550 = vmatprep.subr.bf16.mxu1 %v546_v6 }
  0x49   : > { %v1604_v5 = vld [vmem:[%s1851_s5 + $0x4] sm:$0xff]   ;;  %v1606_v8 = vld [vmem:[%s1851_s5 + $0xc] sm:$0xff]   ;;  %v1608_v10 = vld [vmem:[%s1851_s5 + $0x14] sm:$0xff]   ;;  %s1912_s12 = scalar_lea.vmem %s2173_s4, %s1554_s9 }
  0x4a   : > { %v1605_v7 = vld [vmem:[%s1851_s5 + $0x64] sm:$0xff]   ;;  %1501 = vmatprep.mubr.msk.bf16.mxu0 %vm468_vm2, %v1604_v5  ;;  %v1607_v9 = vld [vmem:[%s1851_s5 + $0x6c] sm:$0xff]   ;;  %1500 = vmatpush3.bf16.msra.mxu0 %v546_v6  ;;  %v1609_v11 = vld [vmem:[%s1851_s5 + $0x74] sm:$0xff]   ;;  %279 = vst.msk [vmem:[%s1912_s12] sm:$0xf] %vm278_vm3, %v1719_v30 }
  0x4b   : > { %1525 = vmatprep.mubr.msk.bf16.mxu1 %vm468_vm2, %v1605_v7  ;;  %1552 = vmatpush3.bf16.msra.mxu1 %v546_v6  ;;  %v1610_v12 = vld [vmem:[%s1851_s5 + $0x1c] sm:$0xff]   ;;  %v1612_v14 = vld [vmem:[%s1851_s5 + $0x24] sm:$0xff]   ;;  %v1614_v16 = vld [vmem:[%s1851_s5 + $0x2c] sm:$0xff]   ;;  %280 = vst.msk [vmem:[%s1912_s12 + $0x4] sm:$0xf] %vm278_vm3, %v1719_v30 }
  0x4c   : > { %v1611_v13 = vld [vmem:[%s1851_s5 + $0x7c] sm:$0xff]   ;;  %v1613_v15 = vld [vmem:[%s1851_s5 + $0x84] sm:$0xff]   ;;  %v1615_v17 = vld [vmem:[%s1851_s5 + $0x8c] sm:$0xff]   ;;  %281 = vst.msk [vmem:[%s1912_s12 + $0x8] sm:$0xf] %vm278_vm3, %v1719_v30 }
  0x4d   : > { %1502 = vmatmul.mubr.msk.bf16.vlgmr.msra.gmra.mrb[0].mxu0 %vm468_vm2, %v1606_v8  ;;  %v1616_v18 = vld [vmem:[%s1851_s5 + $0x34] sm:$0xff]   ;;  %v1618_v20 = vld [vmem:[%s1851_s5 + $0x3c] sm:$0xff]   ;;  %v1620_v22 = vld [vmem:[%s1851_s5 + $0x44] sm:$0xff]   ;;  %282 = vst.msk [vmem:[%s1912_s12 + $0x4c] sm:$0xf] %vm278_vm3, %v1719_v30 }
  0x4e   : > { %1526 = vmatmul.mubr.msk.bf16.vlgmr.msra.gmra.mrb[0].mxu1 %vm468_vm2, %v1607_v9  ;;  %1505 = vmatprep.mubr.msk.bf16.mxu0 %vm468_vm2, %v1608_v10  ;;  %v1617_v19 = vld [vmem:[%s1851_s5 + $0x94] sm:$0xff]   ;;  %v1619_v21 = vld [vmem:[%s1851_s5 + $0x9c] sm:$0xff]   ;;  %v1621_v23 = vld [vmem:[%s1851_s5 + $0xa4] sm:$0xff]   ;;  %283 = vst.msk [vmem:[%s1912_s12 + $0x50] sm:$0xf] %vm278_vm3, %v1719_v30 }
  0x4f   : > { %1529 = vmatprep.mubr.msk.bf16.mxu1 %vm468_vm2, %v1609_v11  ;;  %v1622_v24 = vld [vmem:[%s1851_s5 + $0x4c] sm:$0xff]   ;;  %v1624_v26 = vld [vmem:[%s1851_s5 + $0x54] sm:$0xff]   ;;  %v1626_v28 = vld [vmem:[%s1851_s5 + $0x5c] sm:$0xff]   ;;  %284 = vst.msk [vmem:[%s1912_s12 + $0x54] sm:$0xf] %vm278_vm3, %v1719_v30 }
  0x50   : > { %v1623_v25 = vld [vmem:[%s1851_s5 + $0xac] sm:$0xff]   ;;  %v1625_v27 = vld [vmem:[%s1851_s5 + $0xb4] sm:$0xff]   ;;  %v1627_v29 = vld [vmem:[%s1851_s5 + $0xbc] sm:$0xff]  }
  0x55   : > { %1506 = vmatmul.mubr.msk.bf16.gmra.mrb[4].mxu0 %vm468_vm2, %v1610_v12 }
  0x56   : > { %1530 = vmatmul.mubr.msk.bf16.gmra.mrb[4].mxu1 %vm468_vm2, %v1611_v13  ;;  %1509 = vmatprep.mubr.msk.bf16.mxu0 %vm468_vm2, %v1612_v14 }
  0x57   : > { %1533 = vmatprep.mubr.msk.bf16.mxu1 %vm468_vm2, %v1613_v15 }
  0x5d   : > { %1510 = vmatmul.mubr.msk.bf16.gmra.mrb[8].mxu0 %vm468_vm2, %v1614_v16 }
  0x5e   : > { %1534 = vmatmul.mubr.msk.bf16.gmra.mrb[8].mxu1 %vm468_vm2, %v1615_v17  ;;  %1513 = vmatprep.mubr.msk.bf16.mxu0 %vm468_vm2, %v1616_v18 }
  0x5f   : > { %1537 = vmatprep.mubr.msk.bf16.mxu1 %vm468_vm2, %v1617_v19 }
  0x65   : > { %1514 = vmatmul.mubr.msk.bf16.gmra.mrb[12].mxu0 %vm468_vm2, %v1618_v20 }
  0x66   : > { %1538 = vmatmul.mubr.msk.bf16.gmra.mrb[12].mxu1 %vm468_vm2, %v1619_v21  ;;  %1517 = vmatprep.mubr.msk.bf16.mxu0 %vm468_vm2, %v1620_v22 }
  0x67   : > { %1541 = vmatprep.mubr.msk.bf16.mxu1 %vm468_vm2, %v1621_v23 }
  0x6d   : > { %1518 = vmatmul.mubr.msk.bf16.gmra.mrb[16].mxu0 %vm468_vm2, %v1622_v24 }
  0x6e   : > { %1542 = vmatmul.mubr.msk.bf16.gmra.mrb[16].mxu1 %vm468_vm2, %v1623_v25  ;;  %1521 = vmatprep.mubr.msk.bf16.mxu0 %vm468_vm2, %v1624_v26 }
  0x6f   : > { %1545 = vmatprep.mubr.msk.bf16.mxu1 %vm468_vm2, %v1625_v27 }
  0x75   : > { %1522 = vmatmul.mubr.msk.bf16.gmra.mrb[20].mxu0 %vm468_vm2, %v1626_v28 }
  0x76   : > { %1546 = vmatmul.mubr.msk.bf16.gmra.mrb[20].mxu1 %vm468_vm2, %v1627_v29 }
 0x120   : > { %v1503_v32 = vpop.f32.mrb[0].mxu0 }
 0x121   : > { %v1527_v33 = vpop.f32.mrb[0].mxu1  ;;  %v582_v35 = vpop.f32.mrb[1].mxu0 }
 0x122   : > { %v670_v36 = vpop.f32.mrb[1].mxu1  ;;  %v763_v37 = vmul.f32 %v1926_v31, %v582_v35  ;;  %v1504_v39 = vpop.f32.mrb[2].mxu0 }
 0x123   : > { %v779_v38 = vmul.f32 %v1926_v31, %v670_v36  ;;  %v1528_v40 = vpop.f32.mrb[2].mxu1  ;;  %v765_v41 = vmul.f32 %v1504_v39, %v1926_v31  ;;  %v585_v43 = vpop.f32.mrb[3].mxu0 }
 0x124   : > { %v781_v42 = vmul.f32 %v1528_v40, %v1926_v31  ;;  %v673_v44 = vpop.f32.mrb[3].mxu1  ;;  %v801_v45 = vadd.f32 %v1928_v34, %v763_v37  ;;  %v764_v47 = vmul.f32 %v1926_v31, %v585_v43 }
 0x125   : > { %v817_v46 = vadd.f32 %v1928_v34, %v779_v38  ;;  %v803_v48 = vadd.f32 %v1928_v34, %v765_v41  ;;  %v780_v52 = vmul.f32 %v1926_v31, %v673_v44 }
 0x126   : > { %v819_v49 = vadd.f32 %v1928_v34, %v781_v42  ;;  %v833_v50 = vmax.f32 %v801_v45, 0.0  ;;  %v802_v55 = vadd.f32 %v1928_v34, %v764_v47 }
 0x127   : > { %v849_v51 = vmax.f32 %v817_v46, 0.0  ;;  %v835_v53 = vmax.f32 %v803_v48, 0.0  ;;  %v818_v0 = vadd.f32 %v1928_v34, %v780_v52 }
 0x128   : > { %v851_v54 = vmax.f32 %v819_v49, 0.0  ;;  %v1507_v56 = vpop.f32.mrb[4].mxu0  ;;  %v834_v16 = vmax.f32 %v802_v55, 0.0 }
 0x129   : > { %v1531_v57 = vpop.f32.mrb[4].mxu1  ;;  %v865_v58 = vmax.f32 %v833_v50, %v835_v53  ;;  %v767_v60 = vmul.f32 %v1507_v56, %v1926_v31  ;;  %v597_v62 = vpop.f32.mrb[5].mxu0  ;;  %v850_v18 = vmax.f32 %v818_v0, 0.0 }
 0x12a   : > { %v873_v59 = vmax.f32 %v849_v51, %v851_v54  ;;  %v783_v61 = vmul.f32 %v1531_v57, %v1926_v31  ;;  %v685_v63 = vpop.f32.mrb[5].mxu1  ;;  %v766_v1 = vmul.f32 %v1926_v31, %v597_v62  ;;  %v1508_v3 = vpop.f32.mrb[6].mxu0 }
 0x12b   : > { %v782_v2 = vmul.f32 %v1926_v31, %v685_v63  ;;  %v1532_v4 = vpop.f32.mrb[6].mxu1  ;;  %v889_v5 = vrot.slane %v865_v58, 1  ;;  %v1947_v7 = vadd.f32 %v1928_v34, %v767_v60  ;;  %v600_v8 = vpop.f32.mrb[7].mxu0  ;;  %v768_v12 = vmul.f32 %v1508_v3, %v1926_v31 }
 0x12c   : > { %v893_v6 = vrot.slane %v873_v59, 1  ;;  %v688_v9 = vpop.f32.mrb[7].mxu1  ;;  %v804_v10 = vadd.f32 %v1928_v34, %v766_v1  ;;  %v784_v13 = vmul.f32 %v1532_v4, %v1926_v31  ;;  %v1954_v17 = vadd.f32 %v1928_v34, %v783_v61 }
 0x12d   : > { %v820_v11 = vadd.f32 %v1928_v34, %v782_v2  ;;  %v905_v14 = vmax.f32 %v865_v58, %v889_v5  ;;  %v837_v19 = vmax.f32 %v1947_v7, 0.0  ;;  %v806_v25 = vadd.f32 %v1928_v34, %v768_v12 }
 0x12e   : > { %v909_v15 = vmax.f32 %v873_v59, %v893_v6  ;;  %v836_v20 = vmax.f32 %v804_v10, 0.0  ;;  %v822_v29 = vadd.f32 %v1928_v34, %v784_v13  ;;  %v853_v37 = vmax.f32 %v1954_v17, 0.0 }
 0x12f   : > { %v852_v21 = vmax.f32 %v820_v11, 0.0  ;;  %v953_v22 = vrot.slane %v905_v14, 1  ;;  %v969_v23 = vrot.slane %v905_v14, 2  ;;  %v985_v33 = vrot.slane %v905_v14, 3 }
 0x130   : > { %v957_v24 = vrot.slane %v909_v15, 1  ;;  %v973_v26 = vrot.slane %v909_v15, 2  ;;  %v866_v27 = vmax.f32 %v834_v16, %v836_v20  ;;  %v1511_v30 = vpop.f32.mrb[8].mxu0  ;;  %v989_v41 = vrot.slane %v909_v15, 3 }
 0x131   : > { %v874_v28 = vmax.f32 %v850_v18, %v852_v21  ;;  %v1535_v32 = vpop.f32.mrb[8].mxu1  ;;  %v1074_v35 = vsel %vm1073_vm4, %v905_v14, %v953_v22  ;;  %v612_v38 = vpop.f32.mrb[9].mxu0  ;;  %v838_v47 = vmax.f32 %v806_v25, 0.0  ;;  %v770_v48 = vmul.f32 %v1511_v30, %v1926_v31 }
 0x132   : > { %v1078_v36 = vsel %vm1073_vm4, %v909_v15, %v957_v24  ;;  %v700_v39 = vpop.f32.mrb[9].mxu1  ;;  %v1083_v40 = vsel %vm1082_vm5, %v1074_v35, %v969_v23  ;;  %v921_v42 = vrot.slane %v866_v27, 1  ;;  %v1512_v44 = vpop.f32.mrb[10].mxu0  ;;  %v786_v49 = vmul.f32 %v1535_v32, %v1926_v31 }
 0x133   : > { %v925_v43 = vrot.slane %v874_v28, 1  ;;  %v1536_v45 = vpop.f32.mrb[10].mxu1  ;;  %v1087_v46 = vsel %vm1082_vm5, %v1078_v36, %v973_v26  ;;  %v614_v50 = vpop.f32.mrb[11].mxu0  ;;  %v854_v54 = vmax.f32 %v822_v29, 0.0  ;;  %v1092_v56 = vsel %vm1091_vm6, %v1083_v40, %v985_v33 }
 0x134   : > { %v702_v51 = vpop.f32.mrb[11].mxu1  ;;  %v937_v52 = vmax.f32 %v866_v27, %v921_v42  ;;  %v769_v55 = vmul.f32 %v1926_v31, %v614_v50  ;;  %v808_v57 = vadd.f32 %v1928_v34, %v770_v48  ;;  %v824_v58 = vadd.f32 %v1928_v34, %v786_v49 }
 0x135   : > { %v941_v53 = vmax.f32 %v874_v28, %v925_v43  ;;  %v785_v59 = vmul.f32 %v1926_v31, %v702_v51  ;;  %v1096_v60 = vsel %vm1091_vm6, %v1087_v46, %v989_v41 }
 0x136   : > { %v1009_v61 = vrot.slane %v937_v52, 4  ;;  %v1025_v62 = vrot.slane %v937_v52, 5  ;;  %v1041_v63 = vrot.slane %v937_v52, 6  ;;  %v1057_v0 = vrot.slane %v937_v52, 7 }
 0x137   : > { %v1013_v1 = vrot.slane %v941_v53, 4  ;;  %v1029_v2 = vrot.slane %v941_v53, 5  ;;  %v1045_v3 = vrot.slane %v941_v53, 6  ;;  %v840_v5 = vmax.f32 %v808_v57, 0.0 }
 0x138   : > { %v1101_v4 = vsel %vm1100_vm7, %v1092_v56, %v1009_v61  ;;  %v856_v6 = vmax.f32 %v824_v58, 0.0  ;;  %v807_v8 = vadd.f32 %v1928_v34, %v769_v55  ;;  %v1515_v9 = vpop.f32.mrb[12].mxu0  ;;  %v1061_v12 = vrot.slane %v941_v53, 7 }
 0x139   : > { %v1539_v10 = vpop.f32.mrb[12].mxu1  ;;  %v1109_v11 = vsel %vm541_vm0, %v1101_v4, %v1025_v62  ;;  %v1105_v13 = vsel %vm1100_vm7, %v1096_v60, %v1013_v1  ;;  %v823_v14 = vadd.f32 %v1928_v34, %v785_v59  ;;  %v626_v15 = vpop.f32.mrb[13].mxu0  ;;  %v868_v20 = vmax.f32 %v838_v47, %v840_v5 }
 0x13a   : > { %v714_v16 = vpop.f32.mrb[13].mxu1  ;;  %v1117_v17 = vsel %vm542_vm1, %v1109_v11, %v1041_v63  ;;  %v1113_v18 = vsel %vm541_vm0, %v1105_v13, %v1029_v2  ;;  %v876_v21 = vmax.f32 %v854_v54, %v856_v6  ;;  %v1516_v22 = vpop.f32.mrb[14].mxu0  ;;  %v839_v26 = vmax.f32 %v807_v8, 0.0 }
 0x13b   : > { %v1540_v23 = vpop.f32.mrb[14].mxu1  ;;  %v1126_v24 = vsel %vm1125_vm8, %v1117_v17, %v1057_v0  ;;  %v1121_v25 = vsel %vm542_vm1, %v1113_v18, %v1045_v3  ;;  %v855_v27 = vmax.f32 %v823_v14, 0.0  ;;  %v1981_v28 = vpop.f32.mrb[15].mxu0  ;;  %v922_v33 = vrot.slane %v868_v20, 1 }
 0x13c   : > { %v1983_v29 = vpop.f32.mrb[15].mxu1  ;;  %v1142_v30 = vrot.slane %v1126_v24, 7  ;;  %v1130_v32 = vsel %vm1125_vm8, %v1121_v25, %v1061_v12  ;;  %v926_v35 = vrot.slane %v876_v21, 1  ;;  %v867_v38 = vmax.f32 %v837_v19, %v839_v26 }
 0x13d   : > { %v1146_v36 = vrot.slane %v1130_v32, 7  ;;  %v875_v39 = vmax.f32 %v853_v37, %v855_v27  ;;  %v1990_v42 = vmax.f32 %v868_v20, %v922_v33  ;;  %v771_v43 = vmul.f32 %v1926_v31, %v626_v15 }
 0x13e   : > { %v1158_v40 = vsel %vm1073_vm4, 0.0, %v1142_v30  ;;  %v1166_v41 = vsel %vm1073_vm4, %v1142_v30, 0.0  ;;  %v1995_v48 = vmax.f32 %v876_v21, %v926_v35  ;;  %v890_v56 = vrot.slane %v867_v38, 1 }
 0x13f   : > { %v1455_v44 = vpack.c.bf16 %v1158_v40, %v1158_v40  ;;  %v1456_v45 = vpack.c.bf16 %v1166_v41, %v1166_v41  ;;  %v1162_v46 = vsel %vm1073_vm4, 0.0, %v1146_v36  ;;  %v1170_v7 = vsel %vm1073_vm4, %v1146_v36, 0.0 }
 0x140   : > { %v1463_v47 = vpack.c.bf16 %v1162_v46, %v1162_v46  ;;  %v1464_v19 = vpack.c.bf16 %v1170_v7, %v1170_v7  ;;  %v1997_v37 = vpop.f32.mrb[16].mxu0  ;;  %v1010_v50 = vrot.slane %v1990_v42, 4  ;;  %v1026_v51 = vrot.slane %v1990_v42, 5 }
 0x141   : > { %v1999_v49 = vpop.f32.mrb[16].mxu1  ;;  %1238 = vst.msk [vmem:[%s1912_s12 + $0xc] sm:$0xf] %vm278_vm3, %v1455_v44  ;;  %1239 = vst.msk [vmem:[%s1912_s12 + $0x10] sm:$0xf] %vm278_vm3, %v1456_v45  ;;  %v2007_v52 = vpop.f32.mrb[17].mxu0  ;;  %v809_v60 = vadd.f32 %v1928_v34, %v771_v43  ;;  %v787_v61 = vmul.f32 %v1926_v31, %v714_v16  ;;  %v773_v62 = vmul.f32 %v1516_v22, %v1926_v31 }
 0x142   : > { %v2009_v53 = vpop.f32.mrb[17].mxu1  ;;  %1246 = vst.msk [vmem:[%s1912_s12 + $0x2c] sm:$0xf] %vm278_vm3, %v1463_v47  ;;  %1247 = vst.msk [vmem:[%s1912_s12 + $0x30] sm:$0xf] %vm278_vm3, %v1464_v19  ;;  %v1042_v54 = vrot.slane %v1990_v42, 6  ;;  %v789_v63 = vmul.f32 %v1540_v23, %v1926_v31  ;;  %v906_v4 = vmax.f32 %v867_v38, %v890_v56  ;;  %v772_v40 = vmul.f32 %v1926_v31, %v1981_v28 }
 0x143   : > { %v1058_v55 = vrot.slane %v1990_v42, 7  ;;  %v894_v57 = vrot.slane %v875_v39, 1  ;;  %v2017_v58 = vpop.f32.mrb[18].mxu0  ;;  %v2019_v59 = vpop.f32.mrb[18].mxu1  ;;  %v1014_v2 = vrot.slane %v1995_v48, 4  ;;  %v1030_v3 = vrot.slane %v1995_v48, 5 }
 0x144   : > { %v644_v0 = vpop.f32.mrb[19].mxu0  ;;  %v732_v1 = vpop.f32.mrb[19].mxu1  ;;  %v841_v6 = vmax.f32 %v809_v60, 0.0  ;;  %v825_v8 = vadd.f32 %v1928_v34, %v787_v61  ;;  %v811_v9 = vadd.f32 %v1928_v34, %v773_v62  ;;  %v827_v10 = vadd.f32 %v1928_v34, %v789_v63 }
 0x145   : > { %v910_v5 = vmax.f32 %v875_v39, %v894_v57  ;;  %v1046_v11 = vrot.slane %v1995_v48, 6  ;;  %v954_v12 = vrot.slane %v906_v4, 1  ;;  %v970_v13 = vrot.slane %v906_v4, 2 }
 0x146   : > { %v986_v15 = vrot.slane %v906_v4, 3  ;;  %v857_v17 = vmax.f32 %v825_v8, 0.0  ;;  %v843_v18 = vmax.f32 %v811_v9, 0.0  ;;  %v859_v23 = vmax.f32 %v827_v10, 0.0 }
 0x147   : > { %v958_v14 = vrot.slane %v910_v5, 1  ;;  %v974_v16 = vrot.slane %v910_v5, 2  ;;  %v1075_v20 = vsel %vm1073_vm4, %v906_v4, %v954_v12  ;;  %v990_v21 = vrot.slane %v910_v5, 3 }
 0x148   : > { %v2033_v24 = vpop.f32.mrb[20].mxu0  ;;  %v1062_v26 = vrot.slane %v1995_v48, 7  ;;  %v1084_v27 = vsel %vm1082_vm5, %v1075_v20, %v970_v13  ;;  %v869_v32 = vmax.f32 %v841_v6, %v843_v18  ;;  %v877_v39 = vmax.f32 %v857_v17, %v859_v23 }
 0x149   : > { %v1079_v22 = vsel %vm1073_vm4, %v910_v5, %v958_v14  ;;  %v2035_v25 = vpop.f32.mrb[20].mxu1  ;;  %v656_v33 = vpop.f32.mrb[21].mxu0  ;;  %v1093_v36 = vsel %vm1091_vm6, %v1084_v27, %v986_v15  ;;  %v788_v46 = vmul.f32 %v1926_v31, %v1983_v29  ;;  %v775_v28 = vmul.f32 %v1997_v37, %v1926_v31 }
 0x14a   : > { %v1088_v30 = vsel %vm1082_vm5, %v1079_v22, %v974_v16  ;;  %v744_v35 = vpop.f32.mrb[21].mxu1  ;;  %v1524_v41 = vpop.f32.mrb[22].mxu0  ;;  %v1102_v43 = vsel %vm1100_vm7, %v1093_v36, %v1010_v50  ;;  %v891_v45 = vrot.slane %v869_v32, 1  ;;  %v895_v56 = vrot.slane %v877_v39, 1 }
 0x14b   : > { %v1097_v38 = vsel %vm1091_vm6, %v1088_v30, %v990_v21  ;;  %v1548_v42 = vpop.f32.mrb[22].mxu1  ;;  %v658_v7 = vpop.f32.mrb[23].mxu0  ;;  %v1110_v19 = vsel %vm541_vm0, %v1102_v43, %v1026_v51  ;;  %v810_v0 = vadd.f32 %v1928_v34, %v772_v40  ;;  %v826_v1 = vadd.f32 %v1928_v34, %v788_v46 }
 0x14c   : > { %v1106_v44 = vsel %vm1100_vm7, %v1097_v38, %v1014_v2  ;;  %v746_v47 = vpop.f32.mrb[23].mxu1  ;;  %v1118_v57 = vsel %vm542_vm1, %v1110_v19, %v1042_v54  ;;  %v2054_v60 = vmax.f32 %v869_v32, %v891_v45  ;;  %v2058_v62 = vmax.f32 %v877_v39, %v895_v56 }
 0x14d   : > { %v1114_v48 = vsel %vm541_vm0, %v1106_v44, %v1030_v3  ;;  %v1127_v61 = vsel %vm1125_vm8, %v1118_v57, %v1058_v55  ;;  %v813_v2 = vadd.f32 %v1928_v34, %v775_v28  ;;  %v791_v55 = vmul.f32 %v1999_v49, %v1926_v31 }
 0x14e   : > { %v1122_v50 = vsel %vm542_vm1, %v1114_v48, %v1046_v11  ;;  %v1143_v63 = vrot.slane %v1127_v61, 7  ;;  %v955_v37 = vrot.slane %v2054_v60, 1  ;;  %v959_v54 = vrot.slane %v2058_v62, 1 }
 0x14f   : > { %v1131_v29 = vsel %vm1125_vm8, %v1122_v50, %v1062_v26  ;;  %v971_v12 = vrot.slane %v2054_v60, 2  ;;  %v842_v13 = vmax.f32 %v810_v0, 0.0  ;;  %v858_v14 = vmax.f32 %v826_v1, 0.0 }
 0x150   : > { %v1147_v51 = vrot.slane %v1131_v29, 7  ;;  %v1159_v3 = vsel %vm1073_vm4, 0.0, %v1143_v63  ;;  %v1167_v4 = vsel %vm1073_vm4, %v1143_v63, 0.0  ;;  %v1076_v49 = vsel %vm1073_vm4, %v2054_v60, %v955_v37 }
 0x151   : > { %v1457_v8 = vpack.c.bf16 %v1159_v3, %v1159_v3  ;;  %v1458_v9 = vpack.c.bf16 %v1167_v4, %v1167_v4  ;;  %v975_v15 = vrot.slane %v2058_v62, 2  ;;  %v774_v16 = vmul.f32 %v1926_v31, %v2007_v52 }
 0x152   : > { %v1163_v5 = vsel %vm1073_vm4, 0.0, %v1147_v51  ;;  %v1171_v6 = vsel %vm1073_vm4, %v1147_v51, 0.0  ;;  %v790_v17 = vmul.f32 %v1926_v31, %v2009_v53  ;;  %v1080_v18 = vsel %vm1073_vm4, %v2058_v62, %v959_v54 }
 0x153   : > { %v1465_v10 = vpack.c.bf16 %v1163_v5, %v1163_v5  ;;  %v1466_v11 = vpack.c.bf16 %v1171_v6, %v1171_v6  ;;  %1240 = vst.msk [vmem:[%s1912_s12 + $0x14] sm:$0xf] %vm278_vm3, %v1457_v8  ;;  %1241 = vst.msk [vmem:[%s1912_s12 + $0x18] sm:$0xf] %vm278_vm3, %v1458_v9  ;;  %v845_v20 = vmax.f32 %v813_v2, 0.0  ;;  %v829_v21 = vadd.f32 %v1928_v34, %v791_v55 }
 0x154   : > { %v776_v22 = vmul.f32 %v2017_v58, %v1926_v31  ;;  %v812_v23 = vadd.f32 %v1928_v34, %v774_v16  ;;  %v828_v26 = vadd.f32 %v1928_v34, %v790_v17  ;;  %v792_v27 = vmul.f32 %v2019_v59, %v1926_v31 }
 0x155   : > { %1248 = vst.msk [vmem:[%s1912_s12 + $0x34] sm:$0xf] %vm278_vm3, %v1465_v10  ;;  %1249 = vst.msk [vmem:[%s1912_s12 + $0x38] sm:$0xf] %vm278_vm3, %v1466_v11  ;;  %v778_v52 = vmul.f32 %v2033_v24, %v1926_v31  ;;  %v794_v30 = vmul.f32 %v2035_v25, %v1926_v31  ;;  %v777_v32 = vmul.f32 %v1926_v31, %v658_v7  ;;  %v861_v39 = vmax.f32 %v829_v21, 0.0 }
 0x156   : > { %v814_v53 = vadd.f32 %v1928_v34, %v776_v22  ;;  %v793_v33 = vmul.f32 %v1926_v31, %v746_v47  ;;  %v844_v58 = vmax.f32 %v812_v23, 0.0  ;;  %v860_v35 = vmax.f32 %v828_v26, 0.0 }
 0x157   : > { %v830_v36 = vadd.f32 %v1928_v34, %v792_v27  ;;  %v816_v38 = vadd.f32 %v1928_v34, %v778_v52  ;;  %v832_v59 = vadd.f32 %v1928_v34, %v794_v30  ;;  %v815_v24 = vadd.f32 %v1928_v34, %v777_v32 }
 0x158   : > { %v831_v40 = vadd.f32 %v1928_v34, %v793_v33  ;;  %v870_v41 = vmax.f32 %v842_v13, %v844_v58  ;;  %v878_v42 = vmax.f32 %v858_v14, %v860_v35  ;;  %v846_v25 = vmax.f32 %v814_v53, 0.0 }
 0x159   : > { %v848_v43 = vmax.f32 %v816_v38, 0.0  ;;  %v862_v44 = vmax.f32 %v830_v36, 0.0  ;;  %v864_v45 = vmax.f32 %v832_v59, 0.0  ;;  %v847_v31 = vmax.f32 %v815_v24, 0.0 }
 0x15a   : > { %v863_v46 = vmax.f32 %v831_v40, 0.0  ;;  %v1085_v7 = vsel %vm1082_vm5, %v1076_v49, %v971_v12  ;;  %v923_v47 = vrot.slane %v870_v41, 1  ;;  %v927_v19 = vrot.slane %v878_v42, 1 }
 0x15b   : > { %v872_v48 = vmax.f32 %v846_v25, %v848_v43  ;;  %v1089_v56 = vsel %vm1082_vm5, %v1080_v18, %v975_v15  ;;  %v880_v28 = vmax.f32 %v862_v44, %v864_v45  ;;  %v871_v57 = vmax.f32 %v845_v20, %v847_v31 }
 0x15c   : > { %v879_v50 = vmax.f32 %v861_v39, %v863_v46  ;;  %v987_v34 = vrot.slane %v2054_v60, 3  ;;  %v991_v61 = vrot.slane %v2058_v62, 3  ;;  %v939_v29 = vmax.f32 %v870_v41, %v923_v47 }
 0x15d   : > { %v943_v63 = vmax.f32 %v878_v42, %v927_v19  ;;  %v892_v51 = vrot.slane %v871_v57, 1  ;;  %v924_v3 = vrot.slane %v872_v48, 1  ;;  %v928_v4 = vrot.slane %v880_v28, 1 }
 0x15e   : > { %v1094_v0 = vsel %vm1091_vm6, %v1085_v7, %v987_v34  ;;  %v1098_v1 = vsel %vm1091_vm6, %v1089_v56, %v991_v61  ;;  %v1011_v37 = vrot.slane %v939_v29, 4  ;;  %v1027_v54 = vrot.slane %v939_v29, 5 }
 0x15f   : > { %v1015_v2 = vrot.slane %v943_v63, 4  ;;  %v1031_v55 = vrot.slane %v943_v63, 5  ;;  %v1043_v5 = vrot.slane %v939_v29, 6  ;;  %v1059_v6 = vrot.slane %v939_v29, 7 }
 0x160   : > { %v1103_v8 = vsel %vm1100_vm7, %v1094_v0, %v1011_v37  ;;  %v896_v60 = vrot.slane %v879_v50, 1  ;;  %v1047_v9 = vrot.slane %v943_v63, 6  ;;  %v908_v11 = vmax.f32 %v871_v57, %v892_v51 }
 0x161   : > { %v1111_v62 = vsel %vm541_vm0, %v1103_v8, %v1027_v54  ;;  %v1107_v10 = vsel %vm1100_vm7, %v1098_v1, %v1015_v2  ;;  %v1063_v13 = vrot.slane %v943_v63, 7  ;;  %v940_v21 = vmax.f32 %v872_v48, %v924_v3 }
 0x162   : > { %v1119_v12 = vsel %vm542_vm1, %v1111_v62, %v1043_v5  ;;  %v1115_v14 = vsel %vm541_vm0, %v1107_v10, %v1031_v55  ;;  %v912_v18 = vmax.f32 %v879_v50, %v896_v60  ;;  %v944_v22 = vmax.f32 %v880_v28, %v928_v4 }
 0x163   : > { %v1128_v49 = vsel %vm1125_vm8, %v1119_v12, %v1059_v6  ;;  %v1123_v15 = vsel %vm542_vm1, %v1115_v14, %v1047_v9  ;;  %v956_v23 = vrot.slane %v908_v11, 1  ;;  %v972_v52 = vrot.slane %v908_v11, 2 }
 0x164   : > { %v1144_v16 = vrot.slane %v1128_v49, 7  ;;  %v1132_v17 = vsel %vm1125_vm8, %v1123_v15, %v1063_v13  ;;  %v988_v53 = vrot.slane %v908_v11, 3  ;;  %v960_v39 = vrot.slane %v912_v18, 1 }
 0x165   : > { %v1148_v20 = vrot.slane %v1132_v17, 7  ;;  %v1077_v38 = vsel %vm1073_vm4, %v908_v11, %v956_v23  ;;  %v1012_v59 = vrot.slane %v940_v21, 4  ;;  %v976_v40 = vrot.slane %v912_v18, 2 }
 0x166   : > { %v1160_v26 = vsel %vm1073_vm4, 0.0, %v1144_v16  ;;  %v1168_v27 = vsel %vm1073_vm4, %v1144_v16, 0.0  ;;  %v1086_v24 = vsel %vm1082_vm5, %v1077_v38, %v972_v52  ;;  %v1028_v41 = vrot.slane %v940_v21, 5 }
 0x167   : > { %v1459_v30 = vpack.c.bf16 %v1160_v26, %v1160_v26  ;;  %v1460_v32 = vpack.c.bf16 %v1168_v27, %v1168_v27  ;;  %v1164_v33 = vsel %vm1073_vm4, 0.0, %v1148_v20  ;;  %v1172_v58 = vsel %vm1073_vm4, %v1148_v20, 0.0 }
 0x168   : > { %v1467_v35 = vpack.c.bf16 %v1164_v33, %v1164_v33  ;;  %v1468_v36 = vpack.c.bf16 %v1172_v58, %v1172_v58  ;;  %v1095_v42 = vsel %vm1091_vm6, %v1086_v24, %v988_v53  ;;  %v992_v25 = vrot.slane %v912_v18, 3 }
 0x169   : > { %1242 = vst.msk [vmem:[%s1912_s12 + $0x1c] sm:$0xf] %vm278_vm3, %v1459_v30  ;;  %1243 = vst.msk [vmem:[%s1912_s12 + $0x20] sm:$0xf] %vm278_vm3, %v1460_v32  ;;  %v1081_v43 = vsel %vm1073_vm4, %v912_v18, %v960_v39  ;;  %v1044_v44 = vrot.slane %v940_v21, 6  ;;  %v1016_v45 = vrot.slane %v944_v22, 4  ;;  %v1104_v31 = vsel %vm1100_vm7, %v1095_v42, %v1012_v59 }
 0x16a   : > { %1250 = vst.msk [vmem:[%s1912_s12 + $0x3c] sm:$0xf] %vm278_vm3, %v1467_v35  ;;  %1251 = vst.msk [vmem:[%s1912_s12 + $0x40] sm:$0xf] %vm278_vm3, %v1468_v36  ;;  %v1090_v46 = vsel %vm1082_vm5, %v1081_v43, %v976_v40  ;;  %v1060_v7 = vrot.slane %v940_v21, 7  ;;  %v1032_v47 = vrot.slane %v944_v22, 5  ;;  %v1112_v19 = vsel %vm541_vm0, %v1104_v31, %v1028_v41 }
 0x16b   : > { %v1099_v48 = vsel %vm1091_vm6, %v1090_v46, %v992_v25  ;;  %v1048_v56 = vrot.slane %v944_v22, 6  ;;  %v1120_v28 = vsel %vm542_vm1, %v1112_v19, %v1044_v44  ;;  %v1064_v50 = vrot.slane %v944_v22, 7 }
 0x16c   : > { %v1108_v57 = vsel %vm1100_vm7, %v1099_v48, %v1016_v45  ;;  %v1129_v34 = vsel %vm1125_vm8, %v1120_v28, %v1060_v7 }
 0x16d   : > { %v1116_v61 = vsel %vm541_vm0, %v1108_v57, %v1032_v47  ;;  %v1145_v29 = vrot.slane %v1129_v34, 7 }
 0x16e   : > { %v1124_v63 = vsel %vm542_vm1, %v1116_v61, %v1048_v56 }
 0x16f   : > { %v1133_v51 = vsel %vm1125_vm8, %v1124_v63, %v1064_v50  ;;  %v1161_v0 = vsel %vm1073_vm4, 0.0, %v1145_v29  ;;  %v1169_v1 = vsel %vm1073_vm4, %v1145_v29, 0.0 }
 0x170   : > { %v1149_v37 = vrot.slane %v1133_v51, 7  ;;  %v1461_v54 = vpack.c.bf16 %v1161_v0, %v1161_v0  ;;  %v1462_v2 = vpack.c.bf16 %v1169_v1, %v1169_v1 }
 0x172   : > { %v1165_v55 = vsel %vm1073_vm4, 0.0, %v1149_v37  ;;  %v1173_v3 = vsel %vm1073_vm4, %v1149_v37, 0.0  ;;  %1244 = vst.msk [vmem:[%s1912_s12 + $0x24] sm:$0xf] %vm278_vm3, %v1461_v54  ;;  %1245 = vst.msk [vmem:[%s1912_s12 + $0x28] sm:$0xf] %vm278_vm3, %v1462_v2 }
 0x173   : > { %v1469_v4 = vpack.c.bf16 %v1165_v55, %v1165_v55  ;;  %v1470_v5 = vpack.c.bf16 %v1173_v3, %v1173_v3 }
 0x175   : > { %1252 = vst.msk [vmem:[%s1912_s12 + $0x44] sm:$0xf] %vm278_vm3, %v1469_v4  ;;  %1253 = vst.msk [vmem:[%s1912_s12 + $0x48] sm:$0xf] %vm278_vm3, %v1470_v5 }
 0x176 PF: > { %s16_s17 = sadd.s32 1, %s1714_s17   ;;  %s2182_s15 = smov %s1710_s16 }
 0x177   : > { %p13_p6 = scmp.ge.s32.totalorder %s16_s17, 4   ;;  %s2183_s16 = smov %s2185_s19 }
 0x179   :  { %15 = sbr.rel (!%p13_p6) target bundleno = 3 (0x3), region = 80 }
 0x180   :  { %1281 = vsyncpa [#allocation3], 1 }
 0x181   :  { %1283 = vsyncpa [#allocation3 + $0x1], 1 }
 0x182   :  { %1284 = vsyncpa [#allocation5], 1 }

// kernel: fwd.10
= control target key start
LH: loop header
LB: loop body
LE: loop exit
PB: predicated region body
PF: predicated region fallthrough
CT: control target
= control target key end

     0   :  { %s2396_s15 = smov 0   ;;  %s2398_s16 = smov 0   ;;  %s2765_s0 = inlined_call_operand.vmem [shape: bf16[2,64,128], index: 0, kind: input, shape index: {}]   ;;  %s2766_s1 = inlined_call_operand.vmem [shape: bf16[9,128,128], index: 1, kind: input, shape index: {}]   ;;  %s2767_s2 = inlined_call_operand.vmem [shape: f32[1,128], index: 2, kind: input, shape index: {}]   ;;  %s2768_s3 = inlined_call_operand.vmem [shape: f32[1,128], index: 3, kind: input, shape index: {}]   ;;  %s2769_s4 = inlined_call_operand.vmem [shape: bf16[2,64,128], index: 4, kind: output, shape index: {}]  }
   0x1   :  { %s2400_s17 = smov 0  }
   0x2 LB: > { %s23_s18 = sadd.s32 1, %s2364_s16  ;;  %p1684_p0 = scmp.ge.s32.totalorder %s2368_s17, 1  ;;  %s2368_s17 = sphi %s2400_s17, %s14_s17   ;;  %s2364_s16 = sphi %s2398_s16, %s2771_s16   ;;  %s2360_s15 = sphi %s2396_s15, %s2770_s15  }
   0x3   : > { %p24_p1 = scmp.ge.s32.totalorder %s23_s18, 2  ;;  %p201_p2 = scmp.lt.s32.totalorder %s2368_s17, 3 }
   0x5   : > { %s2773_s18 = smov (%p24_p1, %s23_s18), 0  ;;  %p202_p3 = pnand %p1684_p0, %p201_p2 }
   0x6   : > { %v2258_v0 = vld [vmem:[%s2766_s1 + $0x40] sm:$0xff] (!%p202_p3)   ;;  %v2260_v2 = vld [vmem:[%s2766_s1 + $0x48] sm:$0xff] (!%p202_p3)   ;;  %p240_p4 = scmp.lt.s32.totalorder (!%p202_p3), %s2360_s15, 1  ;;  %v2262_v4 = vld [vmem:[%s2766_s1 + $0x50] sm:$0xff] (!%p202_p3)   ;;  %vm321_vm0 = vsmask.f32 (!%p202_p3), 7424 }
   0x7   : > { %205 = sbr.rel (%p202_p3) target bundleno = 398 (0x18e), region = 36  ;;  %v2259_v1 = vld [vmem:[%s2766_s1 + $0x100] sm:$0xff] (!%p202_p3)   ;;  %2021 = vmatprep.subr.bf16.mxu1 (!%p202_p3), %v2258_v0  ;;  %v2261_v3 = vld [vmem:[%s2766_s1 + $0x108] sm:$0xff] (!%p202_p3)   ;;  %v2263_v5 = vld [vmem:[%s2766_s1 + $0x110] sm:$0xff] (!%p202_p3)   ;;  %vm561_vm1 = vcmask (!%p202_p3), 1046528   ;;  %vm1530_vm2 = vcmask (!%p202_p3), 1040384  }
   0x8   : > { %2101 = vmatprep.subr.bf16.mxu0 (!%p202_p3), %v2259_v1  ;;  %2022 = vmatpush3.bf16.msra.mxu1 (!%p202_p3), %v2258_v0  ;;  %v2264_v6 = vld [vmem:[%s2766_s1 + $0x58] sm:$0xff] (!%p202_p3)   ;;  %v2266_v8 = vld [vmem:[%s2766_s1 + $0x60] sm:$0xff] (!%p202_p3)   ;;  %v2268_v10 = vld [vmem:[%s2766_s1 + $0x68] sm:$0xff] (!%p202_p3)   ;;  %vm1535_vm3 = vcmask (!%p202_p3), 1044480  }
   0x9   : > { %2102 = vmatpush3.bf16.msra.mxu0 (!%p202_p3), %v2259_v1  ;;  %2023 = vmatprep.subr.bf16.mxu1 (!%p202_p3), %v2260_v2  ;;  %v2265_v7 = vld [vmem:[%s2766_s1 + $0x118] sm:$0xff] (!%p202_p3)   ;;  %v2267_v9 = vld [vmem:[%s2766_s1 + $0x120] sm:$0xff] (!%p202_p3)   ;;  %v2269_v14 = vld [vmem:[%s2766_s1 + $0x128] sm:$0xff] (!%p202_p3)  }
   0xa   : > { %2103 = vmatprep.subr.bf16.mxu0 (!%p202_p3), %v2261_v3  ;;  %v2270_v18 = vld [vmem:[%s2766_s1 + $0x70] sm:$0xff] (!%p202_p3)   ;;  %v2272_v32 = vld [vmem:[%s2766_s1 + $0x78] sm:$0xff] (!%p202_p3)   ;;  %v2276_v50 = vld [vmem:[%s2766_s1] sm:$0xff] (!%p202_p3)  }
   0xb   : > { %v2271_v25 = vld [vmem:[%s2766_s1 + $0x130] sm:$0xff] (!%p202_p3)   ;;  %v2273_v40 = vld [vmem:[%s2766_s1 + $0x138] sm:$0xff] (!%p202_p3)   ;;  %v2279_v54 = vld [vmem:[%s2766_s1 + $0x140] sm:$0xff] (!%p202_p3)  }
   0xc   : > { %2024 = vmatpush3.bf16.msra.mxu1 (!%p202_p3), %v2260_v2  ;;  %v2282_v57 = vld [vmem:[%s2766_s1 + $0x8] sm:$0xff] (!%p202_p3)   ;;  %v2284_v59 = vld [vmem:[%s2766_s1 + $0x10] sm:$0xff] (!%p202_p3)   ;;  %v2286_v62 = vld [vmem:[%s2766_s1 + $0x18] sm:$0xff] (!%p202_p3)  }
   0xd   : > { %2104 = vmatpush3.bf16.msra.mxu0 (!%p202_p3), %v2261_v3  ;;  %2025 = vmatprep.subr.bf16.mxu1 (!%p202_p3), %v2262_v4  ;;  %v2283_v58 = vld [vmem:[%s2766_s1 + $0x148] sm:$0xff] (!%p202_p3)   ;;  %v2285_v60 = vld [vmem:[%s2766_s1 + $0x150] sm:$0xff] (!%p202_p3)   ;;  %v2287_v1 = vld [vmem:[%s2766_s1 + $0x158] sm:$0xff] (!%p202_p3)  }
   0xe   : > { %s2775_s15 = smov (!%p240_p4, %s2360_s15), 1  ;;  %2105 = vmatprep.subr.bf16.mxu0 %v2263_v5  ;;  %v2288_v3 = vld [vmem:[%s2766_s1 + $0x20] sm:$0xff]  }
   0xf   : > { %s1913_s9 = sshll.u32 %s2775_s15, 5 }
  0x10   : > { %2026 = vmatpush3.bf16.msra.mxu1 %v2262_v4  ;;  %s2452_s20 = scalar_lea.vmem %s2765_s0, %s1913_s9  ;;  %s2742_s26 = scalar_lea.vmem %s2769_s4, %s1913_s9 }
  0x11   : > { %2106 = vmatpush3.bf16.msra.mxu0 %v2263_v5  ;;  %2027 = vmatprep.subr.bf16.mxu1 %v2264_v6  ;;  %v270_v11 = vld [vmem:[%s2452_s20 + $0x4] sm:$0xf]  ;;  %v2459_v12 = vld [vmem:[%s2452_s20 + $0x8] sm:$0xf]  ;;  %v2462_v13 = vld [vmem:[%s2452_s20 + $0xc] sm:$0xf] }
  0x12   : > { %2107 = vmatprep.subr.bf16.mxu0 %v2265_v7  ;;  %v2468_v15 = vld [vmem:[%s2452_s20 + $0x10] sm:$0xf]  ;;  %v2471_v16 = vcombine.low %v270_v11, %v2459_v12  ;;  %v1765_v17 = vcombine.low %v2459_v12, %v2462_v13  ;;  %v795_v20 = vld [vmem:[%s2452_s20 + $0x8] sm:$0xf]  ;;  %v2486_v23 = vld [vmem:[%s2452_s20 + $0xc] sm:$0xf] }
  0x13   : > { %v2480_v19 = vcombine.low %v2462_v13, %v2468_v15  ;;  %v2489_v24 = vld [vmem:[%s2452_s20 + $0x10] sm:$0xf]  ;;  %v2496_v27 = vld [vmem:[%s2452_s20 + $0x14] sm:$0xf]  ;;  %v1791_v28 = vcombine.low %v795_v20, %v2486_v23  ;;  %v953_v61 = vld [vmem:[%s2452_s20 + $0x8] sm:$0xe] }
  0x14   : > { %2028 = vmatpush3.bf16.msra.mxu1 %v2264_v6  ;;  %v323_v21 = vshrl.u32 %v2471_v16, 16  ;;  %v325_v22 = vshll.u32 %v2471_v16, 16  ;;  %v2501_v30 = vcombine.low %v2489_v24, %v2496_v27  ;;  %v2508_v36 = vld [vmem:[%s2452_s20 + $0x14] ss:$0 sps:$4 sm:$0x11]   ;;  %v1818_v63 = vcombine.low %v953_v61, %v2486_v23  ;;  %v2289_v5 = vld [vmem:[%s2766_s1 + $0x160] sm:$0xff]  }
  0x15   : > { %2108 = vmatpush3.bf16.msra.mxu0 %v2265_v7  ;;  %2029 = vmatprep.subr.bf16.mxu1 %v2266_v8  ;;  %v330_v26 = vshll.u32 %v2480_v19, 16  ;;  %v334_v31 = vshrl.u32 %v2480_v19, 16  ;;  %v831_v34 = vshrl.u32 %v1791_v28, 16  ;;  %v833_v35 = vshll.u32 %v1791_v28, 16  ;;  %v2290_v6 = vld [vmem:[%s2766_s1 + $0x28] sm:$0xff]   ;;  %v2294_v11 = vld [vmem:[%s2766_s1 + $0x38] sm:$0xff]  }
  0x16   : > { %2109 = vmatprep.subr.bf16.mxu0 %v2267_v9  ;;  %v327_v29 = vrot.slane %v325_v22, 1  ;;  %v838_v38 = vshll.u32 %v2501_v30, 16  ;;  %v2512_v39 = vld [vmem:[%s2452_s20 + $0x18] ss:$0 sps:$4 sm:$0x11]   ;;  %v338_v42 = vshll.u32 %v2508_v36, 16 }
  0x17   : > { %v332_v33 = vrot.slane %v330_v26, 1  ;;  %v835_v41 = vrot.slane %v833_v35, 1  ;;  %v842_v43 = vshrl.u32 %v2501_v30, 16  ;;  %v846_v46 = vshll.u32 %v2512_v39, 16  ;;  %v2291_v7 = vld [vmem:[%s2766_s1 + $0x168] sm:$0xff]   ;;  %v2306_v35 = vld [vmem:[%s2766_s1 + $0x1a0] sm:$0xff]  }
  0x18   : > { %2030 = vmatpush3.bf16.msra.mxu1 %v2266_v8  ;;  %v328_v37 = vor.u32 %v327_v29, %v323_v21  ;;  %v840_v45 = vrot.slane %v838_v38, 1  ;;  %v340_v49 = vrot.slane %v338_v42, 1  ;;  %v975_v0 = vrot.slane %v2501_v30, 1  ;;  %v2292_v8 = vld [vmem:[%s2766_s1 + $0x30] sm:$0xff]   ;;  %v2298_v21 = vld [vmem:[%s2766_s1 + $0x180] sm:$0xff]   ;;  %v2299_v28 = vld [vmem:[%s2766_s1 + $0x88] sm:$0xff]  }
  0x19   : > { %2110 = vmatpush3.bf16.msra.mxu0 %v2267_v9  ;;  %2031 = vmatprep.subr.bf16.mxu1 %v2268_v10  ;;  %v836_v47 = vor.u32 %v835_v41, %v831_v34  ;;  %v336_v48 = vor.u32 %v334_v31, %v332_v33  ;;  %v848_v53 = vrot.slane %v846_v46, 1  ;;  %v974_v2 = vrot.slane %v1818_v63, 1  ;;  %v2293_v9 = vld [vmem:[%s2766_s1 + $0x170] sm:$0xff]   ;;  %v2300_v29 = vld [vmem:[%s2766_s1 + $0x188] sm:$0xff]   ;;  %v2305_v34 = vld [vmem:[%s2766_s1 + $0xa0] sm:$0xff]  }
  0x1a   : > { %2111 = vmatprep.subr.bf16.mxu0 %v2269_v14  ;;  %v333_v44 = vsel %vm321_vm0, %v328_v37, %v332_v33  ;;  %v844_v52 = vor.u32 %v842_v43, %v840_v45  ;;  %v977_v20 = vrot.slane %v2512_v39, 1  ;;  %v1843_v31 = vcombine.low %v2486_v23, %v2489_v24  ;;  %v2302_v33 = vld [vmem:[%s2766_s1 + $0x190] sm:$0xff]   ;;  %v2303_v23 = vld [vmem:[%s2766_s1 + $0x98] sm:$0xff]   ;;  %v2307_v37 = vld [vmem:[%s2766_s1 + $0xa8] sm:$0xff]  }
  0x1b   : > { %2037 = vmatprep.mubr.bf16.mxu1 %v333_v44  ;;  %v841_v51 = vsel %vm321_vm0, %v836_v47, %v840_v45  ;;  %v341_v55 = vsel %vm321_vm0, %v336_v48, %v340_v49  ;;  %v976_v4 = vsel %vm561_vm1, %v974_v2, %v975_v0  ;;  %v2304_v24 = vld [vmem:[%s2766_s1 + $0x198] sm:$0xff]   ;;  %v1207_v38 = vld [vmem:[%s2452_s20 + $0xc] sm:$0xf]  ;;  %v2623_v39 = vld [vmem:[%s2452_s20 + $0x10] sm:$0xf]  ;;  %v565_v48 = vrot.slane %v2508_v36, 1 }
  0x1c   : > { %2032 = vmatpush3.bf16.msra.mxu1 %v2268_v10  ;;  %2117 = vmatprep.mubr.bf16.mxu0 %v841_v51  ;;  %v849_v56 = vsel %vm321_vm0, %v844_v52, %v848_v53  ;;  %v540_v10 = vld [vmem:[%s2452_s20 + $0x4] sm:$0xe]  ;;  %v978_v26 = vsel %vm561_vm1, %v975_v0, %v977_v20  ;;  %v1869_v41 = vcombine.low %v1207_v38, %v2623_v39  ;;  %v2309_v42 = vld [vmem:[%s2766_s1 + $0xb0] sm:$0xff]   ;;  %v2311_v46 = vld [vmem:[%s2766_s1 + $0xb8] sm:$0xff]  }
  0x1d   : > { %2112 = vmatpush3.bf16.msra.mxu0 %v2269_v14  ;;  %2033 = vmatprep.subr.bf16.mxu1 %v2270_v18  ;;  %v2295_v14 = vld [vmem:[%s2766_s1 + $0x178] sm:$0xff]   ;;  %v2310_v43 = vld [vmem:[%s2766_s1 + $0x1b0] sm:$0xff]   ;;  %v2314_v52 = vld [vmem:[%s2766_s1 + $0xc0] sm:$0xff]  }
  0x1e   : > { %2113 = vmatprep.subr.bf16.mxu0 %v2271_v25  ;;  %v2636_v44 = vld [vmem:[%s2452_s20 + $0x14] sm:$0xff]   ;;  %v1245_v45 = vshll.u32 %v1869_v41, 16  ;;  %v1243_v49 = vshrl.u32 %v1869_v41, 16  ;;  %v2325_v13 = vld [vmem:[%s2766_s1 + $0x1e0] sm:$0xff]   ;;  %v2327_v63 = vld [vmem:[%s2766_s1 + $0x1e8] sm:$0xff]  }
  0x1f   : > { %v2312_v47 = vld [vmem:[%s2766_s1 + $0x1b8] sm:$0xff]   ;;  %v1250_v51 = vshll.u32 %v2636_v44, 16  ;;  %v2328_v0 = vld [vmem:[%s2766_s1 + $0xf0] sm:$0xff]   ;;  %v1905_v38 = vld [vmem:[%s2767_s2] ss:$0 sm:$0xff] }
  0x20   : > { %2034 = vmatpush3.bf16.msra.mxu1 %v2270_v18  ;;  %v2296_v18 = vld [vmem:[%s2766_s1 + $0x80] sm:$0xff]   ;;  %v1082_v53 = vld [vmem:[%s2452_s20 + $0x18] sm:$0xf]  ;;  %v2329_v2 = vld [vmem:[%s2766_s1 + $0x1f0] sm:$0xff]  }
  0x21   : > { %2114 = vmatpush3.bf16.msra.mxu0 %v2271_v25  ;;  %2035 = vmatprep.subr.bf16.mxu1 %v2272_v32  ;;  %v563_v25 = vrot.slane %v2480_v19, 1  ;;  %v2322_v61 = vld [vmem:[%s2766_s1 + $0xd8] sm:$0xff]  }
  0x22   : > { %2115 = vmatprep.subr.bf16.mxu0 %v2273_v40 }
  0x23   : > { %v566_v36 = vsel %vm561_vm1, %v563_v25, %v565_v48 }
  0x24   : > { %2036 = vmatpush3.bf16.msra.mxu1 %v2272_v32  ;;  %v2301_v32 = vld [vmem:[%s2766_s1 + $0x90] sm:$0xff]  }
  0x25   : > { %2116 = vmatpush3.bf16.msra.mxu0 %v2273_v40  ;;  %2041 = vmatprep.subr.bf16.mxu1 %v2276_v50  ;;  %v2308_v40 = vld [vmem:[%s2766_s1 + $0x1a8] sm:$0xff]  }
  0x26   : > { %2121 = vmatprep.subr.bf16.mxu0 %v2279_v54 }
  0x27   : > { %2038 = vmatmul.mubr.bf16.vlgmr.msra.gmra.mrb[0].mxu1 %v341_v55  ;;  %v1844_v55 = vcombine.low %v2496_v27, %v1082_v53  ;;  %v2320_v27 = vld [vmem:[%s2766_s1 + $0xd0] sm:$0xff]  }
  0x28   : > { %2042 = vmatpush3.bf16.msra.mxu1 %v2276_v50  ;;  %2118 = vmatmul.mubr.bf16.vlgmr.msra.gmra.mrb[0].mxu0 %v849_v56  ;;  %v1247_v50 = vrot.slane %v1245_v45, 1 }
  0x29   : > { %2122 = vmatpush3.bf16.msra.mxu0 %v2279_v54  ;;  %2043 = vmatprep.subr.bf16.mxu1 %v2282_v57  ;;  %v2316_v54 = vld [vmem:[%s2766_s1 + $0x1c0] sm:$0xff]  }
  0x2a   : > { %2123 = vmatprep.subr.bf16.mxu0 %v2283_v58  ;;  %2057 = vmatprep.mubr.bf16.mxu1 %v2471_v16  ;;  %v1740_v16 = vcombine.low %v540_v10, %v2459_v12  ;;  %v1248_v56 = vor.u32 %v1247_v50, %v1243_v49  ;;  %v2324_v12 = vld [vmem:[%s2766_s1 + $0xe0] sm:$0xff]  }
  0x2b   : > { %2137 = vmatprep.mubr.bf16.mxu0 %v976_v4  ;;  %v2330_v4 = vld [vmem:[%s2766_s1 + $0xf8] sm:$0xff]  }
  0x2c   : > { %2044 = vmatpush3.bf16.msra.mxu1 %v2282_v57  ;;  %v562_v22 = vrot.slane %v1740_v16, 1  ;;  %v1252_v57 = vrot.slane %v1250_v51, 1 }
  0x2d   : > { %2124 = vmatpush3.bf16.msra.mxu0 %v2283_v58  ;;  %2045 = vmatprep.subr.bf16.mxu1 %v2284_v59  ;;  %v2318_v58 = vld [vmem:[%s2766_s1 + $0xc8] sm:$0xff]  }
  0x2e   : > { %2125 = vmatprep.subr.bf16.mxu0 %v2285_v60  ;;  %v564_v30 = vsel %vm561_vm1, %v562_v22, %v563_v25  ;;  %v2338_v22 = vld [vmem:[%s2766_s1 + $0x208] sm:$0xff]  }
  0x30   : > { %2046 = vmatpush3.bf16.msra.mxu1 %v2284_v59  ;;  %v2319_v59 = vld [vmem:[%s2766_s1 + $0x1c8] sm:$0xff]  }
  0x31   : > { %2126 = vmatpush3.bf16.msra.mxu0 %v2285_v60  ;;  %2047 = vmatprep.subr.bf16.mxu1 %v2286_v62  ;;  %v2321_v60 = vld [vmem:[%s2766_s1 + $0x1d0] sm:$0xff]  }
  0x32   : > { %2127 = vmatprep.subr.bf16.mxu0 %v2287_v1 }
  0x34   : > { %2048 = vmatpush3.bf16.msra.mxu1 %v2286_v62  ;;  %v2323_v62 = vld [vmem:[%s2766_s1 + $0x1d8] sm:$0xff]  }
  0x35   : > { %2128 = vmatpush3.bf16.msra.mxu0 %v2287_v1  ;;  %2049 = vmatprep.subr.bf16.mxu1 %v2288_v3  ;;  %v2337_v1 = vld [vmem:[%s2452_s20 + $0x1c] ss:$0 sps:$4 sm:$0x11]  }
  0x36   : > { %2129 = vmatprep.subr.bf16.mxu0 %v2289_v5 }
  0x38   : > { %2050 = vmatpush3.bf16.msra.mxu1 %v2288_v3  ;;  %v1365_v3 = vld [vmem:[%s2452_s20 + $0xc] sm:$0xe] }
  0x39   : > { %2130 = vmatpush3.bf16.msra.mxu0 %v2289_v5  ;;  %2051 = vmatprep.subr.bf16.mxu1 %v2290_v6  ;;  %v1254_v5 = vshrl.u32 %v2636_v44, 16 }
  0x3a   : > { %2131 = vmatprep.subr.bf16.mxu0 %v2291_v7 }
  0x3b   : > { %v1256_v10 = vor.u32 %v1254_v5, %v1252_v57 }
  0x3c   : > { %2052 = vmatpush3.bf16.msra.mxu1 %v2290_v6  ;;  %v1258_v6 = vshll.u32 %v2337_v1, 16 }
  0x3d   : > { %2132 = vmatpush3.bf16.msra.mxu0 %v2291_v7  ;;  %2053 = vmatprep.subr.bf16.mxu1 %v2292_v8  ;;  %v2331_v7 = vld [vmem:[%s2766_s1 + $0x1f8] sm:$0xff]  }
  0x3e   : > { %2133 = vmatprep.subr.bf16.mxu0 %v2293_v9 }
  0x40   : > { %2054 = vmatpush3.bf16.msra.mxu1 %v2292_v8  ;;  %v1896_v8 = vcombine.low %v1365_v3, %v2623_v39 }
  0x41   : > { %2134 = vmatpush3.bf16.msra.mxu0 %v2293_v9  ;;  %2055 = vmatprep.subr.bf16.mxu1 %v2294_v11  ;;  %v670_v9 = vld [vmem:[%s2452_s20 + $0x14] sm:$0xf] }
  0x42   : > { %2135 = vmatprep.subr.bf16.mxu0 %v2295_v14  ;;  %v1386_v16 = vrot.slane %v1896_v8, 1  ;;  %v1766_v20 = vcombine.low %v2468_v15, %v670_v9  ;;  %v2339_v15 = vld [vmem:[%s2766_s1 + $0x210] sm:$0xff]  }
  0x44   : > { %2056 = vmatpush3.bf16.msra.mxu1 %v2294_v11  ;;  %v1260_v11 = vrot.slane %v1258_v6, 1 }
  0x45   : > { %2136 = vmatpush3.bf16.msra.mxu0 %v2295_v14  ;;  %2061 = vmatprep.subr.bf16.mxu1 %v2296_v18  ;;  %v2336_v14 = vld [vmem:[%s2766_s1 + $0x200] sm:$0xff]  }
  0x46   : > { %2141 = vmatprep.subr.bf16.mxu0 %v2298_v21 }
  0x47   : > { %2058 = vmatmul.mubr.bf16.vlgmr.msra.gmra.mrb[0].mxu1 %v2480_v19  ;;  %v1253_v19 = vsel %vm321_vm0, %v1248_v56, %v1252_v57 }
  0x48   : > { %2062 = vmatpush3.bf16.msra.mxu1 %v2296_v18  ;;  %2138 = vmatmul.mubr.bf16.vlgmr.msra.gmra.mrb[0].mxu0 %v978_v26  ;;  %v1387_v18 = vrot.slane %v2636_v44, 1  ;;  %v2340_v26 = vld [vmem:[%s2766_s1 + $0x218] sm:$0xff]  }
  0x49   : > { %2142 = vmatpush3.bf16.msra.mxu0 %v2298_v21  ;;  %2063 = vmatprep.subr.bf16.mxu1 %v2299_v28  ;;  %v1261_v21 = vsel %vm321_vm0, %v1256_v10, %v1260_v11 }
  0x4a   : > { %2143 = vmatprep.subr.bf16.mxu0 %v2300_v29  ;;  %2077 = vmatprep.mubr.bf16.mxu1 %v564_v30  ;;  %v1388_v25 = vsel %vm561_vm1, %v1386_v16, %v1387_v18  ;;  %v2343_v30 = vld [vmem:[%s2766_s1 + $0x230] sm:$0xff]  }
  0x4b   : > { %2157 = vmatprep.mubr.bf16.mxu0 %v1843_v31  ;;  %v2344_v31 = vld [vmem:[%s2766_s1 + $0x238] sm:$0xff]  }
  0x4c   : > { %2064 = vmatpush3.bf16.msra.mxu1 %v2299_v28  ;;  %v2341_v28 = vld [vmem:[%s2766_s1 + $0x220] sm:$0xff]  }
  0x4d   : > { %2144 = vmatpush3.bf16.msra.mxu0 %v2300_v29  ;;  %2065 = vmatprep.subr.bf16.mxu1 %v2301_v32  ;;  %v2342_v29 = vld [vmem:[%s2766_s1 + $0x228] sm:$0xff]  }
  0x4e   : > { %2145 = vmatprep.subr.bf16.mxu0 %v2302_v33 }
  0x50   : > { %2066 = vmatpush3.bf16.msra.mxu1 %v2301_v32  ;;  %v1389_v32 = vrot.slane %v2337_v1, 1 }
  0x51   : > { %2146 = vmatpush3.bf16.msra.mxu0 %v2302_v33  ;;  %2067 = vmatprep.subr.bf16.mxu1 %v2303_v23 }
  0x52   : > { %2147 = vmatprep.subr.bf16.mxu0 %v2304_v24  ;;  %v1390_v33 = vsel %vm561_vm1, %v1387_v18, %v1389_v32 }
  0x54   : > { %2068 = vmatpush3.bf16.msra.mxu1 %v2303_v23  ;;  %v2370_v23 = vmov 0  }
  0x55   : > { %2148 = vmatpush3.bf16.msra.mxu0 %v2304_v24  ;;  %2069 = vmatprep.subr.bf16.mxu1 %v2305_v34  ;;  %266 = vst [vmem:[%s2742_s26] sm:$0xf] %v2370_v23  ;;  %267 = vst [vmem:[%s2742_s26 + $0x4] sm:$0xf] %v2370_v23 }
  0x56   : > { %2149 = vmatprep.subr.bf16.mxu0 %v2306_v35  ;;  %268 = vst [vmem:[%s2742_s26 + $0x18] sm:$0xf] %v2370_v23  ;;  %269 = vst [vmem:[%s2742_s26 + $0x1c] sm:$0xf] %v2370_v23 }
  0x58   : > { %2070 = vmatpush3.bf16.msra.mxu1 %v2305_v34 }
  0x59   : > { %2150 = vmatpush3.bf16.msra.mxu0 %v2306_v35  ;;  %2071 = vmatprep.subr.bf16.mxu1 %v2307_v37 }
  0x5a   : > { %2151 = vmatprep.subr.bf16.mxu0 %v2308_v40 }
  0x5c   : > { %2072 = vmatpush3.bf16.msra.mxu1 %v2307_v37 }
  0x5d   : > { %2152 = vmatpush3.bf16.msra.mxu0 %v2308_v40  ;;  %2073 = vmatprep.subr.bf16.mxu1 %v2309_v42 }
  0x5e   : > { %2153 = vmatprep.subr.bf16.mxu0 %v2310_v43 }
  0x60   : > { %2074 = vmatpush3.bf16.msra.mxu1 %v2309_v42  ;;  %v1906_v42 = vld [vmem:[%s2768_s3] ss:$0 sm:$0xff] }
  0x61   : > { %2154 = vmatpush3.bf16.msra.mxu0 %v2310_v43  ;;  %2075 = vmatprep.subr.bf16.mxu1 %v2311_v46 }
  0x62   : > { %2155 = vmatprep.subr.bf16.mxu0 %v2312_v47 }
  0x64   : > { %2076 = vmatpush3.bf16.msra.mxu1 %v2311_v46 }
  0x65   : > { %2156 = vmatpush3.bf16.msra.mxu0 %v2312_v47  ;;  %2081 = vmatprep.subr.bf16.mxu1 %v2314_v52 }
  0x66   : > { %2161 = vmatprep.subr.bf16.mxu0 %v2316_v54 }
  0x67   : > { %2078 = vmatmul.mubr.bf16.vlgmr.msra.gmra.mrb[0].mxu1 %v566_v36 }
  0x68   : > { %2082 = vmatpush3.bf16.msra.mxu1 %v2314_v52  ;;  %2158 = vmatmul.mubr.bf16.vlgmr.msra.gmra.mrb[0].mxu0 %v1844_v55 }
  0x69   : > { %2162 = vmatpush3.bf16.msra.mxu0 %v2316_v54  ;;  %2083 = vmatprep.subr.bf16.mxu1 %v2318_v58 }
  0x6a   : > { %2163 = vmatprep.subr.bf16.mxu0 %v2319_v59  ;;  %2097 = vmatprep.mubr.bf16.mxu1 %v1765_v17  ;;  %v2326_v17 = vld [vmem:[%s2766_s1 + $0xe8] sm:$0xff]  }
  0x6b   : > { %2177 = vmatprep.mubr.bf16.mxu0 %v1253_v19 }
  0x6c   : > { %2084 = vmatpush3.bf16.msra.mxu1 %v2318_v58 }
  0x6d   : > { %2164 = vmatpush3.bf16.msra.mxu0 %v2319_v59  ;;  %2085 = vmatprep.subr.bf16.mxu1 %v2320_v27 }
  0x6e   : > { %2165 = vmatprep.subr.bf16.mxu0 %v2321_v60 }
  0x70   : > { %2086 = vmatpush3.bf16.msra.mxu1 %v2320_v27 }
  0x71   : > { %2166 = vmatpush3.bf16.msra.mxu0 %v2321_v60  ;;  %2087 = vmatprep.subr.bf16.mxu1 %v2322_v61 }
  0x72   : > { %2167 = vmatprep.subr.bf16.mxu0 %v2323_v62 }
  0x74   : > { %2088 = vmatpush3.bf16.msra.mxu1 %v2322_v61 }
  0x75   : > { %2168 = vmatpush3.bf16.msra.mxu0 %v2323_v62  ;;  %2089 = vmatprep.subr.bf16.mxu1 %v2324_v12 }
  0x76   : > { %2169 = vmatprep.subr.bf16.mxu0 %v2325_v13 }
  0x78   : > { %2090 = vmatpush3.bf16.msra.mxu1 %v2324_v12 }
  0x79   : > { %2170 = vmatpush3.bf16.msra.mxu0 %v2325_v13  ;;  %2091 = vmatprep.subr.bf16.mxu1 %v2326_v17 }
  0x7a   : > { %2171 = vmatprep.subr.bf16.mxu0 %v2327_v63 }
  0x7c   : > { %2092 = vmatpush3.bf16.msra.mxu1 %v2326_v17 }
  0x7d   : > { %2172 = vmatpush3.bf16.msra.mxu0 %v2327_v63  ;;  %2093 = vmatprep.subr.bf16.mxu1 %v2328_v0 }
  0x7e   : > { %2173 = vmatprep.subr.bf16.mxu0 %v2329_v2 }
  0x80   : > { %2094 = vmatpush3.bf16.msra.mxu1 %v2328_v0 }
  0x81   : > { %2174 = vmatpush3.bf16.msra.mxu0 %v2329_v2  ;;  %2095 = vmatprep.subr.bf16.mxu1 %v2330_v4 }
  0x82   : > { %2175 = vmatprep.subr.bf16.mxu0 %v2331_v7 }
  0x84   : > { %2096 = vmatpush3.bf16.msra.mxu1 %v2330_v4 }
  0x85   : > { %2176 = vmatpush3.bf16.msra.mxu0 %v2331_v7 }
  0x86   : > { %2181 = vmatprep.subr.bf16.mxu0 %v2336_v14 }
  0x87   : > { %2098 = vmatmul.mubr.bf16.vlgmr.msra.gmra.mrb[0].mxu1 %v1766_v20 }
  0x88   : > { %2178 = vmatmul.mubr.bf16.vlgmr.msra.gmra.mrb[0].mxu0 %v1261_v21 }
  0x89   : > { %2182 = vmatpush3.bf16.msra.mxu0 %v2336_v14  ;;  %2197 = vmatprep.mubr.bf16.mxu0 %v1388_v25 }
  0x8a   : > { %2183 = vmatprep.subr.bf16.mxu0 %v2338_v22 }
  0x8d   : > { %2184 = vmatpush3.bf16.msra.mxu0 %v2338_v22 }
  0x8e   : > { %2185 = vmatprep.subr.bf16.mxu0 %v2339_v15 }
  0x91   : > { %2186 = vmatpush3.bf16.msra.mxu0 %v2339_v15 }
  0x92   : > { %2187 = vmatprep.subr.bf16.mxu0 %v2340_v26 }
  0x95   : > { %2188 = vmatpush3.bf16.msra.mxu0 %v2340_v26 }
  0x96   : > { %2189 = vmatprep.subr.bf16.mxu0 %v2341_v28 }
  0x99   : > { %2190 = vmatpush3.bf16.msra.mxu0 %v2341_v28 }
  0x9a   : > { %2191 = vmatprep.subr.bf16.mxu0 %v2342_v29 }
  0x9d   : > { %2192 = vmatpush3.bf16.msra.mxu0 %v2342_v29 }
  0x9e   : > { %2193 = vmatprep.subr.bf16.mxu0 %v2343_v30 }
  0xa1   : > { %2194 = vmatpush3.bf16.msra.mxu0 %v2343_v30 }
  0xa2   : > { %2195 = vmatprep.subr.bf16.mxu0 %v2344_v31 }
  0xa5   : > { %2196 = vmatpush3.bf16.msra.mxu0 %v2344_v31 }
  0xa8   : > { %2198 = vmatmul.mubr.bf16.vlgmr.msra.gmra.mrb[0].mxu0 %v1390_v33 }
 0x15a   : > { %v2099_v24 = vpop.f32.mrb[0].mxu1 }
 0x15b   : > { %v776_v34 = vpop.f32.mrb[1].mxu1 }
 0x15c   : > { %v2100_v35 = vpop.f32.mrb[2].mxu1 }
 0x15d   : > { %v779_v37 = vpop.f32.mrb[3].mxu1 }
 0x17b   : > { %v2199_v39 = vpop.f32.mrb[0].mxu0 }
 0x17c   : > { %v2201_v40 = vadd.f32 %v2199_v39, %v2099_v24  ;;  %v1475_v41 = vpop.f32.mrb[1].mxu0 }
 0x17d   : > { %v2202_v43 = vadd.f32 %v1475_v41, %v776_v34  ;;  %v2200_v44 = vpop.f32.mrb[2].mxu0 }
 0x17e   : > { %v1502_v45 = vmul.f32 %v2201_v40, %v1905_v38  ;;  %v2203_v46 = vadd.f32 %v2200_v44, %v2100_v35  ;;  %v1478_v47 = vpop.f32.mrb[3].mxu0 }
 0x17f   : > { %v1500_v48 = vmul.f32 %v2202_v43, %v1905_v38  ;;  %v2204_v49 = vadd.f32 %v1478_v47, %v779_v37 }
 0x180   : > { %v1512_v50 = vadd.f32 %v1906_v42, %v1502_v45  ;;  %v1503_v51 = vmul.f32 %v2203_v46, %v1905_v38 }
 0x181   : > { %v1510_v52 = vadd.f32 %v1906_v42, %v1500_v48  ;;  %v1501_v53 = vmul.f32 %v2204_v49, %v1905_v38 }
 0x182   : > { %v1516_v54 = vmax.f32 %v1512_v50, 0.0  ;;  %v1513_v36 = vadd.f32 %v1906_v42, %v1503_v51 }
 0x183   : > { %v1514_v55 = vmax.f32 %v1510_v52, 0.0  ;;  %v1511_v56 = vadd.f32 %v1906_v42, %v1501_v53 }
 0x184   : > { %v1524_v57 = vrot.slane %v1516_v54, 7  ;;  %v1517_v58 = vmax.f32 %v1513_v36, 0.0 }
 0x185   : > { %v1522_v59 = vrot.slane %v1514_v55, 7  ;;  %v1515_v19 = vmax.f32 %v1511_v56, 0.0 }
 0x186   : > { %v1533_v27 = vsel %vm1530_vm2, 0.0, %v1524_v57  ;;  %v1525_v60 = vrot.slane %v1517_v58, 7 }
 0x187   : > { %v1531_v61 = vsel %vm1530_vm2, 0.0, %v1522_v59  ;;  %v1523_v62 = vrot.slane %v1515_v19, 7  ;;  %v1538_v13 = vsel %vm1535_vm3, %v1533_v27, 0.0 }
 0x188   : > { %v1534_v12 = vsel %vm1530_vm2, 0.0, %v1525_v60  ;;  %v1536_v0 = vsel %vm1535_vm3, %v1531_v61, 0.0 }
 0x189   : > { %v1539_v17 = vsel %vm1535_vm3, %v1534_v12, 0.0  ;;  %v1532_v63 = vsel %vm1530_vm2, 0.0, %v1523_v62 }
 0x18a   : > { %v1927_v1 = vpack.c.bf16 %v1539_v17, %v1538_v13  ;;  %v1537_v2 = vsel %vm1535_vm3, %v1532_v63, 0.0 }
 0x18b   : > { %v1922_v3 = vpack.c.bf16 %v1537_v2, %v1536_v0 }
 0x18c   : > { %1930 = vst [vmem:[%s2742_s26 + $0x10] sm:$0xff] %v1927_v1  }
 0x18d   : > { %1929 = vst [vmem:[%s2742_s26 + $0x8] sm:$0xff] %v1922_v3  }
 0x18e PF: > { %s14_s17 = sadd.s32 1, %s2368_s17   ;;  %s2770_s15 = smov %s2364_s16 }
 0x18f   : > { %p11_p5 = scmp.ge.s32.totalorder %s14_s17, 4   ;;  %s2771_s16 = smov %s2773_s18 }
 0x191   :  { %13 = sbr.rel (!%p11_p5) target bundleno = 2 (0x2), region = 83 }

// kernel: fwd.8
= control target key start
LH: loop header
LB: loop body
LE: loop exit
PB: predicated region body
PF: predicated region fallthrough
CT: control target
= control target key end

     0   :  { %9 = vsyncpa [#allocation3], 0  ;;  %s4153_s0 = inlined_call_operand.vmem [shape: bf16[2,176,64], index: 0, kind: input, shape index: {}]   ;;  %s4154_s1 = inlined_call_operand.vmem [shape: bf16[9,64,64], index: 1, kind: input, shape index: {}]   ;;  %s4155_s2 = inlined_call_operand.hbm [shape: f32[1,64], index: 2, kind: input, shape index: {}]   ;;  %s4156_s3 = inlined_call_operand.hbm [shape: f32[1,64], index: 3, kind: input, shape index: {}]   ;;  %s4157_s4 = inlined_call_operand.vmem [shape: bf16[2,176,64], index: 4, kind: output, shape index: {}]  }
   0x1   :  { %10 = vsyncpa [#allocation5], 0  ;;  %s3451_s15 = smov 0   ;;  %s3453_s16 = smov 0  }
   0x2   :  { %s3455_s17 = smov 0  }
   0x3 LB: > { %s2484_s18 = sadd.s32 4294967295, %s3421_s17   ;;  %s25_s19 = sadd.s32 1, %s3417_s16  ;;  %s3421_s17 = sphi %s3455_s17, %s16_s17   ;;  %s3417_s16 = sphi %s3453_s16, %s4167_s16   ;;  %s3413_s15 = sphi %s3451_s15, %s4166_s15  }
   0x4   : > { %p26_p0 = scmp.ge.s32.totalorder %s25_s19, 2  ;;  %p2486_p1 = scmp.ge.s32.totalorder %s3421_s17, 1 }
   0x5   : > { %p165_p2 = scmp.lt.s32.totalorder %s3421_s17, 3  ;;  %p3476_p4 = scmp.eq.s32.totalorder %s2484_s18, 0 }
   0x6   : > { %s4169_s19 = smov (%p26_p0, %s25_s19), 0  ;;  %s3423_s22 = smov [#allocation2]  }
   0x7   : > { %p3472_p3 = pnand %p2486_p1, %p165_p2  ;;  %s187_s23 = sshll.u32 %s3423_s22, 4  ;;  %s188_s23 = int_to_ptr.vmem [resolvable:$true] %s187_s23 }
   0x8   : > { %s4162_s21 = scalar_select %p3476_p4, 1, 0 }
   0x9   : > { %s4161_s20 = scalar_select %p3472_p3, 1, 0 }
   0xa   : > { %p3211_p5 = pneg %p3472_p3  ;;  %s3424_s24 = smov [#allocation4]  }
   0xb   : > { %s200_s25 = sshll.u32 %s3424_s24, 4  ;;  %s3335_s29 = scalar_lea.hbm %s4155_s2, 16  ;;  %s3488_s25 = int_to_ptr.vmem [resolvable:$true] %s200_s25 }
   0xc   : > { %p3484_p6 = pnand %p3476_p4, %p3211_p5  ;;  %p3336_p7 = scmp.ne.s32.totalorder %s4155_s2, %s3335_s29 }
   0xd   : > { %p3342_p11 = scmp.lt.u32.totalorder %s3335_s29, %s4155_s2 }
   0xe   : > { %p3337_p8 = pneg %p3484_p6 }
  0x10   : > { %p3338_p9 = pnand %p3337_p8, %p3336_p7 }
  0x12   : > { %p3339_p10 = pneg %p3338_p9 }
  0x14   : > { %p3344_p12 = pnand %p3342_p11, %p3339_p10 }
  0x16   : > { %3347 = shalt.err (!%p3344_p12)
}
  0x17   : > { %s3348_s8 = scalar_lea.vmem %s188_s23, 16  ;;  %s3355_s9 = scalar_lea.vmem %s188_s23, 32 }
  0x18   : > { %p3349_p13 = scmp.ne.s32.totalorder %s188_s23, %s3348_s8  ;;  %p3356_p2 = scmp.lt.s32.totalorder %s188_s23, %s188_s23 }
  0x19   : > { %p3357_p5 = scmp.lt.s32.totalorder %s3355_s9, %s3348_s8 }
  0x1a   : > { %p3351_p0 = pnand %p3349_p13, %p3337_p8 }
  0x1b   : > { %p3358_p4 = por %p3357_p5, %p3356_p2 }
  0x1c   : > { %p3352_p1 = pneg %p3351_p0 }
  0x1e   : > { %p3359_p3 = pnand %p3358_p4, %p3352_p1 }
  0x20   : > { %3362 = shalt.err (!%p3359_p3)
}
  0x21   : > { %3214 = dma.hbm_to_vmem [thread:$0]  (!%p3484_p6), %s4155_s2, 16, %s188_s23, [#allocation3]  }
  0x22   : > { %s3363_s14 = scalar_lea.hbm %s4156_s3, 16 }
  0x23   : > { %p3364_p7 = scmp.ne.s32.totalorder %s4156_s3, %s3363_s14  ;;  %p3370_p3 = scmp.lt.u32.totalorder %s3363_s14, %s4156_s3 }
  0x25   : > { %p3366_p9 = pnand %p3364_p7, %p3337_p8 }
  0x27   : > { %p3367_p4 = pneg %p3366_p9 }
  0x29   : > { %p3372_p10 = pnand %p3370_p3, %p3367_p4 }
  0x2b   : > { %3375 = shalt.err (!%p3372_p10)
}
  0x2c   : > { %s3376_s23 = scalar_lea.vmem %s3488_s25, 16  ;;  %s3383_s28 = scalar_lea.vmem %s3488_s25, 32 }
  0x2d   : > { %p3377_p11 = scmp.ne.s32.totalorder %s3488_s25, %s3376_s23  ;;  %p3384_p0 = scmp.lt.s32.totalorder %s3488_s25, %s3488_s25 }
  0x2e   : > { %p3385_p1 = scmp.lt.s32.totalorder %s3383_s28, %s3376_s23 }
  0x2f   : > { %p3379_p12 = pnand %p3377_p11, %p3337_p8 }
  0x30   : > { %p3386_p2 = por %p3385_p1, %p3384_p0 }
  0x31   : > { %p3380_p13 = pneg %p3379_p12 }
  0x33   : > { %p3387_p5 = pnand %p3386_p2, %p3380_p13 }
  0x35   : > { %3390 = shalt.err (!%p3387_p5)
}
  0x36   : > { %3217 = dma.hbm_to_vmem [thread:$0]  (!%p3484_p6), %s4156_s3, 16, %s3488_s25, [#allocation5]  }
  0x37   : > { %p4164_p7 = scmp.ne.s32.totalorder %s4161_s20, 0 }
  0x38   : > { %p4165_p8 = scmp.ne.s32.totalorder (!%p4164_p7), %s4162_s21, 0 }
  0x39   : > { %221 = sbr.rel (%p4164_p7) target bundleno = 450 (0x1c2), region = 36 }
  0x40   : > { %3404 = dma.done.wait (%p4165_p8), [#allocation3], 16  }
  0x41   : > { %3406 = vsyncadd (%p4165_p8), [#allocation3], 4294967280 }
  0x42   : > { %3408 = dma.done.wait (%p4165_p8), [#allocation5], 16  }
  0x43   : > { %3410 = vsyncadd (%p4165_p8), [#allocation5], 4294967280  ;;  %p258_p9 = scmp.lt.s32.totalorder %s3413_s15, 1  ;;  %v3249_v0 = vld [vmem:[%s4154_s1 + $0x20] sm:$0xff]   ;;  %v3251_v2 = vld [vmem:[%s4154_s1 + $0x28] sm:$0xff]   ;;  %vm455_vm1 = vcmask 523264  }
  0x44   : > { %v3558_v1 = vld [vmem:[%s4154_s1 + $0x80] sm:$0xff]   ;;  %2858 = vmatprep.subr.bf16.mxu1 %v3249_v0  ;;  %v3568_v3 = vld [vmem:[%s4154_s1 + $0x88] sm:$0xff]   ;;  %v3253_v4 = vld [vmem:[%s4154_s1 + $0x30] sm:$0xff]   ;;  %vm362_vm0 = vsmask.f32 7424  ;;  %vm711_vm2 = vcmask 1046528  }
  0x45   : > { %s4171_s15 = smov (!%p258_p9, %s3413_s15), 1  ;;  %2954 = vmatprep.subr.bf16.mxu0 %v3558_v1  ;;  %2859 = vmatpush3.bf16.msra.mxu1 %v3249_v0  ;;  %v3578_v5 = vld [vmem:[%s4154_s1 + $0x90] sm:$0xff]   ;;  %v3255_v6 = vld [vmem:[%s4154_s1 + $0x38] sm:$0xff]   ;;  %v3262_v28 = vld [vmem:[%s4154_s1] sm:$0xff]   ;;  %vm278_vm3 = vcmask 519168   ;;  %vm2268_vm4 = vcmask 1040384  }
  0x46   : > { %s3202_s6 = smul.u32 88, %s4171_s15  ;;  %2955 = vmatpush3.bf16.msra.mxu0 %v3558_v1  ;;  %2860 = vmatprep.subr.bf16.mxu1 %v3251_v2  ;;  %v3593_v7 = vld [vmem:[%s4154_s1 + $0x98] sm:$0xff]   ;;  %v3264_v35 = vld [vmem:[%s4154_s1 + $0xa0] sm:$0xff]   ;;  %v3265_v42 = vld [vmem:[%s4154_s1 + $0xa8] sm:$0xff]  }
  0x47   : > { %2956 = vmatprep.subr.bf16.mxu0 %v3568_v3  ;;  %v3269_v55 = vld [vmem:[%s4154_s1 + $0x8] sm:$0xff]  }
  0x48   : > { %s3585_s22 = scalar_lea.vmem %s4153_s0, %s3202_s6  ;;  %s4062_s5 = scalar_lea.vmem %s4157_s4, %s3202_s6 }
  0x49   : > { %2861 = vmatpush3.bf16.msra.mxu1 %v3251_v2  ;;  %v285_v8 = vld [vmem:[%s3585_s22 + $0x4] sm:$0xf]  ;;  %v3598_v9 = vld [vmem:[%s3585_s22 + $0x8] sm:$0xf]  ;;  %v3605_v11 = vld [vmem:[%s3585_s22 + $0xc] sm:$0xff]  }
  0x4a   : > { %2957 = vmatpush3.bf16.msra.mxu0 %v3568_v3  ;;  %2862 = vmatprep.subr.bf16.mxu1 %v3253_v4  ;;  %v3602_v10 = vcombine.low %v285_v8, %v3598_v9  ;;  %v1084_v12 = vld [vmem:[%s3585_s22 + $0xc] sm:$0xf]  ;;  %v3609_v13 = vld [vmem:[%s3585_s22 + $0x10] sm:$0xf]  ;;  %v371_v16 = vshll.u32 %v3605_v11, 16  ;;  %v375_v17 = vshrl.u32 %v3605_v11, 16 }
  0x4b   : > { %2958 = vmatprep.subr.bf16.mxu0 %v3578_v5  ;;  %v3616_v18 = vld [vmem:[%s3585_s22 + $0x14] sm:$0xff]   ;;  %v2594_v20 = vcombine.low %v1084_v12, %v3609_v13  ;;  %v3631_v32 = vld [vmem:[%s3585_s22 + $0x1c] sm:$0xff]   ;;  %v3649_v44 = vld [vmem:[%s3585_s22 + $0x24] sm:$0xff]  }
  0x4c   : > { %v364_v14 = vshrl.u32 %v3602_v10, 16  ;;  %v366_v15 = vshll.u32 %v3602_v10, 16  ;;  %v3619_v19 = vld [vmem:[%s3585_s22 + $0x14] sm:$0xff]   ;;  %v373_v22 = vrot.slane %v371_v16, 1  ;;  %v1161_v23 = vshll.u32 %v3616_v18, 16  ;;  %v3640_v39 = vld [vmem:[%s3585_s22 + $0x1c] sm:$0xff]  }
  0x4d   : > { %2863 = vmatpush3.bf16.msra.mxu1 %v3253_v4  ;;  %v1165_v24 = vshrl.u32 %v3616_v18, 16  ;;  %v1154_v25 = vshrl.u32 %v2594_v20, 16  ;;  %v1156_v26 = vshll.u32 %v2594_v20, 16  ;;  %v379_v27 = vshll.u32 %v3619_v19, 16  ;;  %v3659_v53 = vld [vmem:[%s3585_s22 + $0x24] sm:$0xff]   ;;  %v3667_v58 = vld [vmem:[%s3585_s22 + $0x2c] sm:$0xff]  }
  0x4e   : > { %2959 = vmatpush3.bf16.msra.mxu0 %v3578_v5  ;;  %2864 = vmatprep.subr.bf16.mxu1 %v3255_v6  ;;  %v368_v21 = vrot.slane %v366_v15, 1  ;;  %v377_v30 = vor.u32 %v375_v17, %v373_v22  ;;  %v1163_v31 = vrot.slane %v1161_v23, 1  ;;  %v1169_v38 = vshll.u32 %v3631_v32, 16  ;;  %v3271_v2 = vld [vmem:[%s4154_s1 + $0xb0] sm:$0xff]   ;;  %v3272_v12 = vld [vmem:[%s4154_s1 + $0xb8] sm:$0xff]  }
  0x4f   : > { %2960 = vmatprep.subr.bf16.mxu0 %v3593_v7  ;;  %v1158_v33 = vrot.slane %v1156_v26, 1  ;;  %v381_v34 = vrot.slane %v379_v27, 1  ;;  %v383_v43 = vshrl.u32 %v3619_v19, 16  ;;  %v387_v46 = vshll.u32 %v3640_v39, 16  ;;  %v1366_v20 = vld [vmem:[%s3585_s22 + $0xc] sm:$0xe] }
  0x50   : > { %v369_v29 = vor.u32 %v368_v21, %v364_v14  ;;  %v1167_v37 = vor.u32 %v1165_v24, %v1163_v31  ;;  %v1171_v45 = vrot.slane %v1169_v38, 1  ;;  %v1173_v49 = vshrl.u32 %v3631_v32, 16  ;;  %v3685_v14 = vld [vmem:[%s3585_s22 + $0x2c] sm:$0xff]   ;;  %v3717_v38 = vld [vmem:[%s3585_s22 + $0x44] ss:$0 sps:$4 sm:$0x11]  }
  0x51   : > { %2865 = vmatpush3.bf16.msra.mxu1 %v3255_v6  ;;  %v1159_v40 = vor.u32 %v1158_v33, %v1154_v25  ;;  %v382_v41 = vsel %vm362_vm0, %v377_v30, %v381_v34  ;;  %v385_v48 = vor.u32 %v383_v43, %v381_v34  ;;  %v1177_v50 = vshll.u32 %v3649_v44, 16  ;;  %v3697_v25 = vld [vmem:[%s3585_s22 + $0x34] sm:$0xff]  }
  0x52   : > { %2961 = vmatpush3.bf16.msra.mxu0 %v3593_v7  ;;  %2882 = vmatprep.subr.bf16.mxu1 %v3262_v28  ;;  %v374_v36 = vsel %vm362_vm0, %v369_v29, %v373_v22  ;;  %v1172_v51 = vsel %vm362_vm0, %v1167_v37, %v1171_v45  ;;  %v389_v52 = vrot.slane %v387_v46, 1  ;;  %v391_v54 = vshrl.u32 %v3640_v39, 16  ;;  %v3276_v26 = vld [vmem:[%s4154_s1 + $0x10] sm:$0xff]  }
  0x53   : > { %2866 = vmatprep.mubr.msk.bf16.mxu1 %vm455_vm1, %v374_v36  ;;  %2978 = vmatprep.subr.bf16.mxu0 %v3264_v35  ;;  %v1164_v47 = vsel %vm362_vm0, %v1159_v40, %v1163_v31  ;;  %v1175_v56 = vor.u32 %v1173_v49, %v1171_v45  ;;  %v1179_v57 = vrot.slane %v1177_v50, 1  ;;  %v395_v61 = vshll.u32 %v3659_v53, 16  ;;  %v3710_v31 = vld [vmem:[%s3585_s22 + $0x3c] sm:$0xff]   ;;  %v3735_v50 = vld [vmem:[%s3585_s22 + $0x34] sm:$0xff]  }
  0x54   : > { %2867 = vmatmul.mubr.msk.bf16.vlgmr.msra.gmra.mrb[0].mxu1 %vm455_vm1, %v382_v41  ;;  %2962 = vmatprep.mubr.msk.bf16.mxu0 %vm455_vm1, %v1164_v47  ;;  %v390_v59 = vsel %vm362_vm0, %v385_v48, %v389_v52  ;;  %v393_v60 = vor.u32 %v391_v54, %v389_v52  ;;  %v1181_v62 = vshrl.u32 %v3649_v44, 16  ;;  %v1185_v0 = vshll.u32 %v3667_v58, 16  ;;  %v3280_v45 = vld [vmem:[%s4154_s1 + $0x18] sm:$0xff]   ;;  %v3281_v48 = vld [vmem:[%s4154_s1 + $0xc8] sm:$0xff]  }
  0x55   : > { %2883 = vmatpush3.bf16.msra.mxu1 %v3262_v28  ;;  %2963 = vmatmul.mubr.msk.bf16.vlgmr.msra.gmra.mrb[0].mxu0 %vm455_vm1, %v1172_v51  ;;  %v1180_v63 = vsel %vm362_vm0, %v1175_v56, %v1179_v57  ;;  %v397_v4 = vrot.slane %v395_v61, 1  ;;  %v399_v15 = vshrl.u32 %v3659_v53, 16  ;;  %v1380_v16 = vrot.slane %v3616_v18, 1  ;;  %v3751_v61 = vld [vmem:[%s3585_s22 + $0x3c] sm:$0xff]  }
  0x56   : > { %2979 = vmatpush3.bf16.msra.mxu0 %v3264_v35  ;;  %2884 = vmatprep.subr.bf16.mxu1 %v3269_v55  ;;  %v1183_v6 = vor.u32 %v1181_v62, %v1179_v57  ;;  %v3679_v8 = vrot.slane %v1185_v0, 1  ;;  %v403_v23 = vshll.u32 %v3685_v14, 16  ;;  %v2623_v24 = vcombine.low %v1366_v20, %v3609_v13  ;;  %v3277_v13 = vld [vmem:[%s4154_s1 + $0xc0] sm:$0xff]  }
  0x57   : > { %2980 = vmatprep.subr.bf16.mxu0 %v3265_v42  ;;  %2870 = vmatprep.mubr.msk.bf16.mxu1 %vm455_vm1, %v390_v59  ;;  %v398_v17 = vsel %vm362_vm0, %v393_v60, %v397_v4  ;;  %v401_v22 = vor.u32 %v399_v15, %v397_v4  ;;  %v407_v18 = vshrl.u32 %v3685_v14, 16  ;;  %v1382_v27 = vrot.slane %v3631_v32, 1  ;;  %v3285_v59 = vld [vmem:[%s4154_s1 + $0xd0] sm:$0xff]   ;;  %v3293_v20 = vld [vmem:[%s4154_s1 + $0xe0] sm:$0xff]  }
  0x58   : > { %2966 = vmatprep.mubr.msk.bf16.mxu0 %vm455_vm1, %v1180_v63  ;;  %v1188_v21 = vsel %vm362_vm0, %v1183_v6, %v3679_v8  ;;  %v405_v28 = vrot.slane %v403_v23, 1  ;;  %v1379_v29 = vrot.slane %v2623_v24, 1  ;;  %v411_v30 = vshll.u32 %v3697_v25, 16  ;;  %v3755_v63 = vld [vmem:[%s3585_s22 + $0x44] sm:$0xff]  }
  0x59   : > { %2885 = vmatpush3.bf16.msra.mxu1 %v3269_v55  ;;  %v415_v33 = vshrl.u32 %v3697_v25, 16  ;;  %v1384_v34 = vrot.slane %v3649_v44, 1  ;;  %v419_v40 = vshll.u32 %v3710_v31, 16  ;;  %v423_v41 = vshrl.u32 %v3710_v31, 16  ;;  %v3283_v55 = vld [vmem:[%s4154_s1 + $0x40] sm:$0xff]  }
  0x5a   : > { %2981 = vmatpush3.bf16.msra.mxu0 %v3265_v42  ;;  %2886 = vmatprep.subr.bf16.mxu1 %v3276_v26  ;;  %v406_v32 = vsel %vm362_vm0, %v401_v22, %v405_v28  ;;  %v1381_v35 = vsel %vm711_vm2, %v1379_v29, %v1380_v16  ;;  %v409_v36 = vor.u32 %v407_v18, %v405_v28  ;;  %v413_v37 = vrot.slane %v411_v30, 1  ;;  %v3787_v23 = vld [vmem:[%s3585_s22 + $0x4c] ss:$0 sps:$4 sm:$0x11]  }
  0x5b   : > { %2982 = vmatprep.subr.bf16.mxu0 %v3271_v2  ;;  %v427_v44 = vshll.u32 %v3717_v38, 16  ;;  %v1383_v46 = vsel %vm711_vm2, %v1380_v16, %v1382_v27  ;;  %v421_v47 = vrot.slane %v419_v40, 1  ;;  %v1385_v49 = vsel %vm711_vm2, %v1382_v27, %v1384_v34  ;;  %v3287_v18 = vld [vmem:[%s4154_s1 + $0x48] sm:$0xff]  }
  0x5c   : > { %2871 = vmatmul.mubr.msk.bf16.gmra.mrb[4].mxu1 %vm455_vm1, %v398_v17  ;;  %v414_v42 = vsel %vm362_vm0, %v409_v36, %v413_v37  ;;  %v417_v43 = vor.u32 %v415_v33, %v413_v37  ;;  %v1386_v56 = vrot.slane %v3667_v58, 1  ;;  %v1388_v57 = vrot.slane %v3735_v50, 1 }
  0x5d   : > { %2967 = vmatmul.mubr.msk.bf16.gmra.mrb[4].mxu0 %vm455_vm1, %v1188_v21  ;;  %2887 = vmatpush3.bf16.msra.mxu1 %v3276_v26  ;;  %v425_v52 = vor.u32 %v423_v41, %v421_v47  ;;  %v429_v54 = vrot.slane %v427_v44, 1  ;;  %v715_v4 = vrot.slane %v3619_v19, 1  ;;  %v717_v6 = vrot.slane %v3640_v39, 1 }
  0x5e   : > { %2983 = vmatpush3.bf16.msra.mxu0 %v3271_v2  ;;  %2874 = vmatprep.mubr.msk.bf16.mxu1 %vm455_vm1, %v406_v32  ;;  %v422_v51 = vsel %vm362_vm0, %v417_v43, %v421_v47  ;;  %v1387_v62 = vsel %vm711_vm2, %v1384_v34, %v1386_v56  ;;  %v1389_v0 = vsel %vm711_vm2, %v1386_v56, %v1388_v57  ;;  %v3289_v2 = vld [vmem:[%s4154_s1 + $0xd8] sm:$0xff]   ;;  %v719_v15 = vrot.slane %v3659_v53, 1  ;;  %v3291_v32 = vld [vmem:[%s4154_s1 + $0x50] sm:$0xff]   ;;  %v698_v47 = vld [vmem:[%s3585_s22 + $0x4] sm:$0xe] }
  0x5f   : > { %2984 = vmatprep.subr.bf16.mxu0 %v3272_v12  ;;  %2986 = vmatprep.mubr.msk.bf16.mxu0 %vm455_vm1, %v1381_v35  ;;  %v430_v60 = vsel %vm362_vm0, %v425_v52, %v429_v54  ;;  %v1392_v16 = vrot.slane %v3755_v63, 1  ;;  %v3774_v17 = vsel %vm711_vm2, %v715_v4, %v717_v6  ;;  %v723_v22 = vrot.slane %v3697_v25, 1  ;;  %v3290_v43 = vld [vmem:[%s3585_s22 + $0x14] sm:$0xff]  }
  0x60   : > { %2888 = vmatprep.subr.bf16.mxu1 %v3280_v45  ;;  %v3783_v21 = vsel %vm711_vm2, %v717_v6, %v719_v15  ;;  %v725_v24 = vrot.slane %v3710_v31, 1  ;;  %v727_v27 = vrot.slane %v3717_v38, 1  ;;  %v1189_v33 = vshrl.u32 %v3667_v58, 16  ;;  %v3302_v54 = vld [vmem:[%s4154_s1 + $0xf0] sm:$0xff]   ;;  %v3862_v56 = vld [vmem:[%s3585_s22 + $0x18] sm:$0xf] }
  0x61   : > { %2889 = vmatpush3.bf16.msra.mxu1 %v3280_v45  ;;  %v1193_v34 = vshll.u32 %v3735_v50, 16  ;;  %v1394_v58 = vrot.slane %v3787_v23, 1  ;;  %v1197_v37 = vshrl.u32 %v3735_v50, 16  ;;  %v1201_v40 = vshll.u32 %v3751_v61, 16  ;;  %v3297_v50 = vld [vmem:[%s4154_s1 + $0xe8] sm:$0xff]   ;;  %v3301_v6 = vld [vmem:[%s3585_s22 + $0x3c] sm:$0xff]  }
  0x62   : > { %2985 = vmatpush3.bf16.msra.mxu0 %v3272_v12  ;;  %2906 = vmatprep.subr.bf16.mxu1 %v3283_v55  ;;  %v1390_v12 = vrot.slane %v3751_v61, 1  ;;  %v3801_v29 = vsel %vm711_vm2, %v723_v22, %v725_v24  ;;  %v1191_v35 = vor.u32 %v1189_v33, %v3679_v8  ;;  %v3295_v8 = vld [vmem:[%s4154_s1 + $0x58] sm:$0xff]   ;;  %v713_v52 = vrot.slane %v3605_v11, 1 }
  0x63   : > { %3002 = vmatprep.subr.bf16.mxu0 %v3277_v13  ;;  %v1195_v36 = vrot.slane %v1193_v34, 1  ;;  %v1203_v44 = vrot.slane %v1201_v40, 1  ;;  %v3313_v40 = vld [vmem:[%s4154_s1 + $0x78] sm:$0xff]  }
  0x64   : > { %2875 = vmatmul.mubr.msk.bf16.gmra.mrb[8].mxu1 %vm455_vm1, %v414_v42  ;;  %v1391_v28 = vsel %vm711_vm2, %v1388_v57, %v1390_v12  ;;  %v1393_v30 = vsel %vm711_vm2, %v1390_v12, %v1392_v16  ;;  %v1395_v42 = vsel %vm711_vm2, %v1392_v16, %v1394_v58  ;;  %v3299_v57 = vld [vmem:[%s3585_s22 + $0x34] sm:$0xff]   ;;  %v1209_v12 = vshll.u32 %v3755_v63, 16  ;;  %v3303_v16 = vld [vmem:[%s3585_s22 + $0x44] sm:$0xff]   ;;  %v3305_v58 = vld [vmem:[%s3585_s22 + $0x4c] sm:$0xff]  }
  0x65   : > { %2987 = vmatmul.mubr.msk.bf16.vlgmr.msra.gmra.mrb[0].mxu0 %vm455_vm1, %v1383_v46  ;;  %2878 = vmatprep.mubr.msk.bf16.mxu1 %vm455_vm1, %v422_v51  ;;  %v3822_v38 = vsel %vm362_vm0, %v1191_v35, %v1195_v36  ;;  %v1199_v41 = vor.u32 %v1197_v37, %v1195_v36  ;;  %v3300_v46 = vld [vmem:[%s4154_s1 + $0x60] sm:$0xff]   ;;  %v3912_v35 = vld [vmem:[%s3585_s22 + $0x2c] sm:$0xff]  }
  0x66   : > { %3003 = vmatpush3.bf16.msra.mxu0 %v3277_v13  ;;  %2990 = vmatprep.mubr.msk.bf16.mxu0 %vm455_vm1, %v1385_v49  ;;  %v3807_v13 = vsel %vm711_vm2, %v725_v24, %v727_v27  ;;  %v3294_v49 = vld [vmem:[%s3585_s22 + $0x24] sm:$0xff]   ;;  %v1217_v27 = vshll.u32 %v3787_v23, 16 }
  0x67   : > { %3004 = vmatprep.subr.bf16.mxu0 %v3281_v48  ;;  %v3835_v45 = vsel %vm362_vm0, %v1199_v41, %v1203_v44 }
  0x6a   : > { %3005 = vmatpush3.bf16.msra.mxu0 %v3281_v48  ;;  %v2545_v48 = vcombine.low %v698_v47, %v3598_v9  ;;  %v3296_v9 = vld [vmem:[%s3585_s22 + $0x2c] sm:$0xff]  }
  0x6b   : > { %3006 = vmatprep.subr.bf16.mxu0 %v3285_v59 }
  0x6c   : > { %2879 = vmatmul.mubr.msk.bf16.gmra.mrb[12].mxu1 %vm455_vm1, %v430_v60  ;;  %v712_v51 = vrot.slane %v2545_v48, 1  ;;  %v1205_v60 = vshrl.u32 %v3751_v61, 16  ;;  %v3304_v61 = vld [vmem:[%s4154_s1 + $0x68] sm:$0xff]  }
  0x6d   : > { %2890 = vmatprep.mubr.msk.bf16.mxu1 %vm455_vm1, %v3602_v10  ;;  %2991 = vmatmul.mubr.msk.bf16.gmra.mrb[4].mxu0 %vm455_vm1, %v1387_v62  ;;  %v721_v10 = vrot.slane %v3685_v14, 1  ;;  %v3877_v62 = vld [vmem:[%s3585_s22 + $0x1c] sm:$0xff]  }
  0x6e   : > { %2994 = vmatprep.mubr.msk.bf16.mxu0 %vm455_vm1, %v1389_v0  ;;  %3007 = vmatpush3.bf16.msra.mxu0 %v3285_v59  ;;  %v3882_v0 = vld [vmem:[%s4154_s1 + $0x100] sm:$0xff]  }
  0x6f   : > { %3008 = vmatprep.subr.bf16.mxu0 %v3289_v2  ;;  %v3796_v26 = vsel %vm711_vm2, %v721_v10, %v723_v22  ;;  %v1213_v22 = vshrl.u32 %v3755_v63, 16  ;;  %v3309_v63 = vld [vmem:[%s4154_s1 + $0x70] sm:$0xff]   ;;  %v722_v36 = vsel %vm711_vm2, %v719_v15, %v721_v10 }
  0x70   : > { %v3936_v10 = vld [vmem:[%s3585_s22 + $0x34] sm:$0xff]  }
  0x72   : > { %3009 = vmatpush3.bf16.msra.mxu0 %v3289_v2  ;;  %v716_v2 = vsel %vm711_vm2, %v713_v52, %v715_v4  ;;  %v1211_v4 = vrot.slane %v1209_v12, 1  ;;  %v3984_v12 = vld [vmem:[%s3585_s22 + $0x54] ss:$0 sps:$4 sm:$0x11]  }
  0x73   : > { %3026 = vmatprep.subr.bf16.mxu0 %v3293_v20 }
  0x74   : > { %2891 = vmatmul.mubr.msk.bf16.vlgmr.msra.gmra.mrb[0].mxu1 %vm455_vm1, %v3605_v11  ;;  %v3306_v11 = vld [vmem:[%s4154_s1 + $0xf8] sm:$0xff]   ;;  %v1215_v33 = vor.u32 %v1213_v22, %v1211_v4 }
  0x75   : > { %2907 = vmatpush3.bf16.msra.mxu1 %v3283_v55  ;;  %2894 = vmatprep.mubr.msk.bf16.mxu1 %vm455_vm1, %v3619_v19  ;;  %v1751_v55 = vld [vmem:[%s3585_s22 + $0x14] sm:$0xf]  ;;  %v1828_v19 = vshll.u32 %v3877_v62, 16  ;;  %v3321_v22 = vld [vmem:[%s3585_s22 + $0x1c] sm:$0xff]  }
  0x76   : > { %2995 = vmatmul.mubr.msk.bf16.gmra.mrb[8].mxu0 %vm455_vm1, %v1391_v28  ;;  %2908 = vmatprep.subr.bf16.mxu1 %v3287_v18  ;;  %v2672_v59 = vcombine.low %v1751_v55, %v3862_v56  ;;  %v3905_v28 = vld [vmem:[%s3585_s22 + $0x24] sm:$0xff]   ;;  %v3320_v55 = vld [vmem:[%s4154_s1 + $0x110] sm:$0xff]  }
  0x77   : > { %2998 = vmatprep.mubr.msk.bf16.mxu0 %vm455_vm1, %v1393_v30  ;;  %v1836_v37 = vshll.u32 %v3905_v28, 16 }
  0x78   : > { %v1821_v24 = vshrl.u32 %v2672_v59, 16 }
  0x79   : > { %2909 = vmatpush3.bf16.msra.mxu1 %v3287_v18  ;;  %v1838_v15 = vrot.slane %v1836_v37, 1  ;;  %v3326_v37 = vld [vmem:[%s3585_s22 + $0x2c] sm:$0xff]  }
  0x7a   : > { %2910 = vmatprep.subr.bf16.mxu1 %v3291_v32 }
  0x7c   : > { %2895 = vmatmul.mubr.msk.bf16.gmra.mrb[4].mxu1 %vm455_vm1, %v3640_v39  ;;  %v3292_v39 = vld [vmem:[%s3585_s22 + $0x1c] sm:$0xff]  }
  0x7d   : > { %2898 = vmatprep.mubr.msk.bf16.mxu1 %vm455_vm1, %v3659_v53  ;;  %2911 = vmatpush3.bf16.msra.mxu1 %v3291_v32  ;;  %v1830_v32 = vrot.slane %v1828_v19, 1  ;;  %v1844_v53 = vshll.u32 %v3912_v35, 16 }
  0x7e   : > { %2999 = vmatmul.mubr.msk.bf16.gmra.mrb[12].mxu0 %vm455_vm1, %v1395_v42  ;;  %2912 = vmatprep.subr.bf16.mxu1 %v3295_v8 }
  0x7f   : > { %3010 = vmatprep.mubr.msk.bf16.mxu0 %vm455_vm1, %v3290_v43 }
  0x81   : > { %2913 = vmatpush3.bf16.msra.mxu1 %v3295_v8  ;;  %v1832_v8 = vshrl.u32 %v3877_v62, 16 }
  0x82   : > { %2930 = vmatprep.subr.bf16.mxu1 %v3300_v46 }
  0x83   : > { %v1834_v42 = vor.u32 %v1832_v8, %v1830_v32  ;;  %v3328_v8 = vld [vmem:[%s3585_s22 + $0x34] sm:$0xff]  }
  0x84   : > { %2899 = vmatmul.mubr.msk.bf16.gmra.mrb[8].mxu1 %vm455_vm1, %v3685_v14  ;;  %v1840_v14 = vshrl.u32 %v3905_v28, 16 }
  0x85   : > { %2902 = vmatprep.mubr.msk.bf16.mxu1 %vm455_vm1, %v3697_v25  ;;  %v714_v25 = vsel %vm711_vm2, %v712_v51, %v713_v52  ;;  %v1839_v47 = vsel %vm362_vm0, %v1834_v42, %v1838_v15  ;;  %v3958_v52 = vld [vmem:[%s3585_s22 + $0x44] sm:$0xff]  }
  0x86   : > { %3011 = vmatmul.mubr.msk.bf16.vlgmr.msra.gmra.mrb[0].mxu0 %vm455_vm1, %v3292_v39  ;;  %v1842_v43 = vor.u32 %v1840_v14, %v1838_v15  ;;  %v1848_v39 = vshrl.u32 %v3912_v35, 16  ;;  %v3329_v14 = vld [vmem:[%s3585_s22 + $0x3c] sm:$0xff]  }
  0x87   : > { %3027 = vmatpush3.bf16.msra.mxu0 %v3293_v20  ;;  %3014 = vmatprep.mubr.msk.bf16.mxu0 %vm455_vm1, %v3294_v49  ;;  %v1207_v20 = vor.u32 %v1205_v60, %v1203_v44  ;;  %v3940_v44 = vld [vmem:[%s3585_s22 + $0x3c] sm:$0xff]   ;;  %v3315_v49 = vld [vmem:[%s4154_s1 + $0x108] sm:$0xff]  }
  0x88   : > { %3028 = vmatprep.subr.bf16.mxu0 %v3297_v50  ;;  %v1860_v51 = vshll.u32 %v3940_v44, 16 }
  0x89   : > { %v3909_v30 = vsel %vm362_vm0, %v1207_v20, %v1211_v4  ;;  %v1884_v4 = vshll.u32 %v3984_v12, 16 }
  0x8b   : > { %3029 = vmatpush3.bf16.msra.mxu0 %v3297_v50  ;;  %v1856_v50 = vshrl.u32 %v3936_v10, 16 }
  0x8c   : > { %2903 = vmatmul.mubr.msk.bf16.gmra.mrb[12].mxu1 %vm455_vm1, %v3710_v31  ;;  %3030 = vmatprep.subr.bf16.mxu0 %v3302_v54  ;;  %v1823_v31 = vshll.u32 %v2672_v59, 16  ;;  %v1864_v59 = vshrl.u32 %v3940_v44, 16 }
  0x8d   : > { %2914 = vmatprep.mubr.msk.bf16.mxu1 %vm455_vm1, %v714_v25  ;;  %v3966_v25 = vld [vmem:[%s3585_s22 + $0x4c] sm:$0xff]  }
  0x8e   : > { %3015 = vmatmul.mubr.msk.bf16.gmra.mrb[4].mxu0 %vm455_vm1, %v3296_v9  ;;  %v1825_v18 = vrot.slane %v1823_v31, 1  ;;  %v1872_v31 = vshrl.u32 %v3958_v52, 16  ;;  %v1880_v19 = vshrl.u32 %v3966_v25, 16 }
  0x8f   : > { %3018 = vmatprep.mubr.msk.bf16.mxu0 %vm455_vm1, %v3299_v57  ;;  %3031 = vmatpush3.bf16.msra.mxu0 %v3302_v54  ;;  %v1862_v54 = vrot.slane %v1860_v51, 1  ;;  %v1868_v57 = vshll.u32 %v3958_v52, 16 }
  0x90   : > { %3032 = vmatprep.subr.bf16.mxu0 %v3306_v11  ;;  %v1826_v34 = vor.u32 %v1825_v18, %v1821_v24  ;;  %v2033_v24 = vld [vmem:[%s3585_s22 + $0x14] sm:$0xe] }
  0x92   : > { %v1831_v41 = vsel %vm362_vm0, %v1826_v34, %v1830_v32  ;;  %v1886_v34 = vrot.slane %v1884_v4, 1  ;;  %v3323_v32 = vld [vmem:[%s3585_s22 + $0x24] sm:$0xff]  }
  0x93   : > { %3033 = vmatpush3.bf16.msra.mxu0 %v3306_v11 }
  0x94   : > { %2915 = vmatmul.mubr.msk.bf16.vlgmr.msra.gmra.mrb[0].mxu1 %vm455_vm1, %v716_v2  ;;  %3050 = vmatprep.subr.bf16.mxu0 %v3882_v0  ;;  %v3325_v2 = vld [vmem:[%s4154_s1 + $0x118] sm:$0xff]  }
  0x95   : > { %2931 = vmatpush3.bf16.msra.mxu1 %v3300_v46  ;;  %2918 = vmatprep.mubr.msk.bf16.mxu1 %vm455_vm1, %v3774_v17  ;;  %v1219_v17 = vrot.slane %v1217_v27, 1  ;;  %v1852_v46 = vshll.u32 %v3936_v10, 16 }
  0x96   : > { %3019 = vmatmul.mubr.msk.bf16.gmra.mrb[8].mxu0 %vm455_vm1, %v3301_v6  ;;  %2932 = vmatprep.subr.bf16.mxu1 %v3304_v61  ;;  %v1870_v6 = vrot.slane %v1868_v57, 1 }
  0x97   : > { %3022 = vmatprep.mubr.msk.bf16.mxu0 %vm455_vm1, %v3303_v16  ;;  %v3915_v23 = vsel %vm362_vm0, %v1215_v33, %v1219_v17  ;;  %v3331_v33 = vld [vmem:[%s4154_s1 + $0x80] sm:$0xff]  }
  0x98   : > { %v1874_v16 = vor.u32 %v1872_v31, %v1870_v6 }
  0x99   : > { %2933 = vmatpush3.bf16.msra.mxu1 %v3304_v61  ;;  %v3318_v61 = vld [vmem:[%s3585_s22 + $0x14] sm:$0xff]  }
  0x9a   : > { %2934 = vmatprep.subr.bf16.mxu1 %v3309_v63 }
  0x9c   : > { %2919 = vmatmul.mubr.msk.bf16.gmra.mrb[4].mxu1 %vm455_vm1, %v3783_v21  ;;  %v1846_v21 = vrot.slane %v1844_v53, 1  ;;  %v3334_v53 = vld [vmem:[%s4154_s1 + $0x98] sm:$0xff]  }
  0x9d   : > { %2922 = vmatprep.mubr.msk.bf16.mxu1 %vm455_vm1, %v722_v36  ;;  %2935 = vmatpush3.bf16.msra.mxu1 %v3309_v63  ;;  %v2701_v63 = vcombine.low %v2033_v24, %v3862_v56  ;;  %v2047_v56 = vrot.slane %v3877_v62, 1  ;;  %v3332_v36 = vld [vmem:[%s4154_s1 + $0x88] sm:$0xff]   ;;  %v3333_v62 = vld [vmem:[%s4154_s1 + $0x90] sm:$0xff]  }
  0x9e   : > { %3023 = vmatmul.mubr.msk.bf16.gmra.mrb[12].mxu0 %vm455_vm1, %v3305_v58  ;;  %2936 = vmatprep.subr.bf16.mxu1 %v3313_v40  ;;  %v1847_v48 = vsel %vm362_vm0, %v1842_v43, %v1846_v21 }
  0x9f   : > { %3034 = vmatprep.mubr.msk.bf16.mxu0 %vm455_vm1, %v1831_v41  ;;  %v2046_v58 = vrot.slane %v2701_v63, 1  ;;  %v2051_v41 = vrot.slane %v3912_v35, 1  ;;  %v2055_v35 = vrot.slane %v3940_v44, 1 }
  0xa1   : > { %2937 = vmatpush3.bf16.msra.mxu1 %v3313_v40  ;;  %v2048_v40 = vsel %vm711_vm2, %v2046_v58, %v2047_v56 }
  0xa2   : > { %3074 = vmatprep.subr.bf16.mxu1 %v3558_v1  ;;  %v1854_v1 = vrot.slane %v1852_v46, 1  ;;  %v2057_v46 = vrot.slane %v3958_v52, 1 }
  0xa4   : > { %2923 = vmatmul.mubr.msk.bf16.gmra.mrb[8].mxu1 %vm455_vm1, %v3796_v26  ;;  %v1850_v26 = vor.u32 %v1848_v39, %v1846_v21  ;;  %v1858_v9 = vor.u32 %v1856_v50, %v1854_v1  ;;  %v2058_v44 = vsel %vm711_vm2, %v2055_v35, %v2057_v46 }
  0xa5   : > { %2926 = vmatprep.mubr.msk.bf16.mxu1 %vm455_vm1, %v3801_v29  ;;  %v3316_v29 = vld [vmem:[%s3585_s22 + $0xc] sm:$0xff]  }
  0xa6   : > { %3035 = vmatmul.mubr.msk.bf16.vlgmr.msra.gmra.mrb[0].mxu0 %vm455_vm1, %v1839_v47  ;;  %v1855_v11 = vsel %vm362_vm0, %v1850_v26, %v1854_v1  ;;  %v1863_v60 = vsel %vm362_vm0, %v1858_v9, %v1862_v54  ;;  %v4076_v26 = vld [vmem:[#allocation2] ss:$0 sm:$0xff] }
  0xa7   : > { %3051 = vmatpush3.bf16.msra.mxu0 %v3882_v0  ;;  %3038 = vmatprep.mubr.msk.bf16.mxu0 %vm455_vm1, %v1847_v48  ;;  %v1876_v0 = vshll.u32 %v3966_v25, 16 }
  0xa8   : > { %3052 = vmatprep.subr.bf16.mxu0 %v3315_v49 }
  0xa9   : > { %v1878_v20 = vrot.slane %v1876_v0, 1 }
  0xab   : > { %3053 = vmatpush3.bf16.msra.mxu0 %v3315_v49  ;;  %v1879_v27 = vsel %vm362_vm0, %v1874_v16, %v1878_v20  ;;  %v1882_v17 = vor.u32 %v1880_v19, %v1878_v20 }
  0xac   : > { %2927 = vmatmul.mubr.msk.bf16.gmra.mrb[12].mxu1 %vm455_vm1, %v3807_v13  ;;  %3054 = vmatprep.subr.bf16.mxu0 %v3320_v55  ;;  %v1866_v13 = vor.u32 %v1864_v59, %v1862_v54 }
  0xad   : > { %2938 = vmatprep.mubr.msk.bf16.mxu1 %vm455_vm1, %v3316_v29 }
  0xae   : > { %3039 = vmatmul.mubr.msk.bf16.gmra.mrb[4].mxu0 %vm455_vm1, %v1855_v11  ;;  %v1871_v18 = vsel %vm362_vm0, %v1866_v13, %v1870_v6 }
  0xaf   : > { %3042 = vmatprep.mubr.msk.bf16.mxu0 %vm455_vm1, %v1863_v60  ;;  %3055 = vmatpush3.bf16.msra.mxu0 %v3320_v55 }
  0xb0   : > { %3056 = vmatprep.subr.bf16.mxu0 %v3325_v2 }
  0xb3   : > { %3057 = vmatpush3.bf16.msra.mxu0 %v3325_v2 }
  0xb4   : > { %2939 = vmatmul.mubr.msk.bf16.vlgmr.msra.gmra.mrb[0].mxu1 %vm455_vm1, %v3318_v61 }
  0xb5   : > { %3078 = vmatpush3.bf16.msra.mxu1 %v3331_v33  ;;  %2942 = vmatprep.mubr.msk.bf16.mxu1 %vm455_vm1, %v3321_v22 }
  0xb6   : > { %3043 = vmatmul.mubr.msk.bf16.gmra.mrb[8].mxu0 %vm455_vm1, %v1871_v18  ;;  %3075 = vmatprep.subr.bf16.mxu1 %v3568_v3  ;;  %v1887_v3 = vsel %vm362_vm0, %v1882_v17, %v1886_v34 }
  0xb7   : > { %3046 = vmatprep.mubr.msk.bf16.mxu0 %vm455_vm1, %v1879_v27 }
  0xb9   : > { %3079 = vmatpush3.bf16.msra.mxu1 %v3332_v36 }
  0xba   : > { %3076 = vmatprep.subr.bf16.mxu1 %v3578_v5  ;;  %v2049_v5 = vrot.slane %v3905_v28, 1  ;;  %v3330_v28 = vld [vmem:[%s3585_s22 + $0x44] sm:$0xff]  }
  0xbc   : > { %2943 = vmatmul.mubr.msk.bf16.gmra.mrb[4].mxu1 %vm455_vm1, %v3323_v32  ;;  %v2050_v15 = vsel %vm711_vm2, %v2047_v56, %v2049_v5  ;;  %v2052_v42 = vsel %vm711_vm2, %v2049_v5, %v2051_v41 }
  0xbd   : > { %2946 = vmatprep.mubr.msk.bf16.mxu1 %vm455_vm1, %v3326_v37  ;;  %3080 = vmatpush3.bf16.msra.mxu1 %v3333_v62 }
  0xbe   : > { %3047 = vmatmul.mubr.msk.bf16.gmra.mrb[12].mxu0 %vm455_vm1, %v1887_v3  ;;  %3077 = vmatprep.subr.bf16.mxu1 %v3593_v7  ;;  %v2053_v7 = vrot.slane %v3936_v10, 1  ;;  %v2059_v10 = vrot.slane %v3966_v25, 1  ;;  %v4078_v25 = vld [vmem:[#allocation4] ss:$0 sm:$0xff] }
  0xbf   : > { %3058 = vmatprep.mubr.msk.bf16.mxu0 %vm455_vm1, %v2048_v40 }
  0xc0   : > { %v2054_v43 = vsel %vm711_vm2, %v2051_v41, %v2053_v7  ;;  %v2056_v21 = vsel %vm711_vm2, %v2053_v7, %v2055_v35  ;;  %v2060_v47 = vsel %vm711_vm2, %v2057_v46, %v2059_v10 }
  0xc1   : > { %3081 = vmatpush3.bf16.msra.mxu1 %v3334_v53 }
  0xc4   : > { %2947 = vmatmul.mubr.msk.bf16.gmra.mrb[8].mxu1 %vm455_vm1, %v3328_v8 }
  0xc5   : > { %2950 = vmatprep.mubr.msk.bf16.mxu1 %vm455_vm1, %v3329_v14 }
  0xc6   : > { %3059 = vmatmul.mubr.msk.bf16.vlgmr.msra.gmra.mrb[0].mxu0 %vm455_vm1, %v2050_v15 }
  0xc7   : > { %3062 = vmatprep.mubr.msk.bf16.mxu0 %vm455_vm1, %v2052_v42 }
  0xcc   : > { %2951 = vmatmul.mubr.msk.bf16.gmra.mrb[12].mxu1 %vm455_vm1, %v3330_v28 }
  0xcd   : > { %2970 = vmatprep.mubr.msk.bf16.mxu1 %vm455_vm1, %v3822_v38  ;;  %v2061_v38 = vrot.slane %v3984_v12, 1 }
  0xce   : > { %3063 = vmatmul.mubr.msk.bf16.gmra.mrb[4].mxu0 %vm455_vm1, %v2054_v43 }
  0xcf   : > { %3066 = vmatprep.mubr.msk.bf16.mxu0 %vm455_vm1, %v2056_v21  ;;  %v2062_v39 = vsel %vm711_vm2, %v2059_v10, %v2061_v38 }
  0xd4   : > { %2971 = vmatmul.mubr.msk.bf16.vlgmr.msra.gmra.mrb[8].mxu1 %vm455_vm1, %v3835_v45  ;;  %v3425_v45 = vmov 0  }
  0xd5   : > { %2974 = vmatprep.mubr.msk.bf16.mxu1 %vm455_vm1, %v3909_v30  ;;  %279 = vst.msk [vmem:[%s4062_s5] sm:$0xf] %vm278_vm3, %v3425_v45  ;;  %280 = vst.msk [vmem:[%s4062_s5 + $0x4] sm:$0xf] %vm278_vm3, %v3425_v45 }
  0xd6   : > { %3067 = vmatmul.mubr.msk.bf16.gmra.mrb[8].mxu0 %vm455_vm1, %v2058_v44  ;;  %281 = vst.msk [vmem:[%s4062_s5 + $0x8] sm:$0xf] %vm278_vm3, %v3425_v45  ;;  %282 = vst.msk [vmem:[%s4062_s5 + $0x4c] sm:$0xf] %vm278_vm3, %v3425_v45 }
  0xd7   : > { %3070 = vmatprep.mubr.msk.bf16.mxu0 %vm455_vm1, %v2060_v47  ;;  %283 = vst.msk [vmem:[%s4062_s5 + $0x50] sm:$0xf] %vm278_vm3, %v3425_v45  ;;  %284 = vst.msk [vmem:[%s4062_s5 + $0x54] sm:$0xf] %vm278_vm3, %v3425_v45 }
  0xdc   : > { %2975 = vmatmul.mubr.msk.bf16.gmra.mrb[12].mxu1 %vm455_vm1, %v3915_v23 }
  0xde   : > { %3071 = vmatmul.mubr.msk.bf16.gmra.mrb[12].mxu0 %vm455_vm1, %v2062_v39 }
 0x187   : > { %v2940_v30 = vpop.f32.mrb[0].mxu1 }
 0x188   : > { %v1021_v23 = vpop.f32.mrb[1].mxu1 }
 0x189   : > { %v2941_v48 = vpop.f32.mrb[2].mxu1 }
 0x18a   : > { %v1024_v49 = vpop.f32.mrb[3].mxu1 }
 0x18f   : > { %v2944_v50 = vpop.f32.mrb[4].mxu1 }
 0x190   : > { %v1035_v51 = vpop.f32.mrb[5].mxu1 }
 0x191   : > { %v2945_v1 = vpop.f32.mrb[6].mxu1 }
 0x192   : > { %v1038_v52 = vpop.f32.mrb[7].mxu1 }
 0x199   : > { %v3060_v9 = vpop.f32.mrb[0].mxu0 }
 0x19a   : > { %v3082_v54 = vadd.f32 %v3060_v9, %v2940_v30  ;;  %v2145_v55 = vpop.f32.mrb[1].mxu0 }
 0x19b   : > { %v3083_v29 = vadd.f32 %v2145_v55, %v1021_v23  ;;  %v3061_v57 = vpop.f32.mrb[2].mxu0 }
 0x19c   : > { %v2215_v11 = vmul.f32 %v3082_v54, %v4076_v26  ;;  %v2148_v59 = vpop.f32.mrb[3].mxu0 }
 0x19d   : > { %v2214_v60 = vmul.f32 %v3083_v29, %v4076_v26 }
 0x19e   : > { %v2229_v31 = vadd.f32 %v4078_v25, %v2215_v11 }
 0x19f   : > { %v2228_v0 = vadd.f32 %v4078_v25, %v2214_v60 }
 0x1a0   : > { %v2237_v2 = vmax.f32 %v2229_v31, 0.0 }
 0x1a1   : > { %v2236_v6 = vmax.f32 %v2228_v0, 0.0  ;;  %v3064_v13 = vpop.f32.mrb[4].mxu0 }
 0x1a2   : > { %v2253_v12 = vrot.slane %v2237_v2, 7  ;;  %v3084_v61 = vadd.f32 %v3064_v13, %v2944_v50  ;;  %v2159_v16 = vpop.f32.mrb[5].mxu0 }
 0x1a3   : > { %v2252_v20 = vrot.slane %v2236_v6, 7  ;;  %v3085_v22 = vadd.f32 %v2159_v16, %v1035_v51  ;;  %v3065_v24 = vpop.f32.mrb[6].mxu0 }
 0x1a4   : > { %v2270_v18 = vsel %vm2268_vm4, 0.0, %v2253_v12  ;;  %v2278_v19 = vsel %vm2268_vm4, %v2253_v12, 0.0  ;;  %v2217_v4 = vmul.f32 %v3084_v61, %v4076_v26  ;;  %v2162_v27 = vpop.f32.mrb[7].mxu0 }
 0x1a5   : > { %v2736_v63 = vpack.c.bf16 %v2270_v18, %v2270_v18  ;;  %v2737_v33 = vpack.c.bf16 %v2278_v19, %v2278_v19  ;;  %v2269_v17 = vsel %vm2268_vm4, 0.0, %v2252_v20  ;;  %v2277_v34 = vsel %vm2268_vm4, %v2252_v20, 0.0 }
 0x1a6   : > { %v2734_v32 = vpack.c.bf16 %v2269_v17, %v2269_v17  ;;  %v2735_v58 = vpack.c.bf16 %v2277_v34, %v2277_v34  ;;  %v2231_v56 = vadd.f32 %v4078_v25, %v2217_v4  ;;  %v2216_v36 = vmul.f32 %v3085_v22, %v4076_v26 }
 0x1a7   : > { %2351 = vst.msk [vmem:[%s4062_s5 + $0x14] sm:$0xf] %vm278_vm3, %v2736_v63  ;;  %2352 = vst.msk [vmem:[%s4062_s5 + $0x18] sm:$0xf] %vm278_vm3, %v2737_v33  ;;  %v2972_v37 = vpop.f32.mrb[8].mxu1 }
 0x1a8   : > { %2349 = vst.msk [vmem:[%s4062_s5 + $0xc] sm:$0xf] %vm278_vm3, %v2734_v32  ;;  %2350 = vst.msk [vmem:[%s4062_s5 + $0x10] sm:$0xf] %vm278_vm3, %v2735_v58  ;;  %v2239_v3 = vmax.f32 %v2231_v56, 0.0  ;;  %v2230_v40 = vadd.f32 %v4078_v25, %v2216_v36  ;;  %v1331_v62 = vpop.f32.mrb[9].mxu1 }
 0x1a9   : > { %v3068_v5 = vpop.f32.mrb[8].mxu0  ;;  %v2973_v8 = vpop.f32.mrb[10].mxu1 }
 0x1aa   : > { %v2255_v41 = vrot.slane %v2239_v3, 7  ;;  %v2238_v14 = vmax.f32 %v2230_v40, 0.0  ;;  %v3086_v53 = vadd.f32 %v3068_v5, %v2972_v37  ;;  %v2173_v15 = vpop.f32.mrb[9].mxu0  ;;  %v1334_v42 = vpop.f32.mrb[11].mxu1 }
 0x1ab   : > { %v3087_v7 = vadd.f32 %v2173_v15, %v1331_v62  ;;  %v3069_v28 = vpop.f32.mrb[10].mxu0 }
 0x1ac   : > { %v2272_v35 = vsel %vm2268_vm4, 0.0, %v2255_v41  ;;  %v2280_v43 = vsel %vm2268_vm4, %v2255_v41, 0.0  ;;  %v2254_v21 = vrot.slane %v2238_v14, 7  ;;  %v2219_v46 = vmul.f32 %v3086_v53, %v4076_v26  ;;  %v2176_v10 = vpop.f32.mrb[11].mxu0 }
 0x1ad   : > { %v2740_v44 = vpack.c.bf16 %v2272_v35, %v2272_v35  ;;  %v2741_v47 = vpack.c.bf16 %v2280_v43, %v2280_v43  ;;  %v2218_v38 = vmul.f32 %v3087_v7, %v4076_v26 }
 0x1ae   : > { %v2271_v39 = vsel %vm2268_vm4, 0.0, %v2254_v21  ;;  %v2279_v45 = vsel %vm2268_vm4, %v2254_v21, 0.0  ;;  %v2233_v30 = vadd.f32 %v4078_v25, %v2219_v46 }
 0x1af   : > { %2355 = vst.msk [vmem:[%s4062_s5 + $0x24] sm:$0xf] %vm278_vm3, %v2740_v44  ;;  %2356 = vst.msk [vmem:[%s4062_s5 + $0x28] sm:$0xf] %vm278_vm3, %v2741_v47  ;;  %v2738_v23 = vpack.c.bf16 %v2271_v39, %v2271_v39  ;;  %v2739_v48 = vpack.c.bf16 %v2279_v45, %v2279_v45  ;;  %v2232_v49 = vadd.f32 %v4078_v25, %v2218_v38  ;;  %v2976_v50 = vpop.f32.mrb[12].mxu1 }
 0x1b0   : > { %v2241_v51 = vmax.f32 %v2233_v30, 0.0  ;;  %v1345_v1 = vpop.f32.mrb[13].mxu1 }
 0x1b1   : > { %2353 = vst.msk [vmem:[%s4062_s5 + $0x1c] sm:$0xf] %vm278_vm3, %v2738_v23  ;;  %2354 = vst.msk [vmem:[%s4062_s5 + $0x20] sm:$0xf] %vm278_vm3, %v2739_v48  ;;  %v2240_v52 = vmax.f32 %v2232_v49, 0.0  ;;  %v3072_v9 = vpop.f32.mrb[12].mxu0 }
 0x1b2   : > { %v2977_v54 = vpop.f32.mrb[14].mxu1  ;;  %v2257_v55 = vrot.slane %v2241_v51, 7  ;;  %v3088_v29 = vadd.f32 %v3072_v9, %v2976_v50  ;;  %v2187_v57 = vpop.f32.mrb[13].mxu0 }
 0x1b3   : > { %v1348_v11 = vpop.f32.mrb[15].mxu1  ;;  %v2256_v59 = vrot.slane %v2240_v52, 7  ;;  %v3089_v60 = vadd.f32 %v2187_v57, %v1345_v1  ;;  %v3073_v31 = vpop.f32.mrb[14].mxu0 }
 0x1b4   : > { %v2274_v0 = vsel %vm2268_vm4, 0.0, %v2257_v55  ;;  %v2282_v2 = vsel %vm2268_vm4, %v2257_v55, 0.0  ;;  %v2221_v6 = vmul.f32 %v3088_v29, %v4076_v26  ;;  %v2190_v13 = vpop.f32.mrb[15].mxu0 }
 0x1b5   : > { %v2744_v12 = vpack.c.bf16 %v2274_v0, %v2274_v0  ;;  %v2745_v61 = vpack.c.bf16 %v2282_v2, %v2282_v2  ;;  %v2273_v16 = vsel %vm2268_vm4, 0.0, %v2256_v59  ;;  %v2281_v20 = vsel %vm2268_vm4, %v2256_v59, 0.0 }
 0x1b6   : > { %v2742_v22 = vpack.c.bf16 %v2273_v16, %v2273_v16  ;;  %v2743_v24 = vpack.c.bf16 %v2281_v20, %v2281_v20  ;;  %v2235_v18 = vadd.f32 %v4078_v25, %v2221_v6  ;;  %v2220_v19 = vmul.f32 %v3089_v60, %v4076_v26 }
 0x1b7   : > { %2359 = vst.msk [vmem:[%s4062_s5 + $0x34] sm:$0xf] %vm278_vm3, %v2744_v12  ;;  %2360 = vst.msk [vmem:[%s4062_s5 + $0x38] sm:$0xf] %vm278_vm3, %v2745_v61 }
 0x1b8   : > { %2357 = vst.msk [vmem:[%s4062_s5 + $0x2c] sm:$0xf] %vm278_vm3, %v2742_v22  ;;  %2358 = vst.msk [vmem:[%s4062_s5 + $0x30] sm:$0xf] %vm278_vm3, %v2743_v24  ;;  %v2243_v4 = vmax.f32 %v2235_v18, 0.0  ;;  %v2234_v27 = vadd.f32 %v4078_v25, %v2220_v19 }
 0x1ba   : > { %v2259_v63 = vrot.slane %v2243_v4, 7  ;;  %v2242_v33 = vmax.f32 %v2234_v27, 0.0 }
 0x1bc   : > { %v2276_v17 = vsel %vm2268_vm4, 0.0, %v2259_v63  ;;  %v2284_v26 = vsel %vm2268_vm4, %v2259_v63, 0.0  ;;  %v2258_v34 = vrot.slane %v2242_v33, 7 }
 0x1bd   : > { %v2748_v32 = vpack.c.bf16 %v2276_v17, %v2276_v17  ;;  %v2749_v58 = vpack.c.bf16 %v2284_v26, %v2284_v26 }
 0x1be   : > { %v2275_v56 = vsel %vm2268_vm4, 0.0, %v2258_v34  ;;  %v2283_v36 = vsel %vm2268_vm4, %v2258_v34, 0.0 }
 0x1bf   : > { %2363 = vst.msk [vmem:[%s4062_s5 + $0x44] sm:$0xf] %vm278_vm3, %v2748_v32  ;;  %2364 = vst.msk [vmem:[%s4062_s5 + $0x48] sm:$0xf] %vm278_vm3, %v2749_v58  ;;  %v2746_v37 = vpack.c.bf16 %v2275_v56, %v2275_v56  ;;  %v2747_v3 = vpack.c.bf16 %v2283_v36, %v2283_v36 }
 0x1c1   : > { %2361 = vst.msk [vmem:[%s4062_s5 + $0x3c] sm:$0xf] %vm278_vm3, %v2746_v37  ;;  %2362 = vst.msk [vmem:[%s4062_s5 + $0x40] sm:$0xf] %vm278_vm3, %v2747_v3 }
 0x1c2 PF: > { %s16_s17 = sadd.s32 1, %s3421_s17   ;;  %s4166_s15 = smov %s3417_s16 }
 0x1c3   : > { %p13_p6 = scmp.ge.s32.totalorder %s16_s17, 4   ;;  %s4167_s16 = smov %s4169_s19 }
 0x1c5   :  { %15 = sbr.rel (!%p13_p6) target bundleno = 3 (0x3), region = 88 }
 0x1cc   :  { %2392 = vsyncpa [#allocation3], 1 }
 0x1cd   :  { %2394 = vsyncpa [#allocation3 + $0x1], 1 }
 0x1ce   :  { %2395 = vsyncpa [#allocation5], 1 }

// kernel: fwd.9
= control target key start
LH: loop header
LB: loop body
LE: loop exit
PB: predicated region body
PF: predicated region fallthrough
CT: control target
= control target key end

     0   :  { %s3318_s15 = smov 0   ;;  %s3320_s16 = smov 0   ;;  %s3879_s0 = inlined_call_operand.vmem [shape: bf16[2,176,64], index: 0, kind: input, shape index: {}]   ;;  %s3880_s1 = inlined_call_operand.vmem [shape: bf16[9,64,128], index: 1, kind: input, shape index: {}]   ;;  %s3881_s2 = inlined_call_operand.vmem [shape: f32[1,128], index: 2, kind: input, shape index: {}]   ;;  %s3882_s3 = inlined_call_operand.vmem [shape: f32[1,128], index: 3, kind: input, shape index: {}]   ;;  %s3883_s4 = inlined_call_operand.vmem [shape: bf16[2,64,128], index: 4, kind: output, shape index: {}]  }
   0x1   :  { %s3322_s17 = smov 0  }
   0x2 LB: > { %s23_s18 = sadd.s32 1, %s3286_s16  ;;  %p2457_p0 = scmp.ge.s32.totalorder %s3290_s17, 1  ;;  %s3290_s17 = sphi %s3322_s17, %s14_s17   ;;  %s3286_s16 = sphi %s3320_s16, %s3885_s16   ;;  %s3282_s15 = sphi %s3318_s15, %s3884_s15  }
   0x3   : > { %p24_p1 = scmp.ge.s32.totalorder %s23_s18, 2  ;;  %p201_p2 = scmp.lt.s32.totalorder %s3290_s17, 3 }
   0x5   : > { %s3887_s18 = smov (%p24_p1, %s23_s18), 0  ;;  %p202_p3 = pnand %p2457_p0, %p201_p2 }
   0x6   : > { %v3182_v0 = vld [vmem:[%s3880_s1 + $0x20] sm:$0xff] (!%p202_p3)   ;;  %p240_p4 = scmp.lt.s32.totalorder (!%p202_p3), %s3282_s15, 1  ;;  %v3184_v2 = vld [vmem:[%s3880_s1 + $0x28] sm:$0xff] (!%p202_p3)   ;;  %v3186_v4 = vld [vmem:[%s3880_s1 + $0x30] sm:$0xff] (!%p202_p3)   ;;  %vm440_vm0 = vcmask (!%p202_p3), 523264   ;;  %vm696_vm2 = vcmask (!%p202_p3), 1046528  }
   0x7   : > { %205 = sbr.rel (%p202_p3) target bundleno = 406 (0x196), region = 36  ;;  %v3342_v1 = vld [vmem:[%s3880_s1 + $0x80] sm:$0xff] (!%p202_p3)   ;;  %2812 = vmatprep.subr.bf16.mxu1 (!%p202_p3), %v3182_v0  ;;  %v3353_v3 = vld [vmem:[%s3880_s1 + $0x88] sm:$0xff] (!%p202_p3)   ;;  %v3364_v5 = vld [vmem:[%s3880_s1 + $0x90] sm:$0xff] (!%p202_p3)   ;;  %vm347_vm1 = vsmask.f32 (!%p202_p3), 7424 }
   0x8   : > { %2908 = vmatprep.subr.bf16.mxu0 (!%p202_p3), %v3342_v1  ;;  %2813 = vmatpush3.bf16.msra.mxu1 (!%p202_p3), %v3182_v0  ;;  %v3188_v6 = vld [vmem:[%s3880_s1 + $0x38] sm:$0xff] (!%p202_p3)   ;;  %v3195_v25 = vld [vmem:[%s3880_s1] sm:$0xff] (!%p202_p3)   ;;  %v3198_v41 = vld [vmem:[%s3880_s1 + $0xa8] sm:$0xff] (!%p202_p3)   ;;  %vm2277_vm3 = vcmask (!%p202_p3), 1040384   ;;  %vm2282_vm4 = vcmask (!%p202_p3), 1041408   ;;  %vm2287_vm5 = vcmask (!%p202_p3), 1042432  }
   0x9   : > { %2909 = vmatpush3.bf16.msra.mxu0 (!%p202_p3), %v3342_v1  ;;  %2814 = vmatprep.subr.bf16.mxu1 (!%p202_p3), %v3184_v2  ;;  %v3377_v7 = vld [vmem:[%s3880_s1 + $0x98] sm:$0xff] (!%p202_p3)   ;;  %v3197_v33 = vld [vmem:[%s3880_s1 + $0xa0] sm:$0xff] (!%p202_p3)   ;;  %v3202_v54 = vld [vmem:[%s3880_s1 + $0x8] sm:$0xff] (!%p202_p3)   ;;  %vm2308_vm6 = vcmask (!%p202_p3), 1044480  }
   0xa   : > { %2910 = vmatprep.subr.bf16.mxu0 (!%p202_p3), %v3353_v3  ;;  %v3204_v0 = vld [vmem:[%s3880_s1 + $0xb0] sm:$0xff] (!%p202_p3)  }
   0xc   : > { %2815 = vmatpush3.bf16.msra.mxu1 (!%p202_p3), %v3184_v2 }
   0xd   : > { %2911 = vmatpush3.bf16.msra.mxu0 (!%p202_p3), %v3353_v3  ;;  %2816 = vmatprep.subr.bf16.mxu1 (!%p202_p3), %v3186_v4 }
   0xe   : > { %s3889_s15 = smov (!%p240_p4, %s3282_s15), 1  ;;  %2912 = vmatprep.subr.bf16.mxu0 %v3364_v5 }
   0xf   : > { %s3156_s29 = smul.u32 88, %s3889_s15 }
  0x10   : > { %2817 = vmatpush3.bf16.msra.mxu1 %v3186_v4 }
  0x11   : > { %s3372_s10 = scalar_lea.vmem %s3879_s0, %s3156_s29  ;;  %2913 = vmatpush3.bf16.msra.mxu0 %v3364_v5  ;;  %2818 = vmatprep.subr.bf16.mxu1 %v3188_v6 }
  0x12   : > { %v270_v8 = vld [vmem:[%s3372_s10 + $0x4] sm:$0xf]  ;;  %v3382_v9 = vld [vmem:[%s3372_s10 + $0x8] sm:$0xf]  ;;  %v3389_v11 = vld [vmem:[%s3372_s10 + $0xc] sm:$0xff]   ;;  %2914 = vmatprep.subr.bf16.mxu0 %v3377_v7 }
  0x13   : > { %v3386_v10 = vcombine.low %v270_v8, %v3382_v9  ;;  %v3392_v12 = vld [vmem:[%s3372_s10 + $0x14] sm:$0xff]   ;;  %v1069_v13 = vld [vmem:[%s3372_s10 + $0xc] sm:$0xf]  ;;  %v3396_v14 = vld [vmem:[%s3372_s10 + $0x10] sm:$0xf]  ;;  %v356_v17 = vshll.u32 %v3389_v11, 16 }
  0x14   : > { %v360_v18 = vshrl.u32 %v3389_v11, 16  ;;  %v2559_v19 = vcombine.low %v1069_v13, %v3396_v14  ;;  %v1146_v20 = vshll.u32 %v3392_v12, 16  ;;  %v1150_v21 = vshrl.u32 %v3392_v12, 16  ;;  %v3408_v24 = vld [vmem:[%s3372_s10 + $0x14] sm:$0xff]   ;;  %v3414_v29 = vld [vmem:[%s3372_s10 + $0x1c] sm:$0xff]   ;;  %2819 = vmatpush3.bf16.msra.mxu1 %v3188_v6  ;;  %v3433_v45 = vld [vmem:[%s3372_s10 + $0x24] sm:$0xff]  }
  0x15   : > { %v349_v15 = vshrl.u32 %v3386_v10, 16  ;;  %v351_v16 = vshll.u32 %v3386_v10, 16  ;;  %v358_v23 = vrot.slane %v356_v17, 1  ;;  %v364_v32 = vshll.u32 %v3408_v24, 16  ;;  %2915 = vmatpush3.bf16.msra.mxu0 %v3377_v7  ;;  %2836 = vmatprep.subr.bf16.mxu1 %v3195_v25  ;;  %v3428_v42 = vld [vmem:[%s3372_s10 + $0x1c] sm:$0xff]   ;;  %v3443_v52 = vld [vmem:[%s3372_s10 + $0x24] sm:$0xff]  }
  0x16   : > { %v1139_v26 = vshrl.u32 %v2559_v19, 16  ;;  %v1141_v27 = vshll.u32 %v2559_v19, 16  ;;  %v1148_v28 = vrot.slane %v1146_v20, 1  ;;  %v1154_v36 = vshll.u32 %v3414_v29, 16  ;;  %2932 = vmatprep.subr.bf16.mxu0 %v3197_v33  ;;  %v3451_v57 = vld [vmem:[%s3372_s10 + $0x2c] sm:$0xff]  }
  0x17   : > { %v353_v22 = vrot.slane %v351_v16, 1  ;;  %v362_v31 = vor.u32 %v360_v18, %v358_v23  ;;  %v366_v38 = vrot.slane %v364_v32, 1  ;;  %v368_v44 = vshrl.u32 %v3408_v24, 16  ;;  %v3463_v8 = vld [vmem:[%s3372_s10 + $0x2c] sm:$0xff]  }
  0x18   : > { %v1143_v34 = vrot.slane %v1141_v27, 1  ;;  %v1152_v35 = vor.u32 %v1150_v21, %v1148_v28  ;;  %v1156_v40 = vrot.slane %v1154_v36, 1  ;;  %v372_v48 = vshll.u32 %v3428_v42, 16  ;;  %v1351_v19 = vld [vmem:[%s3372_s10 + $0xc] sm:$0xe] }
  0x19   : > { %v354_v30 = vor.u32 %v353_v22, %v349_v15  ;;  %v367_v43 = vsel %vm347_vm1, %v362_v31, %v366_v38  ;;  %v1158_v49 = vshrl.u32 %v3414_v29, 16  ;;  %v370_v50 = vor.u32 %v368_v44, %v366_v38  ;;  %v3205_v15 = vld [vmem:[%s3880_s1 + $0xb8] sm:$0xff]  }
  0x1a   : > { %v1144_v39 = vor.u32 %v1143_v34, %v1139_v26  ;;  %v1157_v47 = vsel %vm347_vm1, %v1152_v35, %v1156_v40  ;;  %v1162_v51 = vshll.u32 %v3433_v45, 16  ;;  %v376_v53 = vshrl.u32 %v3428_v42, 16  ;;  %v3495_v34 = vld [vmem:[%s3372_s10 + $0x3c] sm:$0xff]  }
  0x1b   : > { %v359_v37 = vsel %vm347_vm1, %v354_v30, %v358_v23  ;;  %v374_v55 = vrot.slane %v372_v48, 1  ;;  %v1160_v56 = vor.u32 %v1158_v49, %v1156_v40  ;;  %v380_v59 = vshll.u32 %v3443_v52, 16 }
  0x1c   : > { %2820 = vmatprep.mubr.msk.bf16.mxu1 %vm440_vm0, %v359_v37  ;;  %v1149_v46 = vsel %vm347_vm1, %v1144_v39, %v1148_v28  ;;  %v1164_v58 = vrot.slane %v1162_v51, 1  ;;  %v1166_v60 = vshrl.u32 %v3433_v45, 16  ;;  %v1170_v63 = vshll.u32 %v3451_v57, 16  ;;  %v3212_v39 = vld [vmem:[%s3372_s10 + $0x44] ss:$0 sps:$4 sm:$0x11]  }
  0x1d   : > { %2821 = vmatmul.mubr.msk.bf16.vlgmr.msra.gmra.mrb[0].mxu1 %vm440_vm0, %v367_v43  ;;  %2916 = vmatprep.mubr.msk.bf16.mxu0 %vm440_vm0, %v1149_v46  ;;  %v375_v61 = vsel %vm347_vm1, %v370_v50, %v374_v55  ;;  %v378_v62 = vor.u32 %v376_v53, %v374_v55  ;;  %v382_v4 = vrot.slane %v380_v59, 1  ;;  %v384_v16 = vshrl.u32 %v3443_v52, 16  ;;  %v3215_v50 = vld [vmem:[%s3372_s10 + $0x34] sm:$0xff]   ;;  %v3216_v55 = vld [vmem:[%s3880_s1 + $0x40] sm:$0xff]  }
  0x1e   : > { %2837 = vmatpush3.bf16.msra.mxu1 %v3195_v25  ;;  %2917 = vmatmul.mubr.msk.bf16.vlgmr.msra.gmra.mrb[0].mxu0 %vm440_vm0, %v1157_v47  ;;  %v1165_v2 = vsel %vm347_vm1, %v1160_v56, %v1164_v58  ;;  %v1168_v6 = vor.u32 %v1166_v60, %v1164_v58  ;;  %v3466_v13 = vrot.slane %v1170_v63, 1  ;;  %v388_v18 = vshll.u32 %v3463_v8, 16  ;;  %v3481_v25 = vld [vmem:[%s3372_s10 + $0x34] sm:$0xff]   ;;  %v3531_v63 = vld [vmem:[%s3372_s10 + $0x44] sm:$0xff]  }
  0x1f   : > { %2933 = vmatpush3.bf16.msra.mxu0 %v3197_v33  ;;  %2838 = vmatprep.subr.bf16.mxu1 %v3202_v54  ;;  %v383_v17 = vsel %vm347_vm1, %v378_v62, %v382_v4  ;;  %v1365_v20 = vrot.slane %v3392_v12, 1  ;;  %v386_v22 = vor.u32 %v384_v16, %v382_v4  ;;  %v2588_v23 = vcombine.low %v1351_v19, %v3396_v14  ;;  %v3209_v12 = vld [vmem:[%s3880_s1 + $0x10] sm:$0xff]   ;;  %v3210_v14 = vld [vmem:[%s3880_s1 + $0xc0] sm:$0xff]  }
  0x20   : > { %2934 = vmatprep.subr.bf16.mxu0 %v3198_v41  ;;  %2824 = vmatprep.mubr.msk.bf16.mxu1 %vm440_vm0, %v375_v61  ;;  %v1173_v21 = vsel %vm347_vm1, %v1168_v6, %v3466_v13  ;;  %v392_v26 = vshrl.u32 %v3463_v8, 16  ;;  %v390_v27 = vrot.slane %v388_v18, 1  ;;  %v1367_v28 = vrot.slane %v3414_v29, 1  ;;  %v3218_v59 = vld [vmem:[%s3880_s1 + $0xd0] sm:$0xff]   ;;  %v3217_v61 = vld [vmem:[%s3372_s10 + $0x3c] sm:$0xff]  }
  0x21   : > { %2920 = vmatprep.mubr.msk.bf16.mxu0 %vm440_vm0, %v1165_v2  ;;  %v1364_v30 = vrot.slane %v2588_v23, 1  ;;  %v396_v31 = vshll.u32 %v3481_v25, 16  ;;  %v400_v35 = vshrl.u32 %v3481_v25, 16  ;;  %v1369_v37 = vrot.slane %v3433_v45, 1  ;;  %v3214_v45 = vld [vmem:[%s3880_s1 + $0xc8] sm:$0xff]   ;;  %v3222_v2 = vld [vmem:[%s3880_s1 + $0xd8] sm:$0xff]  }
  0x22   : > { %2839 = vmatpush3.bf16.msra.mxu1 %v3202_v54  ;;  %v391_v32 = vsel %vm347_vm1, %v386_v22, %v390_v27  ;;  %v394_v33 = vor.u32 %v392_v26, %v390_v27  ;;  %v404_v38 = vshll.u32 %v3495_v34, 16  ;;  %v408_v40 = vshrl.u32 %v3495_v34, 16  ;;  %v3226_v19 = vld [vmem:[%s3880_s1 + $0xe0] sm:$0xff]   ;;  %v3220_v26 = vld [vmem:[%s3880_s1 + $0x48] sm:$0xff]  }
  0x23   : > { %2935 = vmatpush3.bf16.msra.mxu0 %v3198_v41  ;;  %2840 = vmatprep.subr.bf16.mxu1 %v3209_v12  ;;  %v1366_v29 = vsel %vm696_vm2, %v1364_v30, %v1365_v20  ;;  %v398_v36 = vrot.slane %v396_v31, 1  ;;  %v3213_v41 = vld [vmem:[%s3880_s1 + $0x18] sm:$0xff]   ;;  %v1368_v46 = vsel %vm696_vm2, %v1365_v20, %v1367_v28  ;;  %v412_v48 = vshll.u32 %v3212_v39, 16  ;;  %v3570_v30 = vld [vmem:[%s3372_s10 + $0x4c] ss:$0 sps:$4 sm:$0x11]  }
  0x24   : > { %2936 = vmatprep.subr.bf16.mxu0 %v3204_v0  ;;  %v406_v47 = vrot.slane %v404_v38, 1  ;;  %v1370_v49 = vsel %vm696_vm2, %v1367_v28, %v1369_v37  ;;  %v1371_v56 = vrot.slane %v3451_v57, 1  ;;  %v1373_v58 = vrot.slane %v3215_v50, 1 }
  0x25   : > { %2825 = vmatmul.mubr.msk.bf16.gmra.mrb[4].mxu1 %vm440_vm0, %v383_v17  ;;  %v399_v43 = vsel %vm347_vm1, %v394_v33, %v398_v36  ;;  %v402_v44 = vor.u32 %v400_v35, %v398_v36  ;;  %v414_v54 = vrot.slane %v412_v48, 1  ;;  %v704_v4 = vrot.slane %v3443_v52, 1  ;;  %v3233_v48 = vld [vmem:[%s3880_s1 + $0x60] sm:$0xff]  }
  0x26   : > { %2921 = vmatmul.mubr.msk.bf16.gmra.mrb[4].mxu0 %vm440_vm0, %v1173_v21  ;;  %2828 = vmatprep.mubr.msk.bf16.mxu1 %vm440_vm0, %v391_v32  ;;  %v410_v53 = vor.u32 %v408_v40, %v406_v47  ;;  %v1372_v62 = vsel %vm696_vm2, %v1369_v37, %v1371_v56  ;;  %v706_v6 = vrot.slane %v3463_v8, 1  ;;  %v708_v16 = vrot.slane %v3481_v25, 1 }
  0x27   : > { %2937 = vmatpush3.bf16.msra.mxu0 %v3204_v0  ;;  %2940 = vmatprep.mubr.msk.bf16.mxu0 %vm440_vm0, %v1366_v29  ;;  %v407_v51 = vsel %vm347_vm1, %v402_v44, %v406_v47  ;;  %v1374_v0 = vsel %vm696_vm2, %v1371_v56, %v1373_v58  ;;  %v1377_v17 = vrot.slane %v3531_v63, 1  ;;  %v712_v21 = vrot.slane %v3212_v39, 1 }
  0x28   : > { %2938 = vmatprep.subr.bf16.mxu0 %v3205_v15  ;;  %2841 = vmatpush3.bf16.msra.mxu1 %v3209_v12  ;;  %v415_v60 = vsel %vm347_vm1, %v410_v53, %v414_v54  ;;  %v3549_v18 = vsel %vm696_vm2, %v704_v4, %v706_v6  ;;  %v3556_v20 = vsel %vm696_vm2, %v706_v6, %v708_v16  ;;  %v1174_v23 = vshrl.u32 %v3451_v57, 16  ;;  %v3227_v53 = vld [vmem:[%s3372_s10 + $0x24] sm:$0xff]  }
  0x29   : > { %2842 = vmatprep.subr.bf16.mxu1 %v3213_v41  ;;  %v1178_v12 = vshll.u32 %v3215_v50, 16  ;;  %v1186_v33 = vshll.u32 %v3217_v61, 16  ;;  %v1379_v36 = vrot.slane %v3570_v30, 1  ;;  %v1190_v38 = vshrl.u32 %v3217_v61, 16  ;;  %v3230_v54 = vld [vmem:[%s3880_s1 + $0xe8] sm:$0xff]  }
  0x2a   : > { %v1176_v31 = vor.u32 %v1174_v23, %v3466_v13  ;;  %v3224_v13 = vld [vmem:[%s3880_s1 + $0x50] sm:$0xff]   ;;  %v1194_v40 = vshll.u32 %v3531_v63, 16  ;;  %v698_v56 = vrot.slane %v3389_v11, 1 }
  0x2b   : > { %2939 = vmatpush3.bf16.msra.mxu0 %v3205_v15  ;;  %v1375_v15 = vrot.slane %v3217_v61, 1  ;;  %v1180_v32 = vrot.slane %v1178_v12, 1  ;;  %v1188_v37 = vrot.slane %v1186_v33, 1  ;;  %v1380_v44 = vsel %vm696_vm2, %v1377_v17, %v1379_v36  ;;  %v3246_v36 = vld [vmem:[%s3880_s1 + $0x78] sm:$0xff]  }
  0x2c   : > { %2956 = vmatprep.subr.bf16.mxu0 %v3210_v14  ;;  %2843 = vmatpush3.bf16.msra.mxu1 %v3213_v41  ;;  %v3228_v41 = vld [vmem:[%s3880_s1 + $0x58] sm:$0xff]  }
  0x2d   : > { %2829 = vmatmul.mubr.msk.bf16.gmra.mrb[8].mxu1 %vm440_vm0, %v399_v43  ;;  %2860 = vmatprep.subr.bf16.mxu1 %v3216_v55  ;;  %v1376_v28 = vsel %vm696_vm2, %v1373_v58, %v1375_v15  ;;  %v1378_v57 = vsel %vm696_vm2, %v1375_v15, %v1377_v17  ;;  %v3583_v35 = vsel %vm347_vm1, %v1176_v31, %v1180_v32  ;;  %v3627_v58 = vld [vmem:[%s3372_s10 + $0x18] sm:$0xf]  ;;  %v3244_v15 = vld [vmem:[%s3880_s1 + $0x100] sm:$0xff]   ;;  %v1202_v17 = vshll.u32 %v3570_v30, 16 }
  0x2e   : > { %2941 = vmatmul.mubr.msk.bf16.vlgmr.msra.gmra.mrb[0].mxu0 %vm440_vm0, %v1368_v46  ;;  %2832 = vmatprep.mubr.msk.bf16.mxu1 %vm440_vm0, %v407_v51  ;;  %v1192_v43 = vor.u32 %v1190_v38, %v1188_v37  ;;  %v1196_v46 = vrot.slane %v1194_v40, 1  ;;  %v3666_v30 = vld [vmem:[%s3372_s10 + $0x24] sm:$0xff]  }
  0x2f   : > { %2957 = vmatpush3.bf16.msra.mxu0 %v3210_v14  ;;  %2944 = vmatprep.mubr.msk.bf16.mxu0 %vm440_vm0, %v1370_v49  ;;  %v1182_v14 = vshrl.u32 %v3215_v50, 16  ;;  %v683_v49 = vld [vmem:[%s3372_s10 + $0x4] sm:$0xe]  ;;  %v3225_v50 = vld [vmem:[%s3372_s10 + $0x1c] sm:$0xff]   ;;  %v1204_v12 = vrot.slane %v1202_v17, 1 }
  0x30   : > { %2958 = vmatprep.subr.bf16.mxu0 %v3214_v45  ;;  %v3601_v47 = vsel %vm347_vm1, %v1192_v43, %v1196_v46  ;;  %v2510_v51 = vcombine.low %v683_v49, %v3382_v9  ;;  %v3235_v9 = vld [vmem:[%s3880_s1 + $0xf0] sm:$0xff]  }
  0x31   : > { %v1184_v29 = vor.u32 %v1182_v14, %v1180_v32  ;;  %v3673_v32 = vld [vmem:[%s3372_s10 + $0x2c] sm:$0xff]  }
  0x32   : > { %v1833_v49 = vshrl.u32 %v3673_v32, 16 }
  0x33   : > { %2959 = vmatpush3.bf16.msra.mxu0 %v3214_v45  ;;  %v3588_v39 = vsel %vm347_vm1, %v1184_v29, %v1188_v37  ;;  %v3223_v45 = vld [vmem:[%s3372_s10 + $0x14] sm:$0xff]   ;;  %v1821_v29 = vshll.u32 %v3666_v30, 16 }
  0x34   : > { %2960 = vmatprep.subr.bf16.mxu0 %v3218_v59 }
  0x35   : > { %2833 = vmatmul.mubr.msk.bf16.gmra.mrb[12].mxu1 %vm440_vm0, %v415_v60  ;;  %v3232_v60 = vld [vmem:[%s3372_s10 + $0x34] sm:$0xff]   ;;  %v1823_v40 = vrot.slane %v1821_v29, 1  ;;  %v3259_v29 = vld [vmem:[%s3372_s10 + $0x2c] sm:$0xff]  }
  0x36   : > { %2844 = vmatprep.mubr.msk.bf16.mxu1 %vm440_vm0, %v3386_v10  ;;  %2945 = vmatmul.mubr.msk.bf16.gmra.mrb[4].mxu0 %vm440_vm0, %v1372_v62  ;;  %v710_v10 = vrot.slane %v3495_v34, 1  ;;  %v700_v62 = vrot.slane %v3408_v24, 1 }
  0x37   : > { %2948 = vmatprep.mubr.msk.bf16.mxu0 %vm440_vm0, %v1374_v0  ;;  %2961 = vmatpush3.bf16.msra.mxu0 %v3218_v59  ;;  %v3229_v59 = vld [vmem:[%s3372_s10 + $0x2c] sm:$0xff]   ;;  %v702_v0 = vrot.slane %v3428_v42, 1 }
  0x38   : > { %2962 = vmatprep.subr.bf16.mxu0 %v3222_v2  ;;  %v3559_v22 = vsel %vm696_vm2, %v708_v16, %v710_v10  ;;  %v3566_v27 = vsel %vm696_vm2, %v710_v10, %v712_v21  ;;  %v701_v16 = vsel %vm696_vm2, %v698_v56, %v700_v62  ;;  %v3237_v10 = vld [vmem:[%s3880_s1 + $0x68] sm:$0xff]  }
  0x39   : > { %v705_v33 = vsel %vm696_vm2, %v702_v0, %v704_v4  ;;  %v1829_v4 = vshll.u32 %v3673_v32, 16 }
  0x3b   : > { %2963 = vmatpush3.bf16.msra.mxu0 %v3222_v2  ;;  %v1198_v2 = vshrl.u32 %v3531_v63, 16 }
  0x3c   : > { %2980 = vmatprep.subr.bf16.mxu0 %v3226_v19 }
  0x3d   : > { %2845 = vmatmul.mubr.msk.bf16.vlgmr.msra.gmra.mrb[0].mxu1 %vm440_vm0, %v3389_v11  ;;  %v3239_v11 = vld [vmem:[%s3880_s1 + $0xf8] sm:$0xff]   ;;  %v1200_v63 = vor.u32 %v1198_v2, %v1196_v46 }
  0x3e   : > { %2861 = vmatpush3.bf16.msra.mxu1 %v3216_v55  ;;  %2848 = vmatprep.mubr.msk.bf16.mxu1 %vm440_vm0, %v3408_v24  ;;  %v697_v55 = vrot.slane %v2510_v51, 1  ;;  %v3234_v24 = vld [vmem:[%s3372_s10 + $0x3c] sm:$0xff]   ;;  %v3248_v51 = vld [vmem:[%s3880_s1 + $0x108] sm:$0xff]  }
  0x3f   : > { %2949 = vmatmul.mubr.msk.bf16.gmra.mrb[8].mxu0 %vm440_vm0, %v1376_v28  ;;  %2862 = vmatprep.subr.bf16.mxu1 %v3220_v26  ;;  %v3242_v28 = vld [vmem:[%s3880_s1 + $0x70] sm:$0xff]   ;;  %v3670_v31 = vsel %vm347_vm1, %v1200_v63, %v1204_v12  ;;  %v3696_v46 = vld [vmem:[%s3372_s10 + $0x3c] sm:$0xff]  }
  0x40   : > { %2952 = vmatprep.mubr.msk.bf16.mxu0 %vm440_vm0, %v1378_v57  ;;  %v3258_v2 = vld [vmem:[%s3880_s1 + $0x118] sm:$0xff]   ;;  %v3264_v12 = vld [vmem:[%s3880_s1 + $0x80] sm:$0xff]  }
  0x42   : > { %2863 = vmatpush3.bf16.msra.mxu1 %v3220_v26 }
  0x43   : > { %2864 = vmatprep.subr.bf16.mxu1 %v3224_v13 }
  0x45   : > { %2849 = vmatmul.mubr.msk.bf16.gmra.mrb[4].mxu1 %vm440_vm0, %v3428_v42  ;;  %v703_v42 = vsel %vm696_vm2, %v700_v62, %v702_v0 }
  0x46   : > { %2852 = vmatprep.mubr.msk.bf16.mxu1 %vm440_vm0, %v3443_v52  ;;  %2865 = vmatpush3.bf16.msra.mxu1 %v3224_v13  ;;  %v3238_v13 = vld [vmem:[%s3372_s10 + $0x4c] sm:$0xff]   ;;  %v1825_v52 = vshrl.u32 %v3666_v30, 16 }
  0x47   : > { %2953 = vmatmul.mubr.msk.bf16.gmra.mrb[12].mxu0 %vm440_vm0, %v1380_v44  ;;  %2866 = vmatprep.subr.bf16.mxu1 %v3228_v41 }
  0x48   : > { %2964 = vmatprep.mubr.msk.bf16.mxu0 %vm440_vm0, %v3223_v45  ;;  %v1827_v44 = vor.u32 %v1825_v52, %v1823_v40  ;;  %v1831_v45 = vrot.slane %v1829_v4, 1  ;;  %v3262_v52 = vld [vmem:[%s3372_s10 + $0x3c] sm:$0xff]  }
  0x49   : > { %v3267_v4 = vld [vmem:[%s3880_s1 + $0x98] sm:$0xff]  }
  0x4a   : > { %2867 = vmatpush3.bf16.msra.mxu1 %v3228_v41  ;;  %v3692_v41 = vld [vmem:[%s3372_s10 + $0x34] sm:$0xff]  }
  0x4b   : > { %2884 = vmatprep.subr.bf16.mxu1 %v3233_v48 }
  0x4d   : > { %2853 = vmatmul.mubr.msk.bf16.gmra.mrb[8].mxu1 %vm440_vm0, %v3463_v8  ;;  %v1736_v8 = vld [vmem:[%s3372_s10 + $0x14] sm:$0xf] }
  0x4e   : > { %2856 = vmatprep.mubr.msk.bf16.mxu1 %vm440_vm0, %v3481_v25  ;;  %v699_v25 = vsel %vm696_vm2, %v697_v55, %v698_v56  ;;  %v2637_v61 = vcombine.low %v1736_v8, %v3627_v58  ;;  %v3714_v55 = vld [vmem:[%s3372_s10 + $0x44] sm:$0xff]   ;;  %v3253_v8 = vld [vmem:[%s3880_s1 + $0x110] sm:$0xff]  }
  0x4f   : > { %2965 = vmatmul.mubr.msk.bf16.vlgmr.msra.gmra.mrb[0].mxu0 %vm440_vm0, %v3225_v50  ;;  %v1832_v50 = vsel %vm347_vm1, %v1827_v44, %v1831_v45  ;;  %v1857_v62 = vshrl.u32 %v3714_v55, 16 }
  0x50   : > { %2981 = vmatpush3.bf16.msra.mxu0 %v3226_v19  ;;  %2968 = vmatprep.mubr.msk.bf16.mxu0 %vm440_vm0, %v3227_v53  ;;  %v1808_v6 = vshll.u32 %v2637_v61, 16  ;;  %v3236_v19 = vld [vmem:[%s3372_s10 + $0x44] sm:$0xff]   ;;  %v1806_v21 = vshrl.u32 %v2637_v61, 16  ;;  %v1841_v53 = vshrl.u32 %v3692_v41, 16 }
  0x51   : > { %2982 = vmatprep.subr.bf16.mxu0 %v3230_v54 }
  0x52   : > { %v1810_v23 = vrot.slane %v1808_v6, 1 }
  0x54   : > { %2983 = vmatpush3.bf16.msra.mxu0 %v3230_v54  ;;  %v1811_v14 = vor.u32 %v1810_v23, %v1806_v21  ;;  %v1845_v54 = vshll.u32 %v3696_v46, 16 }
  0x55   : > { %2857 = vmatmul.mubr.msk.bf16.gmra.mrb[12].mxu1 %vm440_vm0, %v3495_v34  ;;  %2984 = vmatprep.subr.bf16.mxu0 %v3235_v9  ;;  %v3644_v34 = vld [vmem:[%s3372_s10 + $0x1c] sm:$0xff]  }
  0x56   : > { %2868 = vmatprep.mubr.msk.bf16.mxu1 %vm440_vm0, %v699_v25  ;;  %v1813_v26 = vshll.u32 %v3644_v34, 16  ;;  %v1817_v37 = vshrl.u32 %v3644_v34, 16  ;;  %v3249_v25 = vld [vmem:[%s3372_s10 + $0xc] sm:$0xff]  }
  0x57   : > { %2969 = vmatmul.mubr.msk.bf16.gmra.mrb[4].mxu0 %vm440_vm0, %v3229_v59  ;;  %v3721_v59 = vld [vmem:[%s3372_s10 + $0x4c] sm:$0xff]  }
  0x58   : > { %2972 = vmatprep.mubr.msk.bf16.mxu0 %vm440_vm0, %v3232_v60  ;;  %2985 = vmatpush3.bf16.msra.mxu0 %v3235_v9  ;;  %v1815_v57 = vrot.slane %v1813_v26, 1  ;;  %v1847_v9 = vrot.slane %v1845_v54, 1  ;;  %v1861_v0 = vshll.u32 %v3721_v59, 16  ;;  %v1865_v63 = vshrl.u32 %v3721_v59, 16 }
  0x59   : > { %2986 = vmatprep.subr.bf16.mxu0 %v3239_v11 }
  0x5a   : > { %v1816_v38 = vsel %vm347_vm1, %v1811_v14, %v1815_v57  ;;  %v1819_v43 = vor.u32 %v1817_v37, %v1815_v57  ;;  %v1863_v17 = vrot.slane %v1861_v0, 1  ;;  %v3256_v57 = vld [vmem:[%s3372_s10 + $0x24] sm:$0xff]   ;;  %v3261_v37 = vld [vmem:[%s3372_s10 + $0x34] sm:$0xff]  }
  0x5c   : > { %2987 = vmatpush3.bf16.msra.mxu0 %v3239_v11  ;;  %v1849_v11 = vshrl.u32 %v3696_v46, 16 }
  0x5d   : > { %2869 = vmatmul.mubr.msk.bf16.vlgmr.msra.gmra.mrb[0].mxu1 %vm440_vm0, %v701_v16  ;;  %3004 = vmatprep.subr.bf16.mxu0 %v3244_v15  ;;  %v3251_v16 = vld [vmem:[%s3372_s10 + $0x14] sm:$0xff]  }
  0x5e   : > { %2885 = vmatpush3.bf16.msra.mxu1 %v3233_v48  ;;  %2872 = vmatprep.mubr.msk.bf16.mxu1 %vm440_vm0, %v703_v42  ;;  %v1837_v48 = vshll.u32 %v3692_v41, 16  ;;  %v3254_v42 = vld [vmem:[%s3372_s10 + $0x1c] sm:$0xff]  }
  0x5f   : > { %2973 = vmatmul.mubr.msk.bf16.gmra.mrb[8].mxu0 %vm440_vm0, %v3234_v24  ;;  %2886 = vmatprep.subr.bf16.mxu1 %v3237_v10 }
  0x60   : > { %2976 = vmatprep.mubr.msk.bf16.mxu0 %vm440_vm0, %v3236_v19 }
  0x62   : > { %2887 = vmatpush3.bf16.msra.mxu1 %v3237_v10  ;;  %v2018_v10 = vld [vmem:[%s3372_s10 + $0x14] sm:$0xe] }
  0x63   : > { %2888 = vmatprep.subr.bf16.mxu1 %v3242_v28  ;;  %v2666_v26 = vcombine.low %v2018_v10, %v3627_v58  ;;  %v2032_v58 = vrot.slane %v3644_v34, 1  ;;  %v3266_v34 = vld [vmem:[%s3880_s1 + $0x90] sm:$0xff]  }
  0x65   : > { %2873 = vmatmul.mubr.msk.bf16.gmra.mrb[4].mxu1 %vm440_vm0, %v705_v33  ;;  %v2031_v33 = vrot.slane %v2666_v26, 1 }
  0x66   : > { %2876 = vmatprep.mubr.msk.bf16.mxu1 %vm440_vm0, %v3549_v18  ;;  %2889 = vmatpush3.bf16.msra.mxu1 %v3242_v28  ;;  %v1824_v18 = vsel %vm347_vm1, %v1819_v43, %v1823_v40  ;;  %v1867_v28 = vor.u32 %v1865_v63, %v1863_v17 }
  0x67   : > { %2977 = vmatmul.mubr.msk.bf16.gmra.mrb[12].mxu0 %vm440_vm0, %v3238_v13  ;;  %2890 = vmatprep.subr.bf16.mxu1 %v3246_v36  ;;  %v3265_v13 = vld [vmem:[%s3880_s1 + $0x88] sm:$0xff]  }
  0x68   : > { %2988 = vmatprep.mubr.msk.bf16.mxu0 %vm440_vm0, %v1816_v38  ;;  %v2036_v38 = vrot.slane %v3673_v32, 1  ;;  %v2040_v32 = vrot.slane %v3696_v46, 1 }
  0x6a   : > { %2891 = vmatpush3.bf16.msra.mxu1 %v3246_v36  ;;  %v2033_v36 = vsel %vm696_vm2, %v2031_v33, %v2032_v58 }
  0x6b   : > { %3028 = vmatprep.subr.bf16.mxu1 %v3342_v1  ;;  %v1839_v1 = vrot.slane %v1837_v48, 1  ;;  %v2042_v48 = vrot.slane %v3714_v55, 1 }
  0x6d   : > { %2877 = vmatmul.mubr.msk.bf16.gmra.mrb[8].mxu1 %vm440_vm0, %v3556_v20  ;;  %v1835_v20 = vor.u32 %v1833_v49, %v1831_v45  ;;  %v1843_v56 = vor.u32 %v1841_v53, %v1839_v1  ;;  %v2043_v46 = vsel %vm696_vm2, %v2040_v32, %v2042_v48 }
  0x6e   : > { %2880 = vmatprep.mubr.msk.bf16.mxu1 %vm440_vm0, %v3559_v22  ;;  %v1853_v22 = vshll.u32 %v3714_v55, 16 }
  0x6f   : > { %2989 = vmatmul.mubr.msk.bf16.vlgmr.msra.gmra.mrb[0].mxu0 %vm440_vm0, %v1824_v18  ;;  %v1840_v60 = vsel %vm347_vm1, %v1835_v20, %v1839_v1  ;;  %v1848_v61 = vsel %vm347_vm1, %v1843_v56, %v1847_v9  ;;  %v3825_v20 = vld [vmem:[%s3881_s2] ss:$0 sm:$0xff] }
  0x70   : > { %3005 = vmatpush3.bf16.msra.mxu0 %v3244_v15  ;;  %2992 = vmatprep.mubr.msk.bf16.mxu0 %vm440_vm0, %v1832_v50  ;;  %v1855_v6 = vrot.slane %v1853_v22, 1  ;;  %v3739_v15 = vld [vmem:[%s3372_s10 + $0x54] ss:$0 sps:$4 sm:$0x11]  }
  0x71   : > { %3006 = vmatprep.subr.bf16.mxu0 %v3248_v51  ;;  %v1869_v21 = vshll.u32 %v3739_v15, 16 }
  0x72   : > { %v1859_v24 = vor.u32 %v1857_v62, %v1855_v6 }
  0x73   : > { %v1871_v14 = vrot.slane %v1869_v21, 1 }
  0x74   : > { %3007 = vmatpush3.bf16.msra.mxu0 %v3248_v51  ;;  %v1864_v23 = vsel %vm347_vm1, %v1859_v24, %v1863_v17 }
  0x75   : > { %2881 = vmatmul.mubr.msk.bf16.gmra.mrb[12].mxu1 %vm440_vm0, %v3566_v27  ;;  %3008 = vmatprep.subr.bf16.mxu0 %v3253_v8  ;;  %v1851_v27 = vor.u32 %v1849_v11, %v1847_v9 }
  0x76   : > { %2892 = vmatprep.mubr.msk.bf16.mxu1 %vm440_vm0, %v3249_v25 }
  0x77   : > { %2993 = vmatmul.mubr.msk.bf16.gmra.mrb[4].mxu0 %vm440_vm0, %v1840_v60  ;;  %v1856_v19 = vsel %vm347_vm1, %v1851_v27, %v1855_v6 }
  0x78   : > { %2996 = vmatprep.mubr.msk.bf16.mxu0 %vm440_vm0, %v1848_v61  ;;  %3009 = vmatpush3.bf16.msra.mxu0 %v3253_v8 }
  0x79   : > { %3010 = vmatprep.subr.bf16.mxu0 %v3258_v2 }
  0x7c   : > { %3011 = vmatpush3.bf16.msra.mxu0 %v3258_v2 }
  0x7d   : > { %2893 = vmatmul.mubr.msk.bf16.vlgmr.msra.gmra.mrb[0].mxu1 %vm440_vm0, %v3251_v16 }
  0x7e   : > { %3032 = vmatpush3.bf16.msra.mxu1 %v3264_v12  ;;  %2896 = vmatprep.mubr.msk.bf16.mxu1 %vm440_vm0, %v3254_v42 }
  0x7f   : > { %2997 = vmatmul.mubr.msk.bf16.gmra.mrb[8].mxu0 %vm440_vm0, %v1856_v19  ;;  %3029 = vmatprep.subr.bf16.mxu1 %v3353_v3  ;;  %v1872_v3 = vsel %vm347_vm1, %v1867_v28, %v1871_v14 }
  0x80   : > { %3000 = vmatprep.mubr.msk.bf16.mxu0 %vm440_vm0, %v1864_v23 }
  0x82   : > { %3033 = vmatpush3.bf16.msra.mxu1 %v3265_v13 }
  0x83   : > { %3030 = vmatprep.subr.bf16.mxu1 %v3364_v5  ;;  %v2034_v5 = vrot.slane %v3666_v30, 1  ;;  %v3263_v30 = vld [vmem:[%s3372_s10 + $0x44] sm:$0xff]   ;;  %s2687_s10 = sshll.u32 %s3889_s15, 5 }
  0x84   : > { %s3816_s20 = scalar_lea.vmem %s3883_s4, %s2687_s10 }
  0x85   : > { %2897 = vmatmul.mubr.msk.bf16.gmra.mrb[4].mxu1 %vm440_vm0, %v3256_v57  ;;  %v2035_v40 = vsel %vm696_vm2, %v2032_v58, %v2034_v5  ;;  %v2037_v43 = vsel %vm696_vm2, %v2034_v5, %v2036_v38 }
  0x86   : > { %2900 = vmatprep.mubr.msk.bf16.mxu1 %vm440_vm0, %v3259_v29  ;;  %3034 = vmatpush3.bf16.msra.mxu1 %v3266_v34 }
  0x87   : > { %3001 = vmatmul.mubr.msk.bf16.gmra.mrb[12].mxu0 %vm440_vm0, %v1872_v3  ;;  %3031 = vmatprep.subr.bf16.mxu1 %v3377_v7  ;;  %v2038_v7 = vrot.slane %v3692_v41, 1  ;;  %v2044_v41 = vrot.slane %v3721_v59, 1  ;;  %v3830_v59 = vld [vmem:[%s3882_s3] ss:$0 sm:$0xff] }
  0x88   : > { %3012 = vmatprep.mubr.msk.bf16.mxu0 %vm440_vm0, %v2033_v36 }
  0x89   : > { %v2039_v44 = vsel %vm696_vm2, %v2036_v38, %v2038_v7  ;;  %v2041_v45 = vsel %vm696_vm2, %v2038_v7, %v2040_v32  ;;  %v2045_v18 = vsel %vm696_vm2, %v2042_v48, %v2044_v41 }
  0x8a   : > { %3035 = vmatpush3.bf16.msra.mxu1 %v3267_v4 }
  0x8d   : > { %2901 = vmatmul.mubr.msk.bf16.gmra.mrb[8].mxu1 %vm440_vm0, %v3261_v37 }
  0x8e   : > { %2904 = vmatprep.mubr.msk.bf16.mxu1 %vm440_vm0, %v3262_v52 }
  0x8f   : > { %3013 = vmatmul.mubr.msk.bf16.vlgmr.msra.gmra.mrb[0].mxu0 %vm440_vm0, %v2035_v40 }
  0x90   : > { %3016 = vmatprep.mubr.msk.bf16.mxu0 %vm440_vm0, %v2037_v43 }
  0x95   : > { %2905 = vmatmul.mubr.msk.bf16.gmra.mrb[12].mxu1 %vm440_vm0, %v3263_v30 }
  0x96   : > { %2924 = vmatprep.mubr.msk.bf16.mxu1 %vm440_vm0, %v3583_v35  ;;  %v2046_v35 = vrot.slane %v3739_v15, 1 }
  0x97   : > { %3017 = vmatmul.mubr.msk.bf16.gmra.mrb[4].mxu0 %vm440_vm0, %v2039_v44 }
  0x98   : > { %3020 = vmatprep.mubr.msk.bf16.mxu0 %vm440_vm0, %v2041_v45  ;;  %v2047_v49 = vsel %vm696_vm2, %v2044_v41, %v2046_v35 }
  0x9d   : > { %2925 = vmatmul.mubr.msk.bf16.vlgmr.msra.gmra.mrb[8].mxu1 %vm440_vm0, %v3588_v39  ;;  %v3292_v39 = vmov 0  }
  0x9e   : > { %2928 = vmatprep.mubr.msk.bf16.mxu1 %vm440_vm0, %v3601_v47  ;;  %266 = vst [vmem:[%s3816_s20] sm:$0xf] %v3292_v39  ;;  %267 = vst [vmem:[%s3816_s20 + $0x4] sm:$0xf] %v3292_v39 }
  0x9f   : > { %3021 = vmatmul.mubr.msk.bf16.gmra.mrb[8].mxu0 %vm440_vm0, %v2043_v46  ;;  %268 = vst [vmem:[%s3816_s20 + $0x18] sm:$0xf] %v3292_v39  ;;  %269 = vst [vmem:[%s3816_s20 + $0x1c] sm:$0xf] %v3292_v39 }
  0xa0   : > { %3024 = vmatprep.mubr.msk.bf16.mxu0 %vm440_vm0, %v2045_v18 }
  0xa5   : > { %2929 = vmatmul.mubr.msk.bf16.gmra.mrb[12].mxu1 %vm440_vm0, %v3670_v31 }
  0xa7   : > { %3025 = vmatmul.mubr.msk.bf16.gmra.mrb[12].mxu0 %vm440_vm0, %v2047_v49 }
 0x150   : > { %v2894_v47 = vpop.f32.mrb[0].mxu1 }
 0x151   : > { %v1006_v50 = vpop.f32.mrb[1].mxu1 }
 0x152   : > { %v2895_v31 = vpop.f32.mrb[2].mxu1 }
 0x153   : > { %v1009_v51 = vpop.f32.mrb[3].mxu1 }
 0x158   : > { %v2898_v53 = vpop.f32.mrb[4].mxu1 }
 0x159   : > { %v1020_v54 = vpop.f32.mrb[5].mxu1 }
 0x15a   : > { %v2899_v1 = vpop.f32.mrb[6].mxu1 }
 0x15b   : > { %v1023_v55 = vpop.f32.mrb[7].mxu1 }
 0x162   : > { %v3014_v56 = vpop.f32.mrb[0].mxu0 }
 0x163   : > { %v3036_v9 = vadd.f32 %v3014_v56, %v2894_v47  ;;  %v2130_v8 = vpop.f32.mrb[1].mxu0 }
 0x164   : > { %v3037_v25 = vadd.f32 %v2130_v8, %v1006_v50  ;;  %v3015_v22 = vpop.f32.mrb[2].mxu0 }
 0x165   : > { %v2200_v60 = vmul.f32 %v3036_v9, %v3825_v20  ;;  %v2133_v11 = vpop.f32.mrb[3].mxu0 }
 0x166   : > { %v2199_v61 = vmul.f32 %v3037_v25, %v3825_v20 }
 0x167   : > { %v2214_v62 = vadd.f32 %v3830_v59, %v2200_v60 }
 0x168   : > { %v2213_v0 = vadd.f32 %v3830_v59, %v2199_v61 }
 0x169   : > { %v2222_v2 = vmax.f32 %v2214_v62, 0.0 }
 0x16a   : > { %v2221_v6 = vmax.f32 %v2213_v0, 0.0  ;;  %v3018_v27 = vpop.f32.mrb[4].mxu0 }
 0x16b   : > { %v3038_v15 = vadd.f32 %v3018_v27, %v2898_v53  ;;  %v2144_v16 = vpop.f32.mrb[5].mxu0 }
 0x16c   : > { %v2229_v24 = vmax.f32 %v2221_v6, %v2222_v2  ;;  %v3039_v17 = vadd.f32 %v2144_v16, %v1020_v54  ;;  %v3019_v42 = vpop.f32.mrb[6].mxu0 }
 0x16d   : > { %v2202_v10 = vmul.f32 %v3038_v15, %v3825_v20  ;;  %v2147_v19 = vpop.f32.mrb[7].mxu0 }
 0x16e   : > { %v2237_v63 = vrot.slane %v2229_v24, 1  ;;  %v2201_v21 = vmul.f32 %v3039_v17, %v3825_v20 }
 0x16f   : > { %v2216_v23 = vadd.f32 %v3830_v59, %v2202_v10 }
 0x170   : > { %v2245_v26 = vmax.f32 %v2229_v24, %v2237_v63  ;;  %v2215_v12 = vadd.f32 %v3830_v59, %v2201_v21  ;;  %v2926_v28 = vpop.f32.mrb[8].mxu1 }
 0x171   : > { %v2224_v14 = vmax.f32 %v2216_v23, 0.0  ;;  %v1316_v57 = vpop.f32.mrb[9].mxu1 }
 0x172   : > { %v2253_v33 = vrot.slane %v2245_v26, 1  ;;  %v2261_v58 = vrot.slane %v2245_v26, 2  ;;  %v2223_v13 = vmax.f32 %v2215_v12, 0.0  ;;  %v3022_v29 = vpop.f32.mrb[8].mxu0  ;;  %v2927_v3 = vpop.f32.mrb[10].mxu1  ;;  %v2269_v30 = vrot.slane %v2245_v26, 3 }
 0x173   : > { %v3040_v36 = vadd.f32 %v3022_v29, %v2926_v28  ;;  %v2158_v34 = vpop.f32.mrb[9].mxu0  ;;  %v1319_v5 = vpop.f32.mrb[11].mxu1 }
 0x174   : > { %v2278_v37 = vsel %vm2277_vm3, %v2245_v26, %v2253_v33  ;;  %v2230_v38 = vmax.f32 %v2223_v13, %v2224_v14  ;;  %v3041_v52 = vadd.f32 %v2158_v34, %v1316_v57  ;;  %v3023_v4 = vpop.f32.mrb[10].mxu0 }
 0x175   : > { %v2283_v40 = vsel %vm2282_vm4, %v2278_v37, %v2261_v58  ;;  %v2204_v43 = vmul.f32 %v3040_v36, %v3825_v20  ;;  %v2161_v7 = vpop.f32.mrb[11].mxu0 }
 0x176   : > { %v2238_v32 = vrot.slane %v2230_v38, 1  ;;  %v2203_v44 = vmul.f32 %v3041_v52, %v3825_v20  ;;  %v2288_v48 = vsel %vm2287_vm5, %v2283_v40, %v2269_v30 }
 0x177   : > { %v2218_v45 = vadd.f32 %v3830_v59, %v2204_v43  ;;  %v2296_v51 = vrot.slane %v2288_v48, 7 }
 0x178   : > { %v2246_v41 = vmax.f32 %v2230_v38, %v2238_v32  ;;  %v2217_v46 = vadd.f32 %v3830_v59, %v2203_v44  ;;  %v2930_v18 = vpop.f32.mrb[12].mxu1 }
 0x179   : > { %v2226_v35 = vmax.f32 %v2218_v45, 0.0  ;;  %v1330_v49 = vpop.f32.mrb[13].mxu1  ;;  %v2304_v2 = vsel %vm2277_vm3, 0.0, %v2296_v51 }
 0x17a   : > { %v2254_v39 = vrot.slane %v2246_v41, 1  ;;  %v2262_v47 = vrot.slane %v2246_v41, 2  ;;  %v3026_v50 = vpop.f32.mrb[12].mxu0  ;;  %v2931_v31 = vpop.f32.mrb[14].mxu1  ;;  %v2225_v53 = vmax.f32 %v2217_v46, 0.0  ;;  %v2270_v56 = vrot.slane %v2246_v41, 3 }
 0x17b   : > { %v3042_v54 = vadd.f32 %v3026_v50, %v2930_v18  ;;  %v2172_v1 = vpop.f32.mrb[13].mxu0  ;;  %v1333_v55 = vpop.f32.mrb[15].mxu1  ;;  %v2309_v10 = vsel %vm2308_vm6, %v2304_v2, 0.0 }
 0x17c   : > { %v2279_v9 = vsel %vm2277_vm3, %v2246_v41, %v2254_v39  ;;  %v3043_v8 = vadd.f32 %v2172_v1, %v1330_v49  ;;  %v3027_v25 = vpop.f32.mrb[14].mxu0  ;;  %v2231_v60 = vmax.f32 %v2225_v53, %v2226_v35 }
 0x17d   : > { %v2284_v22 = vsel %vm2282_vm4, %v2279_v9, %v2262_v47  ;;  %v2206_v11 = vmul.f32 %v3042_v54, %v3825_v20  ;;  %v2175_v61 = vpop.f32.mrb[15].mxu0 }
 0x17e   : > { %v2289_v62 = vsel %vm2287_vm5, %v2284_v22, %v2270_v56  ;;  %v2205_v0 = vmul.f32 %v3043_v8, %v3825_v20  ;;  %v2239_v27 = vrot.slane %v2231_v60, 1 }
 0x17f   : > { %v2297_v6 = vrot.slane %v2289_v62, 7  ;;  %v2220_v15 = vadd.f32 %v3830_v59, %v2206_v11 }
 0x180   : > { %v2219_v16 = vadd.f32 %v3830_v59, %v2205_v0  ;;  %v2247_v17 = vmax.f32 %v2231_v60, %v2239_v27 }
 0x181   : > { %v2305_v24 = vsel %vm2277_vm3, 0.0, %v2297_v6  ;;  %v2228_v42 = vmax.f32 %v2220_v15, 0.0 }
 0x182   : > { %v2310_v19 = vsel %vm2308_vm6, %v2305_v24, 0.0  ;;  %v2227_v63 = vmax.f32 %v2219_v16, 0.0  ;;  %v2255_v20 = vrot.slane %v2247_v17, 1  ;;  %v2263_v23 = vrot.slane %v2247_v17, 2 }
 0x183   : > { %v2695_v21 = vpack.c.bf16 %v2310_v19, %v2309_v10  ;;  %v2271_v28 = vrot.slane %v2247_v17, 3 }
 0x184   : > { %v2232_v26 = vmax.f32 %v2227_v63, %v2228_v42  ;;  %v2280_v12 = vsel %vm2277_vm3, %v2247_v17, %v2255_v20 }
 0x185   : > { %2702 = vst [vmem:[%s3816_s20 + $0x8] sm:$0xff] %v2695_v21   ;;  %v2285_v14 = vsel %vm2282_vm4, %v2280_v12, %v2263_v23 }
 0x186   : > { %v2240_v59 = vrot.slane %v2232_v26, 1  ;;  %v2290_v57 = vsel %vm2287_vm5, %v2285_v14, %v2271_v28 }
 0x187   : > { %v2298_v29 = vrot.slane %v2290_v57, 7 }
 0x188   : > { %v2248_v33 = vmax.f32 %v2232_v26, %v2240_v59 }
 0x189   : > { %v2306_v37 = vsel %vm2277_vm3, 0.0, %v2298_v29 }
 0x18a   : > { %v2256_v58 = vrot.slane %v2248_v33, 1  ;;  %v2264_v13 = vrot.slane %v2248_v33, 2  ;;  %v2272_v3 = vrot.slane %v2248_v33, 3  ;;  %v2311_v4 = vsel %vm2308_vm6, %v2306_v37, 0.0 }
 0x18c   : > { %v2281_v36 = vsel %vm2277_vm3, %v2248_v33, %v2256_v58 }
 0x18d   : > { %v2286_v34 = vsel %vm2282_vm4, %v2281_v36, %v2264_v13 }
 0x18e   : > { %v2291_v5 = vsel %vm2287_vm5, %v2286_v34, %v2272_v3 }
 0x18f   : > { %v2299_v38 = vrot.slane %v2291_v5, 7 }
 0x191   : > { %v2307_v52 = vsel %vm2277_vm3, 0.0, %v2299_v38 }
 0x192   : > { %v2312_v40 = vsel %vm2308_vm6, %v2307_v52, 0.0 }
 0x193   : > { %v2700_v43 = vpack.c.bf16 %v2312_v40, %v2311_v4 }
 0x195   : > { %2703 = vst [vmem:[%s3816_s20 + $0x10] sm:$0xff] %v2700_v43  }
 0x196 PF: > { %s14_s17 = sadd.s32 1, %s3290_s17   ;;  %s3884_s15 = smov %s3286_s16 }
 0x197   : > { %p11_p5 = scmp.ge.s32.totalorder %s14_s17, 4   ;;  %s3885_s16 = smov %s3887_s18 }
 0x199   :  { %13 = sbr.rel (!%p11_p5) target bundleno = 2 (0x2), region = 83 }

// kernel: fwd.11
= control target key start
LH: loop header
LB: loop body
LE: loop exit
PB: predicated region body
PF: predicated region fallthrough
CT: control target
= control target key end

     0   :  { %s3137_s15 = smov 0   ;;  %s3139_s16 = smov 0   ;;  %s3752_s0 = inlined_call_operand.vmem [shape: bf16[2,64,128], index: 0, kind: input, shape index: {}]   ;;  %s3753_s1 = inlined_call_operand.vmem [shape: bf16[9,128,256], index: 1, kind: input, shape index: {}]   ;;  %s3754_s2 = inlined_call_operand.vmem [shape: f32[1,256], index: 2, kind: input, shape index: {}]   ;;  %s3755_s3 = inlined_call_operand.vmem [shape: f32[1,256], index: 3, kind: input, shape index: {}]   ;;  %s3756_s4 = inlined_call_operand.vmem [shape: bf16[2,48,256], index: 4, kind: output, shape index: {}]  }
   0x1   :  { %s3141_s17 = smov 0   ;;  %s3143_s18 = smov 0  }
   0x2   :  { %s3145_s19 = smov 0   ;;  %s3147_s20 = smov 0  }
   0x3   :  { %s3149_s21 = smov 0   ;;  %s3151_s22 = smov 0  }
   0x4   :  { %s3153_s23 = smov 0  }
   0x5 LB: > { %s23_s24 = sadd.s32 1, %s3101_s21  ;;  %s26_s25 = sadd.s32 1, %s3105_s22  ;;  %s3109_s23 = sphi %s3153_s23, %s14_s23   ;;  %s3105_s22 = sphi %s3151_s22, %s3766_s22   ;;  %s3101_s21 = sphi %s3149_s21, %s3765_s21   ;;  %s3097_s20 = sphi %s3147_s20, %s3764_s20   ;;  %s3093_s19 = sphi %s3145_s19, %s3763_s19   ;;  %s3089_s18 = sphi %s3143_s18, %s3762_s18   ;;  %s3085_s17 = sphi %s3141_s17, %s3761_s17   ;;  %s3081_s16 = sphi %s3139_s16, %s3760_s16   ;;  %s3077_s15 = sphi %s3137_s15, %s3759_s15  }
   0x6   : > { %p24_p0 = scmp.ge.s32.totalorder %s23_s24, 2  ;;  %p66_p1 = scmp.ne.s32.totalorder %s3089_s18, %s3085_s17 }
   0x7   : > { %s2332_s26 = sadd.s32 4294967295, %s3109_s23   ;;  %p67_p2 = scmp.eq.s32.totalorder %s3109_s23, 0 }
   0x8   : > { %s3768_s24 = smov (%p24_p0, %s23_s24), 0  ;;  %s3770_s25 = smov (!%p24_p0, %s26_s25), %s3105_s22 }
   0x9   : > { %p28_p3 = scmp.ge.s32.totalorder %s3770_s25, 2  ;;  %s134_s27 = ssub.s32 %s3101_s21, %s3768_s24 }
   0xa   : > { %p3193_p4 = por %p67_p2, %p66_p1  ;;  %p149_p5 = scmp.ne.s32.totalorder %s3081_s16, %s3077_s15 }
   0xb   : > { %s3772_s25 = smov (%p28_p3, %s3770_s25), 0  ;;  %s59_s29 = sadd.s32 1, %s3089_s18 }
   0xc   : > { %p150_p6 = scmp.eq.s32.totalorder %s2332_s26, 3  ;;  %s56_s30 = ssub.s32 %s3105_s22, %s3772_s25 }
   0xd   : > { %s139_s5 = sadd.s32 1, %s3081_s16  ;;  %p57_p7 = scmp.eq.s32.totalorder %s56_s30, 0 }
   0xe   : > { %s136_s6 = sor.u32 %s134_s27, %s56_s30  ;;  %p3205_p9 = por %p150_p6, %p149_p5 }
   0xf   : > { %p137_p8 = scmp.eq.s32.totalorder %s136_s6, 0  ;;  %p2335_p10 = scmp.ge.s32.totalorder %s3109_s23, 4 }
  0x10   : > { %s3210_s8 = scalar_select %p57_p7, %s3089_s18, %s59_s29  }
  0x11   : > { %s3213_s9 = scalar_select %p137_p8, %s3081_s16, %s139_s5  }
  0x12   : > { %172 = sbr.rel (%p2335_p10) target bundleno = 125 (0x7d), region = 16 }
  0x19   : > { %183 = sbr.rel (!%p3193_p4) target bundleno = 125 (0x7d), region = 24  ;;  %s185_s10 = sand.u32 (%p3193_p4), 1, %s3089_s18  }
  0x1a   : > { %s2336_s11 = sshll.u32 (%p3193_p4), %s3105_s22, 2  ;;  %s2874_s12 = smul.u32 (%p3193_p4), 576, %s185_s10 }
  0x1b   : > { %s3223_s26 = scalar_lea.vmem (%p3193_p4), %s3753_s1, %s2336_s11 }
  0x1c   : > { %v205_v0 = vld [vmem:[%s3223_s26] sm:$0xf] (%p3193_p4)  ;;  %v207_v1 = vld [vmem:[%s3223_s26 + $0x8] sm:$0xf] (%p3193_p4)  ;;  %v209_v2 = vld [vmem:[%s3223_s26 + $0x10] sm:$0xf] (%p3193_p4) }
  0x1d   : > { %v211_v3 = vld [vmem:[%s3223_s26 + $0x18] sm:$0xf] (%p3193_p4)  ;;  %v213_v4 = vld [vmem:[%s3223_s26 + $0x20] sm:$0xf] (%p3193_p4)  ;;  %s3230_s27 = scalar_lea.vmem (%p3193_p4), [#allocation2], %s2874_s12 }
  0x1e   : > { %206 = vst [vmem:[%s3230_s27] sm:$0xf] (%p3193_p4), %v205_v0  ;;  %208 = vst [vmem:[%s3230_s27 + $0x4] sm:$0xf] (%p3193_p4), %v207_v1  ;;  %v215_v5 = vld [vmem:[%s3223_s26 + $0x28] sm:$0xf] (%p3193_p4) }
  0x1f   : > { %210 = vst [vmem:[%s3230_s27 + $0x8] sm:$0xf] (%p3193_p4), %v209_v2  ;;  %212 = vst [vmem:[%s3230_s27 + $0xc] sm:$0xf] (%p3193_p4), %v211_v3  ;;  %v217_v6 = vld [vmem:[%s3223_s26 + $0x30] sm:$0xf] (%p3193_p4) }
  0x20   : > { %214 = vst [vmem:[%s3230_s27 + $0x10] sm:$0xf] %v213_v4  ;;  %v219_v7 = vld [vmem:[%s3223_s26 + $0x38] sm:$0xf]  ;;  %216 = vst [vmem:[%s3230_s27 + $0x14] sm:$0xf] %v215_v5 }
  0x21   : > { %218 = vst [vmem:[%s3230_s27 + $0x18] sm:$0xf] %v217_v6  ;;  %220 = vst [vmem:[%s3230_s27 + $0x1c] sm:$0xf] %v219_v7  ;;  %v221_v8 = vld [vmem:[%s3223_s26 + $0x40] sm:$0xf] }
  0x22   : > { %v223_v9 = vld [vmem:[%s3223_s26 + $0x48] sm:$0xf]  ;;  %v225_v10 = vld [vmem:[%s3223_s26 + $0x50] sm:$0xf]  ;;  %222 = vst [vmem:[%s3230_s27 + $0x20] sm:$0xf] %v221_v8 }
  0x23   : > { %224 = vst [vmem:[%s3230_s27 + $0x24] sm:$0xf] %v223_v9  ;;  %226 = vst [vmem:[%s3230_s27 + $0x28] sm:$0xf] %v225_v10  ;;  %v227_v11 = vld [vmem:[%s3223_s26 + $0x58] sm:$0xf] }
  0x24   : > { %v229_v12 = vld [vmem:[%s3223_s26 + $0x60] sm:$0xf]  ;;  %v231_v13 = vld [vmem:[%s3223_s26 + $0x68] sm:$0xf]  ;;  %228 = vst [vmem:[%s3230_s27 + $0x2c] sm:$0xf] %v227_v11 }
  0x25   : > { %230 = vst [vmem:[%s3230_s27 + $0x30] sm:$0xf] %v229_v12  ;;  %232 = vst [vmem:[%s3230_s27 + $0x34] sm:$0xf] %v231_v13  ;;  %v233_v14 = vld [vmem:[%s3223_s26 + $0x70] sm:$0xf] }
  0x26   : > { %v235_v15 = vld [vmem:[%s3223_s26 + $0x78] sm:$0xf]  ;;  %v237_v16 = vld [vmem:[%s3223_s26 + $0x80] sm:$0xf]  ;;  %234 = vst [vmem:[%s3230_s27 + $0x38] sm:$0xf] %v233_v14 }
  0x27   : > { %236 = vst [vmem:[%s3230_s27 + $0x3c] sm:$0xf] %v235_v15  ;;  %238 = vst [vmem:[%s3230_s27 + $0x40] sm:$0xf] %v237_v16  ;;  %v239_v17 = vld [vmem:[%s3223_s26 + $0x88] sm:$0xf] }
  0x28   : > { %v241_v18 = vld [vmem:[%s3223_s26 + $0x90] sm:$0xf]  ;;  %v243_v19 = vld [vmem:[%s3223_s26 + $0x98] sm:$0xf]  ;;  %240 = vst [vmem:[%s3230_s27 + $0x44] sm:$0xf] %v239_v17 }
  0x29   : > { %242 = vst [vmem:[%s3230_s27 + $0x48] sm:$0xf] %v241_v18  ;;  %244 = vst [vmem:[%s3230_s27 + $0x4c] sm:$0xf] %v243_v19  ;;  %v245_v20 = vld [vmem:[%s3223_s26 + $0xa0] sm:$0xf] }
  0x2a   : > { %v247_v21 = vld [vmem:[%s3223_s26 + $0xa8] sm:$0xf]  ;;  %v249_v22 = vld [vmem:[%s3223_s26 + $0xb0] sm:$0xf]  ;;  %246 = vst [vmem:[%s3230_s27 + $0x50] sm:$0xf] %v245_v20 }
  0x2b   : > { %248 = vst [vmem:[%s3230_s27 + $0x54] sm:$0xf] %v247_v21  ;;  %250 = vst [vmem:[%s3230_s27 + $0x58] sm:$0xf] %v249_v22  ;;  %v251_v23 = vld [vmem:[%s3223_s26 + $0xb8] sm:$0xf] }
  0x2c   : > { %v253_v24 = vld [vmem:[%s3223_s26 + $0xc0] sm:$0xf]  ;;  %v255_v25 = vld [vmem:[%s3223_s26 + $0xc8] sm:$0xf]  ;;  %252 = vst [vmem:[%s3230_s27 + $0x5c] sm:$0xf] %v251_v23 }
  0x2d   : > { %254 = vst [vmem:[%s3230_s27 + $0x60] sm:$0xf] %v253_v24  ;;  %256 = vst [vmem:[%s3230_s27 + $0x64] sm:$0xf] %v255_v25  ;;  %v257_v26 = vld [vmem:[%s3223_s26 + $0xd0] sm:$0xf] }
  0x2e   : > { %v259_v27 = vld [vmem:[%s3223_s26 + $0xd8] sm:$0xf]  ;;  %v261_v28 = vld [vmem:[%s3223_s26 + $0xe0] sm:$0xf]  ;;  %258 = vst [vmem:[%s3230_s27 + $0x68] sm:$0xf] %v257_v26 }
  0x2f   : > { %260 = vst [vmem:[%s3230_s27 + $0x6c] sm:$0xf] %v259_v27  ;;  %262 = vst [vmem:[%s3230_s27 + $0x70] sm:$0xf] %v261_v28  ;;  %v263_v29 = vld [vmem:[%s3223_s26 + $0xe8] sm:$0xf] }
  0x30   : > { %v265_v30 = vld [vmem:[%s3223_s26 + $0xf0] sm:$0xf]  ;;  %v267_v31 = vld [vmem:[%s3223_s26 + $0xf8] sm:$0xf]  ;;  %264 = vst [vmem:[%s3230_s27 + $0x74] sm:$0xf] %v263_v29 }
  0x31   : > { %266 = vst [vmem:[%s3230_s27 + $0x78] sm:$0xf] %v265_v30  ;;  %268 = vst [vmem:[%s3230_s27 + $0x7c] sm:$0xf] %v267_v31  ;;  %v269_v32 = vld [vmem:[%s3223_s26 + $0x100] sm:$0xf] }
  0x32   : > { %v271_v33 = vld [vmem:[%s3223_s26 + $0x108] sm:$0xf]  ;;  %v273_v34 = vld [vmem:[%s3223_s26 + $0x110] sm:$0xf]  ;;  %270 = vst [vmem:[%s3230_s27 + $0x80] sm:$0xf] %v269_v32 }
  0x33   : > { %272 = vst [vmem:[%s3230_s27 + $0x84] sm:$0xf] %v271_v33  ;;  %274 = vst [vmem:[%s3230_s27 + $0x88] sm:$0xf] %v273_v34  ;;  %v275_v35 = vld [vmem:[%s3223_s26 + $0x118] sm:$0xf] }
  0x34   : > { %v277_v36 = vld [vmem:[%s3223_s26 + $0x120] sm:$0xf]  ;;  %v279_v37 = vld [vmem:[%s3223_s26 + $0x128] sm:$0xf]  ;;  %276 = vst [vmem:[%s3230_s27 + $0x8c] sm:$0xf] %v275_v35 }
  0x35   : > { %278 = vst [vmem:[%s3230_s27 + $0x90] sm:$0xf] %v277_v36  ;;  %280 = vst [vmem:[%s3230_s27 + $0x94] sm:$0xf] %v279_v37  ;;  %v281_v38 = vld [vmem:[%s3223_s26 + $0x130] sm:$0xf] }
  0x36   : > { %v283_v39 = vld [vmem:[%s3223_s26 + $0x138] sm:$0xf]  ;;  %v285_v40 = vld [vmem:[%s3223_s26 + $0x140] sm:$0xf]  ;;  %282 = vst [vmem:[%s3230_s27 + $0x98] sm:$0xf] %v281_v38 }
  0x37   : > { %284 = vst [vmem:[%s3230_s27 + $0x9c] sm:$0xf] %v283_v39  ;;  %286 = vst [vmem:[%s3230_s27 + $0xa0] sm:$0xf] %v285_v40  ;;  %v287_v41 = vld [vmem:[%s3223_s26 + $0x148] sm:$0xf] }
  0x38   : > { %v289_v42 = vld [vmem:[%s3223_s26 + $0x150] sm:$0xf]  ;;  %v291_v43 = vld [vmem:[%s3223_s26 + $0x158] sm:$0xf]  ;;  %288 = vst [vmem:[%s3230_s27 + $0xa4] sm:$0xf] %v287_v41 }
  0x39   : > { %290 = vst [vmem:[%s3230_s27 + $0xa8] sm:$0xf] %v289_v42  ;;  %292 = vst [vmem:[%s3230_s27 + $0xac] sm:$0xf] %v291_v43  ;;  %v293_v44 = vld [vmem:[%s3223_s26 + $0x160] sm:$0xf] }
  0x3a   : > { %v295_v45 = vld [vmem:[%s3223_s26 + $0x168] sm:$0xf]  ;;  %v297_v46 = vld [vmem:[%s3223_s26 + $0x170] sm:$0xf]  ;;  %294 = vst [vmem:[%s3230_s27 + $0xb0] sm:$0xf] %v293_v44 }
  0x3b   : > { %296 = vst [vmem:[%s3230_s27 + $0xb4] sm:$0xf] %v295_v45  ;;  %298 = vst [vmem:[%s3230_s27 + $0xb8] sm:$0xf] %v297_v46  ;;  %v299_v47 = vld [vmem:[%s3223_s26 + $0x178] sm:$0xf] }
  0x3c   : > { %v301_v48 = vld [vmem:[%s3223_s26 + $0x180] sm:$0xf]  ;;  %v303_v49 = vld [vmem:[%s3223_s26 + $0x188] sm:$0xf]  ;;  %300 = vst [vmem:[%s3230_s27 + $0xbc] sm:$0xf] %v299_v47 }
  0x3d   : > { %302 = vst [vmem:[%s3230_s27 + $0xc0] sm:$0xf] %v301_v48  ;;  %304 = vst [vmem:[%s3230_s27 + $0xc4] sm:$0xf] %v303_v49  ;;  %v305_v50 = vld [vmem:[%s3223_s26 + $0x190] sm:$0xf] }
  0x3e   : > { %v307_v51 = vld [vmem:[%s3223_s26 + $0x198] sm:$0xf]  ;;  %v309_v52 = vld [vmem:[%s3223_s26 + $0x1a0] sm:$0xf]  ;;  %306 = vst [vmem:[%s3230_s27 + $0xc8] sm:$0xf] %v305_v50 }
  0x3f   : > { %308 = vst [vmem:[%s3230_s27 + $0xcc] sm:$0xf] %v307_v51  ;;  %310 = vst [vmem:[%s3230_s27 + $0xd0] sm:$0xf] %v309_v52  ;;  %v311_v53 = vld [vmem:[%s3223_s26 + $0x1a8] sm:$0xf] }
  0x40   : > { %v313_v54 = vld [vmem:[%s3223_s26 + $0x1b0] sm:$0xf]  ;;  %v315_v55 = vld [vmem:[%s3223_s26 + $0x1b8] sm:$0xf]  ;;  %312 = vst [vmem:[%s3230_s27 + $0xd4] sm:$0xf] %v311_v53 }
  0x41   : > { %314 = vst [vmem:[%s3230_s27 + $0xd8] sm:$0xf] %v313_v54  ;;  %316 = vst [vmem:[%s3230_s27 + $0xdc] sm:$0xf] %v315_v55  ;;  %v317_v56 = vld [vmem:[%s3223_s26 + $0x1c0] sm:$0xf] }
  0x42   : > { %v319_v57 = vld [vmem:[%s3223_s26 + $0x1c8] sm:$0xf]  ;;  %v321_v58 = vld [vmem:[%s3223_s26 + $0x1d0] sm:$0xf]  ;;  %318 = vst [vmem:[%s3230_s27 + $0xe0] sm:$0xf] %v317_v56 }
  0x43   : > { %320 = vst [vmem:[%s3230_s27 + $0xe4] sm:$0xf] %v319_v57  ;;  %322 = vst [vmem:[%s3230_s27 + $0xe8] sm:$0xf] %v321_v58  ;;  %v323_v59 = vld [vmem:[%s3223_s26 + $0x1d8] sm:$0xf] }
  0x44   : > { %v325_v60 = vld [vmem:[%s3223_s26 + $0x1e0] sm:$0xf]  ;;  %v327_v61 = vld [vmem:[%s3223_s26 + $0x1e8] sm:$0xf]  ;;  %324 = vst [vmem:[%s3230_s27 + $0xec] sm:$0xf] %v323_v59 }
  0x45   : > { %326 = vst [vmem:[%s3230_s27 + $0xf0] sm:$0xf] %v325_v60  ;;  %328 = vst [vmem:[%s3230_s27 + $0xf4] sm:$0xf] %v327_v61  ;;  %v329_v62 = vld [vmem:[%s3223_s26 + $0x1f0] sm:$0xf] }
  0x46   : > { %v331_v63 = vld [vmem:[%s3223_s26 + $0x1f8] sm:$0xf]  ;;  %v333_v0 = vld [vmem:[%s3223_s26 + $0x200] sm:$0xf]  ;;  %330 = vst [vmem:[%s3230_s27 + $0xf8] sm:$0xf] %v329_v62 }
  0x47   : > { %332 = vst [vmem:[%s3230_s27 + $0xfc] sm:$0xf] %v331_v63  ;;  %334 = vst [vmem:[%s3230_s27 + $0x100] sm:$0xf] %v333_v0  ;;  %v335_v1 = vld [vmem:[%s3223_s26 + $0x208] sm:$0xf] }
  0x48   : > { %v337_v2 = vld [vmem:[%s3223_s26 + $0x210] sm:$0xf]  ;;  %v339_v3 = vld [vmem:[%s3223_s26 + $0x218] sm:$0xf]  ;;  %336 = vst [vmem:[%s3230_s27 + $0x104] sm:$0xf] %v335_v1 }
  0x49   : > { %338 = vst [vmem:[%s3230_s27 + $0x108] sm:$0xf] %v337_v2  ;;  %340 = vst [vmem:[%s3230_s27 + $0x10c] sm:$0xf] %v339_v3  ;;  %v341_v4 = vld [vmem:[%s3223_s26 + $0x220] sm:$0xf] }
  0x4a   : > { %v343_v5 = vld [vmem:[%s3223_s26 + $0x228] sm:$0xf]  ;;  %v345_v6 = vld [vmem:[%s3223_s26 + $0x230] sm:$0xf]  ;;  %342 = vst [vmem:[%s3230_s27 + $0x110] sm:$0xf] %v341_v4 }
  0x4b   : > { %344 = vst [vmem:[%s3230_s27 + $0x114] sm:$0xf] %v343_v5  ;;  %346 = vst [vmem:[%s3230_s27 + $0x118] sm:$0xf] %v345_v6  ;;  %v347_v7 = vld [vmem:[%s3223_s26 + $0x238] sm:$0xf] }
  0x4c   : > { %v349_v8 = vld [vmem:[%s3223_s26 + $0x240] sm:$0xf]  ;;  %v351_v9 = vld [vmem:[%s3223_s26 + $0x248] sm:$0xf]  ;;  %348 = vst [vmem:[%s3230_s27 + $0x11c] sm:$0xf] %v347_v7 }
  0x4d   : > { %350 = vst [vmem:[%s3230_s27 + $0x120] sm:$0xf] %v349_v8  ;;  %352 = vst [vmem:[%s3230_s27 + $0x124] sm:$0xf] %v351_v9  ;;  %v353_v10 = vld [vmem:[%s3223_s26 + $0x250] sm:$0xf] }
  0x4e   : > { %v355_v11 = vld [vmem:[%s3223_s26 + $0x258] sm:$0xf]  ;;  %v357_v12 = vld [vmem:[%s3223_s26 + $0x260] sm:$0xf]  ;;  %354 = vst [vmem:[%s3230_s27 + $0x128] sm:$0xf] %v353_v10 }
  0x4f   : > { %356 = vst [vmem:[%s3230_s27 + $0x12c] sm:$0xf] %v355_v11  ;;  %358 = vst [vmem:[%s3230_s27 + $0x130] sm:$0xf] %v357_v12  ;;  %v359_v13 = vld [vmem:[%s3223_s26 + $0x268] sm:$0xf] }
  0x50   : > { %v361_v14 = vld [vmem:[%s3223_s26 + $0x270] sm:$0xf]  ;;  %v363_v15 = vld [vmem:[%s3223_s26 + $0x278] sm:$0xf]  ;;  %360 = vst [vmem:[%s3230_s27 + $0x134] sm:$0xf] %v359_v13 }
  0x51   : > { %362 = vst [vmem:[%s3230_s27 + $0x138] sm:$0xf] %v361_v14  ;;  %364 = vst [vmem:[%s3230_s27 + $0x13c] sm:$0xf] %v363_v15  ;;  %v365_v16 = vld [vmem:[%s3223_s26 + $0x280] sm:$0xf] }
  0x52   : > { %v367_v17 = vld [vmem:[%s3223_s26 + $0x288] sm:$0xf]  ;;  %v369_v18 = vld [vmem:[%s3223_s26 + $0x290] sm:$0xf]  ;;  %366 = vst [vmem:[%s3230_s27 + $0x140] sm:$0xf] %v365_v16 }
  0x53   : > { %368 = vst [vmem:[%s3230_s27 + $0x144] sm:$0xf] %v367_v17  ;;  %370 = vst [vmem:[%s3230_s27 + $0x148] sm:$0xf] %v369_v18  ;;  %v371_v19 = vld [vmem:[%s3223_s26 + $0x298] sm:$0xf] }
  0x54   : > { %v373_v20 = vld [vmem:[%s3223_s26 + $0x2a0] sm:$0xf]  ;;  %v375_v21 = vld [vmem:[%s3223_s26 + $0x2a8] sm:$0xf]  ;;  %372 = vst [vmem:[%s3230_s27 + $0x14c] sm:$0xf] %v371_v19 }
  0x55   : > { %374 = vst [vmem:[%s3230_s27 + $0x150] sm:$0xf] %v373_v20  ;;  %376 = vst [vmem:[%s3230_s27 + $0x154] sm:$0xf] %v375_v21  ;;  %v377_v22 = vld [vmem:[%s3223_s26 + $0x2b0] sm:$0xf] }
  0x56   : > { %v379_v23 = vld [vmem:[%s3223_s26 + $0x2b8] sm:$0xf]  ;;  %v381_v24 = vld [vmem:[%s3223_s26 + $0x2c0] sm:$0xf]  ;;  %378 = vst [vmem:[%s3230_s27 + $0x158] sm:$0xf] %v377_v22 }
  0x57   : > { %380 = vst [vmem:[%s3230_s27 + $0x15c] sm:$0xf] %v379_v23  ;;  %382 = vst [vmem:[%s3230_s27 + $0x160] sm:$0xf] %v381_v24  ;;  %v383_v25 = vld [vmem:[%s3223_s26 + $0x2c8] sm:$0xf] }
  0x58   : > { %v385_v26 = vld [vmem:[%s3223_s26 + $0x2d0] sm:$0xf]  ;;  %v387_v27 = vld [vmem:[%s3223_s26 + $0x2d8] sm:$0xf]  ;;  %384 = vst [vmem:[%s3230_s27 + $0x164] sm:$0xf] %v383_v25 }
  0x59   : > { %386 = vst [vmem:[%s3230_s27 + $0x168] sm:$0xf] %v385_v26  ;;  %388 = vst [vmem:[%s3230_s27 + $0x16c] sm:$0xf] %v387_v27  ;;  %v389_v28 = vld [vmem:[%s3223_s26 + $0x2e0] sm:$0xf] }
  0x5a   : > { %v391_v29 = vld [vmem:[%s3223_s26 + $0x2e8] sm:$0xf]  ;;  %v393_v30 = vld [vmem:[%s3223_s26 + $0x2f0] sm:$0xf]  ;;  %390 = vst [vmem:[%s3230_s27 + $0x170] sm:$0xf] %v389_v28 }
  0x5b   : > { %392 = vst [vmem:[%s3230_s27 + $0x174] sm:$0xf] %v391_v29  ;;  %394 = vst [vmem:[%s3230_s27 + $0x178] sm:$0xf] %v393_v30  ;;  %v395_v31 = vld [vmem:[%s3223_s26 + $0x2f8] sm:$0xf] }
  0x5c   : > { %v397_v32 = vld [vmem:[%s3223_s26 + $0x300] sm:$0xf]  ;;  %v399_v33 = vld [vmem:[%s3223_s26 + $0x308] sm:$0xf]  ;;  %396 = vst [vmem:[%s3230_s27 + $0x17c] sm:$0xf] %v395_v31 }
  0x5d   : > { %398 = vst [vmem:[%s3230_s27 + $0x180] sm:$0xf] %v397_v32  ;;  %400 = vst [vmem:[%s3230_s27 + $0x184] sm:$0xf] %v399_v33  ;;  %v401_v34 = vld [vmem:[%s3223_s26 + $0x310] sm:$0xf] }
  0x5e   : > { %v403_v35 = vld [vmem:[%s3223_s26 + $0x318] sm:$0xf]  ;;  %v405_v36 = vld [vmem:[%s3223_s26 + $0x320] sm:$0xf]  ;;  %402 = vst [vmem:[%s3230_s27 + $0x188] sm:$0xf] %v401_v34 }
  0x5f   : > { %404 = vst [vmem:[%s3230_s27 + $0x18c] sm:$0xf] %v403_v35  ;;  %406 = vst [vmem:[%s3230_s27 + $0x190] sm:$0xf] %v405_v36  ;;  %v407_v37 = vld [vmem:[%s3223_s26 + $0x328] sm:$0xf] }
  0x60   : > { %v409_v38 = vld [vmem:[%s3223_s26 + $0x330] sm:$0xf]  ;;  %v411_v39 = vld [vmem:[%s3223_s26 + $0x338] sm:$0xf]  ;;  %408 = vst [vmem:[%s3230_s27 + $0x194] sm:$0xf] %v407_v37 }
  0x61   : > { %410 = vst [vmem:[%s3230_s27 + $0x198] sm:$0xf] %v409_v38  ;;  %412 = vst [vmem:[%s3230_s27 + $0x19c] sm:$0xf] %v411_v39  ;;  %v413_v40 = vld [vmem:[%s3223_s26 + $0x340] sm:$0xf] }
  0x62   : > { %v415_v41 = vld [vmem:[%s3223_s26 + $0x348] sm:$0xf]  ;;  %v417_v42 = vld [vmem:[%s3223_s26 + $0x350] sm:$0xf]  ;;  %414 = vst [vmem:[%s3230_s27 + $0x1a0] sm:$0xf] %v413_v40 }
  0x63   : > { %416 = vst [vmem:[%s3230_s27 + $0x1a4] sm:$0xf] %v415_v41  ;;  %418 = vst [vmem:[%s3230_s27 + $0x1a8] sm:$0xf] %v417_v42  ;;  %v419_v43 = vld [vmem:[%s3223_s26 + $0x358] sm:$0xf] }
  0x64   : > { %v421_v44 = vld [vmem:[%s3223_s26 + $0x360] sm:$0xf]  ;;  %v423_v45 = vld [vmem:[%s3223_s26 + $0x368] sm:$0xf]  ;;  %420 = vst [vmem:[%s3230_s27 + $0x1ac] sm:$0xf] %v419_v43 }
  0x65   : > { %422 = vst [vmem:[%s3230_s27 + $0x1b0] sm:$0xf] %v421_v44  ;;  %424 = vst [vmem:[%s3230_s27 + $0x1b4] sm:$0xf] %v423_v45  ;;  %v425_v46 = vld [vmem:[%s3223_s26 + $0x370] sm:$0xf] }
  0x66   : > { %v427_v47 = vld [vmem:[%s3223_s26 + $0x378] sm:$0xf]  ;;  %v429_v48 = vld [vmem:[%s3223_s26 + $0x380] sm:$0xf]  ;;  %426 = vst [vmem:[%s3230_s27 + $0x1b8] sm:$0xf] %v425_v46 }
  0x67   : > { %428 = vst [vmem:[%s3230_s27 + $0x1bc] sm:$0xf] %v427_v47  ;;  %430 = vst [vmem:[%s3230_s27 + $0x1c0] sm:$0xf] %v429_v48  ;;  %v431_v49 = vld [vmem:[%s3223_s26 + $0x388] sm:$0xf] }
  0x68   : > { %v433_v50 = vld [vmem:[%s3223_s26 + $0x390] sm:$0xf]  ;;  %v435_v51 = vld [vmem:[%s3223_s26 + $0x398] sm:$0xf]  ;;  %432 = vst [vmem:[%s3230_s27 + $0x1c4] sm:$0xf] %v431_v49 }
  0x69   : > { %434 = vst [vmem:[%s3230_s27 + $0x1c8] sm:$0xf] %v433_v50  ;;  %436 = vst [vmem:[%s3230_s27 + $0x1cc] sm:$0xf] %v435_v51  ;;  %v437_v52 = vld [vmem:[%s3223_s26 + $0x3a0] sm:$0xf] }
  0x6a   : > { %v439_v53 = vld [vmem:[%s3223_s26 + $0x3a8] sm:$0xf]  ;;  %v441_v54 = vld [vmem:[%s3223_s26 + $0x3b0] sm:$0xf]  ;;  %438 = vst [vmem:[%s3230_s27 + $0x1d0] sm:$0xf] %v437_v52 }
  0x6b   : > { %440 = vst [vmem:[%s3230_s27 + $0x1d4] sm:$0xf] %v439_v53  ;;  %442 = vst [vmem:[%s3230_s27 + $0x1d8] sm:$0xf] %v441_v54  ;;  %v443_v55 = vld [vmem:[%s3223_s26 + $0x3b8] sm:$0xf] }
  0x6c   : > { %v445_v56 = vld [vmem:[%s3223_s26 + $0x3c0] sm:$0xf]  ;;  %v447_v57 = vld [vmem:[%s3223_s26 + $0x3c8] sm:$0xf]  ;;  %444 = vst [vmem:[%s3230_s27 + $0x1dc] sm:$0xf] %v443_v55 }
  0x6d   : > { %446 = vst [vmem:[%s3230_s27 + $0x1e0] sm:$0xf] %v445_v56  ;;  %448 = vst [vmem:[%s3230_s27 + $0x1e4] sm:$0xf] %v447_v57  ;;  %v449_v58 = vld [vmem:[%s3223_s26 + $0x3d0] sm:$0xf] }
  0x6e   : > { %v451_v59 = vld [vmem:[%s3223_s26 + $0x3d8] sm:$0xf]  ;;  %v453_v60 = vld [vmem:[%s3223_s26 + $0x3e0] sm:$0xf]  ;;  %450 = vst [vmem:[%s3230_s27 + $0x1e8] sm:$0xf] %v449_v58 }
  0x6f   : > { %452 = vst [vmem:[%s3230_s27 + $0x1ec] sm:$0xf] %v451_v59  ;;  %454 = vst [vmem:[%s3230_s27 + $0x1f0] sm:$0xf] %v453_v60  ;;  %v455_v61 = vld [vmem:[%s3223_s26 + $0x3e8] sm:$0xf] }
  0x70   : > { %v457_v62 = vld [vmem:[%s3223_s26 + $0x3f0] sm:$0xf]  ;;  %v459_v63 = vld [vmem:[%s3223_s26 + $0x3f8] sm:$0xf]  ;;  %456 = vst [vmem:[%s3230_s27 + $0x1f4] sm:$0xf] %v455_v61 }
  0x71   : > { %458 = vst [vmem:[%s3230_s27 + $0x1f8] sm:$0xf] %v457_v62  ;;  %460 = vst [vmem:[%s3230_s27 + $0x1fc] sm:$0xf] %v459_v63  ;;  %v461_v0 = vld [vmem:[%s3223_s26 + $0x400] sm:$0xf] }
  0x72   : > { %v463_v1 = vld [vmem:[%s3223_s26 + $0x408] sm:$0xf]  ;;  %v465_v2 = vld [vmem:[%s3223_s26 + $0x410] sm:$0xf]  ;;  %462 = vst [vmem:[%s3230_s27 + $0x200] sm:$0xf] %v461_v0 }
  0x73   : > { %464 = vst [vmem:[%s3230_s27 + $0x204] sm:$0xf] %v463_v1  ;;  %466 = vst [vmem:[%s3230_s27 + $0x208] sm:$0xf] %v465_v2  ;;  %v467_v3 = vld [vmem:[%s3223_s26 + $0x418] sm:$0xf] }
  0x74   : > { %v469_v4 = vld [vmem:[%s3223_s26 + $0x420] sm:$0xf]  ;;  %v471_v5 = vld [vmem:[%s3223_s26 + $0x428] sm:$0xf]  ;;  %468 = vst [vmem:[%s3230_s27 + $0x20c] sm:$0xf] %v467_v3 }
  0x75   : > { %470 = vst [vmem:[%s3230_s27 + $0x210] sm:$0xf] %v469_v4  ;;  %472 = vst [vmem:[%s3230_s27 + $0x214] sm:$0xf] %v471_v5  ;;  %v473_v6 = vld [vmem:[%s3223_s26 + $0x430] sm:$0xf] }
  0x76   : > { %v475_v7 = vld [vmem:[%s3223_s26 + $0x438] sm:$0xf]  ;;  %v477_v8 = vld [vmem:[%s3223_s26 + $0x440] sm:$0xf]  ;;  %474 = vst [vmem:[%s3230_s27 + $0x218] sm:$0xf] %v473_v6 }
  0x77   : > { %476 = vst [vmem:[%s3230_s27 + $0x21c] sm:$0xf] %v475_v7  ;;  %478 = vst [vmem:[%s3230_s27 + $0x220] sm:$0xf] %v477_v8  ;;  %v479_v9 = vld [vmem:[%s3223_s26 + $0x448] sm:$0xf] }
  0x78   : > { %v481_v10 = vld [vmem:[%s3223_s26 + $0x450] sm:$0xf]  ;;  %v483_v11 = vld [vmem:[%s3223_s26 + $0x458] sm:$0xf]  ;;  %480 = vst [vmem:[%s3230_s27 + $0x224] sm:$0xf] %v479_v9 }
  0x79   : > { %482 = vst [vmem:[%s3230_s27 + $0x228] sm:$0xf] %v481_v10  ;;  %484 = vst [vmem:[%s3230_s27 + $0x22c] sm:$0xf] %v483_v11  ;;  %v485_v12 = vld [vmem:[%s3223_s26 + $0x460] sm:$0xf] }
  0x7a   : > { %v487_v13 = vld [vmem:[%s3223_s26 + $0x468] sm:$0xf]  ;;  %v489_v14 = vld [vmem:[%s3223_s26 + $0x470] sm:$0xf]  ;;  %486 = vst [vmem:[%s3230_s27 + $0x230] sm:$0xf] %v485_v12 }
  0x7b   : > { %488 = vst [vmem:[%s3230_s27 + $0x234] sm:$0xf] %v487_v13  ;;  %490 = vst [vmem:[%s3230_s27 + $0x238] sm:$0xf] %v489_v14  ;;  %v491_v15 = vld [vmem:[%s3223_s26 + $0x478] sm:$0xf] }
  0x7c   : > { %492 = vst [vmem:[%s3230_s27 + $0x23c] sm:$0xf] %v491_v15 }
  0x7d PF: > { %p2337_p11 = scmp.ge.s32.totalorder %s3109_s23, 1  ;;  %p814_p12 = scmp.lt.s32.totalorder %s3109_s23, 5 }
  0x7f   : > { %p815_p13 = pnand %p2337_p11, %p814_p12 }
  0x80   : > { %s821_s28 = sand.u32 (!%p815_p13), 1, %s3085_s17   ;;  %p856_p0 = scmp.lt.s32.totalorder (!%p815_p13), %s3093_s19, 1  ;;  %vm925_vm0 = vsmask.f32 (!%p815_p13), 7424  ;;  %vm1165_vm1 = vcmask (!%p815_p13), 1046528   ;;  %vm2138_vm2 = vcmask (!%p815_p13), 1040384  }
  0x81   : > { %818 = sbr.rel (%p815_p13) target bundleno = 542 (0x21e), region = 73  ;;  %s853_s12 = sand.u32 (!%p815_p13), 1, %s3077_s15   ;;  %vm2149_vm3 = vcmask (!%p815_p13), 1042432  }
  0x82   : > { %s2875_s29 = smul.u32 (!%p815_p13), 576, %s821_s28  ;;  %p861_p1 = scmp.lt.s32.totalorder (!%p815_p13), %s3097_s20, 1 }
  0x83   : > { %s2876_s13 = smul.u32 (!%p815_p13), 24, %s853_s12 }
  0x84   : > { %s3518_s30 = scalar_lea.vmem (!%p815_p13), [#allocation2], %s2875_s29 }
  0x85   : > { %v2951_v16 = vld [vmem:[%s3518_s30 + $0x40] sm:$0xff] (!%p815_p13)   ;;  %v2953_v18 = vld [vmem:[%s3518_s30 + $0x48] sm:$0xff] (!%p815_p13)   ;;  %v2955_v20 = vld [vmem:[%s3518_s30 + $0x50] sm:$0xff] (!%p815_p13)   ;;  %s3697_s14 = scalar_lea.vmem (!%p815_p13), [#allocation3], %s2876_s13 }
  0x86   : > { %v2952_v17 = vld [vmem:[%s3518_s30 + $0x100] sm:$0xff] (!%p815_p13)   ;;  %2662 = vmatprep.subr.bf16.mxu1 (!%p815_p13), %v2951_v16  ;;  %v2954_v19 = vld [vmem:[%s3518_s30 + $0x108] sm:$0xff] (!%p815_p13)   ;;  %v2956_v21 = vld [vmem:[%s3518_s30 + $0x110] sm:$0xff] (!%p815_p13)  }
  0x87   : > { %2742 = vmatprep.subr.bf16.mxu0 (!%p815_p13), %v2952_v17  ;;  %2663 = vmatpush3.bf16.msra.mxu1 (!%p815_p13), %v2951_v16  ;;  %v2957_v22 = vld [vmem:[%s3518_s30 + $0x58] sm:$0xff] (!%p815_p13)   ;;  %v2959_v24 = vld [vmem:[%s3518_s30 + $0x60] sm:$0xff] (!%p815_p13)   ;;  %v2961_v26 = vld [vmem:[%s3518_s30 + $0x68] sm:$0xff] (!%p815_p13)  }
  0x88   : > { %2743 = vmatpush3.bf16.msra.mxu0 %v2952_v17  ;;  %2664 = vmatprep.subr.bf16.mxu1 %v2953_v18  ;;  %s857_s17 = scalar_select %p856_p0, %s3093_s19, 1  ;;  %v2958_v23 = vld [vmem:[%s3518_s30 + $0x118] sm:$0xff]   ;;  %v2960_v25 = vld [vmem:[%s3518_s30 + $0x120] sm:$0xff]   ;;  %v2962_v27 = vld [vmem:[%s3518_s30 + $0x128] sm:$0xff]  }
  0x89   : > { %2744 = vmatprep.subr.bf16.mxu0 %v2954_v19  ;;  %v2963_v34 = vld [vmem:[%s3518_s30 + $0x70] sm:$0xff]   ;;  %v2965_v50 = vld [vmem:[%s3518_s30 + $0x78] sm:$0xff]   ;;  %v2969_v3 = vld [vmem:[%s3518_s30] sm:$0xff]   ;;  %s862_s26 = scalar_select %p861_p1, %s3097_s20, 1 }
  0x8a   : > { %s2563_s5 = sshll.u32 %s857_s17, 5  ;;  %v2964_v43 = vld [vmem:[%s3518_s30 + $0x130] sm:$0xff]   ;;  %v2966_v60 = vld [vmem:[%s3518_s30 + $0x138] sm:$0xff]   ;;  %v2972_v6 = vld [vmem:[%s3518_s30 + $0x140] sm:$0xff]  }
  0x8b   : > { %2665 = vmatpush3.bf16.msra.mxu1 %v2953_v18  ;;  %s3535_s11 = scalar_lea.vmem %s3752_s0, %s2563_s5  ;;  %v2975_v9 = vld [vmem:[%s3518_s30 + $0x8] sm:$0xff]   ;;  %v2977_v11 = vld [vmem:[%s3518_s30 + $0x10] sm:$0xff]   ;;  %v2979_v14 = vld [vmem:[%s3518_s30 + $0x18] sm:$0xff]   ;;  %s863_s28 = scalar_lea.vmem %s3754_s2, %s862_s26 }
  0x8c   : > { %2745 = vmatpush3.bf16.msra.mxu0 %v2954_v19  ;;  %2666 = vmatprep.subr.bf16.mxu1 %v2955_v20  ;;  %v874_v28 = vld [vmem:[%s3535_s11 + $0x4] sm:$0xf]  ;;  %v3541_v29 = vld [vmem:[%s3535_s11 + $0x8] sm:$0xf]  ;;  %v3544_v30 = vld [vmem:[%s3535_s11 + $0xc] sm:$0xf]  ;;  %s866_s17 = scalar_lea.vmem %s3755_s3, %s862_s26 }
  0x8d   : > { %2746 = vmatprep.subr.bf16.mxu0 %v2956_v21  ;;  %v3547_v31 = vld [vmem:[%s3535_s11 + $0x10] sm:$0xf]  ;;  %v3550_v32 = vcombine.low %v874_v28, %v3541_v29  ;;  %v2416_v33 = vcombine.low %v3541_v29, %v3544_v30  ;;  %v1399_v36 = vld [vmem:[%s3535_s11 + $0x8] sm:$0xf]  ;;  %v3561_v37 = vld [vmem:[%s3535_s11 + $0xc] sm:$0xf] }
  0x8e   : > { %v3557_v35 = vcombine.low %v3544_v30, %v3547_v31  ;;  %v3566_v40 = vld [vmem:[%s3535_s11 + $0x10] sm:$0xf]  ;;  %v3569_v41 = vld [vmem:[%s3535_s11 + $0x14] sm:$0xf]  ;;  %v2442_v42 = vcombine.low %v1399_v36, %v3561_v37  ;;  %v2976_v10 = vld [vmem:[%s3518_s30 + $0x148] sm:$0xff]   ;;  %s2877_s5 = smul.u32 (%p3205_p9), 12, %s3093_s19 }
  0x8f   : > { %2667 = vmatpush3.bf16.msra.mxu1 %v2955_v20  ;;  %v927_v38 = vshrl.u32 %v3550_v32, 16  ;;  %v929_v39 = vshll.u32 %v3550_v32, 16  ;;  %v3576_v45 = vcombine.low %v3566_v40, %v3569_v41  ;;  %v3582_v53 = vld [vmem:[%s3535_s11 + $0x14] ss:$0 sps:$4 sm:$0x11]   ;;  %v2980_v17 = vld [vmem:[%s3518_s30 + $0x158] sm:$0xff]  }
  0x90   : > { %2747 = vmatpush3.bf16.msra.mxu0 %v2956_v21  ;;  %2668 = vmatprep.subr.bf16.mxu1 %v2957_v22  ;;  %v934_v44 = vshll.u32 %v3557_v35, 16  ;;  %v1435_v47 = vshrl.u32 %v2442_v42, 16  ;;  %v1437_v48 = vshll.u32 %v2442_v42, 16  ;;  %v938_v49 = vshrl.u32 %v3557_v35, 16  ;;  %v2978_v12 = vld [vmem:[%s3518_s30 + $0x150] sm:$0xff]   ;;  %v2981_v19 = vld [vmem:[%s3518_s30 + $0x20] sm:$0xff]   ;;  %s2170_s6 = sadd.s32 (%p3205_p9), %s3097_s20, %s2877_s5 }
  0x91   : > { %2748 = vmatprep.subr.bf16.mxu0 %v2958_v23  ;;  %v931_v46 = vrot.slane %v929_v39, 1  ;;  %v1442_v52 = vshll.u32 %v3576_v45, 16  ;;  %v1446_v54 = vshrl.u32 %v3576_v45, 16  ;;  %v3586_v57 = vld [vmem:[%s3535_s11 + $0x18] ss:$0 sps:$4 sm:$0x11]  }
  0x92   : > { %v936_v51 = vrot.slane %v934_v44, 1  ;;  %v1439_v56 = vrot.slane %v1437_v48, 1  ;;  %v942_v59 = vshll.u32 %v3582_v53, 16  ;;  %v1450_v63 = vshll.u32 %v3586_v57, 16  ;;  %v1557_v13 = vld [vmem:[%s3535_s11 + $0x8] sm:$0xe] }
  0x93   : > { %2669 = vmatpush3.bf16.msra.mxu1 %v2957_v22  ;;  %v932_v55 = vor.u32 %v931_v46, %v927_v38  ;;  %v1444_v58 = vrot.slane %v1442_v52, 1  ;;  %v2469_v15 = vcombine.low %v1557_v13, %v3561_v37  ;;  %v1579_v16 = vrot.slane %v3576_v45, 1  ;;  %v2982_v21 = vld [vmem:[%s3518_s30 + $0x160] sm:$0xff]   ;;  %v2983_v22 = vld [vmem:[%s3518_s30 + $0x28] sm:$0xff]   ;;  %v2988_v28 = vld [vmem:[%s3518_s30 + $0x178] sm:$0xff]   ;;  %s2560_s10 = sshll.u32 (%p3205_p9), %s2170_s6, 2 }
  0x94   : > { %2749 = vmatpush3.bf16.msra.mxu0 %v2958_v23  ;;  %2670 = vmatprep.subr.bf16.mxu1 %v2959_v24  ;;  %v1440_v62 = vor.u32 %v1439_v56, %v1435_v47  ;;  %v940_v1 = vor.u32 %v938_v49, %v936_v51  ;;  %v944_v2 = vrot.slane %v942_v59, 1  ;;  %v1452_v5 = vrot.slane %v1450_v63, 1  ;;  %v2984_v23 = vld [vmem:[%s3518_s30 + $0x168] sm:$0xff]   ;;  %v2991_v38 = vld [vmem:[%s3518_s30 + $0x180] sm:$0xff]   ;;  %v2994_v48 = vld [vmem:[%s3518_s30 + $0x90] sm:$0xff]   ;;  %s2172_s12 = scalar_lea.vmem (%p3205_p9), %s3756_s4, %s2560_s10 }
  0x95   : > { %2750 = vmatprep.subr.bf16.mxu0 %v2960_v25  ;;  %v937_v61 = vsel %vm925_vm0, %v932_v55, %v936_v51  ;;  %v1448_v4 = vor.u32 %v1446_v54, %v1444_v58  ;;  %v1578_v18 = vrot.slane %v2469_v15, 1  ;;  %v1581_v36 = vrot.slane %v3586_v57, 1  ;;  %v2992_v44 = vld [vmem:[%s3518_s30 + $0x88] sm:$0xff]   ;;  %v2995_v49 = vld [vmem:[%s3518_s30 + $0x190] sm:$0xff]   ;;  %v2999_v51 = vld [vmem:[%s3518_s30 + $0x1a0] sm:$0xff]  }
  0x96   : > { %2678 = vmatprep.mubr.bf16.mxu1 %v937_v61  ;;  %v1445_v0 = vsel %vm925_vm0, %v1440_v62, %v1444_v58  ;;  %v945_v7 = vsel %vm925_vm0, %v940_v1, %v944_v2  ;;  %v1167_v42 = vrot.slane %v3557_v35, 1  ;;  %v2993_v45 = vld [vmem:[%s3518_s30 + $0x188] sm:$0xff]   ;;  %v2494_v47 = vcombine.low %v3561_v37, %v3566_v40  ;;  %v2997_v37 = vld [vmem:[%s3518_s30 + $0x198] sm:$0xff]   ;;  %v2998_v40 = vld [vmem:[%s3518_s30 + $0xa0] sm:$0xff]  }
  0x97   : > { %2671 = vmatpush3.bf16.msra.mxu1 %v2959_v24  ;;  %2758 = vmatprep.mubr.bf16.mxu0 %v1445_v0  ;;  %v1453_v8 = vsel %vm925_vm0, %v1448_v4, %v1452_v5  ;;  %v1580_v20 = vsel %vm1165_vm1, %v1578_v18, %v1579_v16  ;;  %v2985_v24 = vld [vmem:[%s3518_s30 + $0x30] sm:$0xff]   ;;  %v3000_v52 = vld [vmem:[%s3518_s30 + $0xa8] sm:$0xff]   ;;  %v3004_v62 = vld [vmem:[%s3518_s30 + $0xb8] sm:$0xff]   ;;  %v1169_v0 = vrot.slane %v3582_v53, 1 }
  0x98   : > { %2751 = vmatpush3.bf16.msra.mxu0 %v2960_v25  ;;  %2672 = vmatprep.subr.bf16.mxu1 %v2961_v26  ;;  %v2986_v25 = vld [vmem:[%s3518_s30 + $0x170] sm:$0xff]   ;;  %v1811_v54 = vld [vmem:[%s3535_s11 + $0xc] sm:$0xf]  ;;  %v3005_v63 = vld [vmem:[%s3518_s30 + $0x1b8] sm:$0xff]  }
  0x99   : > { %2752 = vmatprep.subr.bf16.mxu0 %v2962_v27  ;;  %v3640_v55 = vld [vmem:[%s3535_s11 + $0x10] sm:$0xf]  ;;  %v3001_v56 = vld [vmem:[%s3518_s30 + $0x1a8] sm:$0xff]   ;;  %v3007_v4 = vld [vmem:[%s3518_s30 + $0xc0] sm:$0xff]  }
  0x9a   : > { %v2520_v57 = vcombine.low %v1811_v54, %v3640_v55  ;;  %v3002_v58 = vld [vmem:[%s3518_s30 + $0xb0] sm:$0xff]   ;;  %v1686_v5 = vld [vmem:[%s3535_s11 + $0x18] sm:$0xf]  ;;  %v3017_v15 = vld [vmem:[%s3518_s30 + $0xe0] sm:$0xff]  }
  0x9b   : > { %2673 = vmatpush3.bf16.msra.mxu1 %v2961_v26  ;;  %v1144_v26 = vld [vmem:[%s3535_s11 + $0x4] sm:$0xe]  ;;  %v3003_v59 = vld [vmem:[%s3518_s30 + $0x1b0] sm:$0xff]   ;;  %v2495_v53 = vcombine.low %v3569_v41, %v1686_v5  ;;  %v3015_v13 = vld [vmem:[%s3518_s30 + $0xd8] sm:$0xff]  }
  0x9c   : > { %2753 = vmatpush3.bf16.msra.mxu0 %v2962_v27  ;;  %2674 = vmatprep.subr.bf16.mxu1 %v2963_v34  ;;  %v2987_v27 = vld [vmem:[%s3518_s30 + $0x38] sm:$0xff]   ;;  %v1849_v61 = vshll.u32 %v2520_v57, 16  ;;  %v1847_v1 = vshrl.u32 %v2520_v57, 16  ;;  %v3014_v41 = vld [vmem:[%s3518_s30 + $0x1d0] sm:$0xff]   ;;  %v3019_v30 = vld [vmem:[%s3518_s30 + $0xe8] sm:$0xff]  }
  0x9d   : > { %2754 = vmatprep.subr.bf16.mxu0 %v2964_v43  ;;  %v3022_v18 = vld [vmem:[%s3518_s30 + $0x1f0] sm:$0xff]   ;;  %v2556_v54 = vld [vmem:[%s863_s28] ss:$0 sm:$0xff] }
  0x9e   : > { %v1851_v2 = vrot.slane %v1849_v61, 1 }
  0x9f   : > { %2675 = vmatpush3.bf16.msra.mxu1 %v2963_v34  ;;  %v2989_v34 = vld [vmem:[%s3518_s30 + $0x80] sm:$0xff]  }
  0xa0   : > { %2755 = vmatpush3.bf16.msra.mxu0 %v2964_v43  ;;  %2676 = vmatprep.subr.bf16.mxu1 %v2965_v50  ;;  %v1582_v43 = vsel %vm1165_vm1, %v1579_v16, %v1581_v36  ;;  %v3021_v16 = vld [vmem:[%s3518_s30 + $0xf0] sm:$0xff]  }
  0xa1   : > { %2756 = vmatprep.subr.bf16.mxu0 %v2966_v60 }
  0xa3   : > { %2677 = vmatpush3.bf16.msra.mxu1 %v2965_v50  ;;  %v2996_v50 = vld [vmem:[%s3518_s30 + $0x98] sm:$0xff]  }
  0xa4   : > { %2757 = vmatpush3.bf16.msra.mxu0 %v2966_v60  ;;  %2682 = vmatprep.subr.bf16.mxu1 %v2969_v3  ;;  %v3647_v60 = vld [vmem:[%s3535_s11 + $0x14] sm:$0xff]  }
  0xa5   : > { %2762 = vmatprep.subr.bf16.mxu0 %v2972_v6 }
  0xa6   : > { %2679 = vmatmul.mubr.bf16.vlgmr.msra.gmra.mrb[0].mxu1 %v945_v7  ;;  %v1170_v7 = vsel %vm1165_vm1, %v1167_v42, %v1169_v0 }
  0xa7   : > { %2683 = vmatpush3.bf16.msra.mxu1 %v2969_v3  ;;  %2759 = vmatmul.mubr.bf16.vlgmr.msra.gmra.mrb[0].mxu0 %v1453_v8  ;;  %v1854_v3 = vshll.u32 %v3647_v60, 16  ;;  %v1852_v8 = vor.u32 %v1851_v2, %v1847_v1 }
  0xa8   : > { %2763 = vmatpush3.bf16.msra.mxu0 %v2972_v6  ;;  %2684 = vmatprep.subr.bf16.mxu1 %v2975_v9  ;;  %v3009_v6 = vld [vmem:[%s3518_s30 + $0x1c0] sm:$0xff]  }
  0xa9   : > { %2764 = vmatprep.subr.bf16.mxu0 %v2976_v10  ;;  %2698 = vmatprep.mubr.bf16.mxu1 %v3550_v32  ;;  %v2391_v32 = vcombine.low %v1144_v26, %v3541_v29  ;;  %v3018_v29 = vld [vmem:[%s3518_s30 + $0x1e0] sm:$0xff]  }
  0xaa   : > { %2778 = vmatprep.mubr.bf16.mxu0 %v1580_v20  ;;  %v3023_v20 = vld [vmem:[%s3518_s30 + $0xf8] sm:$0xff]  }
  0xab   : > { %2685 = vmatpush3.bf16.msra.mxu1 %v2975_v9  ;;  %v1166_v39 = vrot.slane %v2391_v32, 1  ;;  %v1856_v9 = vrot.slane %v1854_v3, 1 }
  0xac   : > { %2765 = vmatpush3.bf16.msra.mxu0 %v2976_v10  ;;  %2686 = vmatprep.subr.bf16.mxu1 %v2977_v11  ;;  %v3011_v10 = vld [vmem:[%s3518_s30 + $0xc8] sm:$0xff]  }
  0xad   : > { %2766 = vmatprep.subr.bf16.mxu0 %v2978_v12  ;;  %v1168_v46 = vsel %vm1165_vm1, %v1166_v39, %v1167_v42  ;;  %v3031_v39 = vld [vmem:[%s3518_s30 + $0x208] sm:$0xff]  }
  0xaf   : > { %2687 = vmatpush3.bf16.msra.mxu1 %v2977_v11  ;;  %v3012_v11 = vld [vmem:[%s3518_s30 + $0x1c8] sm:$0xff]  }
  0xb0   : > { %2767 = vmatpush3.bf16.msra.mxu0 %v2978_v12  ;;  %2688 = vmatprep.subr.bf16.mxu1 %v2979_v14  ;;  %v3013_v12 = vld [vmem:[%s3518_s30 + $0xd0] sm:$0xff]  }
  0xb1   : > { %2768 = vmatprep.subr.bf16.mxu0 %v2980_v17 }
  0xb3   : > { %2689 = vmatpush3.bf16.msra.mxu1 %v2979_v14  ;;  %v3016_v14 = vld [vmem:[%s3518_s30 + $0x1d8] sm:$0xff]  }
  0xb4   : > { %2769 = vmatpush3.bf16.msra.mxu0 %v2980_v17  ;;  %2690 = vmatprep.subr.bf16.mxu1 %v2981_v19  ;;  %v3030_v17 = vld [vmem:[%s3535_s11 + $0x1c] ss:$0 sps:$4 sm:$0x11]  }
  0xb5   : > { %2770 = vmatprep.subr.bf16.mxu0 %v2982_v21 }
  0xb7   : > { %2691 = vmatpush3.bf16.msra.mxu1 %v2981_v19  ;;  %v1969_v19 = vld [vmem:[%s3535_s11 + $0xc] sm:$0xe] }
  0xb8   : > { %2771 = vmatpush3.bf16.msra.mxu0 %v2982_v21  ;;  %2692 = vmatprep.subr.bf16.mxu1 %v2983_v22  ;;  %v1858_v21 = vshrl.u32 %v3647_v60, 16 }
  0xb9   : > { %2772 = vmatprep.subr.bf16.mxu0 %v2984_v23 }
  0xba   : > { %v1860_v26 = vor.u32 %v1858_v21, %v1856_v9 }
  0xbb   : > { %2693 = vmatpush3.bf16.msra.mxu1 %v2983_v22  ;;  %v1862_v22 = vshll.u32 %v3030_v17, 16 }
  0xbc   : > { %2773 = vmatpush3.bf16.msra.mxu0 %v2984_v23  ;;  %2694 = vmatprep.subr.bf16.mxu1 %v2985_v24  ;;  %v3024_v23 = vld [vmem:[%s3518_s30 + $0x1f8] sm:$0xff]  }
  0xbd   : > { %2774 = vmatprep.subr.bf16.mxu0 %v2986_v25 }
  0xbf   : > { %2695 = vmatpush3.bf16.msra.mxu1 %v2985_v24  ;;  %v2547_v24 = vcombine.low %v1969_v19, %v3640_v55 }
  0xc0   : > { %2775 = vmatpush3.bf16.msra.mxu0 %v2986_v25  ;;  %2696 = vmatprep.subr.bf16.mxu1 %v2987_v27  ;;  %v1274_v25 = vld [vmem:[%s3535_s11 + $0x14] sm:$0xf] }
  0xc1   : > { %2776 = vmatprep.subr.bf16.mxu0 %v2988_v28  ;;  %v1990_v32 = vrot.slane %v2547_v24, 1  ;;  %v2417_v36 = vcombine.low %v3547_v31, %v1274_v25  ;;  %v3033_v31 = vld [vmem:[%s3518_s30 + $0x218] sm:$0xff]  }
  0xc3   : > { %2697 = vmatpush3.bf16.msra.mxu1 %v2987_v27  ;;  %v1864_v27 = vrot.slane %v1862_v22, 1 }
  0xc4   : > { %2777 = vmatpush3.bf16.msra.mxu0 %v2988_v28  ;;  %2702 = vmatprep.subr.bf16.mxu1 %v2989_v34  ;;  %v3029_v28 = vld [vmem:[%s3518_s30 + $0x200] sm:$0xff]  }
  0xc5   : > { %2782 = vmatprep.subr.bf16.mxu0 %v2991_v38 }
  0xc6   : > { %2699 = vmatmul.mubr.bf16.vlgmr.msra.gmra.mrb[0].mxu1 %v3557_v35  ;;  %v1857_v35 = vsel %vm925_vm0, %v1852_v8, %v1856_v9 }
  0xc7   : > { %2703 = vmatpush3.bf16.msra.mxu1 %v2989_v34  ;;  %2779 = vmatmul.mubr.bf16.vlgmr.msra.gmra.mrb[0].mxu0 %v1582_v43  ;;  %v1991_v34 = vrot.slane %v3647_v60, 1  ;;  %v3032_v43 = vld [vmem:[%s3518_s30 + $0x210] sm:$0xff]  }
  0xc8   : > { %2783 = vmatpush3.bf16.msra.mxu0 %v2991_v38  ;;  %2704 = vmatprep.subr.bf16.mxu1 %v2992_v44  ;;  %v1865_v38 = vsel %vm925_vm0, %v1860_v26, %v1864_v27 }
  0xc9   : > { %2784 = vmatprep.subr.bf16.mxu0 %v2993_v45  ;;  %2718 = vmatprep.mubr.bf16.mxu1 %v1168_v46  ;;  %v1992_v42 = vsel %vm1165_vm1, %v1990_v32, %v1991_v34  ;;  %v3036_v46 = vld [vmem:[%s3518_s30 + $0x230] sm:$0xff]  }
  0xca   : > { %2798 = vmatprep.mubr.bf16.mxu0 %v2494_v47  ;;  %v3037_v47 = vld [vmem:[%s3518_s30 + $0x238] sm:$0xff]  }
  0xcb   : > { %2705 = vmatpush3.bf16.msra.mxu1 %v2992_v44  ;;  %v3034_v44 = vld [vmem:[%s3518_s30 + $0x220] sm:$0xff]  }
  0xcc   : > { %2785 = vmatpush3.bf16.msra.mxu0 %v2993_v45  ;;  %2706 = vmatprep.subr.bf16.mxu1 %v2994_v48  ;;  %v3035_v45 = vld [vmem:[%s3518_s30 + $0x228] sm:$0xff]  }
  0xcd   : > { %2786 = vmatprep.subr.bf16.mxu0 %v2995_v49 }
  0xcf   : > { %2707 = vmatpush3.bf16.msra.mxu1 %v2994_v48  ;;  %v1993_v48 = vrot.slane %v3030_v17, 1 }
  0xd0   : > { %2787 = vmatpush3.bf16.msra.mxu0 %v2995_v49  ;;  %2708 = vmatprep.subr.bf16.mxu1 %v2996_v50 }
  0xd1   : > { %2788 = vmatprep.subr.bf16.mxu0 %v2997_v37  ;;  %v1994_v49 = vsel %vm1165_vm1, %v1991_v34, %v1993_v48 }
  0xd3   : > { %2709 = vmatpush3.bf16.msra.mxu1 %v2996_v50  ;;  %v3111_v50 = vmov 0  }
  0xd4   : > { %2789 = vmatpush3.bf16.msra.mxu0 %v2997_v37  ;;  %2710 = vmatprep.subr.bf16.mxu1 %v2998_v40  ;;  %870 = vst [vmem:[%s3697_s14] sm:$0xf] %v3111_v50  ;;  %871 = vst [vmem:[%s3697_s14 + $0x4] sm:$0xf] %v3111_v50 }
  0xd5   : > { %2790 = vmatprep.subr.bf16.mxu0 %v2999_v51  ;;  %872 = vst [vmem:[%s3697_s14 + $0x10] sm:$0xf] %v3111_v50  ;;  %873 = vst [vmem:[%s3697_s14 + $0x14] sm:$0xf] %v3111_v50 }
  0xd7   : > { %2711 = vmatpush3.bf16.msra.mxu1 %v2998_v40 }
  0xd8   : > { %2791 = vmatpush3.bf16.msra.mxu0 %v2999_v51  ;;  %2712 = vmatprep.subr.bf16.mxu1 %v3000_v52 }
  0xd9   : > { %2792 = vmatprep.subr.bf16.mxu0 %v3001_v56 }
  0xdb   : > { %2713 = vmatpush3.bf16.msra.mxu1 %v3000_v52  ;;  %v2190_v24 = vld [vmem:[%s3697_s14 + $0x4] sm:$0xf] (%p3205_p9) }
  0xdc   : > { %2793 = vmatpush3.bf16.msra.mxu0 %v3001_v56  ;;  %2714 = vmatprep.subr.bf16.mxu1 %v3002_v58  ;;  %v2196_v27 = vld [vmem:[%s3697_s14 + $0x10] sm:$0xf] (%p3205_p9)  ;;  %2191 = vst [vmem:[%s2172_s12 + $0x8] sm:$0xf] (%p3205_p9), %v2190_v24 }
  0xdd   : > { %2794 = vmatprep.subr.bf16.mxu0 %v3003_v59  ;;  %2197 = vst [vmem:[%s2172_s12 + $0x20] sm:$0xf] (%p3205_p9), %v2196_v27 }
  0xdf   : > { %2715 = vmatpush3.bf16.msra.mxu1 %v3002_v58  ;;  %v2557_v58 = vld [vmem:[%s866_s17] ss:$0 sm:$0xff] }
  0xe0   : > { %2795 = vmatpush3.bf16.msra.mxu0 %v3003_v59  ;;  %2716 = vmatprep.subr.bf16.mxu1 %v3004_v62 }
  0xe1   : > { %2796 = vmatprep.subr.bf16.mxu0 %v3005_v63 }
  0xe3   : > { %2717 = vmatpush3.bf16.msra.mxu1 %v3004_v62 }
  0xe4   : > { %2797 = vmatpush3.bf16.msra.mxu0 %v3005_v63  ;;  %2722 = vmatprep.subr.bf16.mxu1 %v3007_v4 }
  0xe5   : > { %2802 = vmatprep.subr.bf16.mxu0 %v3009_v6 }
  0xe6   : > { %2719 = vmatmul.mubr.bf16.vlgmr.msra.gmra.mrb[0].mxu1 %v1170_v7 }
  0xe7   : > { %2723 = vmatpush3.bf16.msra.mxu1 %v3007_v4  ;;  %2799 = vmatmul.mubr.bf16.vlgmr.msra.gmra.mrb[0].mxu0 %v2495_v53 }
  0xe8   : > { %2803 = vmatpush3.bf16.msra.mxu0 %v3009_v6  ;;  %2724 = vmatprep.subr.bf16.mxu1 %v3011_v10 }
  0xe9   : > { %2804 = vmatprep.subr.bf16.mxu0 %v3012_v11  ;;  %2738 = vmatprep.mubr.bf16.mxu1 %v2416_v33  ;;  %v3020_v33 = vld [vmem:[%s3518_s30 + $0x1e8] sm:$0xff]  }
  0xea   : > { %2818 = vmatprep.mubr.bf16.mxu0 %v1857_v35 }
  0xeb   : > { %2725 = vmatpush3.bf16.msra.mxu1 %v3011_v10 }
  0xec   : > { %2805 = vmatpush3.bf16.msra.mxu0 %v3012_v11  ;;  %2726 = vmatprep.subr.bf16.mxu1 %v3013_v12 }
  0xed   : > { %2806 = vmatprep.subr.bf16.mxu0 %v3014_v41 }
  0xef   : > { %2727 = vmatpush3.bf16.msra.mxu1 %v3013_v12 }
  0xf0   : > { %2807 = vmatpush3.bf16.msra.mxu0 %v3014_v41  ;;  %2728 = vmatprep.subr.bf16.mxu1 %v3015_v13 }
  0xf1   : > { %2808 = vmatprep.subr.bf16.mxu0 %v3016_v14 }
  0xf3   : > { %2729 = vmatpush3.bf16.msra.mxu1 %v3015_v13 }
  0xf4   : > { %2809 = vmatpush3.bf16.msra.mxu0 %v3016_v14  ;;  %2730 = vmatprep.subr.bf16.mxu1 %v3017_v15 }
  0xf5   : > { %2810 = vmatprep.subr.bf16.mxu0 %v3018_v29 }
  0xf7   : > { %2731 = vmatpush3.bf16.msra.mxu1 %v3017_v15 }
  0xf8   : > { %2811 = vmatpush3.bf16.msra.mxu0 %v3018_v29  ;;  %2732 = vmatprep.subr.bf16.mxu1 %v3019_v30 }
  0xf9   : > { %2812 = vmatprep.subr.bf16.mxu0 %v3020_v33 }
  0xfb   : > { %2733 = vmatpush3.bf16.msra.mxu1 %v3019_v30 }
  0xfc   : > { %2813 = vmatpush3.bf16.msra.mxu0 %v3020_v33  ;;  %2734 = vmatprep.subr.bf16.mxu1 %v3021_v16 }
  0xfd   : > { %2814 = vmatprep.subr.bf16.mxu0 %v3022_v18 }
  0xff   : > { %2735 = vmatpush3.bf16.msra.mxu1 %v3021_v16 }
 0x100   : > { %2815 = vmatpush3.bf16.msra.mxu0 %v3022_v18  ;;  %2736 = vmatprep.subr.bf16.mxu1 %v3023_v20 }
 0x101   : > { %2816 = vmatprep.subr.bf16.mxu0 %v3024_v23 }
 0x103   : > { %2737 = vmatpush3.bf16.msra.mxu1 %v3023_v20 }
 0x104   : > { %2817 = vmatpush3.bf16.msra.mxu0 %v3024_v23  ;;  %v2188_v23 = vld [vmem:[%s3697_s14] sm:$0xf] (%p3205_p9) }
 0x105   : > { %2822 = vmatprep.subr.bf16.mxu0 %v3029_v28  ;;  %2189 = vst [vmem:[%s2172_s12] sm:$0xf] (%p3205_p9), %v2188_v23 }
 0x106   : > { %2739 = vmatmul.mubr.bf16.vlgmr.msra.gmra.mrb[0].mxu1 %v2417_v36 }
 0x107   : > { %2819 = vmatmul.mubr.bf16.vlgmr.msra.gmra.mrb[0].mxu0 %v1865_v38 }
 0x108   : > { %2823 = vmatpush3.bf16.msra.mxu0 %v3029_v28  ;;  %2838 = vmatprep.mubr.bf16.mxu0 %v1992_v42  ;;  %v2198_v28 = vld [vmem:[%s3697_s14 + $0x14] sm:$0xf] (%p3205_p9) }
 0x109   : > { %2824 = vmatprep.subr.bf16.mxu0 %v3031_v39  ;;  %2199 = vst [vmem:[%s2172_s12 + $0x28] sm:$0xf] (%p3205_p9), %v2198_v28 }
 0x10c   : > { %2825 = vmatpush3.bf16.msra.mxu0 %v3031_v39 }
 0x10d   : > { %2826 = vmatprep.subr.bf16.mxu0 %v3032_v43 }
 0x110   : > { %2827 = vmatpush3.bf16.msra.mxu0 %v3032_v43 }
 0x111   : > { %2828 = vmatprep.subr.bf16.mxu0 %v3033_v31 }
 0x114   : > { %2829 = vmatpush3.bf16.msra.mxu0 %v3033_v31 }
 0x115   : > { %2830 = vmatprep.subr.bf16.mxu0 %v3034_v44 }
 0x118   : > { %2831 = vmatpush3.bf16.msra.mxu0 %v3034_v44 }
 0x119   : > { %2832 = vmatprep.subr.bf16.mxu0 %v3035_v45 }
 0x11c   : > { %2833 = vmatpush3.bf16.msra.mxu0 %v3035_v45 }
 0x11d   : > { %2834 = vmatprep.subr.bf16.mxu0 %v3036_v46 }
 0x120   : > { %2835 = vmatpush3.bf16.msra.mxu0 %v3036_v46 }
 0x121   : > { %2836 = vmatprep.subr.bf16.mxu0 %v3037_v47 }
 0x124   : > { %2837 = vmatpush3.bf16.msra.mxu0 %v3037_v47 }
 0x127   : > { %2839 = vmatmul.mubr.bf16.vlgmr.msra.gmra.mrb[0].mxu0 %v1994_v49 }
 0x1d9   : > { %v2740_v37 = vpop.f32.mrb[0].mxu1 }
 0x1da   : > { %v1380_v40 = vpop.f32.mrb[1].mxu1 }
 0x1db   : > { %v2741_v51 = vpop.f32.mrb[2].mxu1 }
 0x1dc   : > { %v1383_v52 = vpop.f32.mrb[3].mxu1 }
 0x1fa   : > { %v2840_v55 = vpop.f32.mrb[0].mxu0 }
 0x1fb   : > { %v2842_v56 = vadd.f32 %v2840_v55, %v2740_v37  ;;  %v2079_v57 = vpop.f32.mrb[1].mxu0 }
 0x1fc   : > { %v2843_v59 = vadd.f32 %v2079_v57, %v1380_v40  ;;  %v2841_v60 = vpop.f32.mrb[2].mxu0 }
 0x1fd   : > { %v2106_v61 = vmul.f32 %v2842_v56, %v2556_v54  ;;  %v2844_v62 = vadd.f32 %v2841_v60, %v2741_v51  ;;  %v2082_v63 = vpop.f32.mrb[3].mxu0 }
 0x1fe   : > { %v2104_v0 = vmul.f32 %v2843_v59, %v2556_v54  ;;  %v2845_v1 = vadd.f32 %v2082_v63, %v1383_v52 }
 0x1ff   : > { %v2116_v2 = vadd.f32 %v2557_v58, %v2106_v61  ;;  %v2107_v3 = vmul.f32 %v2844_v62, %v2556_v54 }
 0x200   : > { %v2114_v4 = vadd.f32 %v2557_v58, %v2104_v0  ;;  %v2105_v5 = vmul.f32 %v2845_v1, %v2556_v54 }
 0x201   : > { %v2117_v6 = vadd.f32 %v2557_v58, %v2107_v3  ;;  %v2120_v53 = vmax.f32 %v2116_v2, 0.0 }
 0x202   : > { %v2115_v7 = vadd.f32 %v2557_v58, %v2105_v5  ;;  %v2118_v9 = vmax.f32 %v2114_v4, 0.0 }
 0x203   : > { %v2121_v8 = vmax.f32 %v2117_v6, 0.0 }
 0x204   : > { %v2119_v10 = vmax.f32 %v2115_v7, 0.0 }
 0x205   : > { %v2123_v11 = vmax.f32 %v2120_v53, %v2121_v8 }
 0x206   : > { %v2122_v35 = vmax.f32 %v2118_v9, %v2119_v10 }
 0x207   : > { %v2127_v12 = vrot.slane %v2123_v11, 1 }
 0x208   : > { %v2126_v41 = vrot.slane %v2122_v35, 1 }
 0x209   : > { %v2131_v13 = vmax.f32 %v2123_v11, %v2127_v12 }
 0x20a   : > { %v2130_v14 = vmax.f32 %v2122_v35, %v2126_v41 }
 0x20b   : > { %v2135_v15 = vrot.slane %v2131_v13, 1 }
 0x20c   : > { %v2134_v29 = vrot.slane %v2130_v14, 1 }
 0x20d   : > { %v2140_v30 = vsel %vm2138_vm2, %v2131_v13, %v2135_v15 }
 0x20e   : > { %v2144_v33 = vrot.slane %v2140_v30, 7  ;;  %v2139_v16 = vsel %vm2138_vm2, %v2130_v14, %v2134_v29 }
 0x20f   : > { %v2143_v17 = vrot.slane %v2139_v16, 7  ;;  %2168 = sbr.rel (!%p3205_p9) target bundleno = 542 (0x21e), region = 81 }
 0x210   : > { %v2148_v18 = vsel %vm2138_vm2, 0.0, %v2144_v33 }
 0x211   : > { %v2151_v19 = vsel %vm2149_vm3, %v2148_v18, 0.0  ;;  %v2147_v20 = vsel %vm2138_vm2, 0.0, %v2143_v17 }
 0x212   : > { %v2150_v21 = vsel %vm2149_vm3, %v2147_v20, 0.0 }
 0x213   : > { %v2569_v22 = vpack.c.bf16 %v2151_v19, %v2150_v21 }
 0x215   : > { %2571 = vst [vmem:[%s3697_s14 + $0x8] sm:$0xff] %v2569_v22  }
 0x21c   : > { %v2192_v25 = vld [vmem:[%s3697_s14 + $0x8] sm:$0xf]  ;;  %v2194_v26 = vld [vmem:[%s3697_s14 + $0xc] sm:$0xf] }
 0x21d   : > { %2193 = vst [vmem:[%s2172_s12 + $0x10] sm:$0xf] %v2192_v25  ;;  %2195 = vst [vmem:[%s2172_s12 + $0x18] sm:$0xf] %v2194_v26 }
 0x21e PF: > { %s14_s23 = sadd.s32 1, %s3109_s23   ;;  %s3759_s15 = smov %s3081_s16 }
 0x21f   : > { %p11_p2 = scmp.ge.s32.totalorder %s14_s23, 6   ;;  %s3760_s16 = smov %s3213_s9 }
 0x220   : > { %s3761_s17 = smov %s3089_s18  ;;  %s3762_s18 = smov %s3210_s8 }
 0x221   : > { %s3763_s19 = smov %s3101_s21  ;;  %s3764_s20 = smov %s3105_s22 }
 0x222   : > { %s3765_s21 = smov %s3768_s24  ;;  %s3766_s22 = smov %s3772_s25 }
 0x223   :  { %13 = sbr.rel (!%p11_p2) target bundleno = 5 (0x5), region = 170 }

// kernel: fwd.12
= control target key start
LH: loop header
LB: loop body
LE: loop exit
PB: predicated region body
PF: predicated region fallthrough
CT: control target
= control target key end

     0   :  { %s4371_s15 = smov 0   ;;  %s4373_s16 = smov 0   ;;  %s5311_s0 = inlined_call_operand.vmem [shape: bf16[2,48,256], index: 0, kind: input, shape index: {}]   ;;  %s5312_s1 = inlined_call_operand.vmem [shape: bf16[9,256,256], index: 1, kind: input, shape index: {}]   ;;  %s5313_s2 = inlined_call_operand.vmem [shape: f32[1,256], index: 2, kind: input, shape index: {}]   ;;  %s5314_s3 = inlined_call_operand.vmem [shape: f32[1,256], index: 3, kind: input, shape index: {}]   ;;  %s5315_s4 = inlined_call_operand.vmem [shape: bf16[2,48,256], index: 4, kind: output, shape index: {}]  }
   0x1   :  { %s4375_s17 = smov 0   ;;  %s4377_s18 = smov 0  }
   0x2   :  { %s4379_s19 = smov 0   ;;  %s4381_s20 = smov 0  }
   0x3   :  { %s4383_s21 = smov 0   ;;  %s4385_s22 = smov 0  }
   0x4   :  { %s4387_s23 = smov 0  }
   0x5 LB: > { %s23_s24 = sadd.s32 1, %s4335_s21  ;;  %s26_s25 = sadd.s32 1, %s4339_s22  ;;  %s4343_s23 = sphi %s4387_s23, %s14_s23   ;;  %s4339_s22 = sphi %s4385_s22, %s5325_s22   ;;  %s4335_s21 = sphi %s4383_s21, %s5324_s21   ;;  %s4331_s20 = sphi %s4381_s20, %s5323_s20   ;;  %s4327_s19 = sphi %s4379_s19, %s5322_s19   ;;  %s4323_s18 = sphi %s4377_s18, %s5321_s18   ;;  %s4319_s17 = sphi %s4375_s17, %s5320_s17   ;;  %s4315_s16 = sphi %s4373_s16, %s5319_s16   ;;  %s4311_s15 = sphi %s4371_s15, %s5318_s15  }
   0x6   : > { %p24_p0 = scmp.ge.s32.totalorder %s23_s24, 2  ;;  %p66_p1 = scmp.ne.s32.totalorder %s4323_s18, %s4319_s17 }
   0x7   : > { %s3391_s26 = sadd.s32 4294967295, %s4343_s23   ;;  %p67_p2 = scmp.eq.s32.totalorder %s4343_s23, 0 }
   0x8   : > { %s5327_s24 = smov (%p24_p0, %s23_s24), 0  ;;  %s5329_s25 = smov (!%p24_p0, %s26_s25), %s4339_s22 }
   0x9   : > { %p28_p3 = scmp.ge.s32.totalorder %s5329_s25, 2  ;;  %s134_s27 = ssub.s32 %s4335_s21, %s5327_s24 }
   0xa   : > { %p4427_p4 = por %p67_p2, %p66_p1  ;;  %p149_p5 = scmp.ne.s32.totalorder %s4315_s16, %s4311_s15 }
   0xb   : > { %s5331_s25 = smov (%p28_p3, %s5329_s25), 0  ;;  %s59_s29 = sadd.s32 1, %s4323_s18 }
   0xc   : > { %p150_p6 = scmp.eq.s32.totalorder %s3391_s26, 3  ;;  %s56_s30 = ssub.s32 %s4339_s22, %s5331_s25 }
   0xd   : > { %s139_s5 = sadd.s32 1, %s4315_s16  ;;  %p57_p7 = scmp.eq.s32.totalorder %s56_s30, 0 }
   0xe   : > { %s136_s6 = sor.u32 %s134_s27, %s56_s30  ;;  %p4439_p9 = por %p150_p6, %p149_p5 }
   0xf   : > { %p137_p8 = scmp.eq.s32.totalorder %s136_s6, 0  ;;  %p3394_p10 = scmp.ge.s32.totalorder %s4343_s23, 4 }
  0x10   : > { %s4444_s8 = scalar_select %p57_p7, %s4323_s18, %s59_s29  }
  0x11   : > { %s4447_s9 = scalar_select %p137_p8, %s4315_s16, %s139_s5  }
  0x12   : > { %172 = sbr.rel (%p3394_p10) target bundleno = 221 (0xdd), region = 16 }
  0x19   : > { %183 = sbr.rel (!%p4427_p4) target bundleno = 221 (0xdd), region = 24  ;;  %s185_s10 = sand.u32 (%p4427_p4), 1, %s4323_s18  }
  0x1a   : > { %s3395_s11 = sshll.u32 (%p4427_p4), %s4339_s22, 2  ;;  %s4033_s12 = smul.u32 (%p4427_p4), 1152, %s185_s10 }
  0x1b   : > { %s4457_s26 = scalar_lea.vmem (%p4427_p4), %s5312_s1, %s3395_s11 }
  0x1c   : > { %v205_v0 = vld [vmem:[%s4457_s26] sm:$0xf] (%p4427_p4)  ;;  %v207_v1 = vld [vmem:[%s4457_s26 + $0x8] sm:$0xf] (%p4427_p4)  ;;  %v209_v2 = vld [vmem:[%s4457_s26 + $0x10] sm:$0xf] (%p4427_p4) }
  0x1d   : > { %v211_v3 = vld [vmem:[%s4457_s26 + $0x18] sm:$0xf] (%p4427_p4)  ;;  %v213_v4 = vld [vmem:[%s4457_s26 + $0x20] sm:$0xf] (%p4427_p4)  ;;  %s4464_s27 = scalar_lea.vmem (%p4427_p4), [#allocation2], %s4033_s12 }
  0x1e   : > { %206 = vst [vmem:[%s4464_s27] sm:$0xf] (%p4427_p4), %v205_v0  ;;  %208 = vst [vmem:[%s4464_s27 + $0x4] sm:$0xf] (%p4427_p4), %v207_v1  ;;  %v215_v5 = vld [vmem:[%s4457_s26 + $0x28] sm:$0xf] (%p4427_p4) }
  0x1f   : > { %210 = vst [vmem:[%s4464_s27 + $0x8] sm:$0xf] (%p4427_p4), %v209_v2  ;;  %212 = vst [vmem:[%s4464_s27 + $0xc] sm:$0xf] (%p4427_p4), %v211_v3  ;;  %v217_v6 = vld [vmem:[%s4457_s26 + $0x30] sm:$0xf] (%p4427_p4) }
  0x20   : > { %214 = vst [vmem:[%s4464_s27 + $0x10] sm:$0xf] %v213_v4  ;;  %v219_v7 = vld [vmem:[%s4457_s26 + $0x38] sm:$0xf]  ;;  %216 = vst [vmem:[%s4464_s27 + $0x14] sm:$0xf] %v215_v5 }
  0x21   : > { %218 = vst [vmem:[%s4464_s27 + $0x18] sm:$0xf] %v217_v6  ;;  %220 = vst [vmem:[%s4464_s27 + $0x1c] sm:$0xf] %v219_v7  ;;  %v221_v8 = vld [vmem:[%s4457_s26 + $0x40] sm:$0xf] }
  0x22   : > { %v223_v9 = vld [vmem:[%s4457_s26 + $0x48] sm:$0xf]  ;;  %v225_v10 = vld [vmem:[%s4457_s26 + $0x50] sm:$0xf]  ;;  %222 = vst [vmem:[%s4464_s27 + $0x20] sm:$0xf] %v221_v8 }
  0x23   : > { %224 = vst [vmem:[%s4464_s27 + $0x24] sm:$0xf] %v223_v9  ;;  %226 = vst [vmem:[%s4464_s27 + $0x28] sm:$0xf] %v225_v10  ;;  %v227_v11 = vld [vmem:[%s4457_s26 + $0x58] sm:$0xf] }
  0x24   : > { %v229_v12 = vld [vmem:[%s4457_s26 + $0x60] sm:$0xf]  ;;  %v231_v13 = vld [vmem:[%s4457_s26 + $0x68] sm:$0xf]  ;;  %228 = vst [vmem:[%s4464_s27 + $0x2c] sm:$0xf] %v227_v11 }
  0x25   : > { %230 = vst [vmem:[%s4464_s27 + $0x30] sm:$0xf] %v229_v12  ;;  %232 = vst [vmem:[%s4464_s27 + $0x34] sm:$0xf] %v231_v13  ;;  %v233_v14 = vld [vmem:[%s4457_s26 + $0x70] sm:$0xf] }
  0x26   : > { %v235_v15 = vld [vmem:[%s4457_s26 + $0x78] sm:$0xf]  ;;  %v237_v16 = vld [vmem:[%s4457_s26 + $0x80] sm:$0xf]  ;;  %234 = vst [vmem:[%s4464_s27 + $0x38] sm:$0xf] %v233_v14 }
  0x27   : > { %236 = vst [vmem:[%s4464_s27 + $0x3c] sm:$0xf] %v235_v15  ;;  %238 = vst [vmem:[%s4464_s27 + $0x40] sm:$0xf] %v237_v16  ;;  %v239_v17 = vld [vmem:[%s4457_s26 + $0x88] sm:$0xf] }
  0x28   : > { %v241_v18 = vld [vmem:[%s4457_s26 + $0x90] sm:$0xf]  ;;  %v243_v19 = vld [vmem:[%s4457_s26 + $0x98] sm:$0xf]  ;;  %240 = vst [vmem:[%s4464_s27 + $0x44] sm:$0xf] %v239_v17 }
  0x29   : > { %242 = vst [vmem:[%s4464_s27 + $0x48] sm:$0xf] %v241_v18  ;;  %244 = vst [vmem:[%s4464_s27 + $0x4c] sm:$0xf] %v243_v19  ;;  %v245_v20 = vld [vmem:[%s4457_s26 + $0xa0] sm:$0xf] }
  0x2a   : > { %v247_v21 = vld [vmem:[%s4457_s26 + $0xa8] sm:$0xf]  ;;  %v249_v22 = vld [vmem:[%s4457_s26 + $0xb0] sm:$0xf]  ;;  %246 = vst [vmem:[%s4464_s27 + $0x50] sm:$0xf] %v245_v20 }
  0x2b   : > { %248 = vst [vmem:[%s4464_s27 + $0x54] sm:$0xf] %v247_v21  ;;  %250 = vst [vmem:[%s4464_s27 + $0x58] sm:$0xf] %v249_v22  ;;  %v251_v23 = vld [vmem:[%s4457_s26 + $0xb8] sm:$0xf] }
  0x2c   : > { %v253_v24 = vld [vmem:[%s4457_s26 + $0xc0] sm:$0xf]  ;;  %v255_v25 = vld [vmem:[%s4457_s26 + $0xc8] sm:$0xf]  ;;  %252 = vst [vmem:[%s4464_s27 + $0x5c] sm:$0xf] %v251_v23 }
  0x2d   : > { %254 = vst [vmem:[%s4464_s27 + $0x60] sm:$0xf] %v253_v24  ;;  %256 = vst [vmem:[%s4464_s27 + $0x64] sm:$0xf] %v255_v25  ;;  %v257_v26 = vld [vmem:[%s4457_s26 + $0xd0] sm:$0xf] }
  0x2e   : > { %v259_v27 = vld [vmem:[%s4457_s26 + $0xd8] sm:$0xf]  ;;  %v261_v28 = vld [vmem:[%s4457_s26 + $0xe0] sm:$0xf]  ;;  %258 = vst [vmem:[%s4464_s27 + $0x68] sm:$0xf] %v257_v26 }
  0x2f   : > { %260 = vst [vmem:[%s4464_s27 + $0x6c] sm:$0xf] %v259_v27  ;;  %262 = vst [vmem:[%s4464_s27 + $0x70] sm:$0xf] %v261_v28  ;;  %v263_v29 = vld [vmem:[%s4457_s26 + $0xe8] sm:$0xf] }
  0x30   : > { %v265_v30 = vld [vmem:[%s4457_s26 + $0xf0] sm:$0xf]  ;;  %v267_v31 = vld [vmem:[%s4457_s26 + $0xf8] sm:$0xf]  ;;  %264 = vst [vmem:[%s4464_s27 + $0x74] sm:$0xf] %v263_v29 }
  0x31   : > { %266 = vst [vmem:[%s4464_s27 + $0x78] sm:$0xf] %v265_v30  ;;  %268 = vst [vmem:[%s4464_s27 + $0x7c] sm:$0xf] %v267_v31  ;;  %v269_v32 = vld [vmem:[%s4457_s26 + $0x100] sm:$0xf] }
  0x32   : > { %v271_v33 = vld [vmem:[%s4457_s26 + $0x108] sm:$0xf]  ;;  %v273_v34 = vld [vmem:[%s4457_s26 + $0x110] sm:$0xf]  ;;  %270 = vst [vmem:[%s4464_s27 + $0x80] sm:$0xf] %v269_v32 }
  0x33   : > { %272 = vst [vmem:[%s4464_s27 + $0x84] sm:$0xf] %v271_v33  ;;  %274 = vst [vmem:[%s4464_s27 + $0x88] sm:$0xf] %v273_v34  ;;  %v275_v35 = vld [vmem:[%s4457_s26 + $0x118] sm:$0xf] }
  0x34   : > { %v277_v36 = vld [vmem:[%s4457_s26 + $0x120] sm:$0xf]  ;;  %v279_v37 = vld [vmem:[%s4457_s26 + $0x128] sm:$0xf]  ;;  %276 = vst [vmem:[%s4464_s27 + $0x8c] sm:$0xf] %v275_v35 }
  0x35   : > { %278 = vst [vmem:[%s4464_s27 + $0x90] sm:$0xf] %v277_v36  ;;  %280 = vst [vmem:[%s4464_s27 + $0x94] sm:$0xf] %v279_v37  ;;  %v281_v38 = vld [vmem:[%s4457_s26 + $0x130] sm:$0xf] }
  0x36   : > { %v283_v39 = vld [vmem:[%s4457_s26 + $0x138] sm:$0xf]  ;;  %v285_v40 = vld [vmem:[%s4457_s26 + $0x140] sm:$0xf]  ;;  %282 = vst [vmem:[%s4464_s27 + $0x98] sm:$0xf] %v281_v38 }
  0x37   : > { %284 = vst [vmem:[%s4464_s27 + $0x9c] sm:$0xf] %v283_v39  ;;  %286 = vst [vmem:[%s4464_s27 + $0xa0] sm:$0xf] %v285_v40  ;;  %v287_v41 = vld [vmem:[%s4457_s26 + $0x148] sm:$0xf] }
  0x38   : > { %v289_v42 = vld [vmem:[%s4457_s26 + $0x150] sm:$0xf]  ;;  %v291_v43 = vld [vmem:[%s4457_s26 + $0x158] sm:$0xf]  ;;  %288 = vst [vmem:[%s4464_s27 + $0xa4] sm:$0xf] %v287_v41 }
  0x39   : > { %290 = vst [vmem:[%s4464_s27 + $0xa8] sm:$0xf] %v289_v42  ;;  %292 = vst [vmem:[%s4464_s27 + $0xac] sm:$0xf] %v291_v43  ;;  %v293_v44 = vld [vmem:[%s4457_s26 + $0x160] sm:$0xf] }
  0x3a   : > { %v295_v45 = vld [vmem:[%s4457_s26 + $0x168] sm:$0xf]  ;;  %v297_v46 = vld [vmem:[%s4457_s26 + $0x170] sm:$0xf]  ;;  %294 = vst [vmem:[%s4464_s27 + $0xb0] sm:$0xf] %v293_v44 }
  0x3b   : > { %296 = vst [vmem:[%s4464_s27 + $0xb4] sm:$0xf] %v295_v45  ;;  %298 = vst [vmem:[%s4464_s27 + $0xb8] sm:$0xf] %v297_v46  ;;  %v299_v47 = vld [vmem:[%s4457_s26 + $0x178] sm:$0xf] }
  0x3c   : > { %v301_v48 = vld [vmem:[%s4457_s26 + $0x180] sm:$0xf]  ;;  %v303_v49 = vld [vmem:[%s4457_s26 + $0x188] sm:$0xf]  ;;  %300 = vst [vmem:[%s4464_s27 + $0xbc] sm:$0xf] %v299_v47 }
  0x3d   : > { %302 = vst [vmem:[%s4464_s27 + $0xc0] sm:$0xf] %v301_v48  ;;  %304 = vst [vmem:[%s4464_s27 + $0xc4] sm:$0xf] %v303_v49  ;;  %v305_v50 = vld [vmem:[%s4457_s26 + $0x190] sm:$0xf] }
  0x3e   : > { %v307_v51 = vld [vmem:[%s4457_s26 + $0x198] sm:$0xf]  ;;  %v309_v52 = vld [vmem:[%s4457_s26 + $0x1a0] sm:$0xf]  ;;  %306 = vst [vmem:[%s4464_s27 + $0xc8] sm:$0xf] %v305_v50 }
  0x3f   : > { %308 = vst [vmem:[%s4464_s27 + $0xcc] sm:$0xf] %v307_v51  ;;  %310 = vst [vmem:[%s4464_s27 + $0xd0] sm:$0xf] %v309_v52  ;;  %v311_v53 = vld [vmem:[%s4457_s26 + $0x1a8] sm:$0xf] }
  0x40   : > { %v313_v54 = vld [vmem:[%s4457_s26 + $0x1b0] sm:$0xf]  ;;  %v315_v55 = vld [vmem:[%s4457_s26 + $0x1b8] sm:$0xf]  ;;  %312 = vst [vmem:[%s4464_s27 + $0xd4] sm:$0xf] %v311_v53 }
  0x41   : > { %314 = vst [vmem:[%s4464_s27 + $0xd8] sm:$0xf] %v313_v54  ;;  %316 = vst [vmem:[%s4464_s27 + $0xdc] sm:$0xf] %v315_v55  ;;  %v317_v56 = vld [vmem:[%s4457_s26 + $0x1c0] sm:$0xf] }
  0x42   : > { %v319_v57 = vld [vmem:[%s4457_s26 + $0x1c8] sm:$0xf]  ;;  %v321_v58 = vld [vmem:[%s4457_s26 + $0x1d0] sm:$0xf]  ;;  %318 = vst [vmem:[%s4464_s27 + $0xe0] sm:$0xf] %v317_v56 }
  0x43   : > { %320 = vst [vmem:[%s4464_s27 + $0xe4] sm:$0xf] %v319_v57  ;;  %322 = vst [vmem:[%s4464_s27 + $0xe8] sm:$0xf] %v321_v58  ;;  %v323_v59 = vld [vmem:[%s4457_s26 + $0x1d8] sm:$0xf] }
  0x44   : > { %v325_v60 = vld [vmem:[%s4457_s26 + $0x1e0] sm:$0xf]  ;;  %v327_v61 = vld [vmem:[%s4457_s26 + $0x1e8] sm:$0xf]  ;;  %324 = vst [vmem:[%s4464_s27 + $0xec] sm:$0xf] %v323_v59 }
  0x45   : > { %326 = vst [vmem:[%s4464_s27 + $0xf0] sm:$0xf] %v325_v60  ;;  %328 = vst [vmem:[%s4464_s27 + $0xf4] sm:$0xf] %v327_v61  ;;  %v329_v62 = vld [vmem:[%s4457_s26 + $0x1f0] sm:$0xf] }
  0x46   : > { %v331_v63 = vld [vmem:[%s4457_s26 + $0x1f8] sm:$0xf]  ;;  %v333_v0 = vld [vmem:[%s4457_s26 + $0x200] sm:$0xf]  ;;  %330 = vst [vmem:[%s4464_s27 + $0xf8] sm:$0xf] %v329_v62 }
  0x47   : > { %332 = vst [vmem:[%s4464_s27 + $0xfc] sm:$0xf] %v331_v63  ;;  %334 = vst [vmem:[%s4464_s27 + $0x100] sm:$0xf] %v333_v0  ;;  %v335_v1 = vld [vmem:[%s4457_s26 + $0x208] sm:$0xf] }
  0x48   : > { %v337_v2 = vld [vmem:[%s4457_s26 + $0x210] sm:$0xf]  ;;  %v339_v3 = vld [vmem:[%s4457_s26 + $0x218] sm:$0xf]  ;;  %336 = vst [vmem:[%s4464_s27 + $0x104] sm:$0xf] %v335_v1 }
  0x49   : > { %338 = vst [vmem:[%s4464_s27 + $0x108] sm:$0xf] %v337_v2  ;;  %340 = vst [vmem:[%s4464_s27 + $0x10c] sm:$0xf] %v339_v3  ;;  %v341_v4 = vld [vmem:[%s4457_s26 + $0x220] sm:$0xf] }
  0x4a   : > { %v343_v5 = vld [vmem:[%s4457_s26 + $0x228] sm:$0xf]  ;;  %v345_v6 = vld [vmem:[%s4457_s26 + $0x230] sm:$0xf]  ;;  %342 = vst [vmem:[%s4464_s27 + $0x110] sm:$0xf] %v341_v4 }
  0x4b   : > { %344 = vst [vmem:[%s4464_s27 + $0x114] sm:$0xf] %v343_v5  ;;  %346 = vst [vmem:[%s4464_s27 + $0x118] sm:$0xf] %v345_v6  ;;  %v347_v7 = vld [vmem:[%s4457_s26 + $0x238] sm:$0xf] }
  0x4c   : > { %v349_v8 = vld [vmem:[%s4457_s26 + $0x240] sm:$0xf]  ;;  %v351_v9 = vld [vmem:[%s4457_s26 + $0x248] sm:$0xf]  ;;  %348 = vst [vmem:[%s4464_s27 + $0x11c] sm:$0xf] %v347_v7 }
  0x4d   : > { %350 = vst [vmem:[%s4464_s27 + $0x120] sm:$0xf] %v349_v8  ;;  %352 = vst [vmem:[%s4464_s27 + $0x124] sm:$0xf] %v351_v9  ;;  %v353_v10 = vld [vmem:[%s4457_s26 + $0x250] sm:$0xf] }
  0x4e   : > { %v355_v11 = vld [vmem:[%s4457_s26 + $0x258] sm:$0xf]  ;;  %v357_v12 = vld [vmem:[%s4457_s26 + $0x260] sm:$0xf]  ;;  %354 = vst [vmem:[%s4464_s27 + $0x128] sm:$0xf] %v353_v10 }
  0x4f   : > { %356 = vst [vmem:[%s4464_s27 + $0x12c] sm:$0xf] %v355_v11  ;;  %358 = vst [vmem:[%s4464_s27 + $0x130] sm:$0xf] %v357_v12  ;;  %v359_v13 = vld [vmem:[%s4457_s26 + $0x268] sm:$0xf] }
  0x50   : > { %v361_v14 = vld [vmem:[%s4457_s26 + $0x270] sm:$0xf]  ;;  %v363_v15 = vld [vmem:[%s4457_s26 + $0x278] sm:$0xf]  ;;  %360 = vst [vmem:[%s4464_s27 + $0x134] sm:$0xf] %v359_v13 }
  0x51   : > { %362 = vst [vmem:[%s4464_s27 + $0x138] sm:$0xf] %v361_v14  ;;  %364 = vst [vmem:[%s4464_s27 + $0x13c] sm:$0xf] %v363_v15  ;;  %v365_v16 = vld [vmem:[%s4457_s26 + $0x280] sm:$0xf] }
  0x52   : > { %v367_v17 = vld [vmem:[%s4457_s26 + $0x288] sm:$0xf]  ;;  %v369_v18 = vld [vmem:[%s4457_s26 + $0x290] sm:$0xf]  ;;  %366 = vst [vmem:[%s4464_s27 + $0x140] sm:$0xf] %v365_v16 }
  0x53   : > { %368 = vst [vmem:[%s4464_s27 + $0x144] sm:$0xf] %v367_v17  ;;  %370 = vst [vmem:[%s4464_s27 + $0x148] sm:$0xf] %v369_v18  ;;  %v371_v19 = vld [vmem:[%s4457_s26 + $0x298] sm:$0xf] }
  0x54   : > { %v373_v20 = vld [vmem:[%s4457_s26 + $0x2a0] sm:$0xf]  ;;  %v375_v21 = vld [vmem:[%s4457_s26 + $0x2a8] sm:$0xf]  ;;  %372 = vst [vmem:[%s4464_s27 + $0x14c] sm:$0xf] %v371_v19 }
  0x55   : > { %374 = vst [vmem:[%s4464_s27 + $0x150] sm:$0xf] %v373_v20  ;;  %376 = vst [vmem:[%s4464_s27 + $0x154] sm:$0xf] %v375_v21  ;;  %v377_v22 = vld [vmem:[%s4457_s26 + $0x2b0] sm:$0xf] }
  0x56   : > { %v379_v23 = vld [vmem:[%s4457_s26 + $0x2b8] sm:$0xf]  ;;  %v381_v24 = vld [vmem:[%s4457_s26 + $0x2c0] sm:$0xf]  ;;  %378 = vst [vmem:[%s4464_s27 + $0x158] sm:$0xf] %v377_v22 }
  0x57   : > { %380 = vst [vmem:[%s4464_s27 + $0x15c] sm:$0xf] %v379_v23  ;;  %382 = vst [vmem:[%s4464_s27 + $0x160] sm:$0xf] %v381_v24  ;;  %v383_v25 = vld [vmem:[%s4457_s26 + $0x2c8] sm:$0xf] }
  0x58   : > { %v385_v26 = vld [vmem:[%s4457_s26 + $0x2d0] sm:$0xf]  ;;  %v387_v27 = vld [vmem:[%s4457_s26 + $0x2d8] sm:$0xf]  ;;  %384 = vst [vmem:[%s4464_s27 + $0x164] sm:$0xf] %v383_v25 }
  0x59   : > { %386 = vst [vmem:[%s4464_s27 + $0x168] sm:$0xf] %v385_v26  ;;  %388 = vst [vmem:[%s4464_s27 + $0x16c] sm:$0xf] %v387_v27  ;;  %v389_v28 = vld [vmem:[%s4457_s26 + $0x2e0] sm:$0xf] }
  0x5a   : > { %v391_v29 = vld [vmem:[%s4457_s26 + $0x2e8] sm:$0xf]  ;;  %v393_v30 = vld [vmem:[%s4457_s26 + $0x2f0] sm:$0xf]  ;;  %390 = vst [vmem:[%s4464_s27 + $0x170] sm:$0xf] %v389_v28 }
  0x5b   : > { %392 = vst [vmem:[%s4464_s27 + $0x174] sm:$0xf] %v391_v29  ;;  %394 = vst [vmem:[%s4464_s27 + $0x178] sm:$0xf] %v393_v30  ;;  %v395_v31 = vld [vmem:[%s4457_s26 + $0x2f8] sm:$0xf] }
  0x5c   : > { %v397_v32 = vld [vmem:[%s4457_s26 + $0x300] sm:$0xf]  ;;  %v399_v33 = vld [vmem:[%s4457_s26 + $0x308] sm:$0xf]  ;;  %396 = vst [vmem:[%s4464_s27 + $0x17c] sm:$0xf] %v395_v31 }
  0x5d   : > { %398 = vst [vmem:[%s4464_s27 + $0x180] sm:$0xf] %v397_v32  ;;  %400 = vst [vmem:[%s4464_s27 + $0x184] sm:$0xf] %v399_v33  ;;  %v401_v34 = vld [vmem:[%s4457_s26 + $0x310] sm:$0xf] }
  0x5e   : > { %v403_v35 = vld [vmem:[%s4457_s26 + $0x318] sm:$0xf]  ;;  %v405_v36 = vld [vmem:[%s4457_s26 + $0x320] sm:$0xf]  ;;  %402 = vst [vmem:[%s4464_s27 + $0x188] sm:$0xf] %v401_v34 }
  0x5f   : > { %404 = vst [vmem:[%s4464_s27 + $0x18c] sm:$0xf] %v403_v35  ;;  %406 = vst [vmem:[%s4464_s27 + $0x190] sm:$0xf] %v405_v36  ;;  %v407_v37 = vld [vmem:[%s4457_s26 + $0x328] sm:$0xf] }
  0x60   : > { %v409_v38 = vld [vmem:[%s4457_s26 + $0x330] sm:$0xf]  ;;  %v411_v39 = vld [vmem:[%s4457_s26 + $0x338] sm:$0xf]  ;;  %408 = vst [vmem:[%s4464_s27 + $0x194] sm:$0xf] %v407_v37 }
  0x61   : > { %410 = vst [vmem:[%s4464_s27 + $0x198] sm:$0xf] %v409_v38  ;;  %412 = vst [vmem:[%s4464_s27 + $0x19c] sm:$0xf] %v411_v39  ;;  %v413_v40 = vld [vmem:[%s4457_s26 + $0x340] sm:$0xf] }
  0x62   : > { %v415_v41 = vld [vmem:[%s4457_s26 + $0x348] sm:$0xf]  ;;  %v417_v42 = vld [vmem:[%s4457_s26 + $0x350] sm:$0xf]  ;;  %414 = vst [vmem:[%s4464_s27 + $0x1a0] sm:$0xf] %v413_v40 }
  0x63   : > { %416 = vst [vmem:[%s4464_s27 + $0x1a4] sm:$0xf] %v415_v41  ;;  %418 = vst [vmem:[%s4464_s27 + $0x1a8] sm:$0xf] %v417_v42  ;;  %v419_v43 = vld [vmem:[%s4457_s26 + $0x358] sm:$0xf] }
  0x64   : > { %v421_v44 = vld [vmem:[%s4457_s26 + $0x360] sm:$0xf]  ;;  %v423_v45 = vld [vmem:[%s4457_s26 + $0x368] sm:$0xf]  ;;  %420 = vst [vmem:[%s4464_s27 + $0x1ac] sm:$0xf] %v419_v43 }
  0x65   : > { %422 = vst [vmem:[%s4464_s27 + $0x1b0] sm:$0xf] %v421_v44  ;;  %424 = vst [vmem:[%s4464_s27 + $0x1b4] sm:$0xf] %v423_v45  ;;  %v425_v46 = vld [vmem:[%s4457_s26 + $0x370] sm:$0xf] }
  0x66   : > { %v427_v47 = vld [vmem:[%s4457_s26 + $0x378] sm:$0xf]  ;;  %v429_v48 = vld [vmem:[%s4457_s26 + $0x380] sm:$0xf]  ;;  %426 = vst [vmem:[%s4464_s27 + $0x1b8] sm:$0xf] %v425_v46 }
  0x67   : > { %428 = vst [vmem:[%s4464_s27 + $0x1bc] sm:$0xf] %v427_v47  ;;  %430 = vst [vmem:[%s4464_s27 + $0x1c0] sm:$0xf] %v429_v48  ;;  %v431_v49 = vld [vmem:[%s4457_s26 + $0x388] sm:$0xf] }
  0x68   : > { %v433_v50 = vld [vmem:[%s4457_s26 + $0x390] sm:$0xf]  ;;  %v435_v51 = vld [vmem:[%s4457_s26 + $0x398] sm:$0xf]  ;;  %432 = vst [vmem:[%s4464_s27 + $0x1c4] sm:$0xf] %v431_v49 }
  0x69   : > { %434 = vst [vmem:[%s4464_s27 + $0x1c8] sm:$0xf] %v433_v50  ;;  %436 = vst [vmem:[%s4464_s27 + $0x1cc] sm:$0xf] %v435_v51  ;;  %v437_v52 = vld [vmem:[%s4457_s26 + $0x3a0] sm:$0xf] }
  0x6a   : > { %v439_v53 = vld [vmem:[%s4457_s26 + $0x3a8] sm:$0xf]  ;;  %v441_v54 = vld [vmem:[%s4457_s26 + $0x3b0] sm:$0xf]  ;;  %438 = vst [vmem:[%s4464_s27 + $0x1d0] sm:$0xf] %v437_v52 }
  0x6b   : > { %440 = vst [vmem:[%s4464_s27 + $0x1d4] sm:$0xf] %v439_v53  ;;  %442 = vst [vmem:[%s4464_s27 + $0x1d8] sm:$0xf] %v441_v54  ;;  %v443_v55 = vld [vmem:[%s4457_s26 + $0x3b8] sm:$0xf] }
  0x6c   : > { %v445_v56 = vld [vmem:[%s4457_s26 + $0x3c0] sm:$0xf]  ;;  %v447_v57 = vld [vmem:[%s4457_s26 + $0x3c8] sm:$0xf]  ;;  %444 = vst [vmem:[%s4464_s27 + $0x1dc] sm:$0xf] %v443_v55 }
  0x6d   : > { %446 = vst [vmem:[%s4464_s27 + $0x1e0] sm:$0xf] %v445_v56  ;;  %448 = vst [vmem:[%s4464_s27 + $0x1e4] sm:$0xf] %v447_v57  ;;  %v449_v58 = vld [vmem:[%s4457_s26 + $0x3d0] sm:$0xf] }
  0x6e   : > { %v451_v59 = vld [vmem:[%s4457_s26 + $0x3d8] sm:$0xf]  ;;  %v453_v60 = vld [vmem:[%s4457_s26 + $0x3e0] sm:$0xf]  ;;  %450 = vst [vmem:[%s4464_s27 + $0x1e8] sm:$0xf] %v449_v58 }
  0x6f   : > { %452 = vst [vmem:[%s4464_s27 + $0x1ec] sm:$0xf] %v451_v59  ;;  %454 = vst [vmem:[%s4464_s27 + $0x1f0] sm:$0xf] %v453_v60  ;;  %v455_v61 = vld [vmem:[%s4457_s26 + $0x3e8] sm:$0xf] }
  0x70   : > { %v457_v62 = vld [vmem:[%s4457_s26 + $0x3f0] sm:$0xf]  ;;  %v459_v63 = vld [vmem:[%s4457_s26 + $0x3f8] sm:$0xf]  ;;  %456 = vst [vmem:[%s4464_s27 + $0x1f4] sm:$0xf] %v455_v61 }
  0x71   : > { %458 = vst [vmem:[%s4464_s27 + $0x1f8] sm:$0xf] %v457_v62  ;;  %460 = vst [vmem:[%s4464_s27 + $0x1fc] sm:$0xf] %v459_v63  ;;  %v461_v0 = vld [vmem:[%s4457_s26 + $0x400] sm:$0xf] }
  0x72   : > { %v463_v1 = vld [vmem:[%s4457_s26 + $0x408] sm:$0xf]  ;;  %v465_v2 = vld [vmem:[%s4457_s26 + $0x410] sm:$0xf]  ;;  %462 = vst [vmem:[%s4464_s27 + $0x200] sm:$0xf] %v461_v0 }
  0x73   : > { %464 = vst [vmem:[%s4464_s27 + $0x204] sm:$0xf] %v463_v1  ;;  %466 = vst [vmem:[%s4464_s27 + $0x208] sm:$0xf] %v465_v2  ;;  %v467_v3 = vld [vmem:[%s4457_s26 + $0x418] sm:$0xf] }
  0x74   : > { %v469_v4 = vld [vmem:[%s4457_s26 + $0x420] sm:$0xf]  ;;  %v471_v5 = vld [vmem:[%s4457_s26 + $0x428] sm:$0xf]  ;;  %468 = vst [vmem:[%s4464_s27 + $0x20c] sm:$0xf] %v467_v3 }
  0x75   : > { %470 = vst [vmem:[%s4464_s27 + $0x210] sm:$0xf] %v469_v4  ;;  %472 = vst [vmem:[%s4464_s27 + $0x214] sm:$0xf] %v471_v5  ;;  %v473_v6 = vld [vmem:[%s4457_s26 + $0x430] sm:$0xf] }
  0x76   : > { %v475_v7 = vld [vmem:[%s4457_s26 + $0x438] sm:$0xf]  ;;  %v477_v8 = vld [vmem:[%s4457_s26 + $0x440] sm:$0xf]  ;;  %474 = vst [vmem:[%s4464_s27 + $0x218] sm:$0xf] %v473_v6 }
  0x77   : > { %476 = vst [vmem:[%s4464_s27 + $0x21c] sm:$0xf] %v475_v7  ;;  %478 = vst [vmem:[%s4464_s27 + $0x220] sm:$0xf] %v477_v8  ;;  %v479_v9 = vld [vmem:[%s4457_s26 + $0x448] sm:$0xf] }
  0x78   : > { %v481_v10 = vld [vmem:[%s4457_s26 + $0x450] sm:$0xf]  ;;  %v483_v11 = vld [vmem:[%s4457_s26 + $0x458] sm:$0xf]  ;;  %480 = vst [vmem:[%s4464_s27 + $0x224] sm:$0xf] %v479_v9 }
  0x79   : > { %482 = vst [vmem:[%s4464_s27 + $0x228] sm:$0xf] %v481_v10  ;;  %484 = vst [vmem:[%s4464_s27 + $0x22c] sm:$0xf] %v483_v11  ;;  %v485_v12 = vld [vmem:[%s4457_s26 + $0x460] sm:$0xf] }
  0x7a   : > { %v487_v13 = vld [vmem:[%s4457_s26 + $0x468] sm:$0xf]  ;;  %v489_v14 = vld [vmem:[%s4457_s26 + $0x470] sm:$0xf]  ;;  %486 = vst [vmem:[%s4464_s27 + $0x230] sm:$0xf] %v485_v12 }
  0x7b   : > { %488 = vst [vmem:[%s4464_s27 + $0x234] sm:$0xf] %v487_v13  ;;  %490 = vst [vmem:[%s4464_s27 + $0x238] sm:$0xf] %v489_v14  ;;  %v491_v15 = vld [vmem:[%s4457_s26 + $0x478] sm:$0xf] }
  0x7c   : > { %v493_v16 = vld [vmem:[%s4457_s26 + $0x480] sm:$0xf]  ;;  %v495_v17 = vld [vmem:[%s4457_s26 + $0x488] sm:$0xf]  ;;  %492 = vst [vmem:[%s4464_s27 + $0x23c] sm:$0xf] %v491_v15 }
  0x7d   : > { %494 = vst [vmem:[%s4464_s27 + $0x240] sm:$0xf] %v493_v16  ;;  %496 = vst [vmem:[%s4464_s27 + $0x244] sm:$0xf] %v495_v17  ;;  %v497_v18 = vld [vmem:[%s4457_s26 + $0x490] sm:$0xf] }
  0x7e   : > { %v499_v19 = vld [vmem:[%s4457_s26 + $0x498] sm:$0xf]  ;;  %v501_v20 = vld [vmem:[%s4457_s26 + $0x4a0] sm:$0xf]  ;;  %498 = vst [vmem:[%s4464_s27 + $0x248] sm:$0xf] %v497_v18 }
  0x7f   : > { %500 = vst [vmem:[%s4464_s27 + $0x24c] sm:$0xf] %v499_v19  ;;  %502 = vst [vmem:[%s4464_s27 + $0x250] sm:$0xf] %v501_v20  ;;  %v503_v21 = vld [vmem:[%s4457_s26 + $0x4a8] sm:$0xf] }
  0x80   : > { %v505_v22 = vld [vmem:[%s4457_s26 + $0x4b0] sm:$0xf]  ;;  %v507_v23 = vld [vmem:[%s4457_s26 + $0x4b8] sm:$0xf]  ;;  %504 = vst [vmem:[%s4464_s27 + $0x254] sm:$0xf] %v503_v21 }
  0x81   : > { %506 = vst [vmem:[%s4464_s27 + $0x258] sm:$0xf] %v505_v22  ;;  %508 = vst [vmem:[%s4464_s27 + $0x25c] sm:$0xf] %v507_v23  ;;  %v509_v24 = vld [vmem:[%s4457_s26 + $0x4c0] sm:$0xf] }
  0x82   : > { %v511_v25 = vld [vmem:[%s4457_s26 + $0x4c8] sm:$0xf]  ;;  %v513_v26 = vld [vmem:[%s4457_s26 + $0x4d0] sm:$0xf]  ;;  %510 = vst [vmem:[%s4464_s27 + $0x260] sm:$0xf] %v509_v24 }
  0x83   : > { %512 = vst [vmem:[%s4464_s27 + $0x264] sm:$0xf] %v511_v25  ;;  %514 = vst [vmem:[%s4464_s27 + $0x268] sm:$0xf] %v513_v26  ;;  %v515_v27 = vld [vmem:[%s4457_s26 + $0x4d8] sm:$0xf] }
  0x84   : > { %v517_v28 = vld [vmem:[%s4457_s26 + $0x4e0] sm:$0xf]  ;;  %v519_v29 = vld [vmem:[%s4457_s26 + $0x4e8] sm:$0xf]  ;;  %516 = vst [vmem:[%s4464_s27 + $0x26c] sm:$0xf] %v515_v27 }
  0x85   : > { %518 = vst [vmem:[%s4464_s27 + $0x270] sm:$0xf] %v517_v28  ;;  %520 = vst [vmem:[%s4464_s27 + $0x274] sm:$0xf] %v519_v29  ;;  %v521_v30 = vld [vmem:[%s4457_s26 + $0x4f0] sm:$0xf] }
  0x86   : > { %v523_v31 = vld [vmem:[%s4457_s26 + $0x4f8] sm:$0xf]  ;;  %v525_v32 = vld [vmem:[%s4457_s26 + $0x500] sm:$0xf]  ;;  %522 = vst [vmem:[%s4464_s27 + $0x278] sm:$0xf] %v521_v30 }
  0x87   : > { %524 = vst [vmem:[%s4464_s27 + $0x27c] sm:$0xf] %v523_v31  ;;  %526 = vst [vmem:[%s4464_s27 + $0x280] sm:$0xf] %v525_v32  ;;  %v527_v33 = vld [vmem:[%s4457_s26 + $0x508] sm:$0xf] }
  0x88   : > { %v529_v34 = vld [vmem:[%s4457_s26 + $0x510] sm:$0xf]  ;;  %v531_v35 = vld [vmem:[%s4457_s26 + $0x518] sm:$0xf]  ;;  %528 = vst [vmem:[%s4464_s27 + $0x284] sm:$0xf] %v527_v33 }
  0x89   : > { %530 = vst [vmem:[%s4464_s27 + $0x288] sm:$0xf] %v529_v34  ;;  %532 = vst [vmem:[%s4464_s27 + $0x28c] sm:$0xf] %v531_v35  ;;  %v533_v36 = vld [vmem:[%s4457_s26 + $0x520] sm:$0xf] }
  0x8a   : > { %v535_v37 = vld [vmem:[%s4457_s26 + $0x528] sm:$0xf]  ;;  %v537_v38 = vld [vmem:[%s4457_s26 + $0x530] sm:$0xf]  ;;  %534 = vst [vmem:[%s4464_s27 + $0x290] sm:$0xf] %v533_v36 }
  0x8b   : > { %536 = vst [vmem:[%s4464_s27 + $0x294] sm:$0xf] %v535_v37  ;;  %538 = vst [vmem:[%s4464_s27 + $0x298] sm:$0xf] %v537_v38  ;;  %v539_v39 = vld [vmem:[%s4457_s26 + $0x538] sm:$0xf] }
  0x8c   : > { %v541_v40 = vld [vmem:[%s4457_s26 + $0x540] sm:$0xf]  ;;  %v543_v41 = vld [vmem:[%s4457_s26 + $0x548] sm:$0xf]  ;;  %540 = vst [vmem:[%s4464_s27 + $0x29c] sm:$0xf] %v539_v39 }
  0x8d   : > { %542 = vst [vmem:[%s4464_s27 + $0x2a0] sm:$0xf] %v541_v40  ;;  %544 = vst [vmem:[%s4464_s27 + $0x2a4] sm:$0xf] %v543_v41  ;;  %v545_v42 = vld [vmem:[%s4457_s26 + $0x550] sm:$0xf] }
  0x8e   : > { %v547_v43 = vld [vmem:[%s4457_s26 + $0x558] sm:$0xf]  ;;  %v549_v44 = vld [vmem:[%s4457_s26 + $0x560] sm:$0xf]  ;;  %546 = vst [vmem:[%s4464_s27 + $0x2a8] sm:$0xf] %v545_v42 }
  0x8f   : > { %548 = vst [vmem:[%s4464_s27 + $0x2ac] sm:$0xf] %v547_v43  ;;  %550 = vst [vmem:[%s4464_s27 + $0x2b0] sm:$0xf] %v549_v44  ;;  %v551_v45 = vld [vmem:[%s4457_s26 + $0x568] sm:$0xf] }
  0x90   : > { %v553_v46 = vld [vmem:[%s4457_s26 + $0x570] sm:$0xf]  ;;  %v555_v47 = vld [vmem:[%s4457_s26 + $0x578] sm:$0xf]  ;;  %552 = vst [vmem:[%s4464_s27 + $0x2b4] sm:$0xf] %v551_v45 }
  0x91   : > { %554 = vst [vmem:[%s4464_s27 + $0x2b8] sm:$0xf] %v553_v46  ;;  %556 = vst [vmem:[%s4464_s27 + $0x2bc] sm:$0xf] %v555_v47  ;;  %v557_v48 = vld [vmem:[%s4457_s26 + $0x580] sm:$0xf] }
  0x92   : > { %v559_v49 = vld [vmem:[%s4457_s26 + $0x588] sm:$0xf]  ;;  %v561_v50 = vld [vmem:[%s4457_s26 + $0x590] sm:$0xf]  ;;  %558 = vst [vmem:[%s4464_s27 + $0x2c0] sm:$0xf] %v557_v48 }
  0x93   : > { %560 = vst [vmem:[%s4464_s27 + $0x2c4] sm:$0xf] %v559_v49  ;;  %562 = vst [vmem:[%s4464_s27 + $0x2c8] sm:$0xf] %v561_v50  ;;  %v563_v51 = vld [vmem:[%s4457_s26 + $0x598] sm:$0xf] }
  0x94   : > { %v565_v52 = vld [vmem:[%s4457_s26 + $0x5a0] sm:$0xf]  ;;  %v567_v53 = vld [vmem:[%s4457_s26 + $0x5a8] sm:$0xf]  ;;  %564 = vst [vmem:[%s4464_s27 + $0x2cc] sm:$0xf] %v563_v51 }
  0x95   : > { %566 = vst [vmem:[%s4464_s27 + $0x2d0] sm:$0xf] %v565_v52  ;;  %568 = vst [vmem:[%s4464_s27 + $0x2d4] sm:$0xf] %v567_v53  ;;  %v569_v54 = vld [vmem:[%s4457_s26 + $0x5b0] sm:$0xf] }
  0x96   : > { %v571_v55 = vld [vmem:[%s4457_s26 + $0x5b8] sm:$0xf]  ;;  %v573_v56 = vld [vmem:[%s4457_s26 + $0x5c0] sm:$0xf]  ;;  %570 = vst [vmem:[%s4464_s27 + $0x2d8] sm:$0xf] %v569_v54 }
  0x97   : > { %572 = vst [vmem:[%s4464_s27 + $0x2dc] sm:$0xf] %v571_v55  ;;  %574 = vst [vmem:[%s4464_s27 + $0x2e0] sm:$0xf] %v573_v56  ;;  %v575_v57 = vld [vmem:[%s4457_s26 + $0x5c8] sm:$0xf] }
  0x98   : > { %v577_v58 = vld [vmem:[%s4457_s26 + $0x5d0] sm:$0xf]  ;;  %v579_v59 = vld [vmem:[%s4457_s26 + $0x5d8] sm:$0xf]  ;;  %576 = vst [vmem:[%s4464_s27 + $0x2e4] sm:$0xf] %v575_v57 }
  0x99   : > { %578 = vst [vmem:[%s4464_s27 + $0x2e8] sm:$0xf] %v577_v58  ;;  %580 = vst [vmem:[%s4464_s27 + $0x2ec] sm:$0xf] %v579_v59  ;;  %v581_v60 = vld [vmem:[%s4457_s26 + $0x5e0] sm:$0xf] }
  0x9a   : > { %v583_v61 = vld [vmem:[%s4457_s26 + $0x5e8] sm:$0xf]  ;;  %v585_v62 = vld [vmem:[%s4457_s26 + $0x5f0] sm:$0xf]  ;;  %582 = vst [vmem:[%s4464_s27 + $0x2f0] sm:$0xf] %v581_v60 }
  0x9b   : > { %584 = vst [vmem:[%s4464_s27 + $0x2f4] sm:$0xf] %v583_v61  ;;  %586 = vst [vmem:[%s4464_s27 + $0x2f8] sm:$0xf] %v585_v62  ;;  %v587_v63 = vld [vmem:[%s4457_s26 + $0x5f8] sm:$0xf] }
  0x9c   : > { %v589_v0 = vld [vmem:[%s4457_s26 + $0x600] sm:$0xf]  ;;  %v591_v1 = vld [vmem:[%s4457_s26 + $0x608] sm:$0xf]  ;;  %588 = vst [vmem:[%s4464_s27 + $0x2fc] sm:$0xf] %v587_v63 }
  0x9d   : > { %590 = vst [vmem:[%s4464_s27 + $0x300] sm:$0xf] %v589_v0  ;;  %592 = vst [vmem:[%s4464_s27 + $0x304] sm:$0xf] %v591_v1  ;;  %v593_v2 = vld [vmem:[%s4457_s26 + $0x610] sm:$0xf] }
  0x9e   : > { %v595_v3 = vld [vmem:[%s4457_s26 + $0x618] sm:$0xf]  ;;  %v597_v4 = vld [vmem:[%s4457_s26 + $0x620] sm:$0xf]  ;;  %594 = vst [vmem:[%s4464_s27 + $0x308] sm:$0xf] %v593_v2 }
  0x9f   : > { %596 = vst [vmem:[%s4464_s27 + $0x30c] sm:$0xf] %v595_v3  ;;  %598 = vst [vmem:[%s4464_s27 + $0x310] sm:$0xf] %v597_v4  ;;  %v599_v5 = vld [vmem:[%s4457_s26 + $0x628] sm:$0xf] }
  0xa0   : > { %v601_v6 = vld [vmem:[%s4457_s26 + $0x630] sm:$0xf]  ;;  %v603_v7 = vld [vmem:[%s4457_s26 + $0x638] sm:$0xf]  ;;  %600 = vst [vmem:[%s4464_s27 + $0x314] sm:$0xf] %v599_v5 }
  0xa1   : > { %602 = vst [vmem:[%s4464_s27 + $0x318] sm:$0xf] %v601_v6  ;;  %604 = vst [vmem:[%s4464_s27 + $0x31c] sm:$0xf] %v603_v7  ;;  %v605_v8 = vld [vmem:[%s4457_s26 + $0x640] sm:$0xf] }
  0xa2   : > { %v607_v9 = vld [vmem:[%s4457_s26 + $0x648] sm:$0xf]  ;;  %v609_v10 = vld [vmem:[%s4457_s26 + $0x650] sm:$0xf]  ;;  %606 = vst [vmem:[%s4464_s27 + $0x320] sm:$0xf] %v605_v8 }
  0xa3   : > { %608 = vst [vmem:[%s4464_s27 + $0x324] sm:$0xf] %v607_v9  ;;  %610 = vst [vmem:[%s4464_s27 + $0x328] sm:$0xf] %v609_v10  ;;  %v611_v11 = vld [vmem:[%s4457_s26 + $0x658] sm:$0xf] }
  0xa4   : > { %v613_v12 = vld [vmem:[%s4457_s26 + $0x660] sm:$0xf]  ;;  %v615_v13 = vld [vmem:[%s4457_s26 + $0x668] sm:$0xf]  ;;  %612 = vst [vmem:[%s4464_s27 + $0x32c] sm:$0xf] %v611_v11 }
  0xa5   : > { %614 = vst [vmem:[%s4464_s27 + $0x330] sm:$0xf] %v613_v12  ;;  %616 = vst [vmem:[%s4464_s27 + $0x334] sm:$0xf] %v615_v13  ;;  %v617_v14 = vld [vmem:[%s4457_s26 + $0x670] sm:$0xf] }
  0xa6   : > { %v619_v15 = vld [vmem:[%s4457_s26 + $0x678] sm:$0xf]  ;;  %v621_v16 = vld [vmem:[%s4457_s26 + $0x680] sm:$0xf]  ;;  %618 = vst [vmem:[%s4464_s27 + $0x338] sm:$0xf] %v617_v14 }
  0xa7   : > { %620 = vst [vmem:[%s4464_s27 + $0x33c] sm:$0xf] %v619_v15  ;;  %622 = vst [vmem:[%s4464_s27 + $0x340] sm:$0xf] %v621_v16  ;;  %v623_v17 = vld [vmem:[%s4457_s26 + $0x688] sm:$0xf] }
  0xa8   : > { %v625_v18 = vld [vmem:[%s4457_s26 + $0x690] sm:$0xf]  ;;  %v627_v19 = vld [vmem:[%s4457_s26 + $0x698] sm:$0xf]  ;;  %624 = vst [vmem:[%s4464_s27 + $0x344] sm:$0xf] %v623_v17 }
  0xa9   : > { %626 = vst [vmem:[%s4464_s27 + $0x348] sm:$0xf] %v625_v18  ;;  %628 = vst [vmem:[%s4464_s27 + $0x34c] sm:$0xf] %v627_v19  ;;  %v629_v20 = vld [vmem:[%s4457_s26 + $0x6a0] sm:$0xf] }
  0xaa   : > { %v631_v21 = vld [vmem:[%s4457_s26 + $0x6a8] sm:$0xf]  ;;  %v633_v22 = vld [vmem:[%s4457_s26 + $0x6b0] sm:$0xf]  ;;  %630 = vst [vmem:[%s4464_s27 + $0x350] sm:$0xf] %v629_v20 }
  0xab   : > { %632 = vst [vmem:[%s4464_s27 + $0x354] sm:$0xf] %v631_v21  ;;  %634 = vst [vmem:[%s4464_s27 + $0x358] sm:$0xf] %v633_v22  ;;  %v635_v23 = vld [vmem:[%s4457_s26 + $0x6b8] sm:$0xf] }
  0xac   : > { %v637_v24 = vld [vmem:[%s4457_s26 + $0x6c0] sm:$0xf]  ;;  %v639_v25 = vld [vmem:[%s4457_s26 + $0x6c8] sm:$0xf]  ;;  %636 = vst [vmem:[%s4464_s27 + $0x35c] sm:$0xf] %v635_v23 }
  0xad   : > { %638 = vst [vmem:[%s4464_s27 + $0x360] sm:$0xf] %v637_v24  ;;  %640 = vst [vmem:[%s4464_s27 + $0x364] sm:$0xf] %v639_v25  ;;  %v641_v26 = vld [vmem:[%s4457_s26 + $0x6d0] sm:$0xf] }
  0xae   : > { %v643_v27 = vld [vmem:[%s4457_s26 + $0x6d8] sm:$0xf]  ;;  %v645_v28 = vld [vmem:[%s4457_s26 + $0x6e0] sm:$0xf]  ;;  %642 = vst [vmem:[%s4464_s27 + $0x368] sm:$0xf] %v641_v26 }
  0xaf   : > { %644 = vst [vmem:[%s4464_s27 + $0x36c] sm:$0xf] %v643_v27  ;;  %646 = vst [vmem:[%s4464_s27 + $0x370] sm:$0xf] %v645_v28  ;;  %v647_v29 = vld [vmem:[%s4457_s26 + $0x6e8] sm:$0xf] }
  0xb0   : > { %v649_v30 = vld [vmem:[%s4457_s26 + $0x6f0] sm:$0xf]  ;;  %v651_v31 = vld [vmem:[%s4457_s26 + $0x6f8] sm:$0xf]  ;;  %648 = vst [vmem:[%s4464_s27 + $0x374] sm:$0xf] %v647_v29 }
  0xb1   : > { %650 = vst [vmem:[%s4464_s27 + $0x378] sm:$0xf] %v649_v30  ;;  %652 = vst [vmem:[%s4464_s27 + $0x37c] sm:$0xf] %v651_v31  ;;  %v653_v32 = vld [vmem:[%s4457_s26 + $0x700] sm:$0xf] }
  0xb2   : > { %v655_v33 = vld [vmem:[%s4457_s26 + $0x708] sm:$0xf]  ;;  %v657_v34 = vld [vmem:[%s4457_s26 + $0x710] sm:$0xf]  ;;  %654 = vst [vmem:[%s4464_s27 + $0x380] sm:$0xf] %v653_v32 }
  0xb3   : > { %656 = vst [vmem:[%s4464_s27 + $0x384] sm:$0xf] %v655_v33  ;;  %658 = vst [vmem:[%s4464_s27 + $0x388] sm:$0xf] %v657_v34  ;;  %v659_v35 = vld [vmem:[%s4457_s26 + $0x718] sm:$0xf] }
  0xb4   : > { %v661_v36 = vld [vmem:[%s4457_s26 + $0x720] sm:$0xf]  ;;  %v663_v37 = vld [vmem:[%s4457_s26 + $0x728] sm:$0xf]  ;;  %660 = vst [vmem:[%s4464_s27 + $0x38c] sm:$0xf] %v659_v35 }
  0xb5   : > { %662 = vst [vmem:[%s4464_s27 + $0x390] sm:$0xf] %v661_v36  ;;  %664 = vst [vmem:[%s4464_s27 + $0x394] sm:$0xf] %v663_v37  ;;  %v665_v38 = vld [vmem:[%s4457_s26 + $0x730] sm:$0xf] }
  0xb6   : > { %v667_v39 = vld [vmem:[%s4457_s26 + $0x738] sm:$0xf]  ;;  %v669_v40 = vld [vmem:[%s4457_s26 + $0x740] sm:$0xf]  ;;  %666 = vst [vmem:[%s4464_s27 + $0x398] sm:$0xf] %v665_v38 }
  0xb7   : > { %668 = vst [vmem:[%s4464_s27 + $0x39c] sm:$0xf] %v667_v39  ;;  %670 = vst [vmem:[%s4464_s27 + $0x3a0] sm:$0xf] %v669_v40  ;;  %v671_v41 = vld [vmem:[%s4457_s26 + $0x748] sm:$0xf] }
  0xb8   : > { %v673_v42 = vld [vmem:[%s4457_s26 + $0x750] sm:$0xf]  ;;  %v675_v43 = vld [vmem:[%s4457_s26 + $0x758] sm:$0xf]  ;;  %672 = vst [vmem:[%s4464_s27 + $0x3a4] sm:$0xf] %v671_v41 }
  0xb9   : > { %674 = vst [vmem:[%s4464_s27 + $0x3a8] sm:$0xf] %v673_v42  ;;  %676 = vst [vmem:[%s4464_s27 + $0x3ac] sm:$0xf] %v675_v43  ;;  %v677_v44 = vld [vmem:[%s4457_s26 + $0x760] sm:$0xf] }
  0xba   : > { %v679_v45 = vld [vmem:[%s4457_s26 + $0x768] sm:$0xf]  ;;  %v681_v46 = vld [vmem:[%s4457_s26 + $0x770] sm:$0xf]  ;;  %678 = vst [vmem:[%s4464_s27 + $0x3b0] sm:$0xf] %v677_v44 }
  0xbb   : > { %680 = vst [vmem:[%s4464_s27 + $0x3b4] sm:$0xf] %v679_v45  ;;  %682 = vst [vmem:[%s4464_s27 + $0x3b8] sm:$0xf] %v681_v46  ;;  %v683_v47 = vld [vmem:[%s4457_s26 + $0x778] sm:$0xf] }
  0xbc   : > { %v685_v48 = vld [vmem:[%s4457_s26 + $0x780] sm:$0xf]  ;;  %v687_v49 = vld [vmem:[%s4457_s26 + $0x788] sm:$0xf]  ;;  %684 = vst [vmem:[%s4464_s27 + $0x3bc] sm:$0xf] %v683_v47 }
  0xbd   : > { %686 = vst [vmem:[%s4464_s27 + $0x3c0] sm:$0xf] %v685_v48  ;;  %688 = vst [vmem:[%s4464_s27 + $0x3c4] sm:$0xf] %v687_v49  ;;  %v689_v50 = vld [vmem:[%s4457_s26 + $0x790] sm:$0xf] }
  0xbe   : > { %v691_v51 = vld [vmem:[%s4457_s26 + $0x798] sm:$0xf]  ;;  %v693_v52 = vld [vmem:[%s4457_s26 + $0x7a0] sm:$0xf]  ;;  %690 = vst [vmem:[%s4464_s27 + $0x3c8] sm:$0xf] %v689_v50 }
  0xbf   : > { %692 = vst [vmem:[%s4464_s27 + $0x3cc] sm:$0xf] %v691_v51  ;;  %694 = vst [vmem:[%s4464_s27 + $0x3d0] sm:$0xf] %v693_v52  ;;  %v695_v53 = vld [vmem:[%s4457_s26 + $0x7a8] sm:$0xf] }
  0xc0   : > { %v697_v54 = vld [vmem:[%s4457_s26 + $0x7b0] sm:$0xf]  ;;  %v699_v55 = vld [vmem:[%s4457_s26 + $0x7b8] sm:$0xf]  ;;  %696 = vst [vmem:[%s4464_s27 + $0x3d4] sm:$0xf] %v695_v53 }
  0xc1   : > { %698 = vst [vmem:[%s4464_s27 + $0x3d8] sm:$0xf] %v697_v54  ;;  %700 = vst [vmem:[%s4464_s27 + $0x3dc] sm:$0xf] %v699_v55  ;;  %v701_v56 = vld [vmem:[%s4457_s26 + $0x7c0] sm:$0xf] }
  0xc2   : > { %v703_v57 = vld [vmem:[%s4457_s26 + $0x7c8] sm:$0xf]  ;;  %v705_v58 = vld [vmem:[%s4457_s26 + $0x7d0] sm:$0xf]  ;;  %702 = vst [vmem:[%s4464_s27 + $0x3e0] sm:$0xf] %v701_v56 }
  0xc3   : > { %704 = vst [vmem:[%s4464_s27 + $0x3e4] sm:$0xf] %v703_v57  ;;  %706 = vst [vmem:[%s4464_s27 + $0x3e8] sm:$0xf] %v705_v58  ;;  %v707_v59 = vld [vmem:[%s4457_s26 + $0x7d8] sm:$0xf] }
  0xc4   : > { %v709_v60 = vld [vmem:[%s4457_s26 + $0x7e0] sm:$0xf]  ;;  %v711_v61 = vld [vmem:[%s4457_s26 + $0x7e8] sm:$0xf]  ;;  %708 = vst [vmem:[%s4464_s27 + $0x3ec] sm:$0xf] %v707_v59 }
  0xc5   : > { %710 = vst [vmem:[%s4464_s27 + $0x3f0] sm:$0xf] %v709_v60  ;;  %712 = vst [vmem:[%s4464_s27 + $0x3f4] sm:$0xf] %v711_v61  ;;  %v713_v62 = vld [vmem:[%s4457_s26 + $0x7f0] sm:$0xf] }
  0xc6   : > { %v715_v63 = vld [vmem:[%s4457_s26 + $0x7f8] sm:$0xf]  ;;  %v717_v0 = vld [vmem:[%s4457_s26 + $0x800] sm:$0xf]  ;;  %714 = vst [vmem:[%s4464_s27 + $0x3f8] sm:$0xf] %v713_v62 }
  0xc7   : > { %716 = vst [vmem:[%s4464_s27 + $0x3fc] sm:$0xf] %v715_v63  ;;  %718 = vst [vmem:[%s4464_s27 + $0x400] sm:$0xf] %v717_v0  ;;  %v719_v1 = vld [vmem:[%s4457_s26 + $0x808] sm:$0xf] }
  0xc8   : > { %v721_v2 = vld [vmem:[%s4457_s26 + $0x810] sm:$0xf]  ;;  %v723_v3 = vld [vmem:[%s4457_s26 + $0x818] sm:$0xf]  ;;  %720 = vst [vmem:[%s4464_s27 + $0x404] sm:$0xf] %v719_v1 }
  0xc9   : > { %722 = vst [vmem:[%s4464_s27 + $0x408] sm:$0xf] %v721_v2  ;;  %724 = vst [vmem:[%s4464_s27 + $0x40c] sm:$0xf] %v723_v3  ;;  %v725_v4 = vld [vmem:[%s4457_s26 + $0x820] sm:$0xf] }
  0xca   : > { %v727_v5 = vld [vmem:[%s4457_s26 + $0x828] sm:$0xf]  ;;  %v729_v6 = vld [vmem:[%s4457_s26 + $0x830] sm:$0xf]  ;;  %726 = vst [vmem:[%s4464_s27 + $0x410] sm:$0xf] %v725_v4 }
  0xcb   : > { %728 = vst [vmem:[%s4464_s27 + $0x414] sm:$0xf] %v727_v5  ;;  %730 = vst [vmem:[%s4464_s27 + $0x418] sm:$0xf] %v729_v6  ;;  %v731_v7 = vld [vmem:[%s4457_s26 + $0x838] sm:$0xf] }
  0xcc   : > { %v733_v8 = vld [vmem:[%s4457_s26 + $0x840] sm:$0xf]  ;;  %v735_v9 = vld [vmem:[%s4457_s26 + $0x848] sm:$0xf]  ;;  %732 = vst [vmem:[%s4464_s27 + $0x41c] sm:$0xf] %v731_v7 }
  0xcd   : > { %734 = vst [vmem:[%s4464_s27 + $0x420] sm:$0xf] %v733_v8  ;;  %736 = vst [vmem:[%s4464_s27 + $0x424] sm:$0xf] %v735_v9  ;;  %v737_v10 = vld [vmem:[%s4457_s26 + $0x850] sm:$0xf] }
  0xce   : > { %v739_v11 = vld [vmem:[%s4457_s26 + $0x858] sm:$0xf]  ;;  %v741_v12 = vld [vmem:[%s4457_s26 + $0x860] sm:$0xf]  ;;  %738 = vst [vmem:[%s4464_s27 + $0x428] sm:$0xf] %v737_v10 }
  0xcf   : > { %740 = vst [vmem:[%s4464_s27 + $0x42c] sm:$0xf] %v739_v11  ;;  %742 = vst [vmem:[%s4464_s27 + $0x430] sm:$0xf] %v741_v12  ;;  %v743_v13 = vld [vmem:[%s4457_s26 + $0x868] sm:$0xf] }
  0xd0   : > { %v745_v14 = vld [vmem:[%s4457_s26 + $0x870] sm:$0xf]  ;;  %v747_v15 = vld [vmem:[%s4457_s26 + $0x878] sm:$0xf]  ;;  %744 = vst [vmem:[%s4464_s27 + $0x434] sm:$0xf] %v743_v13 }
  0xd1   : > { %746 = vst [vmem:[%s4464_s27 + $0x438] sm:$0xf] %v745_v14  ;;  %748 = vst [vmem:[%s4464_s27 + $0x43c] sm:$0xf] %v747_v15  ;;  %v749_v16 = vld [vmem:[%s4457_s26 + $0x880] sm:$0xf] }
  0xd2   : > { %v751_v17 = vld [vmem:[%s4457_s26 + $0x888] sm:$0xf]  ;;  %v753_v18 = vld [vmem:[%s4457_s26 + $0x890] sm:$0xf]  ;;  %750 = vst [vmem:[%s4464_s27 + $0x440] sm:$0xf] %v749_v16 }
  0xd3   : > { %752 = vst [vmem:[%s4464_s27 + $0x444] sm:$0xf] %v751_v17  ;;  %754 = vst [vmem:[%s4464_s27 + $0x448] sm:$0xf] %v753_v18  ;;  %v755_v19 = vld [vmem:[%s4457_s26 + $0x898] sm:$0xf] }
  0xd4   : > { %v757_v20 = vld [vmem:[%s4457_s26 + $0x8a0] sm:$0xf]  ;;  %v759_v21 = vld [vmem:[%s4457_s26 + $0x8a8] sm:$0xf]  ;;  %756 = vst [vmem:[%s4464_s27 + $0x44c] sm:$0xf] %v755_v19 }
  0xd5   : > { %758 = vst [vmem:[%s4464_s27 + $0x450] sm:$0xf] %v757_v20  ;;  %760 = vst [vmem:[%s4464_s27 + $0x454] sm:$0xf] %v759_v21  ;;  %v761_v22 = vld [vmem:[%s4457_s26 + $0x8b0] sm:$0xf] }
  0xd6   : > { %v763_v23 = vld [vmem:[%s4457_s26 + $0x8b8] sm:$0xf]  ;;  %v765_v24 = vld [vmem:[%s4457_s26 + $0x8c0] sm:$0xf]  ;;  %762 = vst [vmem:[%s4464_s27 + $0x458] sm:$0xf] %v761_v22 }
  0xd7   : > { %764 = vst [vmem:[%s4464_s27 + $0x45c] sm:$0xf] %v763_v23  ;;  %766 = vst [vmem:[%s4464_s27 + $0x460] sm:$0xf] %v765_v24  ;;  %v767_v25 = vld [vmem:[%s4457_s26 + $0x8c8] sm:$0xf] }
  0xd8   : > { %v769_v26 = vld [vmem:[%s4457_s26 + $0x8d0] sm:$0xf]  ;;  %v771_v27 = vld [vmem:[%s4457_s26 + $0x8d8] sm:$0xf]  ;;  %768 = vst [vmem:[%s4464_s27 + $0x464] sm:$0xf] %v767_v25 }
  0xd9   : > { %770 = vst [vmem:[%s4464_s27 + $0x468] sm:$0xf] %v769_v26  ;;  %772 = vst [vmem:[%s4464_s27 + $0x46c] sm:$0xf] %v771_v27  ;;  %v773_v28 = vld [vmem:[%s4457_s26 + $0x8e0] sm:$0xf] }
  0xda   : > { %v775_v29 = vld [vmem:[%s4457_s26 + $0x8e8] sm:$0xf]  ;;  %v777_v30 = vld [vmem:[%s4457_s26 + $0x8f0] sm:$0xf]  ;;  %774 = vst [vmem:[%s4464_s27 + $0x470] sm:$0xf] %v773_v28 }
  0xdb   : > { %776 = vst [vmem:[%s4464_s27 + $0x474] sm:$0xf] %v775_v29  ;;  %778 = vst [vmem:[%s4464_s27 + $0x478] sm:$0xf] %v777_v30  ;;  %v779_v31 = vld [vmem:[%s4457_s26 + $0x8f8] sm:$0xf] }
  0xdc   : > { %780 = vst [vmem:[%s4464_s27 + $0x47c] sm:$0xf] %v779_v31 }
  0xdd PF: > { %p3396_p11 = scmp.ge.s32.totalorder %s4343_s23, 1  ;;  %p1390_p12 = scmp.lt.s32.totalorder %s4343_s23, 5 }
  0xdf   : > { %p1391_p13 = pnand %p3396_p11, %p1390_p12 }
  0xe0   : > { %s1397_s28 = sand.u32 (!%p1391_p13), 1, %s4319_s17   ;;  %p1432_p0 = scmp.lt.s32.totalorder (!%p1391_p13), %s4327_s19, 1  ;;  %vm1531_vm0 = vsmask.f32 (!%p1391_p13), 7424  ;;  %vm1873_vm1 = vcmask (!%p1391_p13), 1046528   ;;  %vm3205_vm2 = vcmask (!%p1391_p13), 1040384  }
  0xe1   : > { %1394 = sbr.rel (%p1391_p13) target bundleno = 631 (0x277), region = 73  ;;  %s1429_s12 = sand.u32 (!%p1391_p13), 1, %s4311_s15   ;;  %vm3208_vm3 = vcmask (!%p1391_p13), 1042432  }
  0xe2   : > { %s4034_s29 = smul.u32 (!%p1391_p13), 1152, %s1397_s28  ;;  %p1437_p1 = scmp.lt.s32.totalorder (!%p1391_p13), %s4331_s20, 1 }
  0xe3   : > { %s4035_s13 = smul.u32 (!%p1391_p13), 24, %s1429_s12 }
  0xe4   : > { %s5040_s30 = scalar_lea.vmem (!%p1391_p13), [#allocation2], %s4034_s29 }
  0xe5   : > { %v4111_v32 = vld [vmem:[%s5040_s30 + $0xc0] sm:$0xff] (!%p1391_p13)   ;;  %v4115_v36 = vld [vmem:[%s5040_s30 + $0xc8] sm:$0xff] (!%p1391_p13)   ;;  %v4119_v40 = vld [vmem:[%s5040_s30 + $0xd0] sm:$0xff] (!%p1391_p13)   ;;  %s5256_s14 = scalar_lea.vmem (!%p1391_p13), [#allocation3], %s4035_s13 }
  0xe6   : > { %v4112_v33 = vld [vmem:[%s5040_s30 + $0x40] sm:$0xff] (!%p1391_p13)   ;;  %3835 = vmatprep.subr.bf16.mxu0 (!%p1391_p13), %v4111_v32  ;;  %v4116_v37 = vld [vmem:[%s5040_s30 + $0x48] sm:$0xff] (!%p1391_p13)   ;;  %v4120_v41 = vld [vmem:[%s5040_s30 + $0x50] sm:$0xff] (!%p1391_p13)  }
  0xe7   : > { %v4113_v34 = vld [vmem:[%s5040_s30 + $0x80] sm:$0xff] (!%p1391_p13)   ;;  %3857 = vmatprep.subr.bf16.mxu1 (!%p1391_p13), %v4112_v33  ;;  %v4117_v38 = vld [vmem:[%s5040_s30 + $0x88] sm:$0xff] (!%p1391_p13)   ;;  %v4121_v42 = vld [vmem:[%s5040_s30 + $0x90] sm:$0xff] (!%p1391_p13)  }
  0xe8   : > { %v4114_v35 = vld [vmem:[%s5040_s30] sm:$0xff]   ;;  %3836 = vmatpush3.bf16.msra.mxu0 %v4113_v34  ;;  %v4118_v39 = vld [vmem:[%s5040_s30 + $0x8] sm:$0xff]   ;;  %v4122_v43 = vld [vmem:[%s5040_s30 + $0x10] sm:$0xff]   ;;  %s1433_s17 = scalar_select %p1432_p0, %s4327_s19, 1 }
  0xe9   : > { %3858 = vmatpush3.bf16.msra.mxu1 %v4114_v35  ;;  %3837 = vmatprep.subr.bf16.mxu0 %v4115_v36  ;;  %v4123_v44 = vld [vmem:[%s5040_s30 + $0xd8] sm:$0xff]   ;;  %v4127_v48 = vld [vmem:[%s5040_s30 + $0xe0] sm:$0xff]   ;;  %v4131_v52 = vld [vmem:[%s5040_s30 + $0xe8] sm:$0xff]   ;;  %s1438_s15 = scalar_select %p1437_p1, %s4331_s20, 1 }
  0xea   : > { %3859 = vmatprep.subr.bf16.mxu1 %v4116_v37  ;;  %v4124_v45 = vld [vmem:[%s5040_s30 + $0x58] sm:$0xff]   ;;  %v4128_v49 = vld [vmem:[%s5040_s30 + $0x60] sm:$0xff]   ;;  %v4132_v53 = vld [vmem:[%s5040_s30 + $0x68] sm:$0xff]   ;;  %s4036_s5 = smul.u32 48, %s1433_s17 }
  0xeb   : > { %v4125_v46 = vld [vmem:[%s5040_s30 + $0x98] sm:$0xff]   ;;  %v4129_v50 = vld [vmem:[%s5040_s30 + $0xa0] sm:$0xff]   ;;  %v4133_v54 = vld [vmem:[%s5040_s30 + $0xa8] sm:$0xff]   ;;  %s1439_s28 = scalar_lea.vmem %s5313_s2, %s1438_s15  ;;  %s1442_s17 = scalar_lea.vmem %s5314_s3, %s1438_s15 }
  0xec   : > { %3838 = vmatpush3.bf16.msra.mxu0 %v4117_v38  ;;  %v4126_v47 = vld [vmem:[%s5040_s30 + $0x18] sm:$0xff]   ;;  %v4130_v51 = vld [vmem:[%s5040_s30 + $0x20] sm:$0xff]   ;;  %v4134_v55 = vld [vmem:[%s5040_s30 + $0x28] sm:$0xff]   ;;  %s5077_s11 = scalar_lea.vmem %s5311_s0, %s4036_s5  ;;  %s4037_s5 = smul.u32 (%p4439_p9), 12, %s4327_s19 }
  0xed   : > { %3860 = vmatpush3.bf16.msra.mxu1 %v4118_v39  ;;  %3839 = vmatprep.subr.bf16.mxu0 %v4119_v40  ;;  %v4135_v56 = vld [vmem:[%s5040_s30 + $0xf0] sm:$0xff]   ;;  %v4139_v60 = vld [vmem:[%s5040_s30 + $0xf8] sm:$0xff]   ;;  %v1450_v0 = vld [vmem:[%s5077_s11 + $0x8] sm:$0xff] }
  0xee   : > { %3861 = vmatprep.subr.bf16.mxu1 %v4120_v41  ;;  %v4136_v57 = vld [vmem:[%s5040_s30 + $0x70] sm:$0xff]   ;;  %v4140_v61 = vld [vmem:[%s5040_s30 + $0x78] sm:$0xff]   ;;  %v4147_v7 = vld [vmem:[%s5040_s30 + $0x140] sm:$0xff]   ;;  %s3229_s6 = sadd.s32 (%p4439_p9), %s4331_s20, %s4037_s5 }
  0xef   : > { %v4137_v58 = vld [vmem:[%s5040_s30 + $0xb0] sm:$0xff]   ;;  %v4141_v62 = vld [vmem:[%s5040_s30 + $0xb8] sm:$0xff]   ;;  %v4149_v14 = vld [vmem:[%s5040_s30 + $0x1c0] sm:$0xff]   ;;  %s3824_s10 = sshll.u32 (%p4439_p9), %s3229_s6, 2 }
  0xf0   : > { %3840 = vmatpush3.bf16.msra.mxu0 %v4121_v42  ;;  %v4138_v59 = vld [vmem:[%s5040_s30 + $0x30] sm:$0xff]   ;;  %v4142_v63 = vld [vmem:[%s5040_s30 + $0x38] sm:$0xff]   ;;  %v4150_v15 = vld [vmem:[%s5040_s30 + $0x180] sm:$0xff]   ;;  %s3231_s12 = scalar_lea.vmem (%p4439_p9), %s5315_s4, %s3824_s10 }
  0xf1   : > { %3862 = vmatpush3.bf16.msra.mxu1 %v4122_v43  ;;  %3841 = vmatprep.subr.bf16.mxu0 %v4123_v44  ;;  %v5083_v1 = vld [vmem:[%s5077_s11 + $0x10] sm:$0xff]  ;;  %v1484_v2 = vld [vmem:[%s5077_s11 + $0x18] sm:$0x11]  ;;  %v4148_v21 = vld [vmem:[%s5040_s30 + $0x100] sm:$0xff]  }
  0xf2   : > { %3863 = vmatprep.subr.bf16.mxu1 %v4124_v45  ;;  %v3431_v3 = vcombine.high %v1450_v0, %v5083_v1  ;;  %v5087_v4 = vcombine.high %v1484_v2, %v1484_v2  ;;  %v3430_v5 = vcombine.low %v1450_v0, %v5083_v1  ;;  %v5090_v6 = vcombine.low %v1484_v2, %v1484_v2  ;;  %v4151_v23 = vld [vmem:[%s5040_s30 + $0x148] sm:$0xff]   ;;  %v4155_v29 = vld [vmem:[%s5040_s30 + $0x150] sm:$0xff]   ;;  %v4159_v33 = vld [vmem:[%s5040_s30 + $0x158] sm:$0xff]  }
  0xf3   : > { %v4153_v25 = vld [vmem:[%s5040_s30 + $0x1c8] sm:$0xff]   ;;  %v4157_v30 = vld [vmem:[%s5040_s30 + $0x1d0] sm:$0xff]   ;;  %v4161_v34 = vld [vmem:[%s5040_s30 + $0x1d8] sm:$0xff]  }
  0xf4   : > { %3842 = vmatpush3.bf16.msra.mxu0 %v4125_v46  ;;  %v1545_v8 = vshrl.u32 %v3431_v3, 16  ;;  %v1547_v9 = vshll.u32 %v3431_v3, 16  ;;  %v1552_v10 = vshll.u32 %v5087_v4, 16  ;;  %1825 = vmatprep.mubr.bf16.mxu1 %v3431_v3  ;;  %v1533_v11 = vshrl.u32 %v3430_v5, 16  ;;  %v4154_v27 = vld [vmem:[%s5040_s30 + $0x188] sm:$0xff]   ;;  %v4158_v31 = vld [vmem:[%s5040_s30 + $0x190] sm:$0xff]  }
  0xf5   : > { %3864 = vmatpush3.bf16.msra.mxu1 %v4126_v47  ;;  %3843 = vmatprep.subr.bf16.mxu0 %v4127_v48  ;;  %v1535_v12 = vshll.u32 %v3430_v5, 16  ;;  %v1540_v13 = vshll.u32 %v5090_v6, 16  ;;  %v4152_v28 = vld [vmem:[%s5040_s30 + $0x108] sm:$0xff]   ;;  %v4156_v32 = vld [vmem:[%s5040_s30 + $0x110] sm:$0xff]   ;;  %v4162_v35 = vld [vmem:[%s5040_s30 + $0x198] sm:$0xff]  }
  0xf6   : > { %3865 = vmatprep.subr.bf16.mxu1 %v4128_v49  ;;  %v1549_v16 = vrot.slane %v1547_v9, 1  ;;  %v1554_v17 = vrot.slane %v1552_v10, 1  ;;  %v4160_v36 = vld [vmem:[%s5040_s30 + $0x118] sm:$0xff]   ;;  %v4163_v37 = vld [vmem:[%s5040_s30 + $0x160] sm:$0xff]   ;;  %v4167_v41 = vld [vmem:[%s5040_s30 + $0x168] sm:$0xff]  }
  0xf7   : > { %v1537_v18 = vrot.slane %v1535_v12, 1  ;;  %v1542_v19 = vrot.slane %v1540_v13, 1  ;;  %v4165_v38 = vld [vmem:[%s5040_s30 + $0x1e0] sm:$0xff]   ;;  %v4169_v42 = vld [vmem:[%s5040_s30 + $0x1e8] sm:$0xff]   ;;  %v4171_v45 = vld [vmem:[%s5040_s30 + $0x170] sm:$0xff]  }
  0xf8   : > { %3844 = vmatpush3.bf16.msra.mxu0 %v4129_v50  ;;  %v1550_v20 = vor.u32 %v1549_v16, %v1545_v8  ;;  %v4166_v39 = vld [vmem:[%s5040_s30 + $0x1a0] sm:$0xff]   ;;  %v4170_v43 = vld [vmem:[%s5040_s30 + $0x1a8] sm:$0xff]   ;;  %v4173_v46 = vld [vmem:[%s5040_s30 + $0x1f0] sm:$0xff]  }
  0xf9   : > { %3866 = vmatpush3.bf16.msra.mxu1 %v4130_v51  ;;  %3845 = vmatprep.subr.bf16.mxu0 %v4131_v52  ;;  %v1538_v22 = vor.u32 %v1537_v18, %v1533_v11  ;;  %v4164_v40 = vld [vmem:[%s5040_s30 + $0x120] sm:$0xff]   ;;  %v4168_v44 = vld [vmem:[%s5040_s30 + $0x128] sm:$0xff]   ;;  %v4174_v47 = vld [vmem:[%s5040_s30 + $0x1b0] sm:$0xff]  }
  0xfa   : > { %3867 = vmatprep.subr.bf16.mxu1 %v4132_v53  ;;  %v1555_v24 = vsel %vm1531_vm0, %v1550_v20, %v1554_v17  ;;  %v4172_v48 = vld [vmem:[%s5040_s30 + $0x130] sm:$0xff]   ;;  %v4175_v49 = vld [vmem:[%s5040_s30 + $0x178] sm:$0xff]   ;;  %v1834_v51 = vld [vmem:[%s5077_s11 + $0x8] sm:$0xee]  ;;  %v1878_v53 = vrot.slane %v5087_v4, 1 }
  0xfb   : > { %1686 = vmatprep.mubr.bf16.mxu0 %v1555_v24  ;;  %v1543_v26 = vsel %vm1531_vm0, %v1538_v22, %v1542_v19  ;;  %v4177_v50 = vld [vmem:[%s5040_s30 + $0x1f8] sm:$0xff]   ;;  %v3499_v52 = vcombine.high %v1834_v51, %v5083_v1  ;;  %v4185_v2 = vld [vmem:[%s5040_s30 + $0x2c0] sm:$0xff]   ;;  %v4188_v8 = vld [vmem:[%s5040_s30 + $0x208] sm:$0xff]  }
  0xfc   : > { %3846 = vmatpush3.bf16.msra.mxu0 %v4133_v54  ;;  %v4179_v54 = vld [vmem:[%s5040_s30 + $0x1b8] sm:$0xff]   ;;  %v4186_v3 = vld [vmem:[%s5040_s30 + $0x280] sm:$0xff]   ;;  %v4191_v9 = vld [vmem:[%s5040_s30 + $0x250] sm:$0xff]  }
  0xfd   : > { %3868 = vmatpush3.bf16.msra.mxu1 %v4134_v55  ;;  %3847 = vmatprep.subr.bf16.mxu0 %v4135_v56  ;;  %v3498_v55 = vcombine.low %v1834_v51, %v5083_v1  ;;  %v4176_v56 = vld [vmem:[%s5040_s30 + $0x138] sm:$0xff]   ;;  %v4184_v4 = vld [vmem:[%s5040_s30 + $0x200] sm:$0xff]   ;;  %v4193_v10 = vld [vmem:[%s5040_s30 + $0x2d0] sm:$0xff]  }
  0xfe   : > { %3869 = vmatprep.subr.bf16.mxu1 %v4136_v57  ;;  %v1875_v57 = vrot.slane %v5090_v6, 1  ;;  %v4189_v6 = vld [vmem:[%s5040_s30 + $0x2c8] sm:$0xff]   ;;  %v4194_v11 = vld [vmem:[%s5040_s30 + $0x290] sm:$0xff]   ;;  %v4195_v13 = vld [vmem:[%s5040_s30 + $0x258] sm:$0xff]  }
  0xff   : > { %v4192_v12 = vld [vmem:[%s5040_s30 + $0x210] sm:$0xff]   ;;  %v4196_v16 = vld [vmem:[%s5040_s30 + $0x218] sm:$0xff]   ;;  %v4199_v17 = vld [vmem:[%s5040_s30 + $0x260] sm:$0xff]  }
 0x100   : > { %3848 = vmatpush3.bf16.msra.mxu0 %v4137_v58  ;;  %v5134_v58 = vld [vmem:[%s5077_s11 + $0x18] sm:$0xff]  ;;  %v4201_v18 = vld [vmem:[%s5040_s30 + $0x2e0] sm:$0xff]   ;;  %v4205_v22 = vld [vmem:[%s5040_s30 + $0x2e8] sm:$0xff]  }
 0x101   : > { %3870 = vmatpush3.bf16.msra.mxu1 %v4138_v59  ;;  %3849 = vmatprep.subr.bf16.mxu0 %v4139_v60  ;;  %v1877_v59 = vrot.slane %v3499_v52, 1  ;;  %v1874_v60 = vrot.slane %v3498_v55, 1  ;;  %v4202_v19 = vld [vmem:[%s5040_s30 + $0x2a0] sm:$0xff]  }
 0x102   : > { %3871 = vmatprep.subr.bf16.mxu1 %v4140_v61  ;;  %v5138_v61 = vcombine.low %v5083_v1, %v5134_v58  ;;  %v4200_v20 = vld [vmem:[%s5040_s30 + $0x220] sm:$0xff]  }
 0x103   : > { %v1879_v0 = vsel %vm1873_vm1, %v1877_v59, %v1878_v53  ;;  %v4221_v53 = vld [vmem:[%s5040_s30 + $0x3c0] sm:$0xff]  }
 0x104   : > { %3850 = vmatpush3.bf16.msra.mxu0 %v4141_v62  ;;  %v5142_v62 = vcombine.high %v5083_v1, %v5134_v58  ;;  %v1876_v1 = vsel %vm1873_vm1, %v1874_v60, %v1875_v57  ;;  %v4222_v57 = vld [vmem:[%s5040_s30 + $0x380] sm:$0xff]   ;;  %v4223_v60 = vld [vmem:[%s5040_s30 + $0x348] sm:$0xff]  }
 0x105   : > { %3872 = vmatpush3.bf16.msra.mxu1 %v4142_v63  ;;  %3879 = vmatprep.subr.bf16.mxu0 %v4147_v7  ;;  %v4181_v63 = vld [vmem:[%s5040_s30 + $0x240] sm:$0xff]   ;;  %v4190_v7 = vld [vmem:[%s5040_s30 + $0x288] sm:$0xff]  }
 0x106   : > { %3901 = vmatprep.subr.bf16.mxu1 %v4149_v14  ;;  %v4197_v14 = vld [vmem:[%s5040_s30 + $0x2d8] sm:$0xff]   ;;  %v2265_v24 = vshll.u32 %v5142_v62, 16 }
 0x107   : > { %1687 = vmatmul.mubr.bf16.vlgmr.msra.gmra.mrb[0].mxu0 %v1543_v26  ;;  %v2253_v26 = vshll.u32 %v5138_v61, 16 }
 0x108   : > { %1826 = vmatmul.mubr.bf16.vlgmr.msra.gmra.mrb[0].mxu1 %v3430_v5  ;;  %3880 = vmatpush3.bf16.msra.mxu0 %v4148_v21  ;;  %v4187_v5 = vld [vmem:[%s5040_s30 + $0x248] sm:$0xff]  }
 0x109   : > { %3902 = vmatpush3.bf16.msra.mxu1 %v4150_v15  ;;  %3881 = vmatprep.subr.bf16.mxu0 %v4151_v23  ;;  %v4198_v15 = vld [vmem:[%s5040_s30 + $0x298] sm:$0xff]   ;;  %v4203_v21 = vld [vmem:[%s5040_s30 + $0x268] sm:$0xff]  }
 0x10a   : > { %3903 = vmatprep.subr.bf16.mxu1 %v4153_v25  ;;  %2190 = vmatprep.mubr.bf16.mxu1 %v5142_v62  ;;  %v4206_v23 = vld [vmem:[%s5040_s30 + $0x2a8] sm:$0xff]  }
 0x10b   : > { %2010 = vmatprep.mubr.bf16.mxu0 %v1879_v0  ;;  %v4204_v25 = vld [vmem:[%s5040_s30 + $0x228] sm:$0xff]  }
 0x10c   : > { %3882 = vmatpush3.bf16.msra.mxu0 %v4152_v28  ;;  %v2263_v28 = vshrl.u32 %v5142_v62, 16 }
 0x10d   : > { %3904 = vmatpush3.bf16.msra.mxu1 %v4154_v27  ;;  %3883 = vmatprep.subr.bf16.mxu0 %v4155_v29  ;;  %v4207_v27 = vld [vmem:[%s5040_s30 + $0x270] sm:$0xff]  }
 0x10e   : > { %3905 = vmatprep.subr.bf16.mxu1 %v4157_v30  ;;  %v4209_v29 = vld [vmem:[%s5040_s30 + $0x2f0] sm:$0xff]   ;;  %v2251_v30 = vshrl.u32 %v5138_v61, 16 }
 0x110   : > { %3884 = vmatpush3.bf16.msra.mxu0 %v4156_v32  ;;  %v2267_v32 = vrot.slane %v2265_v24, 1  ;;  %v4247_v24 = vld [vmem:[%s5040_s30 + $0x378] sm:$0xff]  }
 0x111   : > { %3906 = vmatpush3.bf16.msra.mxu1 %v4158_v31  ;;  %3885 = vmatprep.subr.bf16.mxu0 %v4159_v33  ;;  %v4210_v31 = vld [vmem:[%s5040_s30 + $0x2b0] sm:$0xff]  }
 0x112   : > { %3907 = vmatprep.subr.bf16.mxu1 %v4161_v34  ;;  %v4208_v33 = vld [vmem:[%s5040_s30 + $0x230] sm:$0xff]   ;;  %v2255_v34 = vrot.slane %v2253_v26, 1  ;;  %v4249_v26 = vld [vmem:[%s5040_s30 + $0x3f8] sm:$0xff]  }
 0x114   : > { %3886 = vmatpush3.bf16.msra.mxu0 %v4160_v36  ;;  %v4213_v36 = vld [vmem:[%s5040_s30 + $0x2f8] sm:$0xff]  }
 0x115   : > { %3908 = vmatpush3.bf16.msra.mxu1 %v4162_v35  ;;  %3887 = vmatprep.subr.bf16.mxu0 %v4163_v37  ;;  %v4211_v35 = vld [vmem:[%s5040_s30 + $0x278] sm:$0xff]   ;;  %v2203_v37 = vld [vmem:[%s5077_s11 + $0x20] sm:$0x11] }
 0x116   : > { %3909 = vmatprep.subr.bf16.mxu1 %v4165_v38  ;;  %v3601_v38 = vcombine.high %v2203_v37, %v2203_v37 }
 0x118   : > { %3888 = vmatpush3.bf16.msra.mxu0 %v4164_v40  ;;  %v3600_v40 = vcombine.low %v2203_v37, %v2203_v37 }
 0x119   : > { %3910 = vmatpush3.bf16.msra.mxu1 %v4166_v39  ;;  %3889 = vmatprep.subr.bf16.mxu0 %v4167_v41  ;;  %v4215_v39 = vld [vmem:[%s5040_s30 + $0x2b8] sm:$0xff]  }
 0x11a   : > { %3911 = vmatprep.subr.bf16.mxu1 %v4169_v42  ;;  %v4212_v41 = vld [vmem:[%s5040_s30 + $0x238] sm:$0xff]   ;;  %v2268_v42 = vor.u32 %v2267_v32, %v2263_v28  ;;  %v2455_v52 = vrot.slane %v3600_v40, 1  ;;  %v2783_v32 = vld [vmem:[%s5077_s11 + $0x28] sm:$0x11] }
 0x11c   : > { %3890 = vmatpush3.bf16.msra.mxu0 %v4168_v44  ;;  %v2415_v44 = vld [vmem:[%s5077_s11 + $0x10] sm:$0xee] }
 0x11d   : > { %3912 = vmatpush3.bf16.msra.mxu1 %v4170_v43  ;;  %3891 = vmatprep.subr.bf16.mxu0 %v4171_v45  ;;  %v2256_v43 = vor.u32 %v2255_v34, %v2251_v30  ;;  %v2270_v45 = vshll.u32 %v3601_v38, 16  ;;  %v3650_v51 = vcombine.low %v2415_v44, %v5134_v58  ;;  %v4252_v30 = vld [vmem:[%s5040_s30 + $0x3b8] sm:$0xff]  }
 0x11e   : > { %3913 = vmatprep.subr.bf16.mxu1 %v4173_v46  ;;  %v2258_v46 = vshll.u32 %v3600_v40, 16  ;;  %v4255_v40 = vld [vmem:[%s5040_s30 + $0x400] sm:$0xff]  }
 0x11f   : > { %v2454_v59 = vrot.slane %v3650_v51, 1  ;;  %v4259_v51 = vld [vmem:[%s5040_s30 + $0x450] sm:$0xff]  }
 0x120   : > { %3892 = vmatpush3.bf16.msra.mxu0 %v4172_v48  ;;  %v3651_v48 = vcombine.high %v2415_v44, %v5134_v58  ;;  %v2260_v55 = vrot.slane %v2258_v46, 1 }
 0x121   : > { %3914 = vmatpush3.bf16.msra.mxu1 %v4174_v47  ;;  %3893 = vmatprep.subr.bf16.mxu0 %v4175_v49  ;;  %v4217_v47 = vld [vmem:[%s5040_s30 + $0x340] sm:$0xff]   ;;  %v2458_v49 = vrot.slane %v3601_v38, 1  ;;  %v2456_v0 = vsel %vm1873_vm1, %v2454_v59, %v2455_v52  ;;  %v4260_v52 = vld [vmem:[%s5040_s30 + $0x410] sm:$0xff]  }
 0x122   : > { %3915 = vmatprep.subr.bf16.mxu1 %v4177_v50  ;;  %v4219_v50 = vld [vmem:[%s5040_s30 + $0x300] sm:$0xff]   ;;  %v2261_v62 = vsel %vm1531_vm0, %v2256_v43, %v2260_v55  ;;  %v4257_v43 = vld [vmem:[%s5040_s30 + $0x448] sm:$0xff]  }
 0x123   : > { %v4263_v55 = vld [vmem:[%s5040_s30 + $0x460] sm:$0xff]  }
 0x124   : > { %3894 = vmatpush3.bf16.msra.mxu0 %v4176_v56  ;;  %v2457_v56 = vrot.slane %v3651_v48, 1  ;;  %v4258_v48 = vld [vmem:[%s5040_s30 + $0x408] sm:$0xff]  }
 0x125   : > { %3916 = vmatpush3.bf16.msra.mxu1 %v4179_v54  ;;  %3923 = vmatprep.subr.bf16.mxu0 %v4181_v63  ;;  %v2272_v54 = vrot.slane %v2270_v45, 1 }
 0x126   : > { %3945 = vmatprep.subr.bf16.mxu1 %v4185_v2  ;;  %v2459_v63 = vsel %vm1873_vm1, %v2457_v56, %v2458_v49  ;;  %v4224_v2 = vld [vmem:[%s5040_s30 + $0x308] sm:$0xff]   ;;  %v2995_v56 = vld [vmem:[%s5077_s11 + $0x18] sm:$0xee] }
 0x127   : > { %2011 = vmatmul.mubr.bf16.vlgmr.msra.gmra.mrb[4].mxu0 %v1876_v1  ;;  %v4226_v1 = vld [vmem:[%s5040_s30 + $0x388] sm:$0xff]  }
 0x128   : > { %2191 = vmatmul.mubr.bf16.vlgmr.msra.gmra.mrb[4].mxu1 %v5138_v61  ;;  %3924 = vmatpush3.bf16.msra.mxu0 %v4184_v4  ;;  %v2273_v61 = vsel %vm1531_vm0, %v2268_v42, %v2272_v54  ;;  %v4227_v4 = vld [vmem:[%s5040_s30 + $0x350] sm:$0xff]   ;;  %v4262_v54 = vld [vmem:[%s5040_s30 + $0x418] sm:$0xff]  }
 0x129   : > { %3946 = vmatpush3.bf16.msra.mxu1 %v4186_v3  ;;  %3925 = vmatprep.subr.bf16.mxu0 %v4187_v5  ;;  %v4225_v3 = vld [vmem:[%s5040_s30 + $0x3c8] sm:$0xff]   ;;  %v4228_v5 = vld [vmem:[%s5040_s30 + $0x310] sm:$0xff]  }
 0x12a   : > { %3947 = vmatprep.subr.bf16.mxu1 %v4189_v6  ;;  %2404 = vmatprep.mubr.bf16.mxu0 %v2273_v61  ;;  %v4229_v6 = vld [vmem:[%s5040_s30 + $0x3d0] sm:$0xff]   ;;  %v4265_v61 = vld [vmem:[%s5040_s30 + $0x468] sm:$0xff]  }
 0x12b   : > { %2590 = vmatprep.mubr.bf16.mxu1 %v2459_v63 }
 0x12c   : > { %3926 = vmatpush3.bf16.msra.mxu0 %v4188_v8  ;;  %v4231_v8 = vld [vmem:[%s5040_s30 + $0x358] sm:$0xff]  }
 0x12d   : > { %3948 = vmatpush3.bf16.msra.mxu1 %v4190_v7  ;;  %3927 = vmatprep.subr.bf16.mxu0 %v4191_v9  ;;  %v4230_v7 = vld [vmem:[%s5040_s30 + $0x390] sm:$0xff]   ;;  %v4232_v9 = vld [vmem:[%s5040_s30 + $0x318] sm:$0xff]  }
 0x12e   : > { %3949 = vmatprep.subr.bf16.mxu1 %v4193_v10  ;;  %v4233_v10 = vld [vmem:[%s5040_s30 + $0x3d8] sm:$0xff]  }
 0x130   : > { %3928 = vmatpush3.bf16.msra.mxu0 %v4192_v12  ;;  %v4235_v12 = vld [vmem:[%s5040_s30 + $0x360] sm:$0xff]  }
 0x131   : > { %3950 = vmatpush3.bf16.msra.mxu1 %v4194_v11  ;;  %3929 = vmatprep.subr.bf16.mxu0 %v4195_v13  ;;  %v4234_v11 = vld [vmem:[%s5040_s30 + $0x398] sm:$0xff]   ;;  %v4236_v13 = vld [vmem:[%s5040_s30 + $0x320] sm:$0xff]  }
 0x132   : > { %3951 = vmatprep.subr.bf16.mxu1 %v4197_v14  ;;  %v4237_v14 = vld [vmem:[%s5040_s30 + $0x3e0] sm:$0xff]  }
 0x134   : > { %3930 = vmatpush3.bf16.msra.mxu0 %v4196_v16  ;;  %v4239_v16 = vld [vmem:[%s5040_s30 + $0x368] sm:$0xff]  }
 0x135   : > { %3952 = vmatpush3.bf16.msra.mxu1 %v4198_v15  ;;  %3931 = vmatprep.subr.bf16.mxu0 %v4199_v17  ;;  %v4238_v15 = vld [vmem:[%s5040_s30 + $0x3a0] sm:$0xff]   ;;  %v4240_v17 = vld [vmem:[%s5040_s30 + $0x328] sm:$0xff]  }
 0x136   : > { %3953 = vmatprep.subr.bf16.mxu1 %v4201_v18  ;;  %v4241_v18 = vld [vmem:[%s5040_s30 + $0x3e8] sm:$0xff]  }
 0x138   : > { %3932 = vmatpush3.bf16.msra.mxu0 %v4200_v20  ;;  %v4243_v20 = vld [vmem:[%s5040_s30 + $0x370] sm:$0xff]  }
 0x139   : > { %3954 = vmatpush3.bf16.msra.mxu1 %v4202_v19  ;;  %3933 = vmatprep.subr.bf16.mxu0 %v4203_v21  ;;  %v4242_v19 = vld [vmem:[%s5040_s30 + $0x3a8] sm:$0xff]   ;;  %v4244_v21 = vld [vmem:[%s5040_s30 + $0x330] sm:$0xff]  }
 0x13a   : > { %3955 = vmatprep.subr.bf16.mxu1 %v4205_v22  ;;  %v4245_v22 = vld [vmem:[%s5040_s30 + $0x3f0] sm:$0xff]  }
 0x13c   : > { %3934 = vmatpush3.bf16.msra.mxu0 %v4204_v25  ;;  %v4248_v25 = vld [vmem:[%s5040_s30 + $0x338] sm:$0xff]  }
 0x13d   : > { %3956 = vmatpush3.bf16.msra.mxu1 %v4206_v23  ;;  %3935 = vmatprep.subr.bf16.mxu0 %v4207_v27  ;;  %v4246_v23 = vld [vmem:[%s5040_s30 + $0x3b0] sm:$0xff]   ;;  %v5224_v27 = vld [vmem:[%s5077_s11 + $0x20] sm:$0xff] }
 0x13e   : > { %3957 = vmatprep.subr.bf16.mxu1 %v4209_v29  ;;  %v3700_v28 = vcombine.low %v5134_v58, %v5224_v27  ;;  %v3701_v29 = vcombine.high %v5134_v58, %v5224_v27 }
 0x140   : > { %3936 = vmatpush3.bf16.msra.mxu0 %v4208_v33  ;;  %v2843_v33 = vshrl.u32 %v3701_v29, 16  ;;  %v2845_v34 = vshll.u32 %v3701_v29, 16  ;;  %v2831_v37 = vshrl.u32 %v3700_v28, 16  ;;  %v2833_v38 = vshll.u32 %v3700_v28, 16 }
 0x141   : > { %3958 = vmatpush3.bf16.msra.mxu1 %v4210_v31  ;;  %3937 = vmatprep.subr.bf16.mxu0 %v4211_v35  ;;  %v4253_v31 = vld [vmem:[%s5040_s30 + $0x440] sm:$0xff]   ;;  %v3753_v35 = vcombine.high %v2783_v32, %v2783_v32 }
 0x142   : > { %3959 = vmatprep.subr.bf16.mxu1 %v4213_v36  ;;  %v3752_v36 = vcombine.low %v2783_v32, %v2783_v32 }
 0x143   : > { %v2850_v58 = vshll.u32 %v3753_v35, 16  ;;  %v3038_v59 = vrot.slane %v3753_v35, 1 }
 0x144   : > { %3938 = vmatpush3.bf16.msra.mxu0 %v4212_v41  ;;  %v2835_v41 = vrot.slane %v2833_v38, 1  ;;  %v2838_v42 = vshll.u32 %v3752_v36, 16 }
 0x145   : > { %3960 = vmatpush3.bf16.msra.mxu1 %v4215_v39  ;;  %3967 = vmatprep.subr.bf16.mxu0 %v4217_v47  ;;  %v2847_v39 = vrot.slane %v2845_v34, 1  ;;  %v2852_v45 = vrot.slane %v2850_v58, 1 }
 0x146   : > { %3989 = vmatprep.subr.bf16.mxu1 %v4221_v53  ;;  %v2836_v46 = vor.u32 %v2835_v41, %v2831_v37  ;;  %v2840_v47 = vrot.slane %v2838_v42, 1  ;;  %v4261_v53 = vld [vmem:[%s5040_s30 + $0x458] sm:$0xff]  }
 0x147   : > { %2405 = vmatmul.mubr.bf16.vlgmr.msra.gmra.mrb[8].mxu0 %v2261_v62  ;;  %v2848_v44 = vor.u32 %v2847_v39, %v2843_v33 }
 0x148   : > { %2591 = vmatmul.mubr.bf16.vlgmr.msra.gmra.mrb[8].mxu1 %v2456_v0  ;;  %3968 = vmatpush3.bf16.msra.mxu0 %v4219_v50  ;;  %v2841_v50 = vsel %vm1531_vm0, %v2836_v46, %v2840_v47  ;;  %v4266_v0 = vld [vmem:[%s5040_s30 + $0x428] sm:$0xff]  }
 0x149   : > { %3990 = vmatpush3.bf16.msra.mxu1 %v4222_v57  ;;  %3969 = vmatprep.subr.bf16.mxu0 %v4223_v60  ;;  %v2853_v49 = vsel %vm1531_vm0, %v2848_v44, %v2852_v45  ;;  %v3803_v57 = vcombine.high %v2995_v56, %v5224_v27  ;;  %v4264_v60 = vld [vmem:[%s5040_s30 + $0x420] sm:$0xff]  }
 0x14a   : > { %3991 = vmatprep.subr.bf16.mxu1 %v4225_v3  ;;  %2770 = vmatprep.mubr.bf16.mxu0 %v3701_v29  ;;  %v4268_v3 = vld [vmem:[%s5040_s30 + $0x430] sm:$0xff]  }
 0x14b   : > { %2984 = vmatprep.mubr.bf16.mxu1 %v2853_v49  ;;  %v3037_v62 = vrot.slane %v3803_v57, 1 }
 0x14c   : > { %3970 = vmatpush3.bf16.msra.mxu0 %v4224_v2  ;;  %v4267_v2 = vld [vmem:[%s5040_s30 + $0x470] sm:$0xff]  }
 0x14d   : > { %3992 = vmatpush3.bf16.msra.mxu1 %v4226_v1  ;;  %3971 = vmatprep.subr.bf16.mxu0 %v4227_v4  ;;  %v3039_v63 = vsel %vm1873_vm1, %v3037_v62, %v3038_v59  ;;  %v3802_v1 = vcombine.low %v2995_v56, %v5224_v27  ;;  %v4269_v4 = vld [vmem:[%s5040_s30 + $0x478] sm:$0xff]  }
 0x14e   : > { %3993 = vmatprep.subr.bf16.mxu1 %v4229_v6 }
 0x14f   : > { %v3034_v6 = vrot.slane %v3802_v1, 1 }
 0x150   : > { %3972 = vmatpush3.bf16.msra.mxu0 %v4228_v5  ;;  %v4270_v5 = vld [vmem:[%s5040_s30 + $0x438] sm:$0xff]  }
 0x151   : > { %3994 = vmatpush3.bf16.msra.mxu1 %v4230_v7  ;;  %3973 = vmatprep.subr.bf16.mxu0 %v4231_v8  ;;  %v3035_v7 = vrot.slane %v3752_v36, 1 }
 0x152   : > { %3995 = vmatprep.subr.bf16.mxu1 %v4233_v10 }
 0x153   : > { %v3036_v8 = vsel %vm1873_vm1, %v3034_v6, %v3035_v7 }
 0x154   : > { %3974 = vmatpush3.bf16.msra.mxu0 %v4232_v9 }
 0x155   : > { %3996 = vmatpush3.bf16.msra.mxu1 %v4234_v11  ;;  %3975 = vmatprep.subr.bf16.mxu0 %v4235_v12 }
 0x156   : > { %3997 = vmatprep.subr.bf16.mxu1 %v4237_v14 }
 0x158   : > { %3976 = vmatpush3.bf16.msra.mxu0 %v4236_v13 }
 0x159   : > { %3998 = vmatpush3.bf16.msra.mxu1 %v4238_v15  ;;  %3977 = vmatprep.subr.bf16.mxu0 %v4239_v16 }
 0x15a   : > { %3999 = vmatprep.subr.bf16.mxu1 %v4241_v18 }
 0x15c   : > { %3978 = vmatpush3.bf16.msra.mxu0 %v4240_v17 }
 0x15d   : > { %4000 = vmatpush3.bf16.msra.mxu1 %v4242_v19  ;;  %3979 = vmatprep.subr.bf16.mxu0 %v4243_v20 }
 0x15e   : > { %4001 = vmatprep.subr.bf16.mxu1 %v4245_v22 }
 0x160   : > { %3980 = vmatpush3.bf16.msra.mxu0 %v4244_v21 }
 0x161   : > { %4002 = vmatpush3.bf16.msra.mxu1 %v4246_v23  ;;  %3981 = vmatprep.subr.bf16.mxu0 %v4247_v24  ;;  %v4345_v23 = vmov 0  }
 0x162   : > { %4003 = vmatprep.subr.bf16.mxu1 %v4249_v26  ;;  %1446 = vst [vmem:[%s5256_s14] sm:$0xf] %v4345_v23  ;;  %1447 = vst [vmem:[%s5256_s14 + $0x4] sm:$0xf] %v4345_v23 }
 0x163   : > { %1448 = vst [vmem:[%s5256_s14 + $0x10] sm:$0xf] %v4345_v23  ;;  %1449 = vst [vmem:[%s5256_s14 + $0x14] sm:$0xf] %v4345_v23 }
 0x164   : > { %3982 = vmatpush3.bf16.msra.mxu0 %v4248_v25 }
 0x165   : > { %4004 = vmatpush3.bf16.msra.mxu1 %v4252_v30  ;;  %4011 = vmatprep.subr.bf16.mxu0 %v4253_v31 }
 0x167   : > { %2771 = vmatmul.mubr.bf16.vlgmr.msra.gmra.mrb[12].mxu0 %v3700_v28 }
 0x168   : > { %4012 = vmatpush3.bf16.msra.mxu0 %v4255_v40  ;;  %2985 = vmatmul.mubr.bf16.vlgmr.msra.gmra.mrb[12].mxu1 %v2841_v50 }
 0x169   : > { %4013 = vmatprep.subr.bf16.mxu0 %v4257_v43  ;;  %3170 = vmatprep.mubr.bf16.mxu0 %v3039_v63 }
 0x16c   : > { %4014 = vmatpush3.bf16.msra.mxu0 %v4258_v48 }
 0x16d   : > { %4015 = vmatprep.subr.bf16.mxu0 %v4259_v51 }
 0x170   : > { %4016 = vmatpush3.bf16.msra.mxu0 %v4260_v52 }
 0x171   : > { %4017 = vmatprep.subr.bf16.mxu0 %v4261_v53 }
 0x174   : > { %4018 = vmatpush3.bf16.msra.mxu0 %v4262_v54 }
 0x175   : > { %4019 = vmatprep.subr.bf16.mxu0 %v4263_v55 }
 0x178   : > { %4020 = vmatpush3.bf16.msra.mxu0 %v4264_v60 }
 0x179   : > { %4021 = vmatprep.subr.bf16.mxu0 %v4265_v61 }
 0x17c   : > { %4022 = vmatpush3.bf16.msra.mxu0 %v4266_v0 }
 0x17d   : > { %4023 = vmatprep.subr.bf16.mxu0 %v4267_v2 }
 0x180   : > { %4024 = vmatpush3.bf16.msra.mxu0 %v4268_v3 }
 0x181   : > { %4025 = vmatprep.subr.bf16.mxu0 %v4269_v4 }
 0x184   : > { %4026 = vmatpush3.bf16.msra.mxu0 %v4270_v5 }
 0x187   : > { %3171 = vmatmul.mubr.bf16.vlgmr.msra.gmra.mrb[16].mxu0 %v3036_v8 }
 0x1da   : > { %v3851_v15 = vpop.f32.mrb[0].mxu0 }
 0x1db   : > { %v3873_v9 = vpop.f32.mrb[0].mxu1  ;;  %v3852_v16 = vpop.f32.mrb[1].mxu0 }
 0x1dc   : > { %v3874_v10 = vpop.f32.mrb[1].mxu1  ;;  %v3853_v17 = vadd.f32 %v3852_v16, %v3851_v15  ;;  %v3854_v18 = vpop.f32.mrb[2].mxu0  ;;  %v3821_v16 = vld [vmem:[%s1442_s17] ss:$0 sm:$0xff] }
 0x1dd   : > { %v3875_v11 = vadd.f32 %v3874_v10, %v3873_v9  ;;  %v3876_v12 = vpop.f32.mrb[2].mxu1  ;;  %v3855_v19 = vpop.f32.mrb[3].mxu0 }
 0x1de   : > { %v3877_v13 = vpop.f32.mrb[3].mxu1  ;;  %v3856_v21 = vadd.f32 %v3855_v19, %v3854_v18 }
 0x1df   : > { %v3878_v14 = vadd.f32 %v3877_v13, %v3876_v12  ;;  %v1828_v20 = vadd.f32 %v3875_v11, %v3853_v17  ;;  %v3820_v12 = vld [vmem:[%s1439_s28] ss:$0 sm:$0xff] }
 0x1e1   : > { %v1831_v22 = vadd.f32 %v3878_v14, %v3856_v21 }
 0x1fa   : > { %v3895_v29 = vpop.f32.mrb[4].mxu0 }
 0x1fb   : > { %v3917_v24 = vpop.f32.mrb[4].mxu1  ;;  %v3896_v31 = vpop.f32.mrb[5].mxu0 }
 0x1fc   : > { %v3918_v25 = vpop.f32.mrb[5].mxu1  ;;  %v3897_v32 = vadd.f32 %v3896_v31, %v3895_v29  ;;  %v3898_v33 = vpop.f32.mrb[6].mxu0  ;;  %v3247_v31 = vld [vmem:[%s5256_s14] sm:$0xf] (%p4439_p9) }
 0x1fd   : > { %v3919_v26 = vadd.f32 %v3918_v25, %v3917_v24  ;;  %v3920_v27 = vpop.f32.mrb[6].mxu1  ;;  %v3899_v34 = vpop.f32.mrb[7].mxu0  ;;  %3248 = vst [vmem:[%s3231_s12] sm:$0xf] (%p4439_p9), %v3247_v31 }
 0x1fe   : > { %v3921_v28 = vpop.f32.mrb[7].mxu1  ;;  %v2019_v35 = vadd.f32 %v3897_v32, %v1828_v20  ;;  %v3900_v36 = vadd.f32 %v3899_v34, %v3898_v33  ;;  %v3249_v32 = vld [vmem:[%s5256_s14 + $0x4] sm:$0xf] (%p4439_p9) }
 0x1ff   : > { %v3922_v30 = vadd.f32 %v3921_v28, %v3920_v27  ;;  %3250 = vst [vmem:[%s3231_s12 + $0x8] sm:$0xf] (%p4439_p9), %v3249_v32 }
 0x200   : > { %v2020_v37 = vadd.f32 %v3900_v36, %v1831_v22  ;;  %v2199_v38 = vadd.f32 %v3919_v26, %v2019_v35  ;;  %v3255_v35 = vld [vmem:[%s5256_s14 + $0x10] sm:$0xf] (%p4439_p9)  ;;  %v3257_v36 = vld [vmem:[%s5256_s14 + $0x14] sm:$0xf] (%p4439_p9) }
 0x201   : > { %3256 = vst [vmem:[%s3231_s12 + $0x20] sm:$0xf] (%p4439_p9), %v3255_v35  ;;  %3258 = vst [vmem:[%s3231_s12 + $0x28] sm:$0xf] (%p4439_p9), %v3257_v36 }
 0x202   : > { %v2200_v39 = vadd.f32 %v3922_v30, %v2020_v37 }
 0x21a   : > { %v3939_v40 = vpop.f32.mrb[8].mxu0 }
 0x21b   : > { %v3961_v58 = vpop.f32.mrb[8].mxu1  ;;  %v3940_v41 = vpop.f32.mrb[9].mxu0 }
 0x21c   : > { %v3962_v42 = vpop.f32.mrb[9].mxu1  ;;  %v3941_v43 = vadd.f32 %v3940_v41, %v3939_v40  ;;  %v3942_v44 = vpop.f32.mrb[10].mxu0 }
 0x21d   : > { %v3963_v45 = vadd.f32 %v3962_v42, %v3961_v58  ;;  %v3964_v46 = vpop.f32.mrb[10].mxu1  ;;  %v3943_v47 = vpop.f32.mrb[11].mxu0 }
 0x21e   : > { %v3965_v48 = vpop.f32.mrb[11].mxu1  ;;  %v2413_v49 = vadd.f32 %v3941_v43, %v2199_v38  ;;  %v3944_v50 = vadd.f32 %v3943_v47, %v3942_v44 }
 0x21f   : > { %v3966_v51 = vadd.f32 %v3965_v48, %v3964_v46 }
 0x220   : > { %v2414_v52 = vadd.f32 %v3944_v50, %v2200_v39  ;;  %v2599_v53 = vadd.f32 %v3963_v45, %v2413_v49 }
 0x222   : > { %v2600_v54 = vadd.f32 %v3966_v51, %v2414_v52 }
 0x23a   : > { %v3983_v55 = vpop.f32.mrb[12].mxu0 }
 0x23b   : > { %v3984_v56 = vpop.f32.mrb[13].mxu0  ;;  %v4005_v62 = vpop.f32.mrb[12].mxu1 }
 0x23c   : > { %v3985_v57 = vadd.f32 %v3984_v56, %v3983_v55  ;;  %v3986_v59 = vpop.f32.mrb[14].mxu0  ;;  %v4006_v0 = vpop.f32.mrb[13].mxu1 }
 0x23d   : > { %v3987_v60 = vpop.f32.mrb[15].mxu0  ;;  %v4007_v3 = vadd.f32 %v4006_v0, %v4005_v62  ;;  %v4008_v1 = vpop.f32.mrb[14].mxu1 }
 0x23e   : > { %v2779_v61 = vadd.f32 %v3985_v57, %v2599_v53  ;;  %v3988_v63 = vadd.f32 %v3987_v60, %v3986_v59  ;;  %v4009_v4 = vpop.f32.mrb[15].mxu1 }
 0x23f   : > { %v4010_v6 = vadd.f32 %v4009_v4, %v4008_v1 }
 0x240   : > { %v2780_v2 = vadd.f32 %v3988_v63, %v2600_v54  ;;  %v2993_v5 = vadd.f32 %v4007_v3, %v2779_v61 }
 0x242   : > { %v2994_v7 = vadd.f32 %v4010_v6, %v2780_v2 }
 0x25a   : > { %v4027_v8 = vpop.f32.mrb[16].mxu0 }
 0x25b   : > { %v4028_v9 = vpop.f32.mrb[17].mxu0 }
 0x25c   : > { %v4029_v10 = vadd.f32 %v4028_v9, %v4027_v8  ;;  %v4030_v11 = vpop.f32.mrb[18].mxu0 }
 0x25d   : > { %v4031_v13 = vpop.f32.mrb[19].mxu0 }
 0x25e   : > { %v3179_v14 = vadd.f32 %v4029_v10, %v2993_v5  ;;  %v4032_v15 = vadd.f32 %v4031_v13, %v4030_v11 }
 0x260   : > { %v3187_v17 = vmul.f32 %v3820_v12, %v3179_v14  ;;  %v3180_v18 = vadd.f32 %v4032_v15, %v2994_v7 }
 0x262   : > { %v3195_v19 = vadd.f32 %v3821_v16, %v3187_v17  ;;  %v3188_v20 = vmul.f32 %v3820_v12, %v3180_v18 }
 0x264   : > { %v3197_v21 = vmax.f32 %v3195_v19, 0.0  ;;  %v3196_v22 = vadd.f32 %v3821_v16, %v3188_v20 }
 0x266   : > { %v3201_v23 = vrot.slane %v3197_v21, 7  ;;  %v3198_v24 = vmax.f32 %v3196_v22, 0.0 }
 0x268   : > { %v3206_v25 = vsel %vm3205_vm2, 0.0, %v3201_v23  ;;  %v3202_v26 = vrot.slane %v3198_v24, 7  ;;  %3227 = sbr.rel (!%p4439_p9) target bundleno = 631 (0x277), region = 81 }
 0x269   : > { %v3209_v28 = vsel %vm3208_vm3, %v3206_v25, 0.0 }
 0x26a   : > { %v3207_v27 = vsel %vm3205_vm2, 0.0, %v3202_v26 }
 0x26b   : > { %v3210_v29 = vsel %vm3208_vm3, %v3207_v27, 0.0 }
 0x26c   : > { %v3832_v30 = vpack.c.bf16 %v3210_v29, %v3209_v28 }
 0x26e   : > { %3834 = vst [vmem:[%s5256_s14 + $0x8] sm:$0xff] %v3832_v30  }
 0x275   : > { %v3251_v33 = vld [vmem:[%s5256_s14 + $0x8] sm:$0xf]  ;;  %v3253_v34 = vld [vmem:[%s5256_s14 + $0xc] sm:$0xf] }
 0x276   : > { %3252 = vst [vmem:[%s3231_s12 + $0x10] sm:$0xf] %v3251_v33  ;;  %3254 = vst [vmem:[%s3231_s12 + $0x18] sm:$0xf] %v3253_v34 }
 0x277 PF: > { %s14_s23 = sadd.s32 1, %s4343_s23   ;;  %s5318_s15 = smov %s4315_s16 }
 0x278   : > { %p11_p2 = scmp.ge.s32.totalorder %s14_s23, 6   ;;  %s5319_s16 = smov %s4447_s9 }
 0x279   : > { %s5320_s17 = smov %s4323_s18  ;;  %s5321_s18 = smov %s4444_s8 }
 0x27a   : > { %s5322_s19 = smov %s4335_s21  ;;  %s5323_s20 = smov %s4339_s22 }
 0x27b   : > { %s5324_s21 = smov %s5327_s24  ;;  %s5325_s22 = smov %s5331_s25 }
 0x27c   :  { %13 = sbr.rel (!%p11_p2) target bundleno = 5 (0x5), region = 170 }

// kernel: fwd.13
= control target key start
LH: loop header
LB: loop body
LE: loop exit
PB: predicated region body
PF: predicated region fallthrough
CT: control target
= control target key end

     0   :  { %s4349_s15 = smov 0   ;;  %s4351_s16 = smov 0   ;;  %s5288_s0 = inlined_call_operand.vmem [shape: bf16[2,48,256], index: 0, kind: input, shape index: {}]   ;;  %s5289_s1 = inlined_call_operand.vmem [shape: bf16[9,256,512], index: 1, kind: input, shape index: {}]   ;;  %s5290_s2 = inlined_call_operand.vmem [shape: f32[1,512], index: 2, kind: input, shape index: {}]   ;;  %s5291_s3 = inlined_call_operand.vmem [shape: f32[1,512], index: 3, kind: input, shape index: {}]   ;;  %s5292_s4 = inlined_call_operand.vmem [shape: bf16[2,40,512], index: 4, kind: output, shape index: {}]  }
   0x1   :  { %s4353_s17 = smov 0   ;;  %s4355_s18 = smov 0  }
   0x2   :  { %s4357_s19 = smov 0   ;;  %s4359_s20 = smov 0  }
   0x3   :  { %s4361_s21 = smov 0   ;;  %s4363_s22 = smov 0  }
   0x4   :  { %s4365_s23 = smov 0  }
   0x5 LB: > { %s23_s24 = sadd.s32 1, %s4313_s21  ;;  %s26_s25 = sadd.s32 1, %s4317_s22  ;;  %s4321_s23 = sphi %s4365_s23, %s14_s23   ;;  %s4317_s22 = sphi %s4363_s22, %s5302_s22   ;;  %s4313_s21 = sphi %s4361_s21, %s5301_s21   ;;  %s4309_s20 = sphi %s4359_s20, %s5300_s20   ;;  %s4305_s19 = sphi %s4357_s19, %s5299_s19   ;;  %s4301_s18 = sphi %s4355_s18, %s5298_s18   ;;  %s4297_s17 = sphi %s4353_s17, %s5297_s17   ;;  %s4293_s16 = sphi %s4351_s16, %s5296_s16   ;;  %s4289_s15 = sphi %s4349_s15, %s5295_s15  }
   0x6   : > { %p24_p0 = scmp.ge.s32.totalorder %s23_s24, 2  ;;  %p66_p1 = scmp.ne.s32.totalorder %s4301_s18, %s4297_s17 }
   0x7   : > { %s3379_s26 = sadd.s32 4294967295, %s4321_s23   ;;  %p67_p2 = scmp.eq.s32.totalorder %s4321_s23, 0 }
   0x8   : > { %s5304_s24 = smov (%p24_p0, %s23_s24), 0  ;;  %s5306_s25 = smov (!%p24_p0, %s26_s25), %s4317_s22 }
   0x9   : > { %p28_p3 = scmp.ge.s32.totalorder %s5306_s25, 4  ;;  %s134_s27 = ssub.s32 %s4313_s21, %s5304_s24 }
   0xa   : > { %p4405_p4 = por %p67_p2, %p66_p1  ;;  %p149_p5 = scmp.ne.s32.totalorder %s4293_s16, %s4289_s15 }
   0xb   : > { %s5308_s25 = smov (%p28_p3, %s5306_s25), 0  ;;  %s59_s29 = sadd.s32 1, %s4301_s18 }
   0xc   : > { %p150_p6 = scmp.eq.s32.totalorder %s3379_s26, 7  ;;  %s56_s30 = ssub.s32 %s4317_s22, %s5308_s25 }
   0xd   : > { %s139_s5 = sadd.s32 1, %s4293_s16  ;;  %p57_p7 = scmp.eq.s32.totalorder %s56_s30, 0 }
   0xe   : > { %s136_s6 = sor.u32 %s134_s27, %s56_s30  ;;  %p4417_p9 = por %p150_p6, %p149_p5 }
   0xf   : > { %p137_p8 = scmp.eq.s32.totalorder %s136_s6, 0  ;;  %p3382_p10 = scmp.ge.s32.totalorder %s4321_s23, 8 }
  0x10   : > { %s4422_s8 = scalar_select %p57_p7, %s4301_s18, %s59_s29  }
  0x11   : > { %s4425_s9 = scalar_select %p137_p8, %s4293_s16, %s139_s5  }
  0x12   : > { %172 = sbr.rel (%p3382_p10) target bundleno = 221 (0xdd), region = 16 }
  0x19   : > { %183 = sbr.rel (!%p4405_p4) target bundleno = 221 (0xdd), region = 24  ;;  %s185_s10 = sand.u32 (%p4405_p4), 1, %s4301_s18  }
  0x1a   : > { %s3383_s11 = sshll.u32 (%p4405_p4), %s4317_s22, 2  ;;  %s4011_s12 = smul.u32 (%p4405_p4), 1152, %s185_s10 }
  0x1b   : > { %s4435_s26 = scalar_lea.vmem (%p4405_p4), %s5289_s1, %s3383_s11 }
  0x1c   : > { %v205_v0 = vld [vmem:[%s4435_s26] sm:$0xf] (%p4405_p4)  ;;  %v207_v1 = vld [vmem:[%s4435_s26 + $0x10] sm:$0xf] (%p4405_p4)  ;;  %s4442_s27 = scalar_lea.vmem (%p4405_p4), [#allocation2], %s4011_s12 }
  0x1d   : > { %v209_v2 = vld [vmem:[%s4435_s26 + $0x20] sm:$0xf] (%p4405_p4)  ;;  %v211_v3 = vld [vmem:[%s4435_s26 + $0x30] sm:$0xf] (%p4405_p4)  ;;  %206 = vst [vmem:[%s4442_s27] sm:$0xf] (%p4405_p4), %v205_v0 }
  0x1e   : > { %v213_v4 = vld [vmem:[%s4435_s26 + $0x40] sm:$0xf] (%p4405_p4)  ;;  %208 = vst [vmem:[%s4442_s27 + $0x4] sm:$0xf] (%p4405_p4), %v207_v1  ;;  %210 = vst [vmem:[%s4442_s27 + $0x8] sm:$0xf] (%p4405_p4), %v209_v2 }
  0x1f   : > { %212 = vst [vmem:[%s4442_s27 + $0xc] sm:$0xf] (%p4405_p4), %v211_v3  ;;  %214 = vst [vmem:[%s4442_s27 + $0x10] sm:$0xf] (%p4405_p4), %v213_v4  ;;  %v215_v5 = vld [vmem:[%s4435_s26 + $0x50] sm:$0xf] (%p4405_p4) }
  0x20   : > { %v217_v6 = vld [vmem:[%s4435_s26 + $0x60] sm:$0xf]  ;;  %v219_v7 = vld [vmem:[%s4435_s26 + $0x70] sm:$0xf]  ;;  %216 = vst [vmem:[%s4442_s27 + $0x14] sm:$0xf] %v215_v5 }
  0x21   : > { %218 = vst [vmem:[%s4442_s27 + $0x18] sm:$0xf] %v217_v6  ;;  %220 = vst [vmem:[%s4442_s27 + $0x1c] sm:$0xf] %v219_v7  ;;  %v221_v8 = vld [vmem:[%s4435_s26 + $0x80] sm:$0xf] }
  0x22   : > { %v223_v9 = vld [vmem:[%s4435_s26 + $0x90] sm:$0xf]  ;;  %v225_v10 = vld [vmem:[%s4435_s26 + $0xa0] sm:$0xf]  ;;  %222 = vst [vmem:[%s4442_s27 + $0x20] sm:$0xf] %v221_v8 }
  0x23   : > { %224 = vst [vmem:[%s4442_s27 + $0x24] sm:$0xf] %v223_v9  ;;  %226 = vst [vmem:[%s4442_s27 + $0x28] sm:$0xf] %v225_v10  ;;  %v227_v11 = vld [vmem:[%s4435_s26 + $0xb0] sm:$0xf] }
  0x24   : > { %v229_v12 = vld [vmem:[%s4435_s26 + $0xc0] sm:$0xf]  ;;  %v231_v13 = vld [vmem:[%s4435_s26 + $0xd0] sm:$0xf]  ;;  %228 = vst [vmem:[%s4442_s27 + $0x2c] sm:$0xf] %v227_v11 }
  0x25   : > { %230 = vst [vmem:[%s4442_s27 + $0x30] sm:$0xf] %v229_v12  ;;  %232 = vst [vmem:[%s4442_s27 + $0x34] sm:$0xf] %v231_v13  ;;  %v233_v14 = vld [vmem:[%s4435_s26 + $0xe0] sm:$0xf] }
  0x26   : > { %v235_v15 = vld [vmem:[%s4435_s26 + $0xf0] sm:$0xf]  ;;  %v237_v16 = vld [vmem:[%s4435_s26 + $0x100] sm:$0xf]  ;;  %234 = vst [vmem:[%s4442_s27 + $0x38] sm:$0xf] %v233_v14 }
  0x27   : > { %236 = vst [vmem:[%s4442_s27 + $0x3c] sm:$0xf] %v235_v15  ;;  %238 = vst [vmem:[%s4442_s27 + $0x40] sm:$0xf] %v237_v16  ;;  %v239_v17 = vld [vmem:[%s4435_s26 + $0x110] sm:$0xf] }
  0x28   : > { %v241_v18 = vld [vmem:[%s4435_s26 + $0x120] sm:$0xf]  ;;  %v243_v19 = vld [vmem:[%s4435_s26 + $0x130] sm:$0xf]  ;;  %240 = vst [vmem:[%s4442_s27 + $0x44] sm:$0xf] %v239_v17 }
  0x29   : > { %242 = vst [vmem:[%s4442_s27 + $0x48] sm:$0xf] %v241_v18  ;;  %244 = vst [vmem:[%s4442_s27 + $0x4c] sm:$0xf] %v243_v19  ;;  %v245_v20 = vld [vmem:[%s4435_s26 + $0x140] sm:$0xf] }
  0x2a   : > { %v247_v21 = vld [vmem:[%s4435_s26 + $0x150] sm:$0xf]  ;;  %v249_v22 = vld [vmem:[%s4435_s26 + $0x160] sm:$0xf]  ;;  %246 = vst [vmem:[%s4442_s27 + $0x50] sm:$0xf] %v245_v20 }
  0x2b   : > { %248 = vst [vmem:[%s4442_s27 + $0x54] sm:$0xf] %v247_v21  ;;  %250 = vst [vmem:[%s4442_s27 + $0x58] sm:$0xf] %v249_v22  ;;  %v251_v23 = vld [vmem:[%s4435_s26 + $0x170] sm:$0xf] }
  0x2c   : > { %v253_v24 = vld [vmem:[%s4435_s26 + $0x180] sm:$0xf]  ;;  %v255_v25 = vld [vmem:[%s4435_s26 + $0x190] sm:$0xf]  ;;  %252 = vst [vmem:[%s4442_s27 + $0x5c] sm:$0xf] %v251_v23 }
  0x2d   : > { %254 = vst [vmem:[%s4442_s27 + $0x60] sm:$0xf] %v253_v24  ;;  %256 = vst [vmem:[%s4442_s27 + $0x64] sm:$0xf] %v255_v25  ;;  %v257_v26 = vld [vmem:[%s4435_s26 + $0x1a0] sm:$0xf] }
  0x2e   : > { %v259_v27 = vld [vmem:[%s4435_s26 + $0x1b0] sm:$0xf]  ;;  %v261_v28 = vld [vmem:[%s4435_s26 + $0x1c0] sm:$0xf]  ;;  %258 = vst [vmem:[%s4442_s27 + $0x68] sm:$0xf] %v257_v26 }
  0x2f   : > { %260 = vst [vmem:[%s4442_s27 + $0x6c] sm:$0xf] %v259_v27  ;;  %262 = vst [vmem:[%s4442_s27 + $0x70] sm:$0xf] %v261_v28  ;;  %v263_v29 = vld [vmem:[%s4435_s26 + $0x1d0] sm:$0xf] }
  0x30   : > { %v265_v30 = vld [vmem:[%s4435_s26 + $0x1e0] sm:$0xf]  ;;  %v267_v31 = vld [vmem:[%s4435_s26 + $0x1f0] sm:$0xf]  ;;  %264 = vst [vmem:[%s4442_s27 + $0x74] sm:$0xf] %v263_v29 }
  0x31   : > { %266 = vst [vmem:[%s4442_s27 + $0x78] sm:$0xf] %v265_v30  ;;  %268 = vst [vmem:[%s4442_s27 + $0x7c] sm:$0xf] %v267_v31  ;;  %v269_v32 = vld [vmem:[%s4435_s26 + $0x200] sm:$0xf] }
  0x32   : > { %v271_v33 = vld [vmem:[%s4435_s26 + $0x210] sm:$0xf]  ;;  %v273_v34 = vld [vmem:[%s4435_s26 + $0x220] sm:$0xf]  ;;  %270 = vst [vmem:[%s4442_s27 + $0x80] sm:$0xf] %v269_v32 }
  0x33   : > { %272 = vst [vmem:[%s4442_s27 + $0x84] sm:$0xf] %v271_v33  ;;  %274 = vst [vmem:[%s4442_s27 + $0x88] sm:$0xf] %v273_v34  ;;  %v275_v35 = vld [vmem:[%s4435_s26 + $0x230] sm:$0xf] }
  0x34   : > { %v277_v36 = vld [vmem:[%s4435_s26 + $0x240] sm:$0xf]  ;;  %v279_v37 = vld [vmem:[%s4435_s26 + $0x250] sm:$0xf]  ;;  %276 = vst [vmem:[%s4442_s27 + $0x8c] sm:$0xf] %v275_v35 }
  0x35   : > { %278 = vst [vmem:[%s4442_s27 + $0x90] sm:$0xf] %v277_v36  ;;  %280 = vst [vmem:[%s4442_s27 + $0x94] sm:$0xf] %v279_v37  ;;  %v281_v38 = vld [vmem:[%s4435_s26 + $0x260] sm:$0xf] }
  0x36   : > { %v283_v39 = vld [vmem:[%s4435_s26 + $0x270] sm:$0xf]  ;;  %v285_v40 = vld [vmem:[%s4435_s26 + $0x280] sm:$0xf]  ;;  %282 = vst [vmem:[%s4442_s27 + $0x98] sm:$0xf] %v281_v38 }
  0x37   : > { %284 = vst [vmem:[%s4442_s27 + $0x9c] sm:$0xf] %v283_v39  ;;  %286 = vst [vmem:[%s4442_s27 + $0xa0] sm:$0xf] %v285_v40  ;;  %v287_v41 = vld [vmem:[%s4435_s26 + $0x290] sm:$0xf] }
  0x38   : > { %v289_v42 = vld [vmem:[%s4435_s26 + $0x2a0] sm:$0xf]  ;;  %v291_v43 = vld [vmem:[%s4435_s26 + $0x2b0] sm:$0xf]  ;;  %288 = vst [vmem:[%s4442_s27 + $0xa4] sm:$0xf] %v287_v41 }
  0x39   : > { %290 = vst [vmem:[%s4442_s27 + $0xa8] sm:$0xf] %v289_v42  ;;  %292 = vst [vmem:[%s4442_s27 + $0xac] sm:$0xf] %v291_v43  ;;  %v293_v44 = vld [vmem:[%s4435_s26 + $0x2c0] sm:$0xf] }
  0x3a   : > { %v295_v45 = vld [vmem:[%s4435_s26 + $0x2d0] sm:$0xf]  ;;  %v297_v46 = vld [vmem:[%s4435_s26 + $0x2e0] sm:$0xf]  ;;  %294 = vst [vmem:[%s4442_s27 + $0xb0] sm:$0xf] %v293_v44 }
  0x3b   : > { %296 = vst [vmem:[%s4442_s27 + $0xb4] sm:$0xf] %v295_v45  ;;  %298 = vst [vmem:[%s4442_s27 + $0xb8] sm:$0xf] %v297_v46  ;;  %v299_v47 = vld [vmem:[%s4435_s26 + $0x2f0] sm:$0xf] }
  0x3c   : > { %v301_v48 = vld [vmem:[%s4435_s26 + $0x300] sm:$0xf]  ;;  %v303_v49 = vld [vmem:[%s4435_s26 + $0x310] sm:$0xf]  ;;  %300 = vst [vmem:[%s4442_s27 + $0xbc] sm:$0xf] %v299_v47 }
  0x3d   : > { %302 = vst [vmem:[%s4442_s27 + $0xc0] sm:$0xf] %v301_v48  ;;  %304 = vst [vmem:[%s4442_s27 + $0xc4] sm:$0xf] %v303_v49  ;;  %v305_v50 = vld [vmem:[%s4435_s26 + $0x320] sm:$0xf] }
  0x3e   : > { %v307_v51 = vld [vmem:[%s4435_s26 + $0x330] sm:$0xf]  ;;  %v309_v52 = vld [vmem:[%s4435_s26 + $0x340] sm:$0xf]  ;;  %306 = vst [vmem:[%s4442_s27 + $0xc8] sm:$0xf] %v305_v50 }
  0x3f   : > { %308 = vst [vmem:[%s4442_s27 + $0xcc] sm:$0xf] %v307_v51  ;;  %310 = vst [vmem:[%s4442_s27 + $0xd0] sm:$0xf] %v309_v52  ;;  %v311_v53 = vld [vmem:[%s4435_s26 + $0x350] sm:$0xf] }
  0x40   : > { %v313_v54 = vld [vmem:[%s4435_s26 + $0x360] sm:$0xf]  ;;  %v315_v55 = vld [vmem:[%s4435_s26 + $0x370] sm:$0xf]  ;;  %312 = vst [vmem:[%s4442_s27 + $0xd4] sm:$0xf] %v311_v53 }
  0x41   : > { %314 = vst [vmem:[%s4442_s27 + $0xd8] sm:$0xf] %v313_v54  ;;  %316 = vst [vmem:[%s4442_s27 + $0xdc] sm:$0xf] %v315_v55  ;;  %v317_v56 = vld [vmem:[%s4435_s26 + $0x380] sm:$0xf] }
  0x42   : > { %v319_v57 = vld [vmem:[%s4435_s26 + $0x390] sm:$0xf]  ;;  %v321_v58 = vld [vmem:[%s4435_s26 + $0x3a0] sm:$0xf]  ;;  %318 = vst [vmem:[%s4442_s27 + $0xe0] sm:$0xf] %v317_v56 }
  0x43   : > { %320 = vst [vmem:[%s4442_s27 + $0xe4] sm:$0xf] %v319_v57  ;;  %322 = vst [vmem:[%s4442_s27 + $0xe8] sm:$0xf] %v321_v58  ;;  %v323_v59 = vld [vmem:[%s4435_s26 + $0x3b0] sm:$0xf] }
  0x44   : > { %v325_v60 = vld [vmem:[%s4435_s26 + $0x3c0] sm:$0xf]  ;;  %v327_v61 = vld [vmem:[%s4435_s26 + $0x3d0] sm:$0xf]  ;;  %324 = vst [vmem:[%s4442_s27 + $0xec] sm:$0xf] %v323_v59 }
  0x45   : > { %326 = vst [vmem:[%s4442_s27 + $0xf0] sm:$0xf] %v325_v60  ;;  %328 = vst [vmem:[%s4442_s27 + $0xf4] sm:$0xf] %v327_v61  ;;  %v329_v62 = vld [vmem:[%s4435_s26 + $0x3e0] sm:$0xf] }
  0x46   : > { %v331_v63 = vld [vmem:[%s4435_s26 + $0x3f0] sm:$0xf]  ;;  %v333_v0 = vld [vmem:[%s4435_s26 + $0x400] sm:$0xf]  ;;  %330 = vst [vmem:[%s4442_s27 + $0xf8] sm:$0xf] %v329_v62 }
  0x47   : > { %332 = vst [vmem:[%s4442_s27 + $0xfc] sm:$0xf] %v331_v63  ;;  %334 = vst [vmem:[%s4442_s27 + $0x100] sm:$0xf] %v333_v0  ;;  %v335_v1 = vld [vmem:[%s4435_s26 + $0x410] sm:$0xf] }
  0x48   : > { %v337_v2 = vld [vmem:[%s4435_s26 + $0x420] sm:$0xf]  ;;  %v339_v3 = vld [vmem:[%s4435_s26 + $0x430] sm:$0xf]  ;;  %336 = vst [vmem:[%s4442_s27 + $0x104] sm:$0xf] %v335_v1 }
  0x49   : > { %338 = vst [vmem:[%s4442_s27 + $0x108] sm:$0xf] %v337_v2  ;;  %340 = vst [vmem:[%s4442_s27 + $0x10c] sm:$0xf] %v339_v3  ;;  %v341_v4 = vld [vmem:[%s4435_s26 + $0x440] sm:$0xf] }
  0x4a   : > { %v343_v5 = vld [vmem:[%s4435_s26 + $0x450] sm:$0xf]  ;;  %v345_v6 = vld [vmem:[%s4435_s26 + $0x460] sm:$0xf]  ;;  %342 = vst [vmem:[%s4442_s27 + $0x110] sm:$0xf] %v341_v4 }
  0x4b   : > { %344 = vst [vmem:[%s4442_s27 + $0x114] sm:$0xf] %v343_v5  ;;  %346 = vst [vmem:[%s4442_s27 + $0x118] sm:$0xf] %v345_v6  ;;  %v347_v7 = vld [vmem:[%s4435_s26 + $0x470] sm:$0xf] }
  0x4c   : > { %v349_v8 = vld [vmem:[%s4435_s26 + $0x480] sm:$0xf]  ;;  %v351_v9 = vld [vmem:[%s4435_s26 + $0x490] sm:$0xf]  ;;  %348 = vst [vmem:[%s4442_s27 + $0x11c] sm:$0xf] %v347_v7 }
  0x4d   : > { %350 = vst [vmem:[%s4442_s27 + $0x120] sm:$0xf] %v349_v8  ;;  %352 = vst [vmem:[%s4442_s27 + $0x124] sm:$0xf] %v351_v9  ;;  %v353_v10 = vld [vmem:[%s4435_s26 + $0x4a0] sm:$0xf] }
  0x4e   : > { %v355_v11 = vld [vmem:[%s4435_s26 + $0x4b0] sm:$0xf]  ;;  %v357_v12 = vld [vmem:[%s4435_s26 + $0x4c0] sm:$0xf]  ;;  %354 = vst [vmem:[%s4442_s27 + $0x128] sm:$0xf] %v353_v10 }
  0x4f   : > { %356 = vst [vmem:[%s4442_s27 + $0x12c] sm:$0xf] %v355_v11  ;;  %358 = vst [vmem:[%s4442_s27 + $0x130] sm:$0xf] %v357_v12  ;;  %v359_v13 = vld [vmem:[%s4435_s26 + $0x4d0] sm:$0xf] }
  0x50   : > { %v361_v14 = vld [vmem:[%s4435_s26 + $0x4e0] sm:$0xf]  ;;  %v363_v15 = vld [vmem:[%s4435_s26 + $0x4f0] sm:$0xf]  ;;  %360 = vst [vmem:[%s4442_s27 + $0x134] sm:$0xf] %v359_v13 }
  0x51   : > { %362 = vst [vmem:[%s4442_s27 + $0x138] sm:$0xf] %v361_v14  ;;  %364 = vst [vmem:[%s4442_s27 + $0x13c] sm:$0xf] %v363_v15  ;;  %v365_v16 = vld [vmem:[%s4435_s26 + $0x500] sm:$0xf] }
  0x52   : > { %v367_v17 = vld [vmem:[%s4435_s26 + $0x510] sm:$0xf]  ;;  %v369_v18 = vld [vmem:[%s4435_s26 + $0x520] sm:$0xf]  ;;  %366 = vst [vmem:[%s4442_s27 + $0x140] sm:$0xf] %v365_v16 }
  0x53   : > { %368 = vst [vmem:[%s4442_s27 + $0x144] sm:$0xf] %v367_v17  ;;  %370 = vst [vmem:[%s4442_s27 + $0x148] sm:$0xf] %v369_v18  ;;  %v371_v19 = vld [vmem:[%s4435_s26 + $0x530] sm:$0xf] }
  0x54   : > { %v373_v20 = vld [vmem:[%s4435_s26 + $0x540] sm:$0xf]  ;;  %v375_v21 = vld [vmem:[%s4435_s26 + $0x550] sm:$0xf]  ;;  %372 = vst [vmem:[%s4442_s27 + $0x14c] sm:$0xf] %v371_v19 }
  0x55   : > { %374 = vst [vmem:[%s4442_s27 + $0x150] sm:$0xf] %v373_v20  ;;  %376 = vst [vmem:[%s4442_s27 + $0x154] sm:$0xf] %v375_v21  ;;  %v377_v22 = vld [vmem:[%s4435_s26 + $0x560] sm:$0xf] }
  0x56   : > { %v379_v23 = vld [vmem:[%s4435_s26 + $0x570] sm:$0xf]  ;;  %v381_v24 = vld [vmem:[%s4435_s26 + $0x580] sm:$0xf]  ;;  %378 = vst [vmem:[%s4442_s27 + $0x158] sm:$0xf] %v377_v22 }
  0x57   : > { %380 = vst [vmem:[%s4442_s27 + $0x15c] sm:$0xf] %v379_v23  ;;  %382 = vst [vmem:[%s4442_s27 + $0x160] sm:$0xf] %v381_v24  ;;  %v383_v25 = vld [vmem:[%s4435_s26 + $0x590] sm:$0xf] }
  0x58   : > { %v385_v26 = vld [vmem:[%s4435_s26 + $0x5a0] sm:$0xf]  ;;  %v387_v27 = vld [vmem:[%s4435_s26 + $0x5b0] sm:$0xf]  ;;  %384 = vst [vmem:[%s4442_s27 + $0x164] sm:$0xf] %v383_v25 }
  0x59   : > { %386 = vst [vmem:[%s4442_s27 + $0x168] sm:$0xf] %v385_v26  ;;  %388 = vst [vmem:[%s4442_s27 + $0x16c] sm:$0xf] %v387_v27  ;;  %v389_v28 = vld [vmem:[%s4435_s26 + $0x5c0] sm:$0xf] }
  0x5a   : > { %v391_v29 = vld [vmem:[%s4435_s26 + $0x5d0] sm:$0xf]  ;;  %v393_v30 = vld [vmem:[%s4435_s26 + $0x5e0] sm:$0xf]  ;;  %390 = vst [vmem:[%s4442_s27 + $0x170] sm:$0xf] %v389_v28 }
  0x5b   : > { %392 = vst [vmem:[%s4442_s27 + $0x174] sm:$0xf] %v391_v29  ;;  %394 = vst [vmem:[%s4442_s27 + $0x178] sm:$0xf] %v393_v30  ;;  %v395_v31 = vld [vmem:[%s4435_s26 + $0x5f0] sm:$0xf] }
  0x5c   : > { %v397_v32 = vld [vmem:[%s4435_s26 + $0x600] sm:$0xf]  ;;  %v399_v33 = vld [vmem:[%s4435_s26 + $0x610] sm:$0xf]  ;;  %396 = vst [vmem:[%s4442_s27 + $0x17c] sm:$0xf] %v395_v31 }
  0x5d   : > { %398 = vst [vmem:[%s4442_s27 + $0x180] sm:$0xf] %v397_v32  ;;  %400 = vst [vmem:[%s4442_s27 + $0x184] sm:$0xf] %v399_v33  ;;  %v401_v34 = vld [vmem:[%s4435_s26 + $0x620] sm:$0xf] }
  0x5e   : > { %v403_v35 = vld [vmem:[%s4435_s26 + $0x630] sm:$0xf]  ;;  %v405_v36 = vld [vmem:[%s4435_s26 + $0x640] sm:$0xf]  ;;  %402 = vst [vmem:[%s4442_s27 + $0x188] sm:$0xf] %v401_v34 }
  0x5f   : > { %404 = vst [vmem:[%s4442_s27 + $0x18c] sm:$0xf] %v403_v35  ;;  %406 = vst [vmem:[%s4442_s27 + $0x190] sm:$0xf] %v405_v36  ;;  %v407_v37 = vld [vmem:[%s4435_s26 + $0x650] sm:$0xf] }
  0x60   : > { %v409_v38 = vld [vmem:[%s4435_s26 + $0x660] sm:$0xf]  ;;  %v411_v39 = vld [vmem:[%s4435_s26 + $0x670] sm:$0xf]  ;;  %408 = vst [vmem:[%s4442_s27 + $0x194] sm:$0xf] %v407_v37 }
  0x61   : > { %410 = vst [vmem:[%s4442_s27 + $0x198] sm:$0xf] %v409_v38  ;;  %412 = vst [vmem:[%s4442_s27 + $0x19c] sm:$0xf] %v411_v39  ;;  %v413_v40 = vld [vmem:[%s4435_s26 + $0x680] sm:$0xf] }
  0x62   : > { %v415_v41 = vld [vmem:[%s4435_s26 + $0x690] sm:$0xf]  ;;  %v417_v42 = vld [vmem:[%s4435_s26 + $0x6a0] sm:$0xf]  ;;  %414 = vst [vmem:[%s4442_s27 + $0x1a0] sm:$0xf] %v413_v40 }
  0x63   : > { %416 = vst [vmem:[%s4442_s27 + $0x1a4] sm:$0xf] %v415_v41  ;;  %418 = vst [vmem:[%s4442_s27 + $0x1a8] sm:$0xf] %v417_v42  ;;  %v419_v43 = vld [vmem:[%s4435_s26 + $0x6b0] sm:$0xf] }
  0x64   : > { %v421_v44 = vld [vmem:[%s4435_s26 + $0x6c0] sm:$0xf]  ;;  %v423_v45 = vld [vmem:[%s4435_s26 + $0x6d0] sm:$0xf]  ;;  %420 = vst [vmem:[%s4442_s27 + $0x1ac] sm:$0xf] %v419_v43 }
  0x65   : > { %422 = vst [vmem:[%s4442_s27 + $0x1b0] sm:$0xf] %v421_v44  ;;  %424 = vst [vmem:[%s4442_s27 + $0x1b4] sm:$0xf] %v423_v45  ;;  %v425_v46 = vld [vmem:[%s4435_s26 + $0x6e0] sm:$0xf] }
  0x66   : > { %v427_v47 = vld [vmem:[%s4435_s26 + $0x6f0] sm:$0xf]  ;;  %v429_v48 = vld [vmem:[%s4435_s26 + $0x700] sm:$0xf]  ;;  %426 = vst [vmem:[%s4442_s27 + $0x1b8] sm:$0xf] %v425_v46 }
  0x67   : > { %428 = vst [vmem:[%s4442_s27 + $0x1bc] sm:$0xf] %v427_v47  ;;  %430 = vst [vmem:[%s4442_s27 + $0x1c0] sm:$0xf] %v429_v48  ;;  %v431_v49 = vld [vmem:[%s4435_s26 + $0x710] sm:$0xf] }
  0x68   : > { %v433_v50 = vld [vmem:[%s4435_s26 + $0x720] sm:$0xf]  ;;  %v435_v51 = vld [vmem:[%s4435_s26 + $0x730] sm:$0xf]  ;;  %432 = vst [vmem:[%s4442_s27 + $0x1c4] sm:$0xf] %v431_v49 }
  0x69   : > { %434 = vst [vmem:[%s4442_s27 + $0x1c8] sm:$0xf] %v433_v50  ;;  %436 = vst [vmem:[%s4442_s27 + $0x1cc] sm:$0xf] %v435_v51  ;;  %v437_v52 = vld [vmem:[%s4435_s26 + $0x740] sm:$0xf] }
  0x6a   : > { %v439_v53 = vld [vmem:[%s4435_s26 + $0x750] sm:$0xf]  ;;  %v441_v54 = vld [vmem:[%s4435_s26 + $0x760] sm:$0xf]  ;;  %438 = vst [vmem:[%s4442_s27 + $0x1d0] sm:$0xf] %v437_v52 }
  0x6b   : > { %440 = vst [vmem:[%s4442_s27 + $0x1d4] sm:$0xf] %v439_v53  ;;  %442 = vst [vmem:[%s4442_s27 + $0x1d8] sm:$0xf] %v441_v54  ;;  %v443_v55 = vld [vmem:[%s4435_s26 + $0x770] sm:$0xf] }
  0x6c   : > { %v445_v56 = vld [vmem:[%s4435_s26 + $0x780] sm:$0xf]  ;;  %v447_v57 = vld [vmem:[%s4435_s26 + $0x790] sm:$0xf]  ;;  %444 = vst [vmem:[%s4442_s27 + $0x1dc] sm:$0xf] %v443_v55 }
  0x6d   : > { %446 = vst [vmem:[%s4442_s27 + $0x1e0] sm:$0xf] %v445_v56  ;;  %448 = vst [vmem:[%s4442_s27 + $0x1e4] sm:$0xf] %v447_v57  ;;  %v449_v58 = vld [vmem:[%s4435_s26 + $0x7a0] sm:$0xf] }
  0x6e   : > { %v451_v59 = vld [vmem:[%s4435_s26 + $0x7b0] sm:$0xf]  ;;  %v453_v60 = vld [vmem:[%s4435_s26 + $0x7c0] sm:$0xf]  ;;  %450 = vst [vmem:[%s4442_s27 + $0x1e8] sm:$0xf] %v449_v58 }
  0x6f   : > { %452 = vst [vmem:[%s4442_s27 + $0x1ec] sm:$0xf] %v451_v59  ;;  %454 = vst [vmem:[%s4442_s27 + $0x1f0] sm:$0xf] %v453_v60  ;;  %v455_v61 = vld [vmem:[%s4435_s26 + $0x7d0] sm:$0xf] }
  0x70   : > { %v457_v62 = vld [vmem:[%s4435_s26 + $0x7e0] sm:$0xf]  ;;  %v459_v63 = vld [vmem:[%s4435_s26 + $0x7f0] sm:$0xf]  ;;  %456 = vst [vmem:[%s4442_s27 + $0x1f4] sm:$0xf] %v455_v61 }
  0x71   : > { %458 = vst [vmem:[%s4442_s27 + $0x1f8] sm:$0xf] %v457_v62  ;;  %460 = vst [vmem:[%s4442_s27 + $0x1fc] sm:$0xf] %v459_v63  ;;  %v461_v0 = vld [vmem:[%s4435_s26 + $0x800] sm:$0xf] }
  0x72   : > { %v463_v1 = vld [vmem:[%s4435_s26 + $0x810] sm:$0xf]  ;;  %v465_v2 = vld [vmem:[%s4435_s26 + $0x820] sm:$0xf]  ;;  %462 = vst [vmem:[%s4442_s27 + $0x200] sm:$0xf] %v461_v0 }
  0x73   : > { %464 = vst [vmem:[%s4442_s27 + $0x204] sm:$0xf] %v463_v1  ;;  %466 = vst [vmem:[%s4442_s27 + $0x208] sm:$0xf] %v465_v2  ;;  %v467_v3 = vld [vmem:[%s4435_s26 + $0x830] sm:$0xf] }
  0x74   : > { %v469_v4 = vld [vmem:[%s4435_s26 + $0x840] sm:$0xf]  ;;  %v471_v5 = vld [vmem:[%s4435_s26 + $0x850] sm:$0xf]  ;;  %468 = vst [vmem:[%s4442_s27 + $0x20c] sm:$0xf] %v467_v3 }
  0x75   : > { %470 = vst [vmem:[%s4442_s27 + $0x210] sm:$0xf] %v469_v4  ;;  %472 = vst [vmem:[%s4442_s27 + $0x214] sm:$0xf] %v471_v5  ;;  %v473_v6 = vld [vmem:[%s4435_s26 + $0x860] sm:$0xf] }
  0x76   : > { %v475_v7 = vld [vmem:[%s4435_s26 + $0x870] sm:$0xf]  ;;  %v477_v8 = vld [vmem:[%s4435_s26 + $0x880] sm:$0xf]  ;;  %474 = vst [vmem:[%s4442_s27 + $0x218] sm:$0xf] %v473_v6 }
  0x77   : > { %476 = vst [vmem:[%s4442_s27 + $0x21c] sm:$0xf] %v475_v7  ;;  %478 = vst [vmem:[%s4442_s27 + $0x220] sm:$0xf] %v477_v8  ;;  %v479_v9 = vld [vmem:[%s4435_s26 + $0x890] sm:$0xf] }
  0x78   : > { %v481_v10 = vld [vmem:[%s4435_s26 + $0x8a0] sm:$0xf]  ;;  %v483_v11 = vld [vmem:[%s4435_s26 + $0x8b0] sm:$0xf]  ;;  %480 = vst [vmem:[%s4442_s27 + $0x224] sm:$0xf] %v479_v9 }
  0x79   : > { %482 = vst [vmem:[%s4442_s27 + $0x228] sm:$0xf] %v481_v10  ;;  %484 = vst [vmem:[%s4442_s27 + $0x22c] sm:$0xf] %v483_v11  ;;  %v485_v12 = vld [vmem:[%s4435_s26 + $0x8c0] sm:$0xf] }
  0x7a   : > { %v487_v13 = vld [vmem:[%s4435_s26 + $0x8d0] sm:$0xf]  ;;  %v489_v14 = vld [vmem:[%s4435_s26 + $0x8e0] sm:$0xf]  ;;  %486 = vst [vmem:[%s4442_s27 + $0x230] sm:$0xf] %v485_v12 }
  0x7b   : > { %488 = vst [vmem:[%s4442_s27 + $0x234] sm:$0xf] %v487_v13  ;;  %490 = vst [vmem:[%s4442_s27 + $0x238] sm:$0xf] %v489_v14  ;;  %v491_v15 = vld [vmem:[%s4435_s26 + $0x8f0] sm:$0xf] }
  0x7c   : > { %v493_v16 = vld [vmem:[%s4435_s26 + $0x900] sm:$0xf]  ;;  %v495_v17 = vld [vmem:[%s4435_s26 + $0x910] sm:$0xf]  ;;  %492 = vst [vmem:[%s4442_s27 + $0x23c] sm:$0xf] %v491_v15 }
  0x7d   : > { %494 = vst [vmem:[%s4442_s27 + $0x240] sm:$0xf] %v493_v16  ;;  %496 = vst [vmem:[%s4442_s27 + $0x244] sm:$0xf] %v495_v17  ;;  %v497_v18 = vld [vmem:[%s4435_s26 + $0x920] sm:$0xf] }
  0x7e   : > { %v499_v19 = vld [vmem:[%s4435_s26 + $0x930] sm:$0xf]  ;;  %v501_v20 = vld [vmem:[%s4435_s26 + $0x940] sm:$0xf]  ;;  %498 = vst [vmem:[%s4442_s27 + $0x248] sm:$0xf] %v497_v18 }
  0x7f   : > { %500 = vst [vmem:[%s4442_s27 + $0x24c] sm:$0xf] %v499_v19  ;;  %502 = vst [vmem:[%s4442_s27 + $0x250] sm:$0xf] %v501_v20  ;;  %v503_v21 = vld [vmem:[%s4435_s26 + $0x950] sm:$0xf] }
  0x80   : > { %v505_v22 = vld [vmem:[%s4435_s26 + $0x960] sm:$0xf]  ;;  %v507_v23 = vld [vmem:[%s4435_s26 + $0x970] sm:$0xf]  ;;  %504 = vst [vmem:[%s4442_s27 + $0x254] sm:$0xf] %v503_v21 }
  0x81   : > { %506 = vst [vmem:[%s4442_s27 + $0x258] sm:$0xf] %v505_v22  ;;  %508 = vst [vmem:[%s4442_s27 + $0x25c] sm:$0xf] %v507_v23  ;;  %v509_v24 = vld [vmem:[%s4435_s26 + $0x980] sm:$0xf] }
  0x82   : > { %v511_v25 = vld [vmem:[%s4435_s26 + $0x990] sm:$0xf]  ;;  %v513_v26 = vld [vmem:[%s4435_s26 + $0x9a0] sm:$0xf]  ;;  %510 = vst [vmem:[%s4442_s27 + $0x260] sm:$0xf] %v509_v24 }
  0x83   : > { %512 = vst [vmem:[%s4442_s27 + $0x264] sm:$0xf] %v511_v25  ;;  %514 = vst [vmem:[%s4442_s27 + $0x268] sm:$0xf] %v513_v26  ;;  %v515_v27 = vld [vmem:[%s4435_s26 + $0x9b0] sm:$0xf] }
  0x84   : > { %v517_v28 = vld [vmem:[%s4435_s26 + $0x9c0] sm:$0xf]  ;;  %v519_v29 = vld [vmem:[%s4435_s26 + $0x9d0] sm:$0xf]  ;;  %516 = vst [vmem:[%s4442_s27 + $0x26c] sm:$0xf] %v515_v27 }
  0x85   : > { %518 = vst [vmem:[%s4442_s27 + $0x270] sm:$0xf] %v517_v28  ;;  %520 = vst [vmem:[%s4442_s27 + $0x274] sm:$0xf] %v519_v29  ;;  %v521_v30 = vld [vmem:[%s4435_s26 + $0x9e0] sm:$0xf] }
  0x86   : > { %v523_v31 = vld [vmem:[%s4435_s26 + $0x9f0] sm:$0xf]  ;;  %v525_v32 = vld [vmem:[%s4435_s26 + $0xa00] sm:$0xf]  ;;  %522 = vst [vmem:[%s4442_s27 + $0x278] sm:$0xf] %v521_v30 }
  0x87   : > { %524 = vst [vmem:[%s4442_s27 + $0x27c] sm:$0xf] %v523_v31  ;;  %526 = vst [vmem:[%s4442_s27 + $0x280] sm:$0xf] %v525_v32  ;;  %v527_v33 = vld [vmem:[%s4435_s26 + $0xa10] sm:$0xf] }
  0x88   : > { %v529_v34 = vld [vmem:[%s4435_s26 + $0xa20] sm:$0xf]  ;;  %v531_v35 = vld [vmem:[%s4435_s26 + $0xa30] sm:$0xf]  ;;  %528 = vst [vmem:[%s4442_s27 + $0x284] sm:$0xf] %v527_v33 }
  0x89   : > { %530 = vst [vmem:[%s4442_s27 + $0x288] sm:$0xf] %v529_v34  ;;  %532 = vst [vmem:[%s4442_s27 + $0x28c] sm:$0xf] %v531_v35  ;;  %v533_v36 = vld [vmem:[%s4435_s26 + $0xa40] sm:$0xf] }
  0x8a   : > { %v535_v37 = vld [vmem:[%s4435_s26 + $0xa50] sm:$0xf]  ;;  %v537_v38 = vld [vmem:[%s4435_s26 + $0xa60] sm:$0xf]  ;;  %534 = vst [vmem:[%s4442_s27 + $0x290] sm:$0xf] %v533_v36 }
  0x8b   : > { %536 = vst [vmem:[%s4442_s27 + $0x294] sm:$0xf] %v535_v37  ;;  %538 = vst [vmem:[%s4442_s27 + $0x298] sm:$0xf] %v537_v38  ;;  %v539_v39 = vld [vmem:[%s4435_s26 + $0xa70] sm:$0xf] }
  0x8c   : > { %v541_v40 = vld [vmem:[%s4435_s26 + $0xa80] sm:$0xf]  ;;  %v543_v41 = vld [vmem:[%s4435_s26 + $0xa90] sm:$0xf]  ;;  %540 = vst [vmem:[%s4442_s27 + $0x29c] sm:$0xf] %v539_v39 }
  0x8d   : > { %542 = vst [vmem:[%s4442_s27 + $0x2a0] sm:$0xf] %v541_v40  ;;  %544 = vst [vmem:[%s4442_s27 + $0x2a4] sm:$0xf] %v543_v41  ;;  %v545_v42 = vld [vmem:[%s4435_s26 + $0xaa0] sm:$0xf] }
  0x8e   : > { %v547_v43 = vld [vmem:[%s4435_s26 + $0xab0] sm:$0xf]  ;;  %v549_v44 = vld [vmem:[%s4435_s26 + $0xac0] sm:$0xf]  ;;  %546 = vst [vmem:[%s4442_s27 + $0x2a8] sm:$0xf] %v545_v42 }
  0x8f   : > { %548 = vst [vmem:[%s4442_s27 + $0x2ac] sm:$0xf] %v547_v43  ;;  %550 = vst [vmem:[%s4442_s27 + $0x2b0] sm:$0xf] %v549_v44  ;;  %v551_v45 = vld [vmem:[%s4435_s26 + $0xad0] sm:$0xf] }
  0x90   : > { %v553_v46 = vld [vmem:[%s4435_s26 + $0xae0] sm:$0xf]  ;;  %v555_v47 = vld [vmem:[%s4435_s26 + $0xaf0] sm:$0xf]  ;;  %552 = vst [vmem:[%s4442_s27 + $0x2b4] sm:$0xf] %v551_v45 }
  0x91   : > { %554 = vst [vmem:[%s4442_s27 + $0x2b8] sm:$0xf] %v553_v46  ;;  %556 = vst [vmem:[%s4442_s27 + $0x2bc] sm:$0xf] %v555_v47  ;;  %v557_v48 = vld [vmem:[%s4435_s26 + $0xb00] sm:$0xf] }
  0x92   : > { %v559_v49 = vld [vmem:[%s4435_s26 + $0xb10] sm:$0xf]  ;;  %v561_v50 = vld [vmem:[%s4435_s26 + $0xb20] sm:$0xf]  ;;  %558 = vst [vmem:[%s4442_s27 + $0x2c0] sm:$0xf] %v557_v48 }
  0x93   : > { %560 = vst [vmem:[%s4442_s27 + $0x2c4] sm:$0xf] %v559_v49  ;;  %562 = vst [vmem:[%s4442_s27 + $0x2c8] sm:$0xf] %v561_v50  ;;  %v563_v51 = vld [vmem:[%s4435_s26 + $0xb30] sm:$0xf] }
  0x94   : > { %v565_v52 = vld [vmem:[%s4435_s26 + $0xb40] sm:$0xf]  ;;  %v567_v53 = vld [vmem:[%s4435_s26 + $0xb50] sm:$0xf]  ;;  %564 = vst [vmem:[%s4442_s27 + $0x2cc] sm:$0xf] %v563_v51 }
  0x95   : > { %566 = vst [vmem:[%s4442_s27 + $0x2d0] sm:$0xf] %v565_v52  ;;  %568 = vst [vmem:[%s4442_s27 + $0x2d4] sm:$0xf] %v567_v53  ;;  %v569_v54 = vld [vmem:[%s4435_s26 + $0xb60] sm:$0xf] }
  0x96   : > { %v571_v55 = vld [vmem:[%s4435_s26 + $0xb70] sm:$0xf]  ;;  %v573_v56 = vld [vmem:[%s4435_s26 + $0xb80] sm:$0xf]  ;;  %570 = vst [vmem:[%s4442_s27 + $0x2d8] sm:$0xf] %v569_v54 }
  0x97   : > { %572 = vst [vmem:[%s4442_s27 + $0x2dc] sm:$0xf] %v571_v55  ;;  %574 = vst [vmem:[%s4442_s27 + $0x2e0] sm:$0xf] %v573_v56  ;;  %v575_v57 = vld [vmem:[%s4435_s26 + $0xb90] sm:$0xf] }
  0x98   : > { %v577_v58 = vld [vmem:[%s4435_s26 + $0xba0] sm:$0xf]  ;;  %v579_v59 = vld [vmem:[%s4435_s26 + $0xbb0] sm:$0xf]  ;;  %576 = vst [vmem:[%s4442_s27 + $0x2e4] sm:$0xf] %v575_v57 }
  0x99   : > { %578 = vst [vmem:[%s4442_s27 + $0x2e8] sm:$0xf] %v577_v58  ;;  %580 = vst [vmem:[%s4442_s27 + $0x2ec] sm:$0xf] %v579_v59  ;;  %v581_v60 = vld [vmem:[%s4435_s26 + $0xbc0] sm:$0xf] }
  0x9a   : > { %v583_v61 = vld [vmem:[%s4435_s26 + $0xbd0] sm:$0xf]  ;;  %v585_v62 = vld [vmem:[%s4435_s26 + $0xbe0] sm:$0xf]  ;;  %582 = vst [vmem:[%s4442_s27 + $0x2f0] sm:$0xf] %v581_v60 }
  0x9b   : > { %584 = vst [vmem:[%s4442_s27 + $0x2f4] sm:$0xf] %v583_v61  ;;  %586 = vst [vmem:[%s4442_s27 + $0x2f8] sm:$0xf] %v585_v62  ;;  %v587_v63 = vld [vmem:[%s4435_s26 + $0xbf0] sm:$0xf] }
  0x9c   : > { %v589_v0 = vld [vmem:[%s4435_s26 + $0xc00] sm:$0xf]  ;;  %v591_v1 = vld [vmem:[%s4435_s26 + $0xc10] sm:$0xf]  ;;  %588 = vst [vmem:[%s4442_s27 + $0x2fc] sm:$0xf] %v587_v63 }
  0x9d   : > { %590 = vst [vmem:[%s4442_s27 + $0x300] sm:$0xf] %v589_v0  ;;  %592 = vst [vmem:[%s4442_s27 + $0x304] sm:$0xf] %v591_v1  ;;  %v593_v2 = vld [vmem:[%s4435_s26 + $0xc20] sm:$0xf] }
  0x9e   : > { %v595_v3 = vld [vmem:[%s4435_s26 + $0xc30] sm:$0xf]  ;;  %v597_v4 = vld [vmem:[%s4435_s26 + $0xc40] sm:$0xf]  ;;  %594 = vst [vmem:[%s4442_s27 + $0x308] sm:$0xf] %v593_v2 }
  0x9f   : > { %596 = vst [vmem:[%s4442_s27 + $0x30c] sm:$0xf] %v595_v3  ;;  %598 = vst [vmem:[%s4442_s27 + $0x310] sm:$0xf] %v597_v4  ;;  %v599_v5 = vld [vmem:[%s4435_s26 + $0xc50] sm:$0xf] }
  0xa0   : > { %v601_v6 = vld [vmem:[%s4435_s26 + $0xc60] sm:$0xf]  ;;  %v603_v7 = vld [vmem:[%s4435_s26 + $0xc70] sm:$0xf]  ;;  %600 = vst [vmem:[%s4442_s27 + $0x314] sm:$0xf] %v599_v5 }
  0xa1   : > { %602 = vst [vmem:[%s4442_s27 + $0x318] sm:$0xf] %v601_v6  ;;  %604 = vst [vmem:[%s4442_s27 + $0x31c] sm:$0xf] %v603_v7  ;;  %v605_v8 = vld [vmem:[%s4435_s26 + $0xc80] sm:$0xf] }
  0xa2   : > { %v607_v9 = vld [vmem:[%s4435_s26 + $0xc90] sm:$0xf]  ;;  %v609_v10 = vld [vmem:[%s4435_s26 + $0xca0] sm:$0xf]  ;;  %606 = vst [vmem:[%s4442_s27 + $0x320] sm:$0xf] %v605_v8 }
  0xa3   : > { %608 = vst [vmem:[%s4442_s27 + $0x324] sm:$0xf] %v607_v9  ;;  %610 = vst [vmem:[%s4442_s27 + $0x328] sm:$0xf] %v609_v10  ;;  %v611_v11 = vld [vmem:[%s4435_s26 + $0xcb0] sm:$0xf] }
  0xa4   : > { %v613_v12 = vld [vmem:[%s4435_s26 + $0xcc0] sm:$0xf]  ;;  %v615_v13 = vld [vmem:[%s4435_s26 + $0xcd0] sm:$0xf]  ;;  %612 = vst [vmem:[%s4442_s27 + $0x32c] sm:$0xf] %v611_v11 }
  0xa5   : > { %614 = vst [vmem:[%s4442_s27 + $0x330] sm:$0xf] %v613_v12  ;;  %616 = vst [vmem:[%s4442_s27 + $0x334] sm:$0xf] %v615_v13  ;;  %v617_v14 = vld [vmem:[%s4435_s26 + $0xce0] sm:$0xf] }
  0xa6   : > { %v619_v15 = vld [vmem:[%s4435_s26 + $0xcf0] sm:$0xf]  ;;  %v621_v16 = vld [vmem:[%s4435_s26 + $0xd00] sm:$0xf]  ;;  %618 = vst [vmem:[%s4442_s27 + $0x338] sm:$0xf] %v617_v14 }
  0xa7   : > { %620 = vst [vmem:[%s4442_s27 + $0x33c] sm:$0xf] %v619_v15  ;;  %622 = vst [vmem:[%s4442_s27 + $0x340] sm:$0xf] %v621_v16  ;;  %v623_v17 = vld [vmem:[%s4435_s26 + $0xd10] sm:$0xf] }
  0xa8   : > { %v625_v18 = vld [vmem:[%s4435_s26 + $0xd20] sm:$0xf]  ;;  %v627_v19 = vld [vmem:[%s4435_s26 + $0xd30] sm:$0xf]  ;;  %624 = vst [vmem:[%s4442_s27 + $0x344] sm:$0xf] %v623_v17 }
  0xa9   : > { %626 = vst [vmem:[%s4442_s27 + $0x348] sm:$0xf] %v625_v18  ;;  %628 = vst [vmem:[%s4442_s27 + $0x34c] sm:$0xf] %v627_v19  ;;  %v629_v20 = vld [vmem:[%s4435_s26 + $0xd40] sm:$0xf] }
  0xaa   : > { %v631_v21 = vld [vmem:[%s4435_s26 + $0xd50] sm:$0xf]  ;;  %v633_v22 = vld [vmem:[%s4435_s26 + $0xd60] sm:$0xf]  ;;  %630 = vst [vmem:[%s4442_s27 + $0x350] sm:$0xf] %v629_v20 }
  0xab   : > { %632 = vst [vmem:[%s4442_s27 + $0x354] sm:$0xf] %v631_v21  ;;  %634 = vst [vmem:[%s4442_s27 + $0x358] sm:$0xf] %v633_v22  ;;  %v635_v23 = vld [vmem:[%s4435_s26 + $0xd70] sm:$0xf] }
  0xac   : > { %v637_v24 = vld [vmem:[%s4435_s26 + $0xd80] sm:$0xf]  ;;  %v639_v25 = vld [vmem:[%s4435_s26 + $0xd90] sm:$0xf]  ;;  %636 = vst [vmem:[%s4442_s27 + $0x35c] sm:$0xf] %v635_v23 }
  0xad   : > { %638 = vst [vmem:[%s4442_s27 + $0x360] sm:$0xf] %v637_v24  ;;  %640 = vst [vmem:[%s4442_s27 + $0x364] sm:$0xf] %v639_v25  ;;  %v641_v26 = vld [vmem:[%s4435_s26 + $0xda0] sm:$0xf] }
  0xae   : > { %v643_v27 = vld [vmem:[%s4435_s26 + $0xdb0] sm:$0xf]  ;;  %v645_v28 = vld [vmem:[%s4435_s26 + $0xdc0] sm:$0xf]  ;;  %642 = vst [vmem:[%s4442_s27 + $0x368] sm:$0xf] %v641_v26 }
  0xaf   : > { %644 = vst [vmem:[%s4442_s27 + $0x36c] sm:$0xf] %v643_v27  ;;  %646 = vst [vmem:[%s4442_s27 + $0x370] sm:$0xf] %v645_v28  ;;  %v647_v29 = vld [vmem:[%s4435_s26 + $0xdd0] sm:$0xf] }
  0xb0   : > { %v649_v30 = vld [vmem:[%s4435_s26 + $0xde0] sm:$0xf]  ;;  %v651_v31 = vld [vmem:[%s4435_s26 + $0xdf0] sm:$0xf]  ;;  %648 = vst [vmem:[%s4442_s27 + $0x374] sm:$0xf] %v647_v29 }
  0xb1   : > { %650 = vst [vmem:[%s4442_s27 + $0x378] sm:$0xf] %v649_v30  ;;  %652 = vst [vmem:[%s4442_s27 + $0x37c] sm:$0xf] %v651_v31  ;;  %v653_v32 = vld [vmem:[%s4435_s26 + $0xe00] sm:$0xf] }
  0xb2   : > { %v655_v33 = vld [vmem:[%s4435_s26 + $0xe10] sm:$0xf]  ;;  %v657_v34 = vld [vmem:[%s4435_s26 + $0xe20] sm:$0xf]  ;;  %654 = vst [vmem:[%s4442_s27 + $0x380] sm:$0xf] %v653_v32 }
  0xb3   : > { %656 = vst [vmem:[%s4442_s27 + $0x384] sm:$0xf] %v655_v33  ;;  %658 = vst [vmem:[%s4442_s27 + $0x388] sm:$0xf] %v657_v34  ;;  %v659_v35 = vld [vmem:[%s4435_s26 + $0xe30] sm:$0xf] }
  0xb4   : > { %v661_v36 = vld [vmem:[%s4435_s26 + $0xe40] sm:$0xf]  ;;  %v663_v37 = vld [vmem:[%s4435_s26 + $0xe50] sm:$0xf]  ;;  %660 = vst [vmem:[%s4442_s27 + $0x38c] sm:$0xf] %v659_v35 }
  0xb5   : > { %662 = vst [vmem:[%s4442_s27 + $0x390] sm:$0xf] %v661_v36  ;;  %664 = vst [vmem:[%s4442_s27 + $0x394] sm:$0xf] %v663_v37  ;;  %v665_v38 = vld [vmem:[%s4435_s26 + $0xe60] sm:$0xf] }
  0xb6   : > { %v667_v39 = vld [vmem:[%s4435_s26 + $0xe70] sm:$0xf]  ;;  %v669_v40 = vld [vmem:[%s4435_s26 + $0xe80] sm:$0xf]  ;;  %666 = vst [vmem:[%s4442_s27 + $0x398] sm:$0xf] %v665_v38 }
  0xb7   : > { %668 = vst [vmem:[%s4442_s27 + $0x39c] sm:$0xf] %v667_v39  ;;  %670 = vst [vmem:[%s4442_s27 + $0x3a0] sm:$0xf] %v669_v40  ;;  %v671_v41 = vld [vmem:[%s4435_s26 + $0xe90] sm:$0xf] }
  0xb8   : > { %v673_v42 = vld [vmem:[%s4435_s26 + $0xea0] sm:$0xf]  ;;  %v675_v43 = vld [vmem:[%s4435_s26 + $0xeb0] sm:$0xf]  ;;  %672 = vst [vmem:[%s4442_s27 + $0x3a4] sm:$0xf] %v671_v41 }
  0xb9   : > { %674 = vst [vmem:[%s4442_s27 + $0x3a8] sm:$0xf] %v673_v42  ;;  %676 = vst [vmem:[%s4442_s27 + $0x3ac] sm:$0xf] %v675_v43  ;;  %v677_v44 = vld [vmem:[%s4435_s26 + $0xec0] sm:$0xf] }
  0xba   : > { %v679_v45 = vld [vmem:[%s4435_s26 + $0xed0] sm:$0xf]  ;;  %v681_v46 = vld [vmem:[%s4435_s26 + $0xee0] sm:$0xf]  ;;  %678 = vst [vmem:[%s4442_s27 + $0x3b0] sm:$0xf] %v677_v44 }
  0xbb   : > { %680 = vst [vmem:[%s4442_s27 + $0x3b4] sm:$0xf] %v679_v45  ;;  %682 = vst [vmem:[%s4442_s27 + $0x3b8] sm:$0xf] %v681_v46  ;;  %v683_v47 = vld [vmem:[%s4435_s26 + $0xef0] sm:$0xf] }
  0xbc   : > { %v685_v48 = vld [vmem:[%s4435_s26 + $0xf00] sm:$0xf]  ;;  %v687_v49 = vld [vmem:[%s4435_s26 + $0xf10] sm:$0xf]  ;;  %684 = vst [vmem:[%s4442_s27 + $0x3bc] sm:$0xf] %v683_v47 }
  0xbd   : > { %686 = vst [vmem:[%s4442_s27 + $0x3c0] sm:$0xf] %v685_v48  ;;  %688 = vst [vmem:[%s4442_s27 + $0x3c4] sm:$0xf] %v687_v49  ;;  %v689_v50 = vld [vmem:[%s4435_s26 + $0xf20] sm:$0xf] }
  0xbe   : > { %v691_v51 = vld [vmem:[%s4435_s26 + $0xf30] sm:$0xf]  ;;  %v693_v52 = vld [vmem:[%s4435_s26 + $0xf40] sm:$0xf]  ;;  %690 = vst [vmem:[%s4442_s27 + $0x3c8] sm:$0xf] %v689_v50 }
  0xbf   : > { %692 = vst [vmem:[%s4442_s27 + $0x3cc] sm:$0xf] %v691_v51  ;;  %694 = vst [vmem:[%s4442_s27 + $0x3d0] sm:$0xf] %v693_v52  ;;  %v695_v53 = vld [vmem:[%s4435_s26 + $0xf50] sm:$0xf] }
  0xc0   : > { %v697_v54 = vld [vmem:[%s4435_s26 + $0xf60] sm:$0xf]  ;;  %v699_v55 = vld [vmem:[%s4435_s26 + $0xf70] sm:$0xf]  ;;  %696 = vst [vmem:[%s4442_s27 + $0x3d4] sm:$0xf] %v695_v53 }
  0xc1   : > { %698 = vst [vmem:[%s4442_s27 + $0x3d8] sm:$0xf] %v697_v54  ;;  %700 = vst [vmem:[%s4442_s27 + $0x3dc] sm:$0xf] %v699_v55  ;;  %v701_v56 = vld [vmem:[%s4435_s26 + $0xf80] sm:$0xf] }
  0xc2   : > { %v703_v57 = vld [vmem:[%s4435_s26 + $0xf90] sm:$0xf]  ;;  %v705_v58 = vld [vmem:[%s4435_s26 + $0xfa0] sm:$0xf]  ;;  %702 = vst [vmem:[%s4442_s27 + $0x3e0] sm:$0xf] %v701_v56 }
  0xc3   : > { %704 = vst [vmem:[%s4442_s27 + $0x3e4] sm:$0xf] %v703_v57  ;;  %706 = vst [vmem:[%s4442_s27 + $0x3e8] sm:$0xf] %v705_v58  ;;  %v707_v59 = vld [vmem:[%s4435_s26 + $0xfb0] sm:$0xf] }
  0xc4   : > { %v709_v60 = vld [vmem:[%s4435_s26 + $0xfc0] sm:$0xf]  ;;  %v711_v61 = vld [vmem:[%s4435_s26 + $0xfd0] sm:$0xf]  ;;  %708 = vst [vmem:[%s4442_s27 + $0x3ec] sm:$0xf] %v707_v59 }
  0xc5   : > { %710 = vst [vmem:[%s4442_s27 + $0x3f0] sm:$0xf] %v709_v60  ;;  %712 = vst [vmem:[%s4442_s27 + $0x3f4] sm:$0xf] %v711_v61  ;;  %v713_v62 = vld [vmem:[%s4435_s26 + $0xfe0] sm:$0xf] }
  0xc6   : > { %v715_v63 = vld [vmem:[%s4435_s26 + $0xff0] sm:$0xf]  ;;  %v717_v0 = vld [vmem:[%s4435_s26 + $0x1000] sm:$0xf]  ;;  %714 = vst [vmem:[%s4442_s27 + $0x3f8] sm:$0xf] %v713_v62 }
  0xc7   : > { %716 = vst [vmem:[%s4442_s27 + $0x3fc] sm:$0xf] %v715_v63  ;;  %718 = vst [vmem:[%s4442_s27 + $0x400] sm:$0xf] %v717_v0  ;;  %v719_v1 = vld [vmem:[%s4435_s26 + $0x1010] sm:$0xf] }
  0xc8   : > { %v721_v2 = vld [vmem:[%s4435_s26 + $0x1020] sm:$0xf]  ;;  %v723_v3 = vld [vmem:[%s4435_s26 + $0x1030] sm:$0xf]  ;;  %720 = vst [vmem:[%s4442_s27 + $0x404] sm:$0xf] %v719_v1 }
  0xc9   : > { %722 = vst [vmem:[%s4442_s27 + $0x408] sm:$0xf] %v721_v2  ;;  %724 = vst [vmem:[%s4442_s27 + $0x40c] sm:$0xf] %v723_v3  ;;  %v725_v4 = vld [vmem:[%s4435_s26 + $0x1040] sm:$0xf] }
  0xca   : > { %v727_v5 = vld [vmem:[%s4435_s26 + $0x1050] sm:$0xf]  ;;  %v729_v6 = vld [vmem:[%s4435_s26 + $0x1060] sm:$0xf]  ;;  %726 = vst [vmem:[%s4442_s27 + $0x410] sm:$0xf] %v725_v4 }
  0xcb   : > { %728 = vst [vmem:[%s4442_s27 + $0x414] sm:$0xf] %v727_v5  ;;  %730 = vst [vmem:[%s4442_s27 + $0x418] sm:$0xf] %v729_v6  ;;  %v731_v7 = vld [vmem:[%s4435_s26 + $0x1070] sm:$0xf] }
  0xcc   : > { %v733_v8 = vld [vmem:[%s4435_s26 + $0x1080] sm:$0xf]  ;;  %v735_v9 = vld [vmem:[%s4435_s26 + $0x1090] sm:$0xf]  ;;  %732 = vst [vmem:[%s4442_s27 + $0x41c] sm:$0xf] %v731_v7 }
  0xcd   : > { %734 = vst [vmem:[%s4442_s27 + $0x420] sm:$0xf] %v733_v8  ;;  %736 = vst [vmem:[%s4442_s27 + $0x424] sm:$0xf] %v735_v9  ;;  %v737_v10 = vld [vmem:[%s4435_s26 + $0x10a0] sm:$0xf] }
  0xce   : > { %v739_v11 = vld [vmem:[%s4435_s26 + $0x10b0] sm:$0xf]  ;;  %v741_v12 = vld [vmem:[%s4435_s26 + $0x10c0] sm:$0xf]  ;;  %738 = vst [vmem:[%s4442_s27 + $0x428] sm:$0xf] %v737_v10 }
  0xcf   : > { %740 = vst [vmem:[%s4442_s27 + $0x42c] sm:$0xf] %v739_v11  ;;  %742 = vst [vmem:[%s4442_s27 + $0x430] sm:$0xf] %v741_v12  ;;  %v743_v13 = vld [vmem:[%s4435_s26 + $0x10d0] sm:$0xf] }
  0xd0   : > { %v745_v14 = vld [vmem:[%s4435_s26 + $0x10e0] sm:$0xf]  ;;  %v747_v15 = vld [vmem:[%s4435_s26 + $0x10f0] sm:$0xf]  ;;  %744 = vst [vmem:[%s4442_s27 + $0x434] sm:$0xf] %v743_v13 }
  0xd1   : > { %746 = vst [vmem:[%s4442_s27 + $0x438] sm:$0xf] %v745_v14  ;;  %748 = vst [vmem:[%s4442_s27 + $0x43c] sm:$0xf] %v747_v15  ;;  %v749_v16 = vld [vmem:[%s4435_s26 + $0x1100] sm:$0xf] }
  0xd2   : > { %v751_v17 = vld [vmem:[%s4435_s26 + $0x1110] sm:$0xf]  ;;  %v753_v18 = vld [vmem:[%s4435_s26 + $0x1120] sm:$0xf]  ;;  %750 = vst [vmem:[%s4442_s27 + $0x440] sm:$0xf] %v749_v16 }
  0xd3   : > { %752 = vst [vmem:[%s4442_s27 + $0x444] sm:$0xf] %v751_v17  ;;  %754 = vst [vmem:[%s4442_s27 + $0x448] sm:$0xf] %v753_v18  ;;  %v755_v19 = vld [vmem:[%s4435_s26 + $0x1130] sm:$0xf] }
  0xd4   : > { %v757_v20 = vld [vmem:[%s4435_s26 + $0x1140] sm:$0xf]  ;;  %v759_v21 = vld [vmem:[%s4435_s26 + $0x1150] sm:$0xf]  ;;  %756 = vst [vmem:[%s4442_s27 + $0x44c] sm:$0xf] %v755_v19 }
  0xd5   : > { %758 = vst [vmem:[%s4442_s27 + $0x450] sm:$0xf] %v757_v20  ;;  %760 = vst [vmem:[%s4442_s27 + $0x454] sm:$0xf] %v759_v21  ;;  %v761_v22 = vld [vmem:[%s4435_s26 + $0x1160] sm:$0xf] }
  0xd6   : > { %v763_v23 = vld [vmem:[%s4435_s26 + $0x1170] sm:$0xf]  ;;  %v765_v24 = vld [vmem:[%s4435_s26 + $0x1180] sm:$0xf]  ;;  %762 = vst [vmem:[%s4442_s27 + $0x458] sm:$0xf] %v761_v22 }
  0xd7   : > { %764 = vst [vmem:[%s4442_s27 + $0x45c] sm:$0xf] %v763_v23  ;;  %766 = vst [vmem:[%s4442_s27 + $0x460] sm:$0xf] %v765_v24  ;;  %v767_v25 = vld [vmem:[%s4435_s26 + $0x1190] sm:$0xf] }
  0xd8   : > { %v769_v26 = vld [vmem:[%s4435_s26 + $0x11a0] sm:$0xf]  ;;  %v771_v27 = vld [vmem:[%s4435_s26 + $0x11b0] sm:$0xf]  ;;  %768 = vst [vmem:[%s4442_s27 + $0x464] sm:$0xf] %v767_v25 }
  0xd9   : > { %770 = vst [vmem:[%s4442_s27 + $0x468] sm:$0xf] %v769_v26  ;;  %772 = vst [vmem:[%s4442_s27 + $0x46c] sm:$0xf] %v771_v27  ;;  %v773_v28 = vld [vmem:[%s4435_s26 + $0x11c0] sm:$0xf] }
  0xda   : > { %v775_v29 = vld [vmem:[%s4435_s26 + $0x11d0] sm:$0xf]  ;;  %v777_v30 = vld [vmem:[%s4435_s26 + $0x11e0] sm:$0xf]  ;;  %774 = vst [vmem:[%s4442_s27 + $0x470] sm:$0xf] %v773_v28 }
  0xdb   : > { %776 = vst [vmem:[%s4442_s27 + $0x474] sm:$0xf] %v775_v29  ;;  %778 = vst [vmem:[%s4442_s27 + $0x478] sm:$0xf] %v777_v30  ;;  %v779_v31 = vld [vmem:[%s4435_s26 + $0x11f0] sm:$0xf] }
  0xdc   : > { %780 = vst [vmem:[%s4442_s27 + $0x47c] sm:$0xf] %v779_v31 }
  0xdd PF: > { %p3384_p11 = scmp.ge.s32.totalorder %s4321_s23, 1  ;;  %p1390_p12 = scmp.lt.s32.totalorder %s4321_s23, 9 }
  0xdf   : > { %p1391_p13 = pnand %p3384_p11, %p1390_p12 }
  0xe0   : > { %s1397_s28 = sand.u32 (!%p1391_p13), 1, %s4297_s17   ;;  %p1432_p0 = scmp.lt.s32.totalorder (!%p1391_p13), %s4305_s19, 1  ;;  %vm1531_vm0 = vsmask.f32 (!%p1391_p13), 7424  ;;  %vm1873_vm1 = vcmask (!%p1391_p13), 1046528   ;;  %vm3207_vm2 = vcmask (!%p1391_p13), 1040384  }
  0xe1   : > { %1394 = sbr.rel (%p1391_p13) target bundleno = 637 (0x27d), region = 73  ;;  %s1429_s12 = sand.u32 (!%p1391_p13), 1, %s4289_s15   ;;  %vm3209_vm3 = vcmask (!%p1391_p13), 1041408  }
  0xe2   : > { %s4012_s29 = smul.u32 (!%p1391_p13), 1152, %s1397_s28  ;;  %p1437_p1 = scmp.lt.s32.totalorder (!%p1391_p13), %s4309_s20, 3 }
  0xe3   : > { %s4013_s13 = smul.u32 (!%p1391_p13), 20, %s1429_s12 }
  0xe4   : > { %s5018_s30 = scalar_lea.vmem (!%p1391_p13), [#allocation2], %s4012_s29 }
  0xe5   : > { %v4089_v32 = vld [vmem:[%s5018_s30 + $0xc0] sm:$0xff] (!%p1391_p13)   ;;  %v4093_v36 = vld [vmem:[%s5018_s30 + $0xc8] sm:$0xff] (!%p1391_p13)   ;;  %v4097_v40 = vld [vmem:[%s5018_s30 + $0xd0] sm:$0xff] (!%p1391_p13)   ;;  %s5234_s14 = scalar_lea.vmem (!%p1391_p13), [#allocation3], %s4013_s13 }
  0xe6   : > { %v4090_v33 = vld [vmem:[%s5018_s30 + $0x40] sm:$0xff] (!%p1391_p13)   ;;  %3813 = vmatprep.subr.bf16.mxu0 (!%p1391_p13), %v4089_v32  ;;  %v4094_v37 = vld [vmem:[%s5018_s30 + $0x48] sm:$0xff] (!%p1391_p13)   ;;  %v4098_v41 = vld [vmem:[%s5018_s30 + $0x50] sm:$0xff] (!%p1391_p13)  }
  0xe7   : > { %v4091_v34 = vld [vmem:[%s5018_s30 + $0x80] sm:$0xff] (!%p1391_p13)   ;;  %3835 = vmatprep.subr.bf16.mxu1 (!%p1391_p13), %v4090_v33  ;;  %v4095_v38 = vld [vmem:[%s5018_s30 + $0x88] sm:$0xff] (!%p1391_p13)   ;;  %v4099_v42 = vld [vmem:[%s5018_s30 + $0x90] sm:$0xff] (!%p1391_p13)  }
  0xe8   : > { %v4092_v35 = vld [vmem:[%s5018_s30] sm:$0xff]   ;;  %3814 = vmatpush3.bf16.msra.mxu0 %v4091_v34  ;;  %v4096_v39 = vld [vmem:[%s5018_s30 + $0x8] sm:$0xff]   ;;  %v4100_v43 = vld [vmem:[%s5018_s30 + $0x10] sm:$0xff]   ;;  %s1433_s17 = scalar_select %p1432_p0, %s4305_s19, 1 }
  0xe9   : > { %3836 = vmatpush3.bf16.msra.mxu1 %v4092_v35  ;;  %3815 = vmatprep.subr.bf16.mxu0 %v4093_v36  ;;  %v4101_v44 = vld [vmem:[%s5018_s30 + $0xd8] sm:$0xff]   ;;  %v4105_v48 = vld [vmem:[%s5018_s30 + $0xe0] sm:$0xff]   ;;  %v4109_v52 = vld [vmem:[%s5018_s30 + $0xe8] sm:$0xff]   ;;  %s1438_s15 = scalar_select %p1437_p1, %s4309_s20, 3 }
  0xea   : > { %3837 = vmatprep.subr.bf16.mxu1 %v4094_v37  ;;  %v4102_v45 = vld [vmem:[%s5018_s30 + $0x58] sm:$0xff]   ;;  %v4106_v49 = vld [vmem:[%s5018_s30 + $0x60] sm:$0xff]   ;;  %v4110_v53 = vld [vmem:[%s5018_s30 + $0x68] sm:$0xff]   ;;  %s4014_s5 = smul.u32 48, %s1433_s17 }
  0xeb   : > { %v4103_v46 = vld [vmem:[%s5018_s30 + $0x98] sm:$0xff]   ;;  %v4107_v50 = vld [vmem:[%s5018_s30 + $0xa0] sm:$0xff]   ;;  %v4111_v54 = vld [vmem:[%s5018_s30 + $0xa8] sm:$0xff]   ;;  %s1439_s28 = scalar_lea.vmem %s5290_s2, %s1438_s15  ;;  %s1442_s17 = scalar_lea.vmem %s5291_s3, %s1438_s15 }
  0xec   : > { %3816 = vmatpush3.bf16.msra.mxu0 %v4095_v38  ;;  %v4104_v47 = vld [vmem:[%s5018_s30 + $0x18] sm:$0xff]   ;;  %v4108_v51 = vld [vmem:[%s5018_s30 + $0x20] sm:$0xff]   ;;  %v4112_v55 = vld [vmem:[%s5018_s30 + $0x28] sm:$0xff]   ;;  %s5055_s11 = scalar_lea.vmem %s5288_s0, %s4014_s5  ;;  %s4015_s5 = smul.u32 (%p4417_p9), 20, %s4305_s19 }
  0xed   : > { %3838 = vmatpush3.bf16.msra.mxu1 %v4096_v39  ;;  %3817 = vmatprep.subr.bf16.mxu0 %v4097_v40  ;;  %v4113_v56 = vld [vmem:[%s5018_s30 + $0xf0] sm:$0xff]   ;;  %v4117_v60 = vld [vmem:[%s5018_s30 + $0xf8] sm:$0xff]   ;;  %v1450_v0 = vld [vmem:[%s5055_s11 + $0x8] sm:$0xff] }
  0xee   : > { %3839 = vmatprep.subr.bf16.mxu1 %v4098_v41  ;;  %v4114_v57 = vld [vmem:[%s5018_s30 + $0x70] sm:$0xff]   ;;  %v4118_v61 = vld [vmem:[%s5018_s30 + $0x78] sm:$0xff]   ;;  %v4125_v7 = vld [vmem:[%s5018_s30 + $0x140] sm:$0xff]   ;;  %s3221_s6 = sadd.s32 (%p4417_p9), %s4309_s20, %s4015_s5 }
  0xef   : > { %v4115_v58 = vld [vmem:[%s5018_s30 + $0xb0] sm:$0xff]   ;;  %v4119_v62 = vld [vmem:[%s5018_s30 + $0xb8] sm:$0xff]   ;;  %v4127_v14 = vld [vmem:[%s5018_s30 + $0x1c0] sm:$0xff]   ;;  %s3810_s10 = sshll.u32 (%p4417_p9), %s3221_s6, 2 }
  0xf0   : > { %3818 = vmatpush3.bf16.msra.mxu0 %v4099_v42  ;;  %v4116_v59 = vld [vmem:[%s5018_s30 + $0x30] sm:$0xff]   ;;  %v4120_v63 = vld [vmem:[%s5018_s30 + $0x38] sm:$0xff]   ;;  %v4128_v15 = vld [vmem:[%s5018_s30 + $0x180] sm:$0xff]   ;;  %s3223_s7 = scalar_lea.vmem (%p4417_p9), %s5292_s4, %s3810_s10 }
  0xf1   : > { %3840 = vmatpush3.bf16.msra.mxu1 %v4100_v43  ;;  %3819 = vmatprep.subr.bf16.mxu0 %v4101_v44  ;;  %v5061_v1 = vld [vmem:[%s5055_s11 + $0x10] sm:$0xff]  ;;  %v1484_v2 = vld [vmem:[%s5055_s11 + $0x18] sm:$0x11]  ;;  %v4126_v21 = vld [vmem:[%s5018_s30 + $0x100] sm:$0xff]  }
  0xf2   : > { %3841 = vmatprep.subr.bf16.mxu1 %v4102_v45  ;;  %v3419_v3 = vcombine.high %v1450_v0, %v5061_v1  ;;  %v5065_v4 = vcombine.high %v1484_v2, %v1484_v2  ;;  %v3418_v5 = vcombine.low %v1450_v0, %v5061_v1  ;;  %v5068_v6 = vcombine.low %v1484_v2, %v1484_v2  ;;  %v4129_v23 = vld [vmem:[%s5018_s30 + $0x148] sm:$0xff]   ;;  %v4133_v29 = vld [vmem:[%s5018_s30 + $0x150] sm:$0xff]   ;;  %v4137_v33 = vld [vmem:[%s5018_s30 + $0x158] sm:$0xff]  }
  0xf3   : > { %v4131_v25 = vld [vmem:[%s5018_s30 + $0x1c8] sm:$0xff]   ;;  %v4135_v30 = vld [vmem:[%s5018_s30 + $0x1d0] sm:$0xff]   ;;  %v4139_v34 = vld [vmem:[%s5018_s30 + $0x1d8] sm:$0xff]  }
  0xf4   : > { %3820 = vmatpush3.bf16.msra.mxu0 %v4103_v46  ;;  %v1545_v8 = vshrl.u32 %v3419_v3, 16  ;;  %v1547_v9 = vshll.u32 %v3419_v3, 16  ;;  %v1552_v10 = vshll.u32 %v5065_v4, 16  ;;  %1825 = vmatprep.mubr.bf16.mxu1 %v3419_v3  ;;  %v1533_v11 = vshrl.u32 %v3418_v5, 16  ;;  %v4132_v27 = vld [vmem:[%s5018_s30 + $0x188] sm:$0xff]   ;;  %v4136_v31 = vld [vmem:[%s5018_s30 + $0x190] sm:$0xff]  }
  0xf5   : > { %3842 = vmatpush3.bf16.msra.mxu1 %v4104_v47  ;;  %3821 = vmatprep.subr.bf16.mxu0 %v4105_v48  ;;  %v1535_v12 = vshll.u32 %v3418_v5, 16  ;;  %v1540_v13 = vshll.u32 %v5068_v6, 16  ;;  %v4130_v28 = vld [vmem:[%s5018_s30 + $0x108] sm:$0xff]   ;;  %v4134_v32 = vld [vmem:[%s5018_s30 + $0x110] sm:$0xff]   ;;  %v4140_v35 = vld [vmem:[%s5018_s30 + $0x198] sm:$0xff]  }
  0xf6   : > { %3843 = vmatprep.subr.bf16.mxu1 %v4106_v49  ;;  %v1549_v16 = vrot.slane %v1547_v9, 1  ;;  %v1554_v17 = vrot.slane %v1552_v10, 1  ;;  %v4138_v36 = vld [vmem:[%s5018_s30 + $0x118] sm:$0xff]   ;;  %v4141_v37 = vld [vmem:[%s5018_s30 + $0x160] sm:$0xff]   ;;  %v4145_v41 = vld [vmem:[%s5018_s30 + $0x168] sm:$0xff]  }
  0xf7   : > { %v1537_v18 = vrot.slane %v1535_v12, 1  ;;  %v1542_v19 = vrot.slane %v1540_v13, 1  ;;  %v4143_v38 = vld [vmem:[%s5018_s30 + $0x1e0] sm:$0xff]   ;;  %v4147_v42 = vld [vmem:[%s5018_s30 + $0x1e8] sm:$0xff]   ;;  %v4149_v45 = vld [vmem:[%s5018_s30 + $0x170] sm:$0xff]  }
  0xf8   : > { %3822 = vmatpush3.bf16.msra.mxu0 %v4107_v50  ;;  %v1550_v20 = vor.u32 %v1549_v16, %v1545_v8  ;;  %v4144_v39 = vld [vmem:[%s5018_s30 + $0x1a0] sm:$0xff]   ;;  %v4148_v43 = vld [vmem:[%s5018_s30 + $0x1a8] sm:$0xff]   ;;  %v4151_v46 = vld [vmem:[%s5018_s30 + $0x1f0] sm:$0xff]  }
  0xf9   : > { %3844 = vmatpush3.bf16.msra.mxu1 %v4108_v51  ;;  %3823 = vmatprep.subr.bf16.mxu0 %v4109_v52  ;;  %v1538_v22 = vor.u32 %v1537_v18, %v1533_v11  ;;  %v4142_v40 = vld [vmem:[%s5018_s30 + $0x120] sm:$0xff]   ;;  %v4146_v44 = vld [vmem:[%s5018_s30 + $0x128] sm:$0xff]   ;;  %v4152_v47 = vld [vmem:[%s5018_s30 + $0x1b0] sm:$0xff]  }
  0xfa   : > { %3845 = vmatprep.subr.bf16.mxu1 %v4110_v53  ;;  %v1555_v24 = vsel %vm1531_vm0, %v1550_v20, %v1554_v17  ;;  %v4150_v48 = vld [vmem:[%s5018_s30 + $0x130] sm:$0xff]   ;;  %v4153_v49 = vld [vmem:[%s5018_s30 + $0x178] sm:$0xff]   ;;  %v1834_v51 = vld [vmem:[%s5055_s11 + $0x8] sm:$0xee]  ;;  %v1878_v53 = vrot.slane %v5065_v4, 1 }
  0xfb   : > { %1686 = vmatprep.mubr.bf16.mxu0 %v1555_v24  ;;  %v1543_v26 = vsel %vm1531_vm0, %v1538_v22, %v1542_v19  ;;  %v4155_v50 = vld [vmem:[%s5018_s30 + $0x1f8] sm:$0xff]   ;;  %v3487_v52 = vcombine.high %v1834_v51, %v5061_v1  ;;  %v4163_v2 = vld [vmem:[%s5018_s30 + $0x2c0] sm:$0xff]   ;;  %v4166_v8 = vld [vmem:[%s5018_s30 + $0x208] sm:$0xff]  }
  0xfc   : > { %3824 = vmatpush3.bf16.msra.mxu0 %v4111_v54  ;;  %v4157_v54 = vld [vmem:[%s5018_s30 + $0x1b8] sm:$0xff]   ;;  %v4164_v3 = vld [vmem:[%s5018_s30 + $0x280] sm:$0xff]   ;;  %v4169_v9 = vld [vmem:[%s5018_s30 + $0x250] sm:$0xff]  }
  0xfd   : > { %3846 = vmatpush3.bf16.msra.mxu1 %v4112_v55  ;;  %3825 = vmatprep.subr.bf16.mxu0 %v4113_v56  ;;  %v3486_v55 = vcombine.low %v1834_v51, %v5061_v1  ;;  %v4154_v56 = vld [vmem:[%s5018_s30 + $0x138] sm:$0xff]   ;;  %v4162_v4 = vld [vmem:[%s5018_s30 + $0x200] sm:$0xff]   ;;  %v4171_v10 = vld [vmem:[%s5018_s30 + $0x2d0] sm:$0xff]  }
  0xfe   : > { %3847 = vmatprep.subr.bf16.mxu1 %v4114_v57  ;;  %v1875_v57 = vrot.slane %v5068_v6, 1  ;;  %v4167_v6 = vld [vmem:[%s5018_s30 + $0x2c8] sm:$0xff]   ;;  %v4172_v11 = vld [vmem:[%s5018_s30 + $0x290] sm:$0xff]   ;;  %v4173_v13 = vld [vmem:[%s5018_s30 + $0x258] sm:$0xff]  }
  0xff   : > { %v4170_v12 = vld [vmem:[%s5018_s30 + $0x210] sm:$0xff]   ;;  %v4174_v16 = vld [vmem:[%s5018_s30 + $0x218] sm:$0xff]   ;;  %v4177_v17 = vld [vmem:[%s5018_s30 + $0x260] sm:$0xff]  }
 0x100   : > { %3826 = vmatpush3.bf16.msra.mxu0 %v4115_v58  ;;  %v5112_v58 = vld [vmem:[%s5055_s11 + $0x18] sm:$0xff]  ;;  %v4179_v18 = vld [vmem:[%s5018_s30 + $0x2e0] sm:$0xff]   ;;  %v4183_v22 = vld [vmem:[%s5018_s30 + $0x2e8] sm:$0xff]  }
 0x101   : > { %3848 = vmatpush3.bf16.msra.mxu1 %v4116_v59  ;;  %3827 = vmatprep.subr.bf16.mxu0 %v4117_v60  ;;  %v1877_v59 = vrot.slane %v3487_v52, 1  ;;  %v1874_v60 = vrot.slane %v3486_v55, 1  ;;  %v4180_v19 = vld [vmem:[%s5018_s30 + $0x2a0] sm:$0xff]  }
 0x102   : > { %3849 = vmatprep.subr.bf16.mxu1 %v4118_v61  ;;  %v5116_v61 = vcombine.low %v5061_v1, %v5112_v58  ;;  %v4178_v20 = vld [vmem:[%s5018_s30 + $0x220] sm:$0xff]  }
 0x103   : > { %v1879_v0 = vsel %vm1873_vm1, %v1877_v59, %v1878_v53  ;;  %v4199_v53 = vld [vmem:[%s5018_s30 + $0x3c0] sm:$0xff]  }
 0x104   : > { %3828 = vmatpush3.bf16.msra.mxu0 %v4119_v62  ;;  %v5120_v62 = vcombine.high %v5061_v1, %v5112_v58  ;;  %v1876_v1 = vsel %vm1873_vm1, %v1874_v60, %v1875_v57  ;;  %v4200_v57 = vld [vmem:[%s5018_s30 + $0x380] sm:$0xff]   ;;  %v4201_v60 = vld [vmem:[%s5018_s30 + $0x348] sm:$0xff]  }
 0x105   : > { %3850 = vmatpush3.bf16.msra.mxu1 %v4120_v63  ;;  %3857 = vmatprep.subr.bf16.mxu0 %v4125_v7  ;;  %v4159_v63 = vld [vmem:[%s5018_s30 + $0x240] sm:$0xff]   ;;  %v4168_v7 = vld [vmem:[%s5018_s30 + $0x288] sm:$0xff]  }
 0x106   : > { %3879 = vmatprep.subr.bf16.mxu1 %v4127_v14  ;;  %v4175_v14 = vld [vmem:[%s5018_s30 + $0x2d8] sm:$0xff]   ;;  %v2265_v24 = vshll.u32 %v5120_v62, 16 }
 0x107   : > { %1687 = vmatmul.mubr.bf16.vlgmr.msra.gmra.mrb[0].mxu0 %v1543_v26  ;;  %v2253_v26 = vshll.u32 %v5116_v61, 16 }
 0x108   : > { %1826 = vmatmul.mubr.bf16.vlgmr.msra.gmra.mrb[0].mxu1 %v3418_v5  ;;  %3858 = vmatpush3.bf16.msra.mxu0 %v4126_v21  ;;  %v4165_v5 = vld [vmem:[%s5018_s30 + $0x248] sm:$0xff]  }
 0x109   : > { %3880 = vmatpush3.bf16.msra.mxu1 %v4128_v15  ;;  %3859 = vmatprep.subr.bf16.mxu0 %v4129_v23  ;;  %v4176_v15 = vld [vmem:[%s5018_s30 + $0x298] sm:$0xff]   ;;  %v4181_v21 = vld [vmem:[%s5018_s30 + $0x268] sm:$0xff]  }
 0x10a   : > { %3881 = vmatprep.subr.bf16.mxu1 %v4131_v25  ;;  %2190 = vmatprep.mubr.bf16.mxu1 %v5120_v62  ;;  %v4184_v23 = vld [vmem:[%s5018_s30 + $0x2a8] sm:$0xff]  }
 0x10b   : > { %2010 = vmatprep.mubr.bf16.mxu0 %v1879_v0  ;;  %v4182_v25 = vld [vmem:[%s5018_s30 + $0x228] sm:$0xff]  }
 0x10c   : > { %3860 = vmatpush3.bf16.msra.mxu0 %v4130_v28  ;;  %v2263_v28 = vshrl.u32 %v5120_v62, 16 }
 0x10d   : > { %3882 = vmatpush3.bf16.msra.mxu1 %v4132_v27  ;;  %3861 = vmatprep.subr.bf16.mxu0 %v4133_v29  ;;  %v4185_v27 = vld [vmem:[%s5018_s30 + $0x270] sm:$0xff]  }
 0x10e   : > { %3883 = vmatprep.subr.bf16.mxu1 %v4135_v30  ;;  %v4187_v29 = vld [vmem:[%s5018_s30 + $0x2f0] sm:$0xff]   ;;  %v2251_v30 = vshrl.u32 %v5116_v61, 16 }
 0x110   : > { %3862 = vmatpush3.bf16.msra.mxu0 %v4134_v32  ;;  %v2267_v32 = vrot.slane %v2265_v24, 1  ;;  %v4225_v24 = vld [vmem:[%s5018_s30 + $0x378] sm:$0xff]  }
 0x111   : > { %3884 = vmatpush3.bf16.msra.mxu1 %v4136_v31  ;;  %3863 = vmatprep.subr.bf16.mxu0 %v4137_v33  ;;  %v4188_v31 = vld [vmem:[%s5018_s30 + $0x2b0] sm:$0xff]  }
 0x112   : > { %3885 = vmatprep.subr.bf16.mxu1 %v4139_v34  ;;  %v4186_v33 = vld [vmem:[%s5018_s30 + $0x230] sm:$0xff]   ;;  %v2255_v34 = vrot.slane %v2253_v26, 1  ;;  %v4227_v26 = vld [vmem:[%s5018_s30 + $0x3f8] sm:$0xff]  }
 0x114   : > { %3864 = vmatpush3.bf16.msra.mxu0 %v4138_v36  ;;  %v4191_v36 = vld [vmem:[%s5018_s30 + $0x2f8] sm:$0xff]  }
 0x115   : > { %3886 = vmatpush3.bf16.msra.mxu1 %v4140_v35  ;;  %3865 = vmatprep.subr.bf16.mxu0 %v4141_v37  ;;  %v4189_v35 = vld [vmem:[%s5018_s30 + $0x278] sm:$0xff]   ;;  %v2203_v37 = vld [vmem:[%s5055_s11 + $0x20] sm:$0x11] }
 0x116   : > { %3887 = vmatprep.subr.bf16.mxu1 %v4143_v38  ;;  %v3589_v38 = vcombine.high %v2203_v37, %v2203_v37 }
 0x118   : > { %3866 = vmatpush3.bf16.msra.mxu0 %v4142_v40  ;;  %v3588_v40 = vcombine.low %v2203_v37, %v2203_v37 }
 0x119   : > { %3888 = vmatpush3.bf16.msra.mxu1 %v4144_v39  ;;  %3867 = vmatprep.subr.bf16.mxu0 %v4145_v41  ;;  %v4193_v39 = vld [vmem:[%s5018_s30 + $0x2b8] sm:$0xff]  }
 0x11a   : > { %3889 = vmatprep.subr.bf16.mxu1 %v4147_v42  ;;  %v4190_v41 = vld [vmem:[%s5018_s30 + $0x238] sm:$0xff]   ;;  %v2268_v42 = vor.u32 %v2267_v32, %v2263_v28  ;;  %v2455_v52 = vrot.slane %v3588_v40, 1  ;;  %v2783_v32 = vld [vmem:[%s5055_s11 + $0x28] sm:$0x11] }
 0x11c   : > { %3868 = vmatpush3.bf16.msra.mxu0 %v4146_v44  ;;  %v2415_v44 = vld [vmem:[%s5055_s11 + $0x10] sm:$0xee] }
 0x11d   : > { %3890 = vmatpush3.bf16.msra.mxu1 %v4148_v43  ;;  %3869 = vmatprep.subr.bf16.mxu0 %v4149_v45  ;;  %v2256_v43 = vor.u32 %v2255_v34, %v2251_v30  ;;  %v2270_v45 = vshll.u32 %v3589_v38, 16  ;;  %v3638_v51 = vcombine.low %v2415_v44, %v5112_v58  ;;  %v4230_v30 = vld [vmem:[%s5018_s30 + $0x3b8] sm:$0xff]  }
 0x11e   : > { %3891 = vmatprep.subr.bf16.mxu1 %v4151_v46  ;;  %v2258_v46 = vshll.u32 %v3588_v40, 16  ;;  %v4233_v40 = vld [vmem:[%s5018_s30 + $0x400] sm:$0xff]  }
 0x11f   : > { %v2454_v59 = vrot.slane %v3638_v51, 1  ;;  %v4237_v51 = vld [vmem:[%s5018_s30 + $0x450] sm:$0xff]  }
 0x120   : > { %3870 = vmatpush3.bf16.msra.mxu0 %v4150_v48  ;;  %v3639_v48 = vcombine.high %v2415_v44, %v5112_v58  ;;  %v2260_v55 = vrot.slane %v2258_v46, 1 }
 0x121   : > { %3892 = vmatpush3.bf16.msra.mxu1 %v4152_v47  ;;  %3871 = vmatprep.subr.bf16.mxu0 %v4153_v49  ;;  %v4195_v47 = vld [vmem:[%s5018_s30 + $0x340] sm:$0xff]   ;;  %v2458_v49 = vrot.slane %v3589_v38, 1  ;;  %v2456_v0 = vsel %vm1873_vm1, %v2454_v59, %v2455_v52  ;;  %v4238_v52 = vld [vmem:[%s5018_s30 + $0x410] sm:$0xff]  }
 0x122   : > { %3893 = vmatprep.subr.bf16.mxu1 %v4155_v50  ;;  %v4197_v50 = vld [vmem:[%s5018_s30 + $0x300] sm:$0xff]   ;;  %v2261_v62 = vsel %vm1531_vm0, %v2256_v43, %v2260_v55  ;;  %v4235_v43 = vld [vmem:[%s5018_s30 + $0x448] sm:$0xff]  }
 0x123   : > { %v4241_v55 = vld [vmem:[%s5018_s30 + $0x460] sm:$0xff]  }
 0x124   : > { %3872 = vmatpush3.bf16.msra.mxu0 %v4154_v56  ;;  %v2457_v56 = vrot.slane %v3639_v48, 1  ;;  %v4236_v48 = vld [vmem:[%s5018_s30 + $0x408] sm:$0xff]  }
 0x125   : > { %3894 = vmatpush3.bf16.msra.mxu1 %v4157_v54  ;;  %3901 = vmatprep.subr.bf16.mxu0 %v4159_v63  ;;  %v2272_v54 = vrot.slane %v2270_v45, 1 }
 0x126   : > { %3923 = vmatprep.subr.bf16.mxu1 %v4163_v2  ;;  %v2459_v63 = vsel %vm1873_vm1, %v2457_v56, %v2458_v49  ;;  %v4202_v2 = vld [vmem:[%s5018_s30 + $0x308] sm:$0xff]   ;;  %v2995_v56 = vld [vmem:[%s5055_s11 + $0x18] sm:$0xee] }
 0x127   : > { %2011 = vmatmul.mubr.bf16.vlgmr.msra.gmra.mrb[4].mxu0 %v1876_v1  ;;  %v4204_v1 = vld [vmem:[%s5018_s30 + $0x388] sm:$0xff]  }
 0x128   : > { %2191 = vmatmul.mubr.bf16.vlgmr.msra.gmra.mrb[4].mxu1 %v5116_v61  ;;  %3902 = vmatpush3.bf16.msra.mxu0 %v4162_v4  ;;  %v2273_v61 = vsel %vm1531_vm0, %v2268_v42, %v2272_v54  ;;  %v4205_v4 = vld [vmem:[%s5018_s30 + $0x350] sm:$0xff]   ;;  %v4240_v54 = vld [vmem:[%s5018_s30 + $0x418] sm:$0xff]  }
 0x129   : > { %3924 = vmatpush3.bf16.msra.mxu1 %v4164_v3  ;;  %3903 = vmatprep.subr.bf16.mxu0 %v4165_v5  ;;  %v4203_v3 = vld [vmem:[%s5018_s30 + $0x3c8] sm:$0xff]   ;;  %v4206_v5 = vld [vmem:[%s5018_s30 + $0x310] sm:$0xff]  }
 0x12a   : > { %3925 = vmatprep.subr.bf16.mxu1 %v4167_v6  ;;  %2404 = vmatprep.mubr.bf16.mxu0 %v2273_v61  ;;  %v4207_v6 = vld [vmem:[%s5018_s30 + $0x3d0] sm:$0xff]   ;;  %v4243_v61 = vld [vmem:[%s5018_s30 + $0x468] sm:$0xff]  }
 0x12b   : > { %2590 = vmatprep.mubr.bf16.mxu1 %v2459_v63 }
 0x12c   : > { %3904 = vmatpush3.bf16.msra.mxu0 %v4166_v8  ;;  %v4209_v8 = vld [vmem:[%s5018_s30 + $0x358] sm:$0xff]  }
 0x12d   : > { %3926 = vmatpush3.bf16.msra.mxu1 %v4168_v7  ;;  %3905 = vmatprep.subr.bf16.mxu0 %v4169_v9  ;;  %v4208_v7 = vld [vmem:[%s5018_s30 + $0x390] sm:$0xff]   ;;  %v4210_v9 = vld [vmem:[%s5018_s30 + $0x318] sm:$0xff]  }
 0x12e   : > { %3927 = vmatprep.subr.bf16.mxu1 %v4171_v10  ;;  %v4211_v10 = vld [vmem:[%s5018_s30 + $0x3d8] sm:$0xff]  }
 0x130   : > { %3906 = vmatpush3.bf16.msra.mxu0 %v4170_v12  ;;  %v4213_v12 = vld [vmem:[%s5018_s30 + $0x360] sm:$0xff]  }
 0x131   : > { %3928 = vmatpush3.bf16.msra.mxu1 %v4172_v11  ;;  %3907 = vmatprep.subr.bf16.mxu0 %v4173_v13  ;;  %v4212_v11 = vld [vmem:[%s5018_s30 + $0x398] sm:$0xff]   ;;  %v4214_v13 = vld [vmem:[%s5018_s30 + $0x320] sm:$0xff]  }
 0x132   : > { %3929 = vmatprep.subr.bf16.mxu1 %v4175_v14  ;;  %v4215_v14 = vld [vmem:[%s5018_s30 + $0x3e0] sm:$0xff]  }
 0x134   : > { %3908 = vmatpush3.bf16.msra.mxu0 %v4174_v16  ;;  %v4217_v16 = vld [vmem:[%s5018_s30 + $0x368] sm:$0xff]  }
 0x135   : > { %3930 = vmatpush3.bf16.msra.mxu1 %v4176_v15  ;;  %3909 = vmatprep.subr.bf16.mxu0 %v4177_v17  ;;  %v4216_v15 = vld [vmem:[%s5018_s30 + $0x3a0] sm:$0xff]   ;;  %v4218_v17 = vld [vmem:[%s5018_s30 + $0x328] sm:$0xff]  }
 0x136   : > { %3931 = vmatprep.subr.bf16.mxu1 %v4179_v18  ;;  %v4219_v18 = vld [vmem:[%s5018_s30 + $0x3e8] sm:$0xff]  }
 0x138   : > { %3910 = vmatpush3.bf16.msra.mxu0 %v4178_v20  ;;  %v4221_v20 = vld [vmem:[%s5018_s30 + $0x370] sm:$0xff]  }
 0x139   : > { %3932 = vmatpush3.bf16.msra.mxu1 %v4180_v19  ;;  %3911 = vmatprep.subr.bf16.mxu0 %v4181_v21  ;;  %v4220_v19 = vld [vmem:[%s5018_s30 + $0x3a8] sm:$0xff]   ;;  %v4222_v21 = vld [vmem:[%s5018_s30 + $0x330] sm:$0xff]  }
 0x13a   : > { %3933 = vmatprep.subr.bf16.mxu1 %v4183_v22  ;;  %v4223_v22 = vld [vmem:[%s5018_s30 + $0x3f0] sm:$0xff]  }
 0x13c   : > { %3912 = vmatpush3.bf16.msra.mxu0 %v4182_v25  ;;  %v4226_v25 = vld [vmem:[%s5018_s30 + $0x338] sm:$0xff]  }
 0x13d   : > { %3934 = vmatpush3.bf16.msra.mxu1 %v4184_v23  ;;  %3913 = vmatprep.subr.bf16.mxu0 %v4185_v27  ;;  %v4224_v23 = vld [vmem:[%s5018_s30 + $0x3b0] sm:$0xff]   ;;  %v5202_v27 = vld [vmem:[%s5055_s11 + $0x20] sm:$0xff] }
 0x13e   : > { %3935 = vmatprep.subr.bf16.mxu1 %v4187_v29  ;;  %v3688_v28 = vcombine.low %v5112_v58, %v5202_v27  ;;  %v3689_v29 = vcombine.high %v5112_v58, %v5202_v27 }
 0x140   : > { %3914 = vmatpush3.bf16.msra.mxu0 %v4186_v33  ;;  %v2843_v33 = vshrl.u32 %v3689_v29, 16  ;;  %v2845_v34 = vshll.u32 %v3689_v29, 16  ;;  %v2831_v37 = vshrl.u32 %v3688_v28, 16  ;;  %v2833_v38 = vshll.u32 %v3688_v28, 16 }
 0x141   : > { %3936 = vmatpush3.bf16.msra.mxu1 %v4188_v31  ;;  %3915 = vmatprep.subr.bf16.mxu0 %v4189_v35  ;;  %v4231_v31 = vld [vmem:[%s5018_s30 + $0x440] sm:$0xff]   ;;  %v3741_v35 = vcombine.high %v2783_v32, %v2783_v32 }
 0x142   : > { %3937 = vmatprep.subr.bf16.mxu1 %v4191_v36  ;;  %v3740_v36 = vcombine.low %v2783_v32, %v2783_v32 }
 0x143   : > { %v2850_v58 = vshll.u32 %v3741_v35, 16  ;;  %v3038_v59 = vrot.slane %v3741_v35, 1 }
 0x144   : > { %3916 = vmatpush3.bf16.msra.mxu0 %v4190_v41  ;;  %v2835_v41 = vrot.slane %v2833_v38, 1  ;;  %v2838_v42 = vshll.u32 %v3740_v36, 16 }
 0x145   : > { %3938 = vmatpush3.bf16.msra.mxu1 %v4193_v39  ;;  %3945 = vmatprep.subr.bf16.mxu0 %v4195_v47  ;;  %v2847_v39 = vrot.slane %v2845_v34, 1  ;;  %v2852_v45 = vrot.slane %v2850_v58, 1 }
 0x146   : > { %3967 = vmatprep.subr.bf16.mxu1 %v4199_v53  ;;  %v2836_v46 = vor.u32 %v2835_v41, %v2831_v37  ;;  %v2840_v47 = vrot.slane %v2838_v42, 1  ;;  %v4239_v53 = vld [vmem:[%s5018_s30 + $0x458] sm:$0xff]  }
 0x147   : > { %2405 = vmatmul.mubr.bf16.vlgmr.msra.gmra.mrb[8].mxu0 %v2261_v62  ;;  %v2848_v44 = vor.u32 %v2847_v39, %v2843_v33 }
 0x148   : > { %2591 = vmatmul.mubr.bf16.vlgmr.msra.gmra.mrb[8].mxu1 %v2456_v0  ;;  %3946 = vmatpush3.bf16.msra.mxu0 %v4197_v50  ;;  %v2841_v50 = vsel %vm1531_vm0, %v2836_v46, %v2840_v47  ;;  %v4244_v0 = vld [vmem:[%s5018_s30 + $0x428] sm:$0xff]  }
 0x149   : > { %3968 = vmatpush3.bf16.msra.mxu1 %v4200_v57  ;;  %3947 = vmatprep.subr.bf16.mxu0 %v4201_v60  ;;  %v2853_v49 = vsel %vm1531_vm0, %v2848_v44, %v2852_v45  ;;  %v3791_v57 = vcombine.high %v2995_v56, %v5202_v27  ;;  %v4242_v60 = vld [vmem:[%s5018_s30 + $0x420] sm:$0xff]  }
 0x14a   : > { %3969 = vmatprep.subr.bf16.mxu1 %v4203_v3  ;;  %2770 = vmatprep.mubr.bf16.mxu0 %v3689_v29  ;;  %v4246_v3 = vld [vmem:[%s5018_s30 + $0x430] sm:$0xff]  }
 0x14b   : > { %2984 = vmatprep.mubr.bf16.mxu1 %v2853_v49  ;;  %v3037_v62 = vrot.slane %v3791_v57, 1 }
 0x14c   : > { %3948 = vmatpush3.bf16.msra.mxu0 %v4202_v2  ;;  %v4245_v2 = vld [vmem:[%s5018_s30 + $0x470] sm:$0xff]  }
 0x14d   : > { %3970 = vmatpush3.bf16.msra.mxu1 %v4204_v1  ;;  %3949 = vmatprep.subr.bf16.mxu0 %v4205_v4  ;;  %v3039_v63 = vsel %vm1873_vm1, %v3037_v62, %v3038_v59  ;;  %v3790_v1 = vcombine.low %v2995_v56, %v5202_v27  ;;  %v4247_v4 = vld [vmem:[%s5018_s30 + $0x478] sm:$0xff]  }
 0x14e   : > { %3971 = vmatprep.subr.bf16.mxu1 %v4207_v6 }
 0x14f   : > { %v3034_v6 = vrot.slane %v3790_v1, 1 }
 0x150   : > { %3950 = vmatpush3.bf16.msra.mxu0 %v4206_v5  ;;  %v4248_v5 = vld [vmem:[%s5018_s30 + $0x438] sm:$0xff]  }
 0x151   : > { %3972 = vmatpush3.bf16.msra.mxu1 %v4208_v7  ;;  %3951 = vmatprep.subr.bf16.mxu0 %v4209_v8  ;;  %v3035_v7 = vrot.slane %v3740_v36, 1 }
 0x152   : > { %3973 = vmatprep.subr.bf16.mxu1 %v4211_v10 }
 0x153   : > { %v3036_v8 = vsel %vm1873_vm1, %v3034_v6, %v3035_v7 }
 0x154   : > { %3952 = vmatpush3.bf16.msra.mxu0 %v4210_v9 }
 0x155   : > { %3974 = vmatpush3.bf16.msra.mxu1 %v4212_v11  ;;  %3953 = vmatprep.subr.bf16.mxu0 %v4213_v12 }
 0x156   : > { %3975 = vmatprep.subr.bf16.mxu1 %v4215_v14 }
 0x158   : > { %3954 = vmatpush3.bf16.msra.mxu0 %v4214_v13 }
 0x159   : > { %3976 = vmatpush3.bf16.msra.mxu1 %v4216_v15  ;;  %3955 = vmatprep.subr.bf16.mxu0 %v4217_v16 }
 0x15a   : > { %3977 = vmatprep.subr.bf16.mxu1 %v4219_v18 }
 0x15c   : > { %3956 = vmatpush3.bf16.msra.mxu0 %v4218_v17 }
 0x15d   : > { %3978 = vmatpush3.bf16.msra.mxu1 %v4220_v19  ;;  %3957 = vmatprep.subr.bf16.mxu0 %v4221_v20 }
 0x15e   : > { %3979 = vmatprep.subr.bf16.mxu1 %v4223_v22 }
 0x160   : > { %3958 = vmatpush3.bf16.msra.mxu0 %v4222_v21 }
 0x161   : > { %3980 = vmatpush3.bf16.msra.mxu1 %v4224_v23  ;;  %3959 = vmatprep.subr.bf16.mxu0 %v4225_v24  ;;  %v4323_v23 = vmov 0  }
 0x162   : > { %3981 = vmatprep.subr.bf16.mxu1 %v4227_v26  ;;  %1446 = vst [vmem:[%s5234_s14] sm:$0xf] %v4323_v23  ;;  %1447 = vst [vmem:[%s5234_s14 + $0x4] sm:$0xf] %v4323_v23 }
 0x163   : > { %1448 = vst [vmem:[%s5234_s14 + $0xc] sm:$0xf] %v4323_v23  ;;  %1449 = vst [vmem:[%s5234_s14 + $0x10] sm:$0xf] %v4323_v23 }
 0x164   : > { %3960 = vmatpush3.bf16.msra.mxu0 %v4226_v25 }
 0x165   : > { %3982 = vmatpush3.bf16.msra.mxu1 %v4230_v30  ;;  %3989 = vmatprep.subr.bf16.mxu0 %v4231_v31 }
 0x167   : > { %2771 = vmatmul.mubr.bf16.vlgmr.msra.gmra.mrb[12].mxu0 %v3688_v28 }
 0x168   : > { %3990 = vmatpush3.bf16.msra.mxu0 %v4233_v40  ;;  %2985 = vmatmul.mubr.bf16.vlgmr.msra.gmra.mrb[12].mxu1 %v2841_v50 }
 0x169   : > { %3991 = vmatprep.subr.bf16.mxu0 %v4235_v43  ;;  %3170 = vmatprep.mubr.bf16.mxu0 %v3039_v63 }
 0x16c   : > { %3992 = vmatpush3.bf16.msra.mxu0 %v4236_v48 }
 0x16d   : > { %3993 = vmatprep.subr.bf16.mxu0 %v4237_v51 }
 0x170   : > { %3994 = vmatpush3.bf16.msra.mxu0 %v4238_v52 }
 0x171   : > { %3995 = vmatprep.subr.bf16.mxu0 %v4239_v53 }
 0x174   : > { %3996 = vmatpush3.bf16.msra.mxu0 %v4240_v54 }
 0x175   : > { %3997 = vmatprep.subr.bf16.mxu0 %v4241_v55 }
 0x178   : > { %3998 = vmatpush3.bf16.msra.mxu0 %v4242_v60 }
 0x179   : > { %3999 = vmatprep.subr.bf16.mxu0 %v4243_v61 }
 0x17c   : > { %4000 = vmatpush3.bf16.msra.mxu0 %v4244_v0 }
 0x17d   : > { %4001 = vmatprep.subr.bf16.mxu0 %v4245_v2 }
 0x180   : > { %4002 = vmatpush3.bf16.msra.mxu0 %v4246_v3 }
 0x181   : > { %4003 = vmatprep.subr.bf16.mxu0 %v4247_v4 }
 0x184   : > { %4004 = vmatpush3.bf16.msra.mxu0 %v4248_v5 }
 0x187   : > { %3171 = vmatmul.mubr.bf16.vlgmr.msra.gmra.mrb[16].mxu0 %v3036_v8 }
 0x1da   : > { %v3829_v15 = vpop.f32.mrb[0].mxu0 }
 0x1db   : > { %v3851_v9 = vpop.f32.mrb[0].mxu1  ;;  %v3830_v16 = vpop.f32.mrb[1].mxu0 }
 0x1dc   : > { %v3852_v10 = vpop.f32.mrb[1].mxu1  ;;  %v3831_v17 = vadd.f32 %v3830_v16, %v3829_v15  ;;  %v3832_v18 = vpop.f32.mrb[2].mxu0  ;;  %v3809_v16 = vld [vmem:[%s1442_s17] ss:$0 sm:$0xff] }
 0x1dd   : > { %v3853_v11 = vadd.f32 %v3852_v10, %v3851_v9  ;;  %v3854_v12 = vpop.f32.mrb[2].mxu1  ;;  %v3833_v19 = vpop.f32.mrb[3].mxu0 }
 0x1de   : > { %v3855_v13 = vpop.f32.mrb[3].mxu1  ;;  %v3834_v21 = vadd.f32 %v3833_v19, %v3832_v18 }
 0x1df   : > { %v3856_v14 = vadd.f32 %v3855_v13, %v3854_v12  ;;  %v1828_v20 = vadd.f32 %v3853_v11, %v3831_v17  ;;  %v3808_v12 = vld [vmem:[%s1439_s28] ss:$0 sm:$0xff] }
 0x1e1   : > { %v1831_v22 = vadd.f32 %v3856_v14, %v3834_v21 }
 0x1fa   : > { %v3873_v29 = vpop.f32.mrb[4].mxu0 }
 0x1fb   : > { %v3895_v24 = vpop.f32.mrb[4].mxu1  ;;  %v3874_v31 = vpop.f32.mrb[5].mxu0 }
 0x1fc   : > { %v3896_v25 = vpop.f32.mrb[5].mxu1  ;;  %v3875_v32 = vadd.f32 %v3874_v31, %v3873_v29  ;;  %v3876_v33 = vpop.f32.mrb[6].mxu0  ;;  %v3239_v31 = vld [vmem:[%s5234_s14] sm:$0xf] (%p4417_p9) }
 0x1fd   : > { %v3897_v26 = vadd.f32 %v3896_v25, %v3895_v24  ;;  %v3898_v27 = vpop.f32.mrb[6].mxu1  ;;  %v3877_v34 = vpop.f32.mrb[7].mxu0  ;;  %3240 = vst [vmem:[%s3223_s7] sm:$0xf] (%p4417_p9), %v3239_v31 }
 0x1fe   : > { %v3899_v28 = vpop.f32.mrb[7].mxu1  ;;  %v2019_v35 = vadd.f32 %v3875_v32, %v1828_v20  ;;  %v3878_v36 = vadd.f32 %v3877_v34, %v3876_v33  ;;  %v3241_v32 = vld [vmem:[%s5234_s14 + $0x4] sm:$0xf] (%p4417_p9)  ;;  %v3245_v34 = vld [vmem:[%s5234_s14 + $0xc] sm:$0xf] (%p4417_p9) }
 0x1ff   : > { %v3900_v30 = vadd.f32 %v3899_v28, %v3898_v27  ;;  %3242 = vst [vmem:[%s3223_s7 + $0x10] sm:$0xf] (%p4417_p9), %v3241_v32  ;;  %3246 = vst [vmem:[%s3223_s7 + $0x30] sm:$0xf] (%p4417_p9), %v3245_v34 }
 0x200   : > { %v2020_v37 = vadd.f32 %v3878_v36, %v1831_v22  ;;  %v2199_v38 = vadd.f32 %v3897_v26, %v2019_v35  ;;  %v3247_v35 = vld [vmem:[%s5234_s14 + $0x10] sm:$0xf] (%p4417_p9) }
 0x201   : > { %3248 = vst [vmem:[%s3223_s7 + $0x40] sm:$0xf] (%p4417_p9), %v3247_v35 }
 0x202   : > { %v2200_v39 = vadd.f32 %v3900_v30, %v2020_v37 }
 0x21a   : > { %v3917_v40 = vpop.f32.mrb[8].mxu0 }
 0x21b   : > { %v3939_v58 = vpop.f32.mrb[8].mxu1  ;;  %v3918_v41 = vpop.f32.mrb[9].mxu0 }
 0x21c   : > { %v3940_v42 = vpop.f32.mrb[9].mxu1  ;;  %v3919_v43 = vadd.f32 %v3918_v41, %v3917_v40  ;;  %v3920_v44 = vpop.f32.mrb[10].mxu0 }
 0x21d   : > { %v3941_v45 = vadd.f32 %v3940_v42, %v3939_v58  ;;  %v3942_v46 = vpop.f32.mrb[10].mxu1  ;;  %v3921_v47 = vpop.f32.mrb[11].mxu0 }
 0x21e   : > { %v3943_v48 = vpop.f32.mrb[11].mxu1  ;;  %v2413_v49 = vadd.f32 %v3919_v43, %v2199_v38  ;;  %v3922_v50 = vadd.f32 %v3921_v47, %v3920_v44 }
 0x21f   : > { %v3944_v51 = vadd.f32 %v3943_v48, %v3942_v46 }
 0x220   : > { %v2414_v52 = vadd.f32 %v3922_v50, %v2200_v39  ;;  %v2599_v53 = vadd.f32 %v3941_v45, %v2413_v49 }
 0x222   : > { %v2600_v54 = vadd.f32 %v3944_v51, %v2414_v52 }
 0x23a   : > { %v3961_v55 = vpop.f32.mrb[12].mxu0 }
 0x23b   : > { %v3962_v56 = vpop.f32.mrb[13].mxu0  ;;  %v3983_v62 = vpop.f32.mrb[12].mxu1 }
 0x23c   : > { %v3963_v57 = vadd.f32 %v3962_v56, %v3961_v55  ;;  %v3964_v59 = vpop.f32.mrb[14].mxu0  ;;  %v3984_v0 = vpop.f32.mrb[13].mxu1 }
 0x23d   : > { %v3965_v60 = vpop.f32.mrb[15].mxu0  ;;  %v3985_v3 = vadd.f32 %v3984_v0, %v3983_v62  ;;  %v3986_v1 = vpop.f32.mrb[14].mxu1 }
 0x23e   : > { %v2779_v61 = vadd.f32 %v3963_v57, %v2599_v53  ;;  %v3966_v63 = vadd.f32 %v3965_v60, %v3964_v59  ;;  %v3987_v4 = vpop.f32.mrb[15].mxu1 }
 0x23f   : > { %v3988_v6 = vadd.f32 %v3987_v4, %v3986_v1 }
 0x240   : > { %v2780_v2 = vadd.f32 %v3966_v63, %v2600_v54  ;;  %v2993_v5 = vadd.f32 %v3985_v3, %v2779_v61 }
 0x242   : > { %v2994_v7 = vadd.f32 %v3988_v6, %v2780_v2 }
 0x25a   : > { %v4005_v8 = vpop.f32.mrb[16].mxu0 }
 0x25b   : > { %v4006_v9 = vpop.f32.mrb[17].mxu0 }
 0x25c   : > { %v4007_v10 = vadd.f32 %v4006_v9, %v4005_v8  ;;  %v4008_v11 = vpop.f32.mrb[18].mxu0 }
 0x25d   : > { %v4009_v13 = vpop.f32.mrb[19].mxu0 }
 0x25e   : > { %v3179_v14 = vadd.f32 %v4007_v10, %v2993_v5  ;;  %v4010_v15 = vadd.f32 %v4009_v13, %v4008_v11 }
 0x260   : > { %v3187_v17 = vmul.f32 %v3808_v12, %v3179_v14  ;;  %v3180_v18 = vadd.f32 %v4010_v15, %v2994_v7 }
 0x262   : > { %v3195_v19 = vadd.f32 %v3809_v16, %v3187_v17  ;;  %v3188_v20 = vmul.f32 %v3808_v12, %v3180_v18 }
 0x264   : > { %v3196_v21 = vadd.f32 %v3809_v16, %v3188_v20  ;;  %v3197_v22 = vmax.f32 %v3195_v19, 0.0 }
 0x266   : > { %v3198_v23 = vmax.f32 %v3196_v21, 0.0 }
 0x268   : > { %v3199_v24 = vmax.f32 %v3197_v22, %v3198_v23 }
 0x26a   : > { %v3201_v25 = vrot.slane %v3199_v24, 1 }
 0x26c   : > { %v3203_v26 = vmax.f32 %v3199_v24, %v3201_v25 }
 0x26e   : > { %v3205_v27 = vrot.slane %v3203_v26, 7  ;;  %3219 = sbr.rel (!%p4417_p9) target bundleno = 637 (0x27d), region = 81 }
 0x270   : > { %v3208_v28 = vsel %vm3207_vm2, 0.0, %v3205_v27 }
 0x271   : > { %v3210_v29 = vsel %vm3209_vm3, %v3208_v28, 0.0 }
 0x272   : > { %v3211_v30 = vpack.c.bf16 %v3210_v29, %v3210_v29 }
 0x274   : > { %3212 = vst [vmem:[%s5234_s14 + $0x8] sm:$0xf] %v3211_v30 }
 0x27b   : > { %v3243_v33 = vld [vmem:[%s5234_s14 + $0x8] sm:$0xf] }
 0x27c   : > { %3244 = vst [vmem:[%s3223_s7 + $0x20] sm:$0xf] %v3243_v33 }
 0x27d PF: > { %s14_s23 = sadd.s32 1, %s4321_s23   ;;  %s5295_s15 = smov %s4293_s16 }
 0x27e   : > { %p11_p2 = scmp.ge.s32.totalorder %s14_s23, 10   ;;  %s5296_s16 = smov %s4425_s9 }
 0x27f   : > { %s5297_s17 = smov %s4301_s18  ;;  %s5298_s18 = smov %s4422_s8 }
 0x280   : > { %s5299_s19 = smov %s4313_s21  ;;  %s5300_s20 = smov %s4317_s22 }
 0x281   : > { %s5301_s21 = smov %s5304_s24  ;;  %s5302_s22 = smov %s5308_s25 }
 0x282   :  { %13 = sbr.rel (!%p11_p2) target bundleno = 5 (0x5), region = 170 }

</bundles_post_ra>
